<compile_context>
chip_gen: v7x
topology: tpu7x:2x2x1
jax: 0.10.0
libtpu: 0.0.40
codegen_flags: <defaults>
</compile_context>

<pallas_src>
import jax
import jax.numpy as jnp
from jax.experimental import pallas as pl
from jax.experimental.pallas import tpu as pltpu

_EPS = 1e-5
_PARALLEL = pltpu.CompilerParams(dimension_semantics=("parallel",))


def _round_up(x, m):
    return ((x + m - 1) // m) * m


# ----------------------------- Pallas kernels ------------------------------ #

def _linear_block1_kernel(z_ref, wl_ref, bl_ref, w1_ref, o_ref):
    # nn.Linear(latent, 384) fused with block1 ConvTranspose2d(384,192,4,1,0):
    # on a 1x1 input the transposed conv is just a second matmul with W1 laid
    # out as (Cin, kh*kw*Cout) -> output columns are (oh, ow, cout).
    h = jnp.dot(z_ref[...].astype(jnp.bfloat16), wl_ref[...],
                preferred_element_type=jnp.float32) + bl_ref[...]
    o_ref[...] = jnp.dot(h.astype(jnp.bfloat16), w1_ref[...],
                         preferred_element_type=jnp.float32)


def _bn_relu_matmul_kernel(x_ref, w_ref, g_ref, b_ref, o_ref):
    # BatchNorm2d (batch statistics, one-pass sum/sumsq, folded scale/shift)
    # + ReLU of the previous layer's conv output, fused with the current
    # layer's stride-decomposed ConvTranspose matmul (Cin, Cout*k*k).
    x = x_ref[...]                                   # (M, Cin) f32, full batch
    inv_m = 1.0 / x.shape[0]
    mean = jnp.sum(x, axis=0, keepdims=True) * inv_m
    var = jnp.sum(x * x, axis=0, keepdims=True) * inv_m - mean * mean
    scale = g_ref[...] * jax.lax.rsqrt(var + _EPS)
    shift = b_ref[...] - mean * scale
    xn = jnp.maximum(x * scale + shift, 0.0)
    o_ref[...] = jnp.dot(xn.astype(jnp.bfloat16), w_ref[...],
                         preferred_element_type=jnp.float32)


def _bias_tanh_kernel(x_ref, b_ref, o_ref):
    # final per-channel bias + tanh on a lane-dense (B*3, H*W) NCHW slab.
    o_ref[...] = jnp.tanh(x_ref[...] + b_ref[...])


# ----------------------------- kernel wrappers ------------------------------ #

def _linear_block1(z, wl, bl, w1):
    B, K = z.shape
    N1 = wl.shape[1]
    N2 = w1.shape[1]
    bm = min(128, _round_up(B, 8))
    return pl.pallas_call(
        _linear_block1_kernel,
        out_shape=jax.ShapeDtypeStruct((B, N2), jnp.float32),
        grid=(pl.cdiv(B, bm),),
        in_specs=[
            pl.BlockSpec((bm, K), lambda i: (i, 0)),
            pl.BlockSpec((K, N1), lambda i: (0, 0)),
            pl.BlockSpec((1, N1), lambda i: (0, 0)),
            pl.BlockSpec((N1, N2), lambda i: (0, 0)),
        ],
        out_specs=pl.BlockSpec((bm, N2), lambda i: (i, 0)),
        compiler_params=_PARALLEL,
    )(z, wl, bl, w1)


def _bn_relu_matmul(x, w, g, b, block_n):
    # Grid over the output-column (N) axis: every tile sees the full (M, Cin)
    # activation, so the BatchNorm statistics stay exact whole-batch stats
    # while the weight / output tiles stream and the axis is megacore-parallel.
    # TODO(synk): for very large batches (activation no longer VMEM resident)
    # also tile M and switch BN to a sum/sumsq accumulator + second pass.
    M, C = x.shape
    N = w.shape[1]
    return pl.pallas_call(
        _bn_relu_matmul_kernel,
        out_shape=jax.ShapeDtypeStruct((M, N), jnp.float32),
        grid=(pl.cdiv(N, block_n),),
        in_specs=[
            pl.BlockSpec((M, C), lambda j: (0, 0)),
            pl.BlockSpec((C, block_n), lambda j: (0, j)),
            pl.BlockSpec((1, C), lambda j: (0, 0)),
            pl.BlockSpec((1, C), lambda j: (0, 0)),
        ],
        out_specs=pl.BlockSpec((M, block_n), lambda j: (0, j)),
        compiler_params=_PARALLEL,
    )(x, w, g, b)


def _bias_tanh(x, bias_col):
    M, N = x.shape
    bm = min(256, _round_up(M, 8))
    return pl.pallas_call(
        _bias_tanh_kernel,
        out_shape=jax.ShapeDtypeStruct((M, N), jnp.float32),
        grid=(pl.cdiv(M, bm),),
        in_specs=[
            pl.BlockSpec((bm, N), lambda i: (i, 0)),
            pl.BlockSpec((bm, 1), lambda i: (i, 0)),
        ],
        out_specs=pl.BlockSpec((bm, N), lambda i: (i, 0)),
        compiler_params=_PARALLEL,
    )(x, bias_col)


# ------------------------------- JAX glue ----------------------------------- #

def _overlap_add_stride2(y, B, H, W, C):
    """Scatter-add the per-input-position tap products of a (k=4, s=2, p=1)
    ConvTranspose2d into its (B, 2H, 2W, C) channel-last output.

    y: (B*H*W, 16*C) matmul output, columns ordered (kh, kw, c).
    Pure layout work (a few shifted adds + interleaves) done in plain JAX.
    """
    y = y.reshape(B, H, W, 4, 4, C)
    # rows: even output row 2j   <- (ih=j, kh=1) + (ih=j-1, kh=3)
    #       odd  output row 2j+1 <- (ih=j, kh=2) + (ih=j+1, kh=0)
    r_even = y[:, :, :, 1]
    r_even = r_even.at[:, 1:].add(y[:, :-1, :, 3])
    r_odd = y[:, :, :, 2]
    r_odd = r_odd.at[:, :-1].add(y[:, 1:, :, 0])
    rows = jnp.stack([r_even, r_odd], axis=2).reshape(B, 2 * H, W, 4, C)
    # columns: same combine along kw
    c_even = rows[:, :, :, 1]
    c_even = c_even.at[:, :, 1:].add(rows[:, :, :-1, 3])
    c_odd = rows[:, :, :, 2]
    c_odd = c_odd.at[:, :, :-1].add(rows[:, :, 1:, 0])
    return jnp.stack([c_even, c_odd], axis=3).reshape(B, 2 * H, 2 * W, C)


def _convt_weight_mat(w):
    """torch ConvTranspose2d weight (Cin, Cout, k, k) -> (Cin, k*k*Cout), with
    columns ordered (kh, kw, cout); bf16 for the MXU fast path."""
    cin, cout, k, _ = w.shape
    return w.transpose(0, 2, 3, 1).reshape(cin, k * k * cout).astype(jnp.bfloat16)


def prepare_params(params):
    """One-time weight transforms (not re-run inside the traced forward)."""
    return {
        "lin_w_t": params["lin_w"].T.astype(jnp.bfloat16),      # (latent, 384)
        "lin_b": params["lin_b"][None, :].astype(jnp.float32),  # (1, 384)
        "w1": _convt_weight_mat(params["block1_w"]),            # (384, 3072)
        "w2": _convt_weight_mat(params["block2_w"]),            # (192, 1536)
        "w3": _convt_weight_mat(params["block3_w"]),            # (96, 768)
        "w4": _convt_weight_mat(params["final_w"]),             # (48, 48)
        "g1": params["block1_g"][None, :], "b1": params["block1_b"][None, :],
        "g2": params["block2_g"][None, :], "b2": params["block2_b"][None, :],
        "g3": params["block3_g"][None, :], "b3": params["block3_b"][None, :],
        "final_b": params["final_b"].astype(jnp.float32),       # (3,)
    }


def generator_forward(fp, z):
    B = z.shape[0]

    # linear + block1 (ConvTranspose2d on 1x1 input == matmul) -> (B, 3072)
    y1 = _linear_block1(z, fp["lin_w_t"], fp["lin_b"], fp["w1"])
    x1 = y1.reshape(B * 16, 192)            # (B,4,4,192) channel-last, flat

    # BN1 + ReLU + block2 matmul, overlap-add -> (B, 8, 8, 96)
    y2 = _bn_relu_matmul(x1, fp["w2"], fp["g1"], fp["b1"], block_n=768)
    x2 = _overlap_add_stride2(y2, B, 4, 4, 96).reshape(B * 64, 96)

    # BN2 + ReLU + block3 matmul, overlap-add -> (B, 16, 16, 48)
    y3 = _bn_relu_matmul(x2, fp["w3"], fp["g2"], fp["b2"], block_n=384)
    x3 = _overlap_add_stride2(y3, B, 8, 8, 48).reshape(B * 256, 48)

    # BN3 + ReLU + final matmul, overlap-add -> (B, 32, 32, 3)
    y4 = _bn_relu_matmul(x3, fp["w4"], fp["g3"], fp["b3"], block_n=48)
    x4 = _overlap_add_stride2(y4, B, 16, 16, 3)

    # final per-channel bias + tanh on a lane-dense (B*3, 1024) NCHW slab
    x4 = x4.transpose(0, 3, 1, 2).reshape(B * 3, 32 * 32)
    bias_col = jnp.tile(fp["final_b"], B)[:, None]
    img = _bias_tanh(x4, bias_col)
    return img.reshape(B, 3, 32, 32)


# --------------------------- deterministic params --------------------------- #

def init_params(key, latent_dim=110):
    ks = jax.random.split(key, 13)

    def nrm(k, shape, scale=0.05):
        return scale * jax.random.normal(k, shape, jnp.float32)

    return {
        # nn.Linear(latent_dim, 384)
        "lin_w": nrm(ks[0], (384, latent_dim)),
        "lin_b": nrm(ks[1], (384,)),
        # ConvTranspose2d weights have shape (Cin, Cout, k, k)
        "block1_w": nrm(ks[2], (384, 192, 4, 4)),
        "block1_g": 1.0 + nrm(ks[3], (192,), 0.1),
        "block1_b": nrm(ks[4], (192,), 0.1),
        "block2_w": nrm(ks[5], (192, 96, 4, 4)),
        "block2_g": 1.0 + nrm(ks[6], (96,), 0.1),
        "block2_b": nrm(ks[7], (96,), 0.1),
        "block3_w": nrm(ks[8], (96, 48, 4, 4)),
        "block3_g": 1.0 + nrm(ks[9], (48,), 0.1),
        "block3_b": nrm(ks[10], (48,), 0.1),
        "final_w": nrm(ks[11], (48, 3, 4, 4)),
        "final_b": nrm(ks[12], (3,), 0.1),
    }


# ------------------------- plain-JAX reference check ------------------------ #

def _convt_ref(x, w, s, p):
    # ConvTranspose2d(x NCHW, torch weight (Cin, Cout, k, k), stride s, pad p)
    k = w.shape[2]
    wk = jnp.flip(w, (2, 3)).transpose(1, 0, 2, 3)      # OIHW
    return jax.lax.conv_general_dilated(
        x, wk, window_strides=(1, 1),
        padding=[(k - 1 - p, k - 1 - p)] * 2,
        lhs_dilation=(s, s),
        dimension_numbers=("NCHW", "OIHW", "NCHW"),
        preferred_element_type=jnp.float32)


def reference_forward(params, z):
    """Plain-JAX reference (same bf16 matmul inputs as the kernels)."""
    bf = jnp.bfloat16
    h = jnp.dot(z.astype(bf), params["lin_w"].T.astype(bf),
                preferred_element_type=jnp.float32) + params["lin_b"]
    x = h.reshape(z.shape[0], 384, 1, 1)
    for name, s, p in (("block1", 1, 0), ("block2", 2, 1), ("block3", 2, 1)):
        y = _convt_ref(x.astype(bf), params[name + "_w"].astype(bf), s, p)
        mean = jnp.mean(y, axis=(0, 2, 3), keepdims=True)
        var = jnp.var(y, axis=(0, 2, 3), keepdims=True)
        yn = (y - mean) * jax.lax.rsqrt(var + _EPS)
        x = jnp.maximum(yn * params[name + "_g"][None, :, None, None]
                        + params[name + "_b"][None, :, None, None], 0.0)
    y = _convt_ref(x.astype(bf), params["final_w"].astype(bf), 2, 1)
    return jnp.tanh(y + params["final_b"][None, :, None, None])


if __name__ == "__main__":
    key = jax.random.PRNGKey(0)
    pkey, zkey = jax.random.split(key)
    params = init_params(pkey, latent_dim=110)
    fp = prepare_params(params)
    z = jax.random.normal(zkey, (2, 110), jnp.float32)  # B x 110 latent

    img = jax.jit(generator_forward)(fp, z)
    img = jax.block_until_ready(img)

    assert img.shape == (2, 3, 32, 32), img.shape
    assert bool(jnp.all(jnp.isfinite(img)))
    assert bool(jnp.all(jnp.abs(img) <= 1.0))  # tanh output range

    # Cross-check the stride-decomposed Pallas lowering against a plain-JAX
    # lax.conv_general_dilated reference at matching (bf16-input) precision.
    ref = jax.jit(reference_forward)(params, z)
    err = float(jnp.max(jnp.abs(img - ref)))
    assert err < 2e-2, f"mismatch vs reference: {err}"

    print("KERNEL_OK")
</pallas_src>

<mosaic_0001>
module attributes {stable_mosaic.version = 11 : i64} {
  func.func @_linear_block1_kernel(%arg0: i32, %arg1: memref<8x110xf32, #tpu.memory_space<vmem>>, %arg2: memref<110x384xbf16, #tpu.memory_space<vmem>>, %arg3: memref<1x384xf32, #tpu.memory_space<vmem>>, %arg4: memref<384x3072xbf16, #tpu.memory_space<vmem>>, %arg5: memref<8x3072xf32, #tpu.memory_space<vmem>>) attributes {dimension_semantics = [#tpu.dimension_semantics<parallel>], iteration_bounds = array<i64: 1>, scalar_prefetch = 0 : i64, scratch_operands = 0 : i64, tpu.core_type = #tpu.core_type<tc>, window_params = [{transform_indices = @transform_0, window_bounds = array<i64: 8, 110>}, {pipeline_mode = #tpu.pipeline_mode<synchronous>, transform_indices = @transform_1, window_bounds = array<i64: 110, 384>}, {pipeline_mode = #tpu.pipeline_mode<synchronous>, transform_indices = @transform_2, window_bounds = array<i64: 1, 384>}, {pipeline_mode = #tpu.pipeline_mode<synchronous>, transform_indices = @transform_3, window_bounds = array<i64: 384, 3072>}, {transform_indices = @transform_4, window_bounds = array<i64: 8, 3072>}]} {
    %c0 = arith.constant 0 : index
    %c0_0 = arith.constant 0 : index
    %0 = vector.load %arg1[%c0, %c0_0] : memref<8x110xf32, #tpu.memory_space<vmem>>, vector<8x110xf32>
    %1 = arith.truncf %0 : vector<8x110xf32> to vector<8x110xbf16>
    %c0_1 = arith.constant 0 : index
    %c0_2 = arith.constant 0 : index
    %2 = vector.load %arg2[%c0_1, %c0_2] : memref<110x384xbf16, #tpu.memory_space<vmem>>, vector<110x384xbf16>
    %cst = arith.constant dense<0.000000e+00> : vector<8x384xf32>
    %3 = tpu.matmul %1, %2, %cst {dimension_numbers = #tpu.dot_dimension_numbers<[1], [0], [0], [1], [0, 0, 1, 1], [], []>} : vector<8x110xbf16>, vector<110x384xbf16>, vector<8x384xf32> -> vector<8x384xf32>
    %c0_3 = arith.constant 0 : index
    %c0_4 = arith.constant 0 : index
    %4 = vector.load %arg3[%c0_3, %c0_4] : memref<1x384xf32, #tpu.memory_space<vmem>>, vector<1x384xf32>
    %5 = vector.broadcast %4 : vector<1x384xf32> to vector<8x384xf32>
    %6 = arith.addf %3, %5 : vector<8x384xf32>
    %7 = arith.truncf %6 : vector<8x384xf32> to vector<8x384xbf16>
    %c0_5 = arith.constant 0 : index
    %c0_6 = arith.constant 0 : index
    %8 = vector.load %arg4[%c0_5, %c0_6] : memref<384x3072xbf16, #tpu.memory_space<vmem>>, vector<384x3072xbf16>
    %cst_7 = arith.constant dense<0.000000e+00> : vector<8x3072xf32>
    %9 = tpu.matmul %7, %8, %cst_7 {dimension_numbers = #tpu.dot_dimension_numbers<[1], [0], [0], [1], [0, 0, 1, 1], [], []>} : vector<8x384xbf16>, vector<384x3072xbf16>, vector<8x3072xf32> -> vector<8x3072xf32>
    %c0_8 = arith.constant 0 : index
    %c0_9 = arith.constant 0 : index
    %10 = vector.load %arg5[%c0_8, %c0_9] : memref<8x3072xf32, #tpu.memory_space<vmem>>, vector<8x3072xf32>
    tpu.vector_store %arg5[%c0_8, %c0_9], %9 {strides = array<i32>} : memref<8x3072xf32, #tpu.memory_space<vmem>>, vector<8x3072xf32>,
    return
  }
  func.func @transform_0(%arg0: i32) -> (i32, i32) {
    %c0_i32 = arith.constant 0 : i32
    %c0_i32_0 = arith.constant 0 : i32
    return %arg0, %c0_i32 : i32, i32
  }
  func.func @transform_1(%arg0: i32) -> (i32, i32) {
    %c0_i32 = arith.constant 0 : i32
    %c0_i32_0 = arith.constant 0 : i32
    %c0_i32_1 = arith.constant 0 : i32
    return %c0_i32, %c0_i32_0 : i32, i32
  }
  func.func @transform_2(%arg0: i32) -> (i32, i32) {
    %c0_i32 = arith.constant 0 : i32
    %c0_i32_0 = arith.constant 0 : i32
    %c0_i32_1 = arith.constant 0 : i32
    return %c0_i32, %c0_i32_0 : i32, i32
  }
  func.func @transform_3(%arg0: i32) -> (i32, i32) {
    %c0_i32 = arith.constant 0 : i32
    %c0_i32_0 = arith.constant 0 : i32
    %c0_i32_1 = arith.constant 0 : i32
    return %c0_i32, %c0_i32_0 : i32, i32
  }
  func.func @transform_4(%arg0: i32) -> (i32, i32) {
    %c0_i32 = arith.constant 0 : i32
    %c0_i32_0 = arith.constant 0 : i32
    return %arg0, %c0_i32 : i32, i32
  }
}

module attributes {stable_mosaic.version = 11 : i64} {
  func.func @_bn_relu_matmul_kernel(%arg0: i32, %arg1: memref<32x192xf32, #tpu.memory_space<vmem>>, %arg2: memref<192x768xbf16, #tpu.memory_space<vmem>>, %arg3: memref<1x192xf32, #tpu.memory_space<vmem>>, %arg4: memref<1x192xf32, #tpu.memory_space<vmem>>, %arg5: memref<32x768xf32, #tpu.memory_space<vmem>>) attributes {dimension_semantics = [#tpu.dimension_semantics<parallel>], iteration_bounds = array<i64: 2>, scalar_prefetch = 0 : i64, scratch_operands = 0 : i64, tpu.core_type = #tpu.core_type<tc>, window_params = [{pipeline_mode = #tpu.pipeline_mode<synchronous>, transform_indices = @transform_0, window_bounds = array<i64: 32, 192>}, {transform_indices = @transform_1, window_bounds = array<i64: 192, 768>}, {pipeline_mode = #tpu.pipeline_mode<synchronous>, transform_indices = @transform_2, window_bounds = array<i64: 1, 192>}, {pipeline_mode = #tpu.pipeline_mode<synchronous>, transform_indices = @transform_3, window_bounds = array<i64: 1, 192>}, {transform_indices = @transform_4, window_bounds = array<i64: 32, 768>}]} {
    %c0 = arith.constant 0 : index
    %c0_0 = arith.constant 0 : index
    %0 = vector.load %arg1[%c0, %c0_0] : memref<32x192xf32, #tpu.memory_space<vmem>>, vector<32x192xf32>
    %cst = arith.constant dense<0.000000e+00> : vector<192xf32>
    %1 = vector.multi_reduction <add>, %0, %cst [0] : vector<32x192xf32> to vector<192xf32>
    %2 = vector.shape_cast %1 : vector<192xf32> to vector<1x192xf32>
    %cst_1 = arith.constant 3.125000e-02 : f32
    %3 = vector.broadcast %cst_1 : f32 to vector<1x192xf32>
    %4 = arith.mulf %2, %3 : vector<1x192xf32>
    %5 = arith.mulf %0, %0 : vector<32x192xf32>
    %cst_2 = arith.constant dense<0.000000e+00> : vector<192xf32>
    %6 = vector.multi_reduction <add>, %5, %cst_2 [0] : vector<32x192xf32> to vector<192xf32>
    %7 = vector.shape_cast %6 : vector<192xf32> to vector<1x192xf32>
    %cst_3 = arith.constant 3.125000e-02 : f32
    %8 = vector.broadcast %cst_3 : f32 to vector<1x192xf32>
    %9 = arith.mulf %7, %8 : vector<1x192xf32>
    %10 = arith.mulf %4, %4 : vector<1x192xf32>
    %11 = arith.subf %9, %10 : vector<1x192xf32>
    %c0_4 = arith.constant 0 : index
    %c0_5 = arith.constant 0 : index
    %12 = vector.load %arg3[%c0_4, %c0_5] : memref<1x192xf32, #tpu.memory_space<vmem>>, vector<1x192xf32>
    %cst_6 = arith.constant 9.99999974E-6 : f32
    %13 = vector.broadcast %cst_6 : f32 to vector<1x192xf32>
    %14 = arith.addf %11, %13 : vector<1x192xf32>
    %15 = math.rsqrt %14 : vector<1x192xf32>
    %16 = arith.mulf %12, %15 : vector<1x192xf32>
    %c0_7 = arith.constant 0 : index
    %c0_8 = arith.constant 0 : index
    %17 = vector.load %arg4[%c0_7, %c0_8] : memref<1x192xf32, #tpu.memory_space<vmem>>, vector<1x192xf32>
    %18 = arith.mulf %4, %16 : vector<1x192xf32>
    %19 = arith.subf %17, %18 : vector<1x192xf32>
    %20 = vector.broadcast %16 : vector<1x192xf32> to vector<32x192xf32>
    %21 = arith.mulf %0, %20 : vector<32x192xf32>
    %22 = vector.broadcast %19 : vector<1x192xf32> to vector<32x192xf32>
    %23 = arith.addf %21, %22 : vector<32x192xf32>
    %cst_9 = arith.constant 0.000000e+00 : f32
    %24 = vector.broadcast %cst_9 : f32 to vector<32x192xf32>
    %25 = arith.maximumf %23, %24 : vector<32x192xf32>
    %26 = arith.truncf %25 : vector<32x192xf32> to vector<32x192xbf16>
    %c0_10 = arith.constant 0 : index
    %c0_11 = arith.constant 0 : index
    %27 = vector.load %arg2[%c0_10, %c0_11] : memref<192x768xbf16, #tpu.memory_space<vmem>>, vector<192x768xbf16>
    %cst_12 = arith.constant dense<0.000000e+00> : vector<32x768xf32>
    %28 = tpu.matmul %26, %27, %cst_12 {dimension_numbers = #tpu.dot_dimension_numbers<[1], [0], [0], [1], [0, 0, 1, 1], [], []>} : vector<32x192xbf16>, vector<192x768xbf16>, vector<32x768xf32> -> vector<32x768xf32>
    %c0_13 = arith.constant 0 : index
    %c0_14 = arith.constant 0 : index
    %29 = vector.load %arg5[%c0_13, %c0_14] : memref<32x768xf32, #tpu.memory_space<vmem>>, vector<32x768xf32>
    tpu.vector_store %arg5[%c0_13, %c0_14], %28 {strides = array<i32>} : memref<32x768xf32, #tpu.memory_space<vmem>>, vector<32x768xf32>,
    return
  }
  func.func @transform_0(%arg0: i32) -> (i32, i32) {
    %c0_i32 = arith.constant 0 : i32
    %c0_i32_0 = arith.constant 0 : i32
    %c0_i32_1 = arith.constant 0 : i32
    return %c0_i32, %c0_i32_0 : i32, i32
  }
  func.func @transform_1(%arg0: i32) -> (i32, i32) {
    %c0_i32 = arith.constant 0 : i32
    %c0_i32_0 = arith.constant 0 : i32
    return %c0_i32, %arg0 : i32, i32
  }
  func.func @transform_2(%arg0: i32) -> (i32, i32) {
    %c0_i32 = arith.constant 0 : i32
    %c0_i32_0 = arith.constant 0 : i32
    %c0_i32_1 = arith.constant 0 : i32
    return %c0_i32, %c0_i32_0 : i32, i32
  }
  func.func @transform_3(%arg0: i32) -> (i32, i32) {
    %c0_i32 = arith.constant 0 : i32
    %c0_i32_0 = arith.constant 0 : i32
    %c0_i32_1 = arith.constant 0 : i32
    return %c0_i32, %c0_i32_0 : i32, i32
  }
  func.func @transform_4(%arg0: i32) -> (i32, i32) {
    %c0_i32 = arith.constant 0 : i32
    %c0_i32_0 = arith.constant 0 : i32
    return %c0_i32, %arg0 : i32, i32
  }
}

module attributes {stable_mosaic.version = 11 : i64} {
  func.func @_bn_relu_matmul_kernel(%arg0: i32, %arg1: memref<128x96xf32, #tpu.memory_space<vmem>>, %arg2: memref<96x384xbf16, #tpu.memory_space<vmem>>, %arg3: memref<1x96xf32, #tpu.memory_space<vmem>>, %arg4: memref<1x96xf32, #tpu.memory_space<vmem>>, %arg5: memref<128x384xf32, #tpu.memory_space<vmem>>) attributes {dimension_semantics = [#tpu.dimension_semantics<parallel>], iteration_bounds = array<i64: 2>, scalar_prefetch = 0 : i64, scratch_operands = 0 : i64, tpu.core_type = #tpu.core_type<tc>, window_params = [{pipeline_mode = #tpu.pipeline_mode<synchronous>, transform_indices = @transform_0, window_bounds = array<i64: 128, 96>}, {transform_indices = @transform_1, window_bounds = array<i64: 96, 384>}, {pipeline_mode = #tpu.pipeline_mode<synchronous>, transform_indices = @transform_2, window_bounds = array<i64: 1, 96>}, {pipeline_mode = #tpu.pipeline_mode<synchronous>, transform_indices = @transform_3, window_bounds = array<i64: 1, 96>}, {transform_indices = @transform_4, window_bounds = array<i64: 128, 384>}]} {
    %c0 = arith.constant 0 : index
    %c0_0 = arith.constant 0 : index
    %0 = vector.load %arg1[%c0, %c0_0] : memref<128x96xf32, #tpu.memory_space<vmem>>, vector<128x96xf32>
    %cst = arith.constant dense<0.000000e+00> : vector<96xf32>
    %1 = vector.multi_reduction <add>, %0, %cst [0] : vector<128x96xf32> to vector<96xf32>
    %2 = vector.shape_cast %1 : vector<96xf32> to vector<1x96xf32>
    %cst_1 = arith.constant 7.812500e-03 : f32
    %3 = vector.broadcast %cst_1 : f32 to vector<1x96xf32>
    %4 = arith.mulf %2, %3 : vector<1x96xf32>
    %5 = arith.mulf %0, %0 : vector<128x96xf32>
    %cst_2 = arith.constant dense<0.000000e+00> : vector<96xf32>
    %6 = vector.multi_reduction <add>, %5, %cst_2 [0] : vector<128x96xf32> to vector<96xf32>
    %7 = vector.shape_cast %6 : vector<96xf32> to vector<1x96xf32>
    %cst_3 = arith.constant 7.812500e-03 : f32
    %8 = vector.broadcast %cst_3 : f32 to vector<1x96xf32>
    %9 = arith.mulf %7, %8 : vector<1x96xf32>
    %10 = arith.mulf %4, %4 : vector<1x96xf32>
    %11 = arith.subf %9, %10 : vector<1x96xf32>
    %c0_4 = arith.constant 0 : index
    %c0_5 = arith.constant 0 : index
    %12 = vector.load %arg3[%c0_4, %c0_5] : memref<1x96xf32, #tpu.memory_space<vmem>>, vector<1x96xf32>
    %cst_6 = arith.constant 9.99999974E-6 : f32
    %13 = vector.broadcast %cst_6 : f32 to vector<1x96xf32>
    %14 = arith.addf %11, %13 : vector<1x96xf32>
    %15 = math.rsqrt %14 : vector<1x96xf32>
    %16 = arith.mulf %12, %15 : vector<1x96xf32>
    %c0_7 = arith.constant 0 : index
    %c0_8 = arith.constant 0 : index
    %17 = vector.load %arg4[%c0_7, %c0_8] : memref<1x96xf32, #tpu.memory_space<vmem>>, vector<1x96xf32>
    %18 = arith.mulf %4, %16 : vector<1x96xf32>
    %19 = arith.subf %17, %18 : vector<1x96xf32>
    %20 = vector.broadcast %16 : vector<1x96xf32> to vector<128x96xf32>
    %21 = arith.mulf %0, %20 : vector<128x96xf32>
    %22 = vector.broadcast %19 : vector<1x96xf32> to vector<128x96xf32>
    %23 = arith.addf %21, %22 : vector<128x96xf32>
    %cst_9 = arith.constant 0.000000e+00 : f32
    %24 = vector.broadcast %cst_9 : f32 to vector<128x96xf32>
    %25 = arith.maximumf %23, %24 : vector<128x96xf32>
    %26 = arith.truncf %25 : vector<128x96xf32> to vector<128x96xbf16>
    %c0_10 = arith.constant 0 : index
    %c0_11 = arith.constant 0 : index
    %27 = vector.load %arg2[%c0_10, %c0_11] : memref<96x384xbf16, #tpu.memory_space<vmem>>, vector<96x384xbf16>
    %cst_12 = arith.constant dense<0.000000e+00> : vector<128x384xf32>
    %28 = tpu.matmul %26, %27, %cst_12 {dimension_numbers = #tpu.dot_dimension_numbers<[1], [0], [0], [1], [0, 0, 1, 1], [], []>} : vector<128x96xbf16>, vector<96x384xbf16>, vector<128x384xf32> -> vector<128x384xf32>
    %c0_13 = arith.constant 0 : index
    %c0_14 = arith.constant 0 : index
    %29 = vector.load %arg5[%c0_13, %c0_14] : memref<128x384xf32, #tpu.memory_space<vmem>>, vector<128x384xf32>
    tpu.vector_store %arg5[%c0_13, %c0_14], %28 {strides = array<i32>} : memref<128x384xf32, #tpu.memory_space<vmem>>, vector<128x384xf32>,
    return
  }
  func.func @transform_0(%arg0: i32) -> (i32, i32) {
    %c0_i32 = arith.constant 0 : i32
    %c0_i32_0 = arith.constant 0 : i32
    %c0_i32_1 = arith.constant 0 : i32
    return %c0_i32, %c0_i32_0 : i32, i32
  }
  func.func @transform_1(%arg0: i32) -> (i32, i32) {
    %c0_i32 = arith.constant 0 : i32
    %c0_i32_0 = arith.constant 0 : i32
    return %c0_i32, %arg0 : i32, i32
  }
  func.func @transform_2(%arg0: i32) -> (i32, i32) {
    %c0_i32 = arith.constant 0 : i32
    %c0_i32_0 = arith.constant 0 : i32
    %c0_i32_1 = arith.constant 0 : i32
    return %c0_i32, %c0_i32_0 : i32, i32
  }
  func.func @transform_3(%arg0: i32) -> (i32, i32) {
    %c0_i32 = arith.constant 0 : i32
    %c0_i32_0 = arith.constant 0 : i32
    %c0_i32_1 = arith.constant 0 : i32
    return %c0_i32, %c0_i32_0 : i32, i32
  }
  func.func @transform_4(%arg0: i32) -> (i32, i32) {
    %c0_i32 = arith.constant 0 : i32
    %c0_i32_0 = arith.constant 0 : i32
    return %c0_i32, %arg0 : i32, i32
  }
}

module attributes {stable_mosaic.version = 11 : i64} {
  func.func @_bn_relu_matmul_kernel(%arg0: i32, %arg1: memref<512x48xf32, #tpu.memory_space<vmem>>, %arg2: memref<48x48xbf16, #tpu.memory_space<vmem>>, %arg3: memref<1x48xf32, #tpu.memory_space<vmem>>, %arg4: memref<1x48xf32, #tpu.memory_space<vmem>>, %arg5: memref<512x48xf32, #tpu.memory_space<vmem>>) attributes {dimension_semantics = [#tpu.dimension_semantics<parallel>], iteration_bounds = array<i64: 1>, scalar_prefetch = 0 : i64, scratch_operands = 0 : i64, tpu.core_type = #tpu.core_type<tc>, window_params = [{pipeline_mode = #tpu.pipeline_mode<synchronous>, transform_indices = @transform_0, window_bounds = array<i64: 512, 48>}, {transform_indices = @transform_1, window_bounds = array<i64: 48, 48>}, {pipeline_mode = #tpu.pipeline_mode<synchronous>, transform_indices = @transform_2, window_bounds = array<i64: 1, 48>}, {pipeline_mode = #tpu.pipeline_mode<synchronous>, transform_indices = @transform_3, window_bounds = array<i64: 1, 48>}, {transform_indices = @transform_4, window_bounds = array<i64: 512, 48>}]} {
    %c0 = arith.constant 0 : index
    %c0_0 = arith.constant 0 : index
    %0 = vector.load %arg1[%c0, %c0_0] : memref<512x48xf32, #tpu.memory_space<vmem>>, vector<512x48xf32>
    %cst = arith.constant dense<0.000000e+00> : vector<48xf32>
    %1 = vector.multi_reduction <add>, %0, %cst [0] : vector<512x48xf32> to vector<48xf32>
    %2 = vector.shape_cast %1 : vector<48xf32> to vector<1x48xf32>
    %cst_1 = arith.constant 0.001953125 : f32
    %3 = vector.broadcast %cst_1 : f32 to vector<1x48xf32>
    %4 = arith.mulf %2, %3 : vector<1x48xf32>
    %5 = arith.mulf %0, %0 : vector<512x48xf32>
    %cst_2 = arith.constant dense<0.000000e+00> : vector<48xf32>
    %6 = vector.multi_reduction <add>, %5, %cst_2 [0] : vector<512x48xf32> to vector<48xf32>
    %7 = vector.shape_cast %6 : vector<48xf32> to vector<1x48xf32>
    %cst_3 = arith.constant 0.001953125 : f32
    %8 = vector.broadcast %cst_3 : f32 to vector<1x48xf32>
    %9 = arith.mulf %7, %8 : vector<1x48xf32>
    %10 = arith.mulf %4, %4 : vector<1x48xf32>
    %11 = arith.subf %9, %10 : vector<1x48xf32>
    %c0_4 = arith.constant 0 : index
    %c0_5 = arith.constant 0 : index
    %12 = vector.load %arg3[%c0_4, %c0_5] : memref<1x48xf32, #tpu.memory_space<vmem>>, vector<1x48xf32>
    %cst_6 = arith.constant 9.99999974E-6 : f32
    %13 = vector.broadcast %cst_6 : f32 to vector<1x48xf32>
    %14 = arith.addf %11, %13 : vector<1x48xf32>
    %15 = math.rsqrt %14 : vector<1x48xf32>
    %16 = arith.mulf %12, %15 : vector<1x48xf32>
    %c0_7 = arith.constant 0 : index
    %c0_8 = arith.constant 0 : index
    %17 = vector.load %arg4[%c0_7, %c0_8] : memref<1x48xf32, #tpu.memory_space<vmem>>, vector<1x48xf32>
    %18 = arith.mulf %4, %16 : vector<1x48xf32>
    %19 = arith.subf %17, %18 : vector<1x48xf32>
    %20 = vector.broadcast %16 : vector<1x48xf32> to vector<512x48xf32>
    %21 = arith.mulf %0, %20 : vector<512x48xf32>
    %22 = vector.broadcast %19 : vector<1x48xf32> to vector<512x48xf32>
    %23 = arith.addf %21, %22 : vector<512x48xf32>
    %cst_9 = arith.constant 0.000000e+00 : f32
    %24 = vector.broadcast %cst_9 : f32 to vector<512x48xf32>
    %25 = arith.maximumf %23, %24 : vector<512x48xf32>
    %26 = arith.truncf %25 : vector<512x48xf32> to vector<512x48xbf16>
    %c0_10 = arith.constant 0 : index
    %c0_11 = arith.constant 0 : index
    %27 = vector.load %arg2[%c0_10, %c0_11] : memref<48x48xbf16, #tpu.memory_space<vmem>>, vector<48x48xbf16>
    %cst_12 = arith.constant dense<0.000000e+00> : vector<512x48xf32>
    %28 = tpu.matmul %26, %27, %cst_12 {dimension_numbers = #tpu.dot_dimension_numbers<[1], [0], [0], [1], [0, 0, 1, 1], [], []>} : vector<512x48xbf16>, vector<48x48xbf16>, vector<512x48xf32> -> vector<512x48xf32>
    %c0_13 = arith.constant 0 : index
    %c0_14 = arith.constant 0 : index
    %29 = vector.load %arg5[%c0_13, %c0_14] : memref<512x48xf32, #tpu.memory_space<vmem>>, vector<512x48xf32>
    tpu.vector_store %arg5[%c0_13, %c0_14], %28 {strides = array<i32>} : memref<512x48xf32, #tpu.memory_space<vmem>>, vector<512x48xf32>,
    return
  }
  func.func @transform_0(%arg0: i32) -> (i32, i32) {
    %c0_i32 = arith.constant 0 : i32
    %c0_i32_0 = arith.constant 0 : i32
    %c0_i32_1 = arith.constant 0 : i32
    return %c0_i32, %c0_i32_0 : i32, i32
  }
  func.func @transform_1(%arg0: i32) -> (i32, i32) {
    %c0_i32 = arith.constant 0 : i32
    %c0_i32_0 = arith.constant 0 : i32
    return %c0_i32, %arg0 : i32, i32
  }
  func.func @transform_2(%arg0: i32) -> (i32, i32) {
    %c0_i32 = arith.constant 0 : i32
    %c0_i32_0 = arith.constant 0 : i32
    %c0_i32_1 = arith.constant 0 : i32
    return %c0_i32, %c0_i32_0 : i32, i32
  }
  func.func @transform_3(%arg0: i32) -> (i32, i32) {
    %c0_i32 = arith.constant 0 : i32
    %c0_i32_0 = arith.constant 0 : i32
    %c0_i32_1 = arith.constant 0 : i32
    return %c0_i32, %c0_i32_0 : i32, i32
  }
  func.func @transform_4(%arg0: i32) -> (i32, i32) {
    %c0_i32 = arith.constant 0 : i32
    %c0_i32_0 = arith.constant 0 : i32
    return %c0_i32, %arg0 : i32, i32
  }
}

module attributes {stable_mosaic.version = 11 : i64} {
  func.func @_bias_tanh_kernel(%arg0: i32, %arg1: memref<8x1024xf32, #tpu.memory_space<vmem>>, %arg2: memref<8x1xf32, #tpu.memory_space<vmem>>, %arg3: memref<8x1024xf32, #tpu.memory_space<vmem>>) attributes {dimension_semantics = [#tpu.dimension_semantics<parallel>], iteration_bounds = array<i64: 1>, scalar_prefetch = 0 : i64, scratch_operands = 0 : i64, tpu.core_type = #tpu.core_type<tc>, window_params = [{transform_indices = @transform_0, window_bounds = array<i64: 8, 1024>}, {transform_indices = @transform_1, window_bounds = array<i64: 8, 1>}, {transform_indices = @transform_2, window_bounds = array<i64: 8, 1024>}]} {
    %c0 = arith.constant 0 : index
    %c0_0 = arith.constant 0 : index
    %0 = vector.load %arg1[%c0, %c0_0] : memref<8x1024xf32, #tpu.memory_space<vmem>>, vector<8x1024xf32>
    %c0_1 = arith.constant 0 : index
    %c0_2 = arith.constant 0 : index
    %1 = vector.load %arg2[%c0_1, %c0_2] : memref<8x1xf32, #tpu.memory_space<vmem>>, vector<8x1xf32>
    %2 = vector.broadcast %1 : vector<8x1xf32> to vector<8x1024xf32>
    %3 = arith.addf %0, %2 : vector<8x1024xf32>
    %4 = math.tanh %3 : vector<8x1024xf32>
    %c0_3 = arith.constant 0 : index
    %c0_4 = arith.constant 0 : index
    %5 = vector.load %arg3[%c0_3, %c0_4] : memref<8x1024xf32, #tpu.memory_space<vmem>>, vector<8x1024xf32>
    tpu.vector_store %arg3[%c0_3, %c0_4], %4 {strides = array<i32>} : memref<8x1024xf32, #tpu.memory_space<vmem>>, vector<8x1024xf32>,
    return
  }
  func.func @transform_0(%arg0: i32) -> (i32, i32) {
    %c0_i32 = arith.constant 0 : i32
    %c0_i32_0 = arith.constant 0 : i32
    return %arg0, %c0_i32 : i32, i32
  }
  func.func @transform_1(%arg0: i32) -> (i32, i32) {
    %c0_i32 = arith.constant 0 : i32
    %c0_i32_0 = arith.constant 0 : i32
    return %arg0, %c0_i32 : i32, i32
  }
  func.func @transform_2(%arg0: i32) -> (i32, i32) {
    %c0_i32 = arith.constant 0 : i32
    %c0_i32_0 = arith.constant 0 : i32
    return %arg0, %c0_i32 : i32, i32
  }
}

</mosaic_0001>

<bundles_post_ra>
// kernel: generator_forward.6
= control target key start
LH: loop header
LB: loop body
LE: loop exit
PB: predicated region body
PF: predicated region fallthrough
CT: control target
= control target key end

     0   :  { %s1575_s15 = smov 0   ;;  %s1577_s16 = smov 0   ;;  %s2049_s0 = inlined_call_operand.vmem [shape: f32[32,192], index: 0, kind: input, shape index: {}]   ;;  %s2050_s1 = inlined_call_operand.vmem [shape: bf16[192,1536], index: 1, kind: input, shape index: {}]   ;;  %s2051_s2 = inlined_call_operand.vmem [shape: f32[1,192], index: 2, kind: input, shape index: {}]   ;;  %s2052_s3 = inlined_call_operand.vmem [shape: f32[1,192], index: 3, kind: input, shape index: {}]   ;;  %s2053_s4 = inlined_call_operand.vmem [shape: f32[32,1536], index: 4, kind: output, shape index: {}]  }
   0x1   :  { %s1579_s17 = smov 0  }
   0x2 LB: > { %s1272_s18 = sadd.s32 4294967295, %s1547_s17   ;;  %s1592_s19 = sadd.s32 1, %s1547_s17   ;;  %s1547_s17 = sphi %s1579_s17, %s2057_s17   ;;  %s1543_s16 = sphi %s1577_s16, %s2056_s16   ;;  %s1539_s15 = sphi %s1575_s15, %s2055_s15  }
   0x3   : > { %s39_s20 = ssub.s32 %s1547_s17, %s1592_s19  ;;  %s42_s21 = sadd.s32 1, %s1543_s16 }
   0x4   : > { %p40_p0 = scmp.eq.s32.totalorder %s39_s20, 0  ;;  %p49_p1 = scmp.ne.s32.totalorder %s1543_s16, %s1539_s15 }
   0x5   : > { %p50_p2 = scmp.eq.s32.totalorder %s1547_s17, 0  ;;  %p121_p3 = scmp.eq.s32.totalorder %s1272_s18, 1 }
   0x6   : > { %s1603_s22 = scalar_select %p40_p0, %s1543_s16, %s42_s21  }
   0x7   : > { %p51_p4 = por %p50_p2, %p49_p1  ;;  %p1605_p5 = por %p121_p3, %p49_p1 }
   0x8   : > { %p1275_p6 = scmp.ge.s32.totalorder %s1547_s17, 2 }
   0xa   : > { %152 = sbr.rel (%p1275_p6) target bundleno = 58 (0x3a), region = 28 }
  0x11   : > { %155 = sbr.rel (!%p51_p4) target bundleno = 58 (0x3a), region = 32  ;;  %s157_s24 = sand.u32 (%p51_p4), 1, %s1543_s16  }
  0x12   : > { %s1359_s25 = smul.u32 (%p51_p4), 24, %s1547_s17 }
  0x13   : > { %s1385_s26 = smul.u32 (%p51_p4), 576, %s157_s24 }
  0x14   : > { %s1615_s29 = scalar_lea.vmem (%p51_p4), %s2050_s1, %s1359_s25 }
  0x15   : > { %v175_v0 = vld [vmem:[%s1615_s29] sm:$0xff] (%p51_p4)  ;;  %v177_v1 = vld [vmem:[%s1615_s29 + $0x8] sm:$0xff] (%p51_p4)  ;;  %v179_v2 = vld [vmem:[%s1615_s29 + $0x10] sm:$0xff] (%p51_p4)  ;;  %s1620_s30 = scalar_lea.vmem (%p51_p4), [#allocation2], %s1385_s26 }
  0x16   : > { %176 = vst [vmem:[%s1620_s30] sm:$0xff] (%p51_p4), %v175_v0  ;;  %178 = vst [vmem:[%s1620_s30 + $0x8] sm:$0xff] (%p51_p4), %v177_v1  ;;  %v181_v3 = vld [vmem:[%s1615_s29 + $0x30] sm:$0xff] (%p51_p4)  ;;  %v183_v4 = vld [vmem:[%s1615_s29 + $0x38] sm:$0xff] (%p51_p4) }
  0x17   : > { %180 = vst [vmem:[%s1620_s30 + $0x10] sm:$0xff] (%p51_p4), %v179_v2  ;;  %v185_v5 = vld [vmem:[%s1615_s29 + $0x40] sm:$0xff] (%p51_p4)  ;;  %182 = vst [vmem:[%s1620_s30 + $0x18] sm:$0xff] (%p51_p4), %v181_v3  ;;  %v189_v7 = vld [vmem:[%s1615_s29 + $0x68] sm:$0xff] (%p51_p4) }
  0x18   : > { %184 = vst [vmem:[%s1620_s30 + $0x20] sm:$0xff] %v183_v4  ;;  %186 = vst [vmem:[%s1620_s30 + $0x28] sm:$0xff] %v185_v5  ;;  %v187_v6 = vld [vmem:[%s1615_s29 + $0x60] sm:$0xff]  ;;  %v191_v8 = vld [vmem:[%s1615_s29 + $0x70] sm:$0xff] }
  0x19   : > { %188 = vst [vmem:[%s1620_s30 + $0x30] sm:$0xff] %v187_v6  ;;  %190 = vst [vmem:[%s1620_s30 + $0x38] sm:$0xff] %v189_v7  ;;  %v193_v9 = vld [vmem:[%s1615_s29 + $0x90] sm:$0xff]  ;;  %v195_v10 = vld [vmem:[%s1615_s29 + $0x98] sm:$0xff] }
  0x1a   : > { %192 = vst [vmem:[%s1620_s30 + $0x40] sm:$0xff] %v191_v8  ;;  %v197_v11 = vld [vmem:[%s1615_s29 + $0xa0] sm:$0xff]  ;;  %194 = vst [vmem:[%s1620_s30 + $0x48] sm:$0xff] %v193_v9  ;;  %v201_v13 = vld [vmem:[%s1615_s29 + $0xc8] sm:$0xff] }
  0x1b   : > { %196 = vst [vmem:[%s1620_s30 + $0x50] sm:$0xff] %v195_v10  ;;  %198 = vst [vmem:[%s1620_s30 + $0x58] sm:$0xff] %v197_v11  ;;  %v199_v12 = vld [vmem:[%s1615_s29 + $0xc0] sm:$0xff]  ;;  %v203_v14 = vld [vmem:[%s1615_s29 + $0xd0] sm:$0xff] }
  0x1c   : > { %200 = vst [vmem:[%s1620_s30 + $0x60] sm:$0xff] %v199_v12  ;;  %202 = vst [vmem:[%s1620_s30 + $0x68] sm:$0xff] %v201_v13  ;;  %v205_v15 = vld [vmem:[%s1615_s29 + $0xf0] sm:$0xff]  ;;  %v207_v16 = vld [vmem:[%s1615_s29 + $0xf8] sm:$0xff] }
  0x1d   : > { %204 = vst [vmem:[%s1620_s30 + $0x70] sm:$0xff] %v203_v14  ;;  %v209_v17 = vld [vmem:[%s1615_s29 + $0x100] sm:$0xff]  ;;  %206 = vst [vmem:[%s1620_s30 + $0x78] sm:$0xff] %v205_v15  ;;  %v213_v19 = vld [vmem:[%s1615_s29 + $0x128] sm:$0xff] }
  0x1e   : > { %208 = vst [vmem:[%s1620_s30 + $0x80] sm:$0xff] %v207_v16  ;;  %210 = vst [vmem:[%s1620_s30 + $0x88] sm:$0xff] %v209_v17  ;;  %v211_v18 = vld [vmem:[%s1615_s29 + $0x120] sm:$0xff]  ;;  %v215_v20 = vld [vmem:[%s1615_s29 + $0x130] sm:$0xff] }
  0x1f   : > { %212 = vst [vmem:[%s1620_s30 + $0x90] sm:$0xff] %v211_v18  ;;  %214 = vst [vmem:[%s1620_s30 + $0x98] sm:$0xff] %v213_v19  ;;  %v217_v21 = vld [vmem:[%s1615_s29 + $0x150] sm:$0xff]  ;;  %v219_v22 = vld [vmem:[%s1615_s29 + $0x158] sm:$0xff] }
  0x20   : > { %216 = vst [vmem:[%s1620_s30 + $0xa0] sm:$0xff] %v215_v20  ;;  %v221_v23 = vld [vmem:[%s1615_s29 + $0x160] sm:$0xff]  ;;  %218 = vst [vmem:[%s1620_s30 + $0xa8] sm:$0xff] %v217_v21  ;;  %v225_v25 = vld [vmem:[%s1615_s29 + $0x188] sm:$0xff] }
  0x21   : > { %220 = vst [vmem:[%s1620_s30 + $0xb0] sm:$0xff] %v219_v22  ;;  %222 = vst [vmem:[%s1620_s30 + $0xb8] sm:$0xff] %v221_v23  ;;  %v223_v24 = vld [vmem:[%s1615_s29 + $0x180] sm:$0xff]  ;;  %v227_v26 = vld [vmem:[%s1615_s29 + $0x190] sm:$0xff] }
  0x22   : > { %224 = vst [vmem:[%s1620_s30 + $0xc0] sm:$0xff] %v223_v24  ;;  %226 = vst [vmem:[%s1620_s30 + $0xc8] sm:$0xff] %v225_v25  ;;  %v229_v27 = vld [vmem:[%s1615_s29 + $0x1b0] sm:$0xff]  ;;  %v231_v28 = vld [vmem:[%s1615_s29 + $0x1b8] sm:$0xff] }
  0x23   : > { %228 = vst [vmem:[%s1620_s30 + $0xd0] sm:$0xff] %v227_v26  ;;  %v233_v29 = vld [vmem:[%s1615_s29 + $0x1c0] sm:$0xff]  ;;  %230 = vst [vmem:[%s1620_s30 + $0xd8] sm:$0xff] %v229_v27  ;;  %v237_v31 = vld [vmem:[%s1615_s29 + $0x1e8] sm:$0xff] }
  0x24   : > { %232 = vst [vmem:[%s1620_s30 + $0xe0] sm:$0xff] %v231_v28  ;;  %234 = vst [vmem:[%s1620_s30 + $0xe8] sm:$0xff] %v233_v29  ;;  %v235_v30 = vld [vmem:[%s1615_s29 + $0x1e0] sm:$0xff]  ;;  %v239_v32 = vld [vmem:[%s1615_s29 + $0x1f0] sm:$0xff] }
  0x25   : > { %236 = vst [vmem:[%s1620_s30 + $0xf0] sm:$0xff] %v235_v30  ;;  %238 = vst [vmem:[%s1620_s30 + $0xf8] sm:$0xff] %v237_v31  ;;  %v241_v33 = vld [vmem:[%s1615_s29 + $0x210] sm:$0xff]  ;;  %v243_v34 = vld [vmem:[%s1615_s29 + $0x218] sm:$0xff] }
  0x26   : > { %240 = vst [vmem:[%s1620_s30 + $0x100] sm:$0xff] %v239_v32  ;;  %v245_v35 = vld [vmem:[%s1615_s29 + $0x220] sm:$0xff]  ;;  %242 = vst [vmem:[%s1620_s30 + $0x108] sm:$0xff] %v241_v33  ;;  %v249_v37 = vld [vmem:[%s1615_s29 + $0x248] sm:$0xff] }
  0x27   : > { %244 = vst [vmem:[%s1620_s30 + $0x110] sm:$0xff] %v243_v34  ;;  %246 = vst [vmem:[%s1620_s30 + $0x118] sm:$0xff] %v245_v35  ;;  %v247_v36 = vld [vmem:[%s1615_s29 + $0x240] sm:$0xff]  ;;  %v251_v38 = vld [vmem:[%s1615_s29 + $0x250] sm:$0xff] }
  0x28   : > { %248 = vst [vmem:[%s1620_s30 + $0x120] sm:$0xff] %v247_v36  ;;  %250 = vst [vmem:[%s1620_s30 + $0x128] sm:$0xff] %v249_v37  ;;  %v253_v39 = vld [vmem:[%s1615_s29 + $0x270] sm:$0xff]  ;;  %v255_v40 = vld [vmem:[%s1615_s29 + $0x278] sm:$0xff] }
  0x29   : > { %252 = vst [vmem:[%s1620_s30 + $0x130] sm:$0xff] %v251_v38  ;;  %v257_v41 = vld [vmem:[%s1615_s29 + $0x280] sm:$0xff]  ;;  %254 = vst [vmem:[%s1620_s30 + $0x138] sm:$0xff] %v253_v39  ;;  %v261_v43 = vld [vmem:[%s1615_s29 + $0x2a8] sm:$0xff] }
  0x2a   : > { %256 = vst [vmem:[%s1620_s30 + $0x140] sm:$0xff] %v255_v40  ;;  %258 = vst [vmem:[%s1620_s30 + $0x148] sm:$0xff] %v257_v41  ;;  %v259_v42 = vld [vmem:[%s1615_s29 + $0x2a0] sm:$0xff]  ;;  %v263_v44 = vld [vmem:[%s1615_s29 + $0x2b0] sm:$0xff] }
  0x2b   : > { %260 = vst [vmem:[%s1620_s30 + $0x150] sm:$0xff] %v259_v42  ;;  %262 = vst [vmem:[%s1620_s30 + $0x158] sm:$0xff] %v261_v43  ;;  %v265_v45 = vld [vmem:[%s1615_s29 + $0x2d0] sm:$0xff]  ;;  %v267_v46 = vld [vmem:[%s1615_s29 + $0x2d8] sm:$0xff] }
  0x2c   : > { %264 = vst [vmem:[%s1620_s30 + $0x160] sm:$0xff] %v263_v44  ;;  %v269_v47 = vld [vmem:[%s1615_s29 + $0x2e0] sm:$0xff]  ;;  %266 = vst [vmem:[%s1620_s30 + $0x168] sm:$0xff] %v265_v45  ;;  %v273_v49 = vld [vmem:[%s1615_s29 + $0x308] sm:$0xff] }
  0x2d   : > { %268 = vst [vmem:[%s1620_s30 + $0x170] sm:$0xff] %v267_v46  ;;  %270 = vst [vmem:[%s1620_s30 + $0x178] sm:$0xff] %v269_v47  ;;  %v271_v48 = vld [vmem:[%s1615_s29 + $0x300] sm:$0xff]  ;;  %v275_v50 = vld [vmem:[%s1615_s29 + $0x310] sm:$0xff] }
  0x2e   : > { %272 = vst [vmem:[%s1620_s30 + $0x180] sm:$0xff] %v271_v48  ;;  %274 = vst [vmem:[%s1620_s30 + $0x188] sm:$0xff] %v273_v49  ;;  %v277_v51 = vld [vmem:[%s1615_s29 + $0x330] sm:$0xff]  ;;  %v279_v52 = vld [vmem:[%s1615_s29 + $0x338] sm:$0xff] }
  0x2f   : > { %276 = vst [vmem:[%s1620_s30 + $0x190] sm:$0xff] %v275_v50  ;;  %v281_v53 = vld [vmem:[%s1615_s29 + $0x340] sm:$0xff]  ;;  %278 = vst [vmem:[%s1620_s30 + $0x198] sm:$0xff] %v277_v51  ;;  %v285_v55 = vld [vmem:[%s1615_s29 + $0x368] sm:$0xff] }
  0x30   : > { %280 = vst [vmem:[%s1620_s30 + $0x1a0] sm:$0xff] %v279_v52  ;;  %282 = vst [vmem:[%s1620_s30 + $0x1a8] sm:$0xff] %v281_v53  ;;  %v283_v54 = vld [vmem:[%s1615_s29 + $0x360] sm:$0xff]  ;;  %v287_v56 = vld [vmem:[%s1615_s29 + $0x370] sm:$0xff] }
  0x31   : > { %284 = vst [vmem:[%s1620_s30 + $0x1b0] sm:$0xff] %v283_v54  ;;  %286 = vst [vmem:[%s1620_s30 + $0x1b8] sm:$0xff] %v285_v55  ;;  %v289_v57 = vld [vmem:[%s1615_s29 + $0x390] sm:$0xff]  ;;  %v291_v58 = vld [vmem:[%s1615_s29 + $0x398] sm:$0xff] }
  0x32   : > { %288 = vst [vmem:[%s1620_s30 + $0x1c0] sm:$0xff] %v287_v56  ;;  %v293_v59 = vld [vmem:[%s1615_s29 + $0x3a0] sm:$0xff]  ;;  %290 = vst [vmem:[%s1620_s30 + $0x1c8] sm:$0xff] %v289_v57  ;;  %v297_v61 = vld [vmem:[%s1615_s29 + $0x3c8] sm:$0xff] }
  0x33   : > { %292 = vst [vmem:[%s1620_s30 + $0x1d0] sm:$0xff] %v291_v58  ;;  %294 = vst [vmem:[%s1620_s30 + $0x1d8] sm:$0xff] %v293_v59  ;;  %v295_v60 = vld [vmem:[%s1615_s29 + $0x3c0] sm:$0xff]  ;;  %v299_v62 = vld [vmem:[%s1615_s29 + $0x3d0] sm:$0xff] }
  0x34   : > { %296 = vst [vmem:[%s1620_s30 + $0x1e0] sm:$0xff] %v295_v60  ;;  %298 = vst [vmem:[%s1620_s30 + $0x1e8] sm:$0xff] %v297_v61  ;;  %v301_v63 = vld [vmem:[%s1615_s29 + $0x3f0] sm:$0xff]  ;;  %v303_v0 = vld [vmem:[%s1615_s29 + $0x3f8] sm:$0xff] }
  0x35   : > { %300 = vst [vmem:[%s1620_s30 + $0x1f0] sm:$0xff] %v299_v62  ;;  %v305_v1 = vld [vmem:[%s1615_s29 + $0x400] sm:$0xff]  ;;  %302 = vst [vmem:[%s1620_s30 + $0x1f8] sm:$0xff] %v301_v63  ;;  %v309_v3 = vld [vmem:[%s1615_s29 + $0x428] sm:$0xff] }
  0x36   : > { %304 = vst [vmem:[%s1620_s30 + $0x200] sm:$0xff] %v303_v0  ;;  %306 = vst [vmem:[%s1620_s30 + $0x208] sm:$0xff] %v305_v1  ;;  %v307_v2 = vld [vmem:[%s1615_s29 + $0x420] sm:$0xff]  ;;  %v311_v4 = vld [vmem:[%s1615_s29 + $0x430] sm:$0xff] }
  0x37   : > { %308 = vst [vmem:[%s1620_s30 + $0x210] sm:$0xff] %v307_v2  ;;  %310 = vst [vmem:[%s1620_s30 + $0x218] sm:$0xff] %v309_v3  ;;  %v313_v5 = vld [vmem:[%s1615_s29 + $0x450] sm:$0xff]  ;;  %v315_v6 = vld [vmem:[%s1615_s29 + $0x458] sm:$0xff] }
  0x38   : > { %312 = vst [vmem:[%s1620_s30 + $0x220] sm:$0xff] %v311_v4  ;;  %v317_v7 = vld [vmem:[%s1615_s29 + $0x460] sm:$0xff]  ;;  %314 = vst [vmem:[%s1620_s30 + $0x228] sm:$0xff] %v313_v5 }
  0x39   : > { %316 = vst [vmem:[%s1620_s30 + $0x230] sm:$0xff] %v315_v6  ;;  %318 = vst [vmem:[%s1620_s30 + $0x238] sm:$0xff] %v317_v7 }
  0x3a PF: > { %p1277_p7 = scmp.ge.s32.totalorder %s1547_s17, 1  ;;  %p323_p8 = scmp.lt.s32.totalorder %s1547_s17, 3 }
  0x3c   : > { %p324_p9 = pnand %p1277_p7, %p323_p8 }
  0x3d   : > { %s330_s5 = sand.u32 (!%p324_p9), 1, %s1539_s15   ;;  %v1769_v8 = vld [vmem:[%s2049_s0] sm:$0xff] (!%p324_p9)  ;;  %v1774_v9 = vld [vmem:[%s2049_s0 + $0x8] sm:$0xff] (!%p324_p9)  ;;  %v1779_v10 = vld [vmem:[%s2049_s0 + $0x10] sm:$0xff] (!%p324_p9)  ;;  %vm374_vm0 = vcmask (!%p324_p9), 523264  }
  0x3e   : > { %327 = sbr.rel (%p324_p9) target bundleno = 404 (0x194), region = 55  ;;  %v1786_v11 = vld [vmem:[%s2049_s0 + $0x18] sm:$0xff] (!%p324_p9)  ;;  %v1791_v12 = vld [vmem:[%s2049_s0 + $0x20] sm:$0xff] (!%p324_p9)  ;;  %v1796_v13 = vld [vmem:[%s2049_s0 + $0x28] sm:$0xff] (!%p324_p9)  ;;  %v365_v14 = vadd.f32 (!%p324_p9), %v1779_v10, %v1769_v8  ;;  %v375_v15 = vsel (!%p324_p9), %vm374_vm0, %v1774_v9, 0.0  ;;  %v390_v16 = vmul.f32 (!%p324_p9), %v1769_v8, %v1769_v8  ;;  %v391_v17 = vmul.f32 (!%p324_p9), %v1774_v9, %v1774_v9 }
  0x3f   : > { %s1386_s12 = smul.u32 (!%p324_p9), 576, %s330_s5  ;;  %v1809_v18 = vld [vmem:[%s2049_s0 + $0x30] sm:$0xff] (!%p324_p9)  ;;  %v1814_v19 = vld [vmem:[%s2049_s0 + $0x38] sm:$0xff] (!%p324_p9)  ;;  %v376_v20 = vsel (!%p324_p9), %vm374_vm0, %v1786_v11, 0.0  ;;  %v378_v21 = vsel (!%p324_p9), %vm374_vm0, %v1796_v13, 0.0  ;;  %v392_v22 = vmul.f32 (!%p324_p9), %v1779_v10, %v1779_v10  ;;  %v393_v23 = vmul.f32 (!%p324_p9), %v1786_v11, %v1786_v11 }
  0x40   : > { %v366_v24 = vadd.f32 (!%p324_p9), %v365_v14, %v1791_v12  ;;  %v377_v25 = vadd.f32 (!%p324_p9), %v376_v20, %v375_v15  ;;  %v380_v26 = vsel (!%p324_p9), %vm374_vm0, %v1814_v19, 0.0  ;;  %v394_v27 = vmul.f32 (!%p324_p9), %v1791_v12, %v1791_v12  ;;  %s1387_s10 = smul.u32 (!%p324_p9), 192, %s330_s5 }
  0x41   : > { %s1829_s30 = scalar_lea.vmem (!%p324_p9), [#allocation2], %s1386_s12  ;;  %v395_v29 = vmul.f32 (!%p324_p9), %v1796_v13, %v1796_v13  ;;  %v396_v30 = vmul.f32 (!%p324_p9), %v1809_v18, %v1809_v18  ;;  %v397_v31 = vmul.f32 (!%p324_p9), %v1814_v19, %v1814_v19  ;;  %v398_v32 = vadd.f32 (!%p324_p9), %v392_v22, %v390_v16 }
  0x42   : > { %v1413_v28 = vld [vmem:[%s1829_s30 + $0x4] ss:$24 sps:$4 sm:$0xff] (!%p324_p9)   ;;  %v367_v34 = vadd.f32 (!%p324_p9), %v366_v24, %v1809_v18  ;;  %v379_v35 = vadd.f32 (!%p324_p9), %v378_v21, %v377_v25  ;;  %v407_v36 = vsel (!%p324_p9), %vm374_vm0, %v391_v17, 0.0  ;;  %v408_v37 = vsel (!%p324_p9), %vm374_vm0, %v393_v23, 0.0  ;;  %v1417_v38 = vld [vmem:[%s1829_s30] ss:$24 sps:$4 sm:$0xff] (!%p324_p9)  }
  0x43   : > { %v1415_v33 = vld [vmem:[%s1829_s30 + $0xc] ss:$24 sps:$4 sm:$0xff] (!%p324_p9)   ;;  %960 = vmatprep.subr.bf16.mxu0 (!%p324_p9), %v1413_v28  ;;  %v1418_v39 = vld [vmem:[%s1829_s30 + $0x8] ss:$24 sps:$4 sm:$0xff] (!%p324_p9)   ;;  %v399_v40 = vadd.f32 (!%p324_p9), %v398_v32, %v394_v27  ;;  %v409_v41 = vadd.f32 (!%p324_p9), %v408_v37, %v407_v36  ;;  %v410_v42 = vsel (!%p324_p9), %vm374_vm0, %v395_v29, 0.0  ;;  %v412_v46 = vsel (!%p324_p9), %vm374_vm0, %v397_v31, 0.0 }
  0x44   : > { %1013 = vmatprep.subr.bf16.mxu1 (!%p324_p9), %v1415_v33  ;;  %v1419_v43 = vld [vmem:[%s1829_s30 + $0x34] ss:$24 sps:$4 sm:$0xff] (!%p324_p9)   ;;  %v368_v44 = vrot.slane (!%p324_p9), %v367_v34, 4  ;;  %v381_v45 = vadd.f32 (!%p324_p9), %v380_v26, %v379_v35  ;;  %961 = vmatpush1.bf16.msra.mxu0 (!%p324_p9), %v1417_v38  ;;  %v1423_v48 = vld [vmem:[%s1829_s30 + $0x30] ss:$24 sps:$4 sm:$0xff] (!%p324_p9)   ;;  %s1956_s11 = scalar_lea.vmem (!%p324_p9), [#allocation3], %s1387_s10 }
  0x45   : > { %1014 = vmatpush1.bf16.msra.mxu1 %v1418_v39  ;;  %v1421_v47 = vld [vmem:[%s1829_s30 + $0x3c] ss:$24 sps:$4 sm:$0xff]   ;;  %v400_v49 = vadd.f32 %v399_v40, %v396_v30  ;;  %v411_v50 = vadd.f32 %v410_v42, %v409_v41  ;;  %962 = vmatprep.subr.bf16.mxu0 %v1419_v43  ;;  %v1424_v51 = vld [vmem:[%s1829_s30 + $0x38] ss:$24 sps:$4 sm:$0xff]   ;;  %v1427_v57 = vld [vmem:[%s1829_s30 + $0x6c] ss:$24 sps:$4 sm:$0xff]  }
  0x46   : > { %v369_v52 = vadd.f32 %v368_v44, %v367_v34  ;;  %v382_v53 = vrot.slane %v381_v45, 4  ;;  %1015 = vmatprep.subr.bf16.mxu1 %v1421_v47  ;;  %v1425_v54 = vld [vmem:[%s1829_s30 + $0x64] ss:$24 sps:$4 sm:$0xff]   ;;  %v1429_v58 = vld [vmem:[%s1829_s30 + $0x60] ss:$24 sps:$4 sm:$0xff]   ;;  %s1360_s15 = smul.u32 (%p1605_p5), 48, %s1272_s18 }
  0x47   : > { %v401_v55 = vrot.slane %v400_v49, 4  ;;  %v413_v56 = vadd.f32 %v412_v46, %v411_v50  ;;  %v1430_v59 = vld [vmem:[%s1829_s30 + $0x68] ss:$24 sps:$4 sm:$0xff]   ;;  %v1431_v61 = vld [vmem:[%s1829_s30 + $0x94] ss:$24 sps:$4 sm:$0xff]  }
  0x48   : > { %v383_v60 = vadd.f32 %v382_v53, %v381_v45  ;;  %963 = vmatpush1.bf16.msra.mxu0 %v1423_v48  ;;  %v370_v62 = vrot.slane %v369_v52, 2  ;;  %v1433_v1 = vld [vmem:[%s1829_s30 + $0x9c] ss:$24 sps:$4 sm:$0xff]   ;;  %v1435_v6 = vld [vmem:[%s1829_s30 + $0x90] ss:$24 sps:$4 sm:$0xff]   ;;  %s1995_s5 = scalar_lea.vmem (%p1605_p5), %s2053_s4, %s1360_s15 }
  0x49   : > { %1016 = vmatpush1.bf16.msra.mxu1 %v1424_v51  ;;  %v402_v63 = vadd.f32 %v401_v55, %v400_v49  ;;  %v414_v0 = vrot.slane %v413_v56, 4  ;;  %964 = vmatprep.subr.bf16.mxu0 %v1425_v54  ;;  %v1436_v14 = vld [vmem:[%s1829_s30 + $0x98] ss:$24 sps:$4 sm:$0xff]   ;;  %v1437_v15 = vld [vmem:[%s1829_s30 + $0xc4] ss:$24 sps:$4 sm:$0xff]  }
  0x4a   : > { %1017 = vmatprep.subr.bf16.mxu1 %v1427_v57  ;;  %v384_v2 = vrot.slane %v383_v60, 2  ;;  %v371_v3 = vadd.f32 %v370_v62, %v369_v52  ;;  %v1439_v20 = vld [vmem:[%s1829_s30 + $0xcc] ss:$24 sps:$4 sm:$0xff]   ;;  %v1441_v25 = vld [vmem:[%s1829_s30 + $0xc0] ss:$24 sps:$4 sm:$0xff]   ;;  %v437_v57 = vlaneseq }
  0x4b   : > { %v403_v4 = vrot.slane %v402_v63, 2  ;;  %v415_v5 = vadd.f32 %v414_v0, %v413_v56  ;;  %v1442_v26 = vld [vmem:[%s1829_s30 + $0xc8] ss:$24 sps:$4 sm:$0xff]   ;;  %v1443_v29 = vld [vmem:[%s1829_s30 + $0xf4] ss:$24 sps:$4 sm:$0xff]  }
  0x4c   : > { %v385_v7 = vadd.f32 %v384_v2, %v383_v60  ;;  %965 = vmatpush1.bf16.msra.mxu0 %v1429_v58  ;;  %v372_v16 = vrot.slane %v371_v3, 1  ;;  %v1445_v32 = vld [vmem:[%s1829_s30 + $0xfc] ss:$24 sps:$4 sm:$0xff]   ;;  %v1447_v37 = vld [vmem:[%s1829_s30 + $0xf0] ss:$24 sps:$4 sm:$0xff]  }
  0x4d   : > { %1018 = vmatpush1.bf16.msra.mxu1 %v1430_v59  ;;  %v404_v17 = vadd.f32 %v403_v4, %v402_v63  ;;  %966 = vmatprep.subr.bf16.mxu0 %v1431_v61  ;;  %v416_v22 = vrot.slane %v415_v5, 2  ;;  %v1448_v40 = vld [vmem:[%s1829_s30 + $0xf8] ss:$24 sps:$4 sm:$0xff]   ;;  %v1449_v41 = vld [vmem:[%s1829_s30 + $0x124] ss:$24 sps:$4 sm:$0xff]   ;;  %v438_v63 = vshrl.u32 %v437_v57, 7 }
  0x4e   : > { %1019 = vmatprep.subr.bf16.mxu1 %v1433_v1  ;;  %v386_v21 = vrot.slane %v385_v7, 1  ;;  %v373_v23 = vadd.f32 %v372_v16, %v371_v3  ;;  %v1451_v43 = vld [vmem:[%s1829_s30 + $0x12c] ss:$24 sps:$4 sm:$0xff]   ;;  %v1453_v46 = vld [vmem:[%s1829_s30 + $0x120] ss:$24 sps:$4 sm:$0xff]  }
  0x4f   : > { %v405_v24 = vrot.slane %v404_v17, 1  ;;  %v417_v28 = vadd.f32 %v416_v22, %v415_v5  ;;  %v1454_v47 = vld [vmem:[%s1829_s30 + $0x128] ss:$24 sps:$4 sm:$0xff]   ;;  %v1455_v49 = vld [vmem:[%s1829_s30 + $0x154] ss:$24 sps:$4 sm:$0xff]  }
  0x50   : > { %v387_v27 = vadd.f32 %v386_v21, %v385_v7  ;;  %967 = vmatpush1.bf16.msra.mxu0 %v1435_v6  ;;  %v1863_v30 = vmul.f32 0.03125, %v373_v23  ;;  %v1457_v50 = vld [vmem:[%s1829_s30 + $0x15c] ss:$24 sps:$4 sm:$0xff]   ;;  %v1459_v52 = vld [vmem:[%s1829_s30 + $0x150] ss:$24 sps:$4 sm:$0xff]  }
  0x51   : > { %1020 = vmatpush1.bf16.msra.mxu1 %v1436_v14  ;;  %v406_v31 = vadd.f32 %v405_v24, %v404_v17  ;;  %968 = vmatprep.subr.bf16.mxu0 %v1437_v15  ;;  %v418_v34 = vrot.slane %v417_v28, 1  ;;  %v1460_v53 = vld [vmem:[%s1829_s30 + $0x158] ss:$24 sps:$4 sm:$0xff]   ;;  %v1461_v54 = vld [vmem:[%s1829_s30 + $0x184] ss:$24 sps:$4 sm:$0xff]   ;;  %v454_v24 = vsub.s32 0, %v438_v63 }
  0x52   : > { %1021 = vmatprep.subr.bf16.mxu1 %v1439_v20  ;;  %v1866_v33 = vmul.f32 0.03125, %v387_v27  ;;  %v422_v36 = vmul.f32 %v1863_v30, %v1863_v30  ;;  %v1549_v55 = vmov 1966171168   ;;  %v1463_v58 = vld [vmem:[%s1829_s30 + $0x18c] ss:$24 sps:$4 sm:$0xff]  }
  0x53   : > { %v420_v35 = vmul.f32 0.03125, %v406_v31  ;;  %v419_v38 = vadd.f32 %v418_v34, %v417_v28  ;;  %v435_v56 = vunpack.c.l.s4 %v1549_v55  ;;  %v1465_v59 = vld [vmem:[%s1829_s30 + $0x180] ss:$24 sps:$4 sm:$0xff]   ;;  %v1467_v61 = vld [vmem:[%s1829_s30 + $0x1b4] ss:$24 sps:$4 sm:$0xff]  }
  0x54   : > { %v423_v39 = vmul.f32 %v1866_v33, %v1866_v33  ;;  %969 = vmatpush1.bf16.msra.mxu0 %v1441_v25  ;;  %v1466_v60 = vld [vmem:[%s1829_s30 + $0x188] ss:$24 sps:$4 sm:$0xff]   ;;  %v1469_v0 = vld [vmem:[%s1829_s30 + $0x1bc] ss:$24 sps:$4 sm:$0xff]   ;;  %v1472_v3 = vld [vmem:[%s1829_s30 + $0x1b8] ss:$24 sps:$4 sm:$0xff]  }
  0x55   : > { %1022 = vmatpush1.bf16.msra.mxu1 %v1442_v26  ;;  %v424_v42 = vsub.f32 %v420_v35, %v422_v36  ;;  %970 = vmatprep.subr.bf16.mxu0 %v1443_v29  ;;  %v421_v44 = vmul.f32 0.03125, %v419_v38  ;;  %v436_v62 = vunpack.c.0.s8 %v435_v56  ;;  %v1471_v2 = vld [vmem:[%s1829_s30 + $0x1b0] ss:$24 sps:$4 sm:$0xff]   ;;  %v1473_v4 = vld [vmem:[%s1829_s30 + $0x1e4] ss:$24 sps:$4 sm:$0xff]   ;;  %v458_v25 = vsub.s32 1, %v438_v63 }
  0x56   : > { %1023 = vmatprep.subr.bf16.mxu1 %v1445_v32  ;;  %v1475_v7 = vld [vmem:[%s1829_s30 + $0x1ec] ss:$24 sps:$4 sm:$0xff]   ;;  %v1477_v15 = vld [vmem:[%s1829_s30 + $0x1e0] ss:$24 sps:$4 sm:$0xff]   ;;  %v1481_v22 = vld [vmem:[%s1829_s30 + $0x21c] ss:$24 sps:$4 sm:$0xff]  }
  0x57   : > { %v427_v45 = vadd.f32 1e-05, %v424_v42  ;;  %v425_v48 = vsub.f32 %v421_v44, %v423_v39  ;;  %v439_v5 = vsub.s32 %v436_v62, %v438_v63  ;;  %v1478_v16 = vld [vmem:[%s1829_s30 + $0x1e8] ss:$24 sps:$4 sm:$0xff]   ;;  %v1479_v20 = vld [vmem:[%s1829_s30 + $0x214] ss:$24 sps:$4 sm:$0xff]  }
  0x58   : > { %971 = vmatpush1.bf16.msra.mxu0 %v1447_v37  ;;  %v426_v17 = vld [vmem:[%s2051_s2] sm:$0x3]  ;;  %v1483_v26 = vld [vmem:[%s1829_s30 + $0x210] ss:$24 sps:$4 sm:$0xff]   ;;  %v1487_v29 = vld [vmem:[%s1829_s30 + $0x14] ss:$24 sps:$4 sm:$0xff]  }
  0x59   : > { %1024 = vmatpush1.bf16.msra.mxu1 %v1448_v40  ;;  %972 = vmatprep.subr.bf16.mxu0 %v1449_v41  ;;  %v428_v51 = vadd.f32 1e-05, %v425_v48  ;;  %1521 = vrsqrt.f32 %v427_v45  ;;  %v1484_v27 = vld [vmem:[%s1829_s30 + $0x218] ss:$24 sps:$4 sm:$0xff]   ;;  %v450_v38 = vld [vmem:[%s2052_s3] sm:$0x3] }
  0x5a   : > { %1025 = vmatprep.subr.bf16.mxu1 %v1451_v43  ;;  %v1488_v62 = vld [vmem:[%s1829_s30 + $0x40] ss:$24 sps:$4 sm:$0xff]   ;;  %v1493_v63 = vld [vmem:[%s1829_s30 + $0x74] ss:$24 sps:$4 sm:$0xff]  }
  0x5b   : > { %1523 = vrsqrt.f32 %v428_v51 }
  0x5c   : > { %973 = vmatpush1.bf16.msra.mxu0 %v1453_v46 }
  0x5d   : > { %1026 = vmatpush1.bf16.msra.mxu1 %v1454_v47  ;;  %974 = vmatprep.subr.bf16.mxu0 %v1455_v49 }
  0x5e   : > { %1027 = vmatprep.subr.bf16.mxu1 %v1457_v50 }
  0x60   : > { %975 = vmatpush1.bf16.msra.mxu0 %v1459_v52 }
  0x61   : > { %1028 = vmatpush1.bf16.msra.mxu1 %v1460_v53  ;;  %976 = vmatprep.subr.bf16.mxu0 %v1461_v54 }
  0x62   : > { %1029 = vmatprep.subr.bf16.mxu1 %v1463_v58  ;;  %v1490_v58 = vld [vmem:[%s1829_s30 + $0x44] ss:$24 sps:$4 sm:$0xff]  }
  0x63   : > { %v1522_v1 = vpop.eup %1521 }
  0x64   : > { %977 = vmatpush1.bf16.msra.mxu0 %v1465_v59 }
  0x65   : > { %1030 = vmatpush1.bf16.msra.mxu1 %v1466_v60  ;;  %v1524_v6 = vpop.eup %1523  ;;  %978 = vmatprep.subr.bf16.mxu0 %v1467_v61 }
  0x66   : > { %1031 = vmatprep.subr.bf16.mxu1 %v1469_v0  ;;  %v433_v14 = vcombine.low %v1522_v1, %v1524_v6  ;;  %v1491_v1 = vld [vmem:[%s1829_s30 + $0x70] ss:$24 sps:$4 sm:$0xff]   ;;  %v1502_v6 = vld [vmem:[%s1829_s30 + $0x104] ss:$24 sps:$4 sm:$0xff]  }
  0x68   : > { %979 = vmatpush1.bf16.msra.mxu0 %v1471_v2  ;;  %v440_v21 = vrot.slane %v433_v14, %v439_v5  ;;  %v1496_v2 = vld [vmem:[%s1829_s30 + $0xa4] ss:$24 sps:$4 sm:$0xff]   ;;  %v1505_v14 = vld [vmem:[%s1829_s30 + $0x134] ss:$24 sps:$4 sm:$0xff]  }
  0x69   : > { %1032 = vmatpush1.bf16.msra.mxu1 %v1472_v3  ;;  %980 = vmatprep.subr.bf16.mxu0 %v1473_v4  ;;  %v1494_v3 = vld [vmem:[%s1829_s30 + $0xa0] ss:$24 sps:$4 sm:$0xff]   ;;  %v1499_v4 = vld [vmem:[%s1829_s30 + $0xd4] ss:$24 sps:$4 sm:$0xff]  }
  0x6a   : > { %1033 = vmatprep.subr.bf16.mxu1 %v1475_v7  ;;  %v447_v23 = vrot.slane %v440_v21, %v439_v5  ;;  %v1500_v7 = vld [vmem:[%s1829_s30 + $0x100] ss:$24 sps:$4 sm:$0xff]   ;;  %v1509_v21 = vld [vmem:[%s1829_s30 + $0x190] ss:$24 sps:$4 sm:$0xff]  }
  0x6c   : > { %981 = vmatpush1.bf16.msra.mxu0 %v1477_v15  ;;  %v449_v28 = vmul.f32 %v447_v23, %v426_v17  ;;  %v1503_v15 = vld [vmem:[%s1829_s30 + $0x130] ss:$24 sps:$4 sm:$0xff]   ;;  %v1506_v17 = vld [vmem:[%s1829_s30 + $0x160] ss:$24 sps:$4 sm:$0xff]  }
  0x6d   : > { %1034 = vmatpush1.bf16.msra.mxu1 %v1478_v16  ;;  %982 = vmatprep.subr.bf16.mxu0 %v1479_v20  ;;  %v1508_v16 = vld [vmem:[%s1829_s30 + $0x164] ss:$24 sps:$4 sm:$0xff]   ;;  %v1511_v20 = vld [vmem:[%s1829_s30 + $0x194] ss:$24 sps:$4 sm:$0xff]   ;;  %v1512_v23 = vld [vmem:[%s1829_s30 + $0x1c0] ss:$24 sps:$4 sm:$0xff]  }
  0x6e   : > { %1035 = vmatprep.subr.bf16.mxu1 %v1481_v22  ;;  %v455_v31 = vrot.slane %v449_v28, %v454_v24  ;;  %v459_v32 = vrot.slane %v449_v28, %v458_v25  ;;  %v1514_v22 = vld [vmem:[%s1829_s30 + $0x1c4] ss:$24 sps:$4 sm:$0xff]  }
  0x70   : > { %983 = vmatpush1.bf16.msra.mxu0 %v1483_v26  ;;  %v462_v34 = vmul.f32 %v455_v31, %v1863_v30  ;;  %v463_v35 = vmul.f32 %v459_v32, %v1866_v33  ;;  %v484_v40 = vmul.f32 %v459_v32, %v1774_v9  ;;  %v486_v42 = vmul.f32 %v459_v32, %v1786_v11  ;;  %v1520_v26 = vld [vmem:[%s1829_s30 + $0x224] ss:$24 sps:$4 sm:$0xff]  }
  0x71   : > { %1036 = vmatpush1.bf16.msra.mxu1 %v1484_v27  ;;  %1066 = vmatprep.subr.bf16.mxu0 %v1487_v29  ;;  %v483_v43 = vmul.f32 %v455_v31, %v1769_v8  ;;  %v485_v30 = vmul.f32 %v455_v31, %v1779_v10  ;;  %v488_v33 = vmul.f32 %v459_v32, %v1796_v13  ;;  %v1518_v27 = vld [vmem:[%s1829_s30 + $0x220] ss:$24 sps:$4 sm:$0xff]  }
  0x72   : > { %1361 = vmatprep.subr.bf16.mxu1 %v1487_v29  ;;  %v466_v36 = vcombine.low %v462_v34, %v463_v35  ;;  %v490_v44 = vmul.f32 %v459_v32, %v1814_v19  ;;  %v487_v47 = vmul.f32 %v455_v31, %v1791_v12  ;;  %v489_v48 = vmul.f32 %v455_v31, %v1809_v18  ;;  %v1485_v18 = vld [vmem:[%s1829_s30 + $0x10] ss:$24 sps:$4 sm:$0xff]  }
  0x74   : > { %v473_v37 = vrot.slane %v466_v36, %v439_v5 }
  0x76   : > { %v480_v39 = vrot.slane %v473_v37, %v439_v5  ;;  %v1497_v5 = vld [vmem:[%s1829_s30 + $0xd0] ss:$24 sps:$4 sm:$0xff]  }
  0x78   : > { %v482_v41 = vsub.f32 %v450_v38, %v480_v39 }
  0x7a   : > { %v499_v45 = vrot.slane %v482_v41, %v458_v25  ;;  %v495_v46 = vrot.slane %v482_v41, %v454_v24  ;;  %v1517_v24 = vld [vmem:[%s1829_s30 + $0x1f4] ss:$24 sps:$4 sm:$0xff]   ;;  %v1515_v25 = vld [vmem:[%s1829_s30 + $0x1f0] ss:$24 sps:$4 sm:$0xff]  }
  0x7c   : > { %v503_v49 = vadd.f32 %v499_v45, %v484_v40  ;;  %v505_v9 = vadd.f32 %v499_v45, %v486_v42  ;;  %v502_v50 = vadd.f32 %v495_v46, %v483_v43  ;;  %v504_v11 = vadd.f32 %v495_v46, %v485_v30 }
  0x7d   : > { %v507_v51 = vadd.f32 %v499_v45, %v488_v33  ;;  %v509_v8 = vadd.f32 %v499_v45, %v490_v44  ;;  %v506_v55 = vadd.f32 %v495_v46, %v487_v47  ;;  %v508_v56 = vadd.f32 %v495_v46, %v489_v48 }
  0x7e   : > { %v511_v52 = vmax.f32 %v503_v49, 0.0  ;;  %v513_v10 = vmax.f32 %v505_v9, 0.0  ;;  %v510_v53 = vmax.f32 %v502_v50, 0.0  ;;  %v512_v13 = vmax.f32 %v504_v11, 0.0 }
  0x7f   : > { %v515_v54 = vmax.f32 %v507_v51, 0.0  ;;  %v517_v19 = vmax.f32 %v509_v8, 0.0  ;;  %v514_v60 = vmax.f32 %v506_v55, 0.0  ;;  %v516_v61 = vmax.f32 %v508_v56, 0.0 }
  0x80   : > { %v519_v12 = vpack.c.bf16 %v513_v10, %v511_v52  ;;  %v1916_v57 = vpack.c.bf16 %v512_v13, %v510_v53 }
  0x81   : > { %v521_v59 = vpack.c.bf16 %v517_v19, %v515_v54  ;;  %v1927_v0 = vpack.c.bf16 %v516_v61, %v514_v60 }
  0x82   : > { %1350 = vmatprep.mubr.msk.bf16.mxu0 %vm374_vm0, %v519_v12  ;;  %1352 = vmatprep.mubr.msk.bf16.mxu1 %vm374_vm0, %v519_v12 }
  0x83   : > { %993 = vmatmul.mubr.bf16.vlgmr.msra.gmra.mrb[0].mxu0 %v1916_v57  ;;  %1046 = vmatmul.mubr.bf16.vlgmr.msra.gmra.mrb[0].mxu1 %v1916_v57 }
  0x84   : > { %1067 = vmatpush1.bf16.msra.mxu0 %v1485_v18  ;;  %1373 = vmatpush1.bf16.msra.mxu1 %v1485_v18 }
  0x85   : > { %1068 = vmatprep.subr.bf16.mxu0 %v1490_v58  ;;  %1362 = vmatprep.subr.bf16.mxu1 %v1490_v58 }
  0x86   : > { %1351 = vmatprep.mubr.msk.bf16.mxu0 %vm374_vm0, %v521_v59  ;;  %1353 = vmatprep.mubr.msk.bf16.mxu1 %vm374_vm0, %v521_v59 }
  0x88   : > { %1069 = vmatpush1.bf16.msra.mxu0 %v1488_v62  ;;  %1374 = vmatpush1.bf16.msra.mxu1 %v1488_v62 }
  0x89   : > { %1070 = vmatprep.subr.bf16.mxu0 %v1493_v63  ;;  %1363 = vmatprep.subr.bf16.mxu1 %v1493_v63 }
  0x8b   : > { %1003 = vmatmul.mubr.bf16.gmra.mrb[4].mxu0 %v1927_v0  ;;  %1056 = vmatmul.mubr.bf16.gmra.mrb[4].mxu1 %v1927_v0 }
  0x8c   : > { %1071 = vmatpush1.bf16.msra.mxu0 %v1491_v1  ;;  %1375 = vmatpush1.bf16.msra.mxu1 %v1491_v1 }
  0x8d   : > { %1072 = vmatprep.subr.bf16.mxu0 %v1496_v2  ;;  %1364 = vmatprep.subr.bf16.mxu1 %v1496_v2 }
  0x8e   : > { %1354 = vmatprep.mubr.msk.bf16.mxu0 %vm374_vm0, %v519_v12  ;;  %1355 = vmatprep.mubr.msk.bf16.mxu1 %vm374_vm0, %v521_v59 }
  0x90   : > { %1073 = vmatpush1.bf16.msra.mxu0 %v1494_v3  ;;  %1376 = vmatpush1.bf16.msra.mxu1 %v1494_v3 }
  0x91   : > { %1074 = vmatprep.subr.bf16.mxu0 %v1499_v4  ;;  %1365 = vmatprep.subr.bf16.mxu1 %v1499_v4 }
  0x94   : > { %1075 = vmatpush1.bf16.msra.mxu0 %v1497_v5  ;;  %1377 = vmatpush1.bf16.msra.mxu1 %v1497_v5 }
  0x95   : > { %1076 = vmatprep.subr.bf16.mxu0 %v1502_v6  ;;  %1366 = vmatprep.subr.bf16.mxu1 %v1502_v6 }
  0x98   : > { %1077 = vmatpush1.bf16.msra.mxu0 %v1500_v7  ;;  %1378 = vmatpush1.bf16.msra.mxu1 %v1500_v7 }
  0x99   : > { %1078 = vmatprep.subr.bf16.mxu0 %v1505_v14  ;;  %1367 = vmatprep.subr.bf16.mxu1 %v1505_v14 }
  0x9c   : > { %1079 = vmatpush1.bf16.msra.mxu0 %v1503_v15  ;;  %1379 = vmatpush1.bf16.msra.mxu1 %v1503_v15 }
  0x9d   : > { %1080 = vmatprep.subr.bf16.mxu0 %v1508_v16  ;;  %1368 = vmatprep.subr.bf16.mxu1 %v1508_v16 }
  0xa0   : > { %1081 = vmatpush1.bf16.msra.mxu0 %v1506_v17  ;;  %1380 = vmatpush1.bf16.msra.mxu1 %v1506_v17 }
  0xa1   : > { %1082 = vmatprep.subr.bf16.mxu0 %v1511_v20  ;;  %1369 = vmatprep.subr.bf16.mxu1 %v1511_v20 }
  0xa4   : > { %1083 = vmatpush1.bf16.msra.mxu0 %v1509_v21  ;;  %1381 = vmatpush1.bf16.msra.mxu1 %v1509_v21 }
  0xa5   : > { %1084 = vmatprep.subr.bf16.mxu0 %v1514_v22  ;;  %1370 = vmatprep.subr.bf16.mxu1 %v1514_v22 }
  0xa8   : > { %1085 = vmatpush1.bf16.msra.mxu0 %v1512_v23  ;;  %1382 = vmatpush1.bf16.msra.mxu1 %v1512_v23 }
  0xa9   : > { %1086 = vmatprep.subr.bf16.mxu0 %v1517_v24  ;;  %1371 = vmatprep.subr.bf16.mxu1 %v1517_v24 }
  0xac   : > { %1087 = vmatpush1.bf16.msra.mxu0 %v1515_v25  ;;  %1383 = vmatpush1.bf16.msra.mxu1 %v1515_v25 }
  0xad   : > { %1088 = vmatprep.subr.bf16.mxu0 %v1520_v26  ;;  %1372 = vmatprep.subr.bf16.mxu1 %v1520_v26 }
  0xb0   : > { %1089 = vmatpush1.bf16.msra.mxu0 %v1518_v27  ;;  %1384 = vmatpush1.bf16.msra.mxu1 %v1518_v27 }
  0xb3   : > { %1099 = vmatmul.mubr.bf16.vlgmr.msra.gmra.mrb[8].mxu0 %v1916_v57  ;;  %1109 = vmatmul.mubr.bf16.vlgmr.msra.gmra.mrb[8].mxu1 %v1927_v0 }
 0x156   : > { %v994_v28 = vpop.f32.mrb[0].mxu0  ;;  %v1047_v29 = vpop.f32.mrb[0].mxu1 }
 0x157   : > { %1119 = vst [vmem:[%s1956_s11] sm:$0xff] %v994_v28  ;;  %1121 = vst [vmem:[%s1956_s11 + $0x10] sm:$0xff] %v1047_v29  ;;  %v996_v31 = vpop.f32.mrb[1].mxu0  ;;  %v1049_v32 = vpop.f32.mrb[1].mxu1 }
 0x158   : > { %1120 = vst [vmem:[%s1956_s11 + $0x8] sm:$0xff] %v996_v31  ;;  %1122 = vst [vmem:[%s1956_s11 + $0x18] sm:$0xff] %v1049_v32  ;;  %v998_v34 = vpop.f32.mrb[2].mxu0  ;;  %v1051_v35 = vpop.f32.mrb[2].mxu1 }
 0x159   : > { %1125 = vst [vmem:[%s1956_s11 + $0x30] sm:$0xff] %v998_v34  ;;  %1127 = vst [vmem:[%s1956_s11 + $0x40] sm:$0xff] %v1051_v35  ;;  %v1000_v36 = vpop.f32.mrb[3].mxu0  ;;  %v1053_v37 = vpop.f32.mrb[3].mxu1 }
 0x15a   : > { %1126 = vst [vmem:[%s1956_s11 + $0x38] sm:$0xff] %v1000_v36  ;;  %1128 = vst [vmem:[%s1956_s11 + $0x48] sm:$0xff] %v1053_v37 }
 0x15e   : > { %v1004_v38 = vpop.f32.mrb[4].mxu0  ;;  %v1057_v39 = vpop.f32.mrb[4].mxu1  ;;  %v1165_v11 = vld [vmem:[%s1956_s11] sm:$0xff] (%p1605_p5)  ;;  %v1169_v8 = vld [vmem:[%s1956_s11 + $0x10] sm:$0xff] (%p1605_p5) }
 0x15f   : > { %1131 = vst [vmem:[%s1956_s11 + $0x60] sm:$0xff] %v1004_v38  ;;  %1133 = vst [vmem:[%s1956_s11 + $0x70] sm:$0xff] %v1057_v39  ;;  %v1006_v40 = vpop.f32.mrb[5].mxu0  ;;  %v1059_v41 = vpop.f32.mrb[5].mxu1  ;;  %v1167_v51 = vld [vmem:[%s1956_s11 + $0x8] sm:$0xff] (%p1605_p5)  ;;  %v1171_v52 = vld [vmem:[%s1956_s11 + $0x18] sm:$0xff] (%p1605_p5) }
 0x160   : > { %1132 = vst [vmem:[%s1956_s11 + $0x68] sm:$0xff] %v1006_v40  ;;  %1134 = vst [vmem:[%s1956_s11 + $0x78] sm:$0xff] %v1059_v41  ;;  %v1008_v42 = vpop.f32.mrb[6].mxu0  ;;  %v1061_v43 = vpop.f32.mrb[6].mxu1  ;;  %v1177_v13 = vld [vmem:[%s1956_s11 + $0x30] sm:$0xff] (%p1605_p5)  ;;  %v1181_v19 = vld [vmem:[%s1956_s11 + $0x40] sm:$0xff] (%p1605_p5) }
 0x161   : > { %1137 = vst [vmem:[%s1956_s11 + $0x90] sm:$0xff] %v1008_v42  ;;  %1139 = vst [vmem:[%s1956_s11 + $0xa0] sm:$0xff] %v1061_v43  ;;  %v1010_v30 = vpop.f32.mrb[7].mxu0  ;;  %v1063_v33 = vpop.f32.mrb[7].mxu1  ;;  %v1179_v54 = vld [vmem:[%s1956_s11 + $0x38] sm:$0xff] (%p1605_p5)  ;;  %v1183_v55 = vld [vmem:[%s1956_s11 + $0x48] sm:$0xff] (%p1605_p5) }
 0x162   : > { %1138 = vst [vmem:[%s1956_s11 + $0x98] sm:$0xff] %v1010_v30  ;;  %1140 = vst [vmem:[%s1956_s11 + $0xa8] sm:$0xff] %v1063_v33 }
 0x163   : > { %1166 = vst [vmem:[%s1995_s5] sm:$0xff] (%p1605_p5), %v1165_v11  ;;  %1168 = vst [vmem:[%s1995_s5 + $0x8] sm:$0xff] (%p1605_p5), %v1167_v51 }
 0x164   : > { %1170 = vst [vmem:[%s1995_s5 + $0x10] sm:$0xff] (%p1605_p5), %v1169_v8  ;;  %1172 = vst [vmem:[%s1995_s5 + $0x18] sm:$0xff] (%p1605_p5), %v1171_v52 }
 0x165   : > { %1178 = vst [vmem:[%s1995_s5 + $0x60] sm:$0xff] (%p1605_p5), %v1177_v13  ;;  %1180 = vst [vmem:[%s1995_s5 + $0x68] sm:$0xff] (%p1605_p5), %v1179_v54 }
 0x166   : > { %1182 = vst [vmem:[%s1995_s5 + $0x70] sm:$0xff] (%p1605_p5), %v1181_v19  ;;  %1184 = vst [vmem:[%s1995_s5 + $0x78] sm:$0xff] (%p1605_p5), %v1183_v55  ;;  %v1189_v18 = vld [vmem:[%s1956_s11 + $0x60] sm:$0xff] (%p1605_p5)  ;;  %v1193_v58 = vld [vmem:[%s1956_s11 + $0x70] sm:$0xff] (%p1605_p5) }
 0x167   : > { %v1191_v57 = vld [vmem:[%s1956_s11 + $0x68] sm:$0xff] (%p1605_p5)  ;;  %1190 = vst [vmem:[%s1995_s5 + $0xc0] sm:$0xff] (%p1605_p5), %v1189_v18  ;;  %1194 = vst [vmem:[%s1995_s5 + $0xd0] sm:$0xff] (%p1605_p5), %v1193_v58  ;;  %v1195_v59 = vld [vmem:[%s1956_s11 + $0x78] sm:$0xff] (%p1605_p5) }
 0x168   : > { %1192 = vst [vmem:[%s1995_s5 + $0xc8] sm:$0xff] (%p1605_p5), %v1191_v57  ;;  %1196 = vst [vmem:[%s1995_s5 + $0xd8] sm:$0xff] (%p1605_p5), %v1195_v59  ;;  %v1201_v62 = vld [vmem:[%s1956_s11 + $0x90] sm:$0xff] (%p1605_p5)  ;;  %v1205_v0 = vld [vmem:[%s1956_s11 + $0xa0] sm:$0xff] (%p1605_p5) }
 0x169   : > { %v1203_v63 = vld [vmem:[%s1956_s11 + $0x98] sm:$0xff] (%p1605_p5)  ;;  %1202 = vst [vmem:[%s1995_s5 + $0x120] sm:$0xff] (%p1605_p5), %v1201_v62  ;;  %1206 = vst [vmem:[%s1995_s5 + $0x130] sm:$0xff] (%p1605_p5), %v1205_v0  ;;  %v1207_v1 = vld [vmem:[%s1956_s11 + $0xa8] sm:$0xff] (%p1605_p5) }
 0x16a   : > { %1204 = vst [vmem:[%s1995_s5 + $0x128] sm:$0xff] (%p1605_p5), %v1203_v63  ;;  %1208 = vst [vmem:[%s1995_s5 + $0x138] sm:$0xff] (%p1605_p5), %v1207_v1 }
 0x184   : > { %1149 = sbr.rel (!%p1605_p5) target bundleno = 404 (0x194), region = 63 }
 0x186   : > { %v1100_v44 = vpop.f32.mrb[8].mxu0  ;;  %v1110_v45 = vpop.f32.mrb[8].mxu1 }
 0x187   : > { %1123 = vst [vmem:[%s1956_s11 + $0x20] sm:$0xff] %v1100_v44  ;;  %1135 = vst [vmem:[%s1956_s11 + $0x80] sm:$0xff] %v1110_v45  ;;  %v1102_v46 = vpop.f32.mrb[9].mxu0  ;;  %v1112_v47 = vpop.f32.mrb[9].mxu1 }
 0x188   : > { %1124 = vst [vmem:[%s1956_s11 + $0x28] sm:$0xff] %v1102_v46  ;;  %1136 = vst [vmem:[%s1956_s11 + $0x88] sm:$0xff] %v1112_v47  ;;  %v1104_v48 = vpop.f32.mrb[10].mxu0  ;;  %v1114_v49 = vpop.f32.mrb[10].mxu1 }
 0x189   : > { %1129 = vst [vmem:[%s1956_s11 + $0x50] sm:$0xff] %v1104_v48  ;;  %1141 = vst [vmem:[%s1956_s11 + $0xb0] sm:$0xff] %v1114_v49  ;;  %v1106_v9 = vpop.f32.mrb[11].mxu0  ;;  %v1116_v50 = vpop.f32.mrb[11].mxu1 }
 0x18a   : > { %1130 = vst [vmem:[%s1956_s11 + $0x58] sm:$0xff] %v1106_v9  ;;  %1142 = vst [vmem:[%s1956_s11 + $0xb8] sm:$0xff] %v1116_v50 }
 0x18e   : > { %v1173_v10 = vld [vmem:[%s1956_s11 + $0x20] sm:$0xff] }
 0x18f   : > { %v1175_v53 = vld [vmem:[%s1956_s11 + $0x28] sm:$0xff]  ;;  %1174 = vst [vmem:[%s1995_s5 + $0x20] sm:$0xff] %v1173_v10  ;;  %v1197_v60 = vld [vmem:[%s1956_s11 + $0x80] sm:$0xff] }
 0x190   : > { %1176 = vst [vmem:[%s1995_s5 + $0x28] sm:$0xff] %v1175_v53  ;;  %v1185_v56 = vld [vmem:[%s1956_s11 + $0x50] sm:$0xff]  ;;  %v1199_v61 = vld [vmem:[%s1956_s11 + $0x88] sm:$0xff]  ;;  %1198 = vst [vmem:[%s1995_s5 + $0xe0] sm:$0xff] %v1197_v60 }
 0x191   : > { %v1187_v12 = vld [vmem:[%s1956_s11 + $0x58] sm:$0xff]  ;;  %1186 = vst [vmem:[%s1995_s5 + $0x80] sm:$0xff] %v1185_v56  ;;  %1200 = vst [vmem:[%s1995_s5 + $0xe8] sm:$0xff] %v1199_v61  ;;  %v1209_v2 = vld [vmem:[%s1956_s11 + $0xb0] sm:$0xff] }
 0x192   : > { %1188 = vst [vmem:[%s1995_s5 + $0x88] sm:$0xff] %v1187_v12  ;;  %v1211_v3 = vld [vmem:[%s1956_s11 + $0xb8] sm:$0xff]  ;;  %1210 = vst [vmem:[%s1995_s5 + $0x140] sm:$0xff] %v1209_v2 }
 0x193   : > { %1212 = vst [vmem:[%s1995_s5 + $0x148] sm:$0xff] %v1211_v3 }
 0x194 PF: > { %p11_p10 = scmp.ge.s32.totalorder %s1592_s19, 4   ;;  %s2055_s15 = smov %s1543_s16 }
 0x195   : > { %s2056_s16 = smov %s1603_s22  ;;  %s2057_s17 = smov %s1592_s19 }
 0x196   :  { %13 = sbr.rel (!%p11_p10) target bundleno = 2 (0x2), region = 117 }

// kernel: generator_forward.7
= control target key start
LH: loop header
LB: loop body
LE: loop exit
PB: predicated region body
PF: predicated region fallthrough
CT: control target
= control target key end

     0   :  { %s1254_s15 = smov 0   ;;  %s1256_s16 = smov 0   ;;  %s1744_s0 = inlined_call_operand.vmem [shape: f32[128,96], index: 0, kind: input, shape index: {}]   ;;  %s1745_s1 = inlined_call_operand.vmem [shape: bf16[96,768], index: 1, kind: input, shape index: {}]   ;;  %s1746_s2 = inlined_call_operand.vmem [shape: f32[1,96], index: 2, kind: input, shape index: {}]   ;;  %s1747_s3 = inlined_call_operand.vmem [shape: f32[1,96], index: 3, kind: input, shape index: {}]   ;;  %s1748_s4 = inlined_call_operand.vmem [shape: f32[128,768], index: 4, kind: output, shape index: {}]  }
   0x1   :  { %s1258_s17 = smov 0  }
   0x2 LB: > { %s1039_s18 = sadd.s32 4294967295, %s1226_s17   ;;  %s1271_s19 = sadd.s32 1, %s1226_s17   ;;  %s1226_s17 = sphi %s1258_s17, %s1752_s17   ;;  %s1222_s16 = sphi %s1256_s16, %s1751_s16   ;;  %s1218_s15 = sphi %s1254_s15, %s1750_s15  }
   0x3   : > { %s39_s20 = ssub.s32 %s1226_s17, %s1271_s19  ;;  %s42_s21 = sadd.s32 1, %s1222_s16 }
   0x4   : > { %p40_p0 = scmp.eq.s32.totalorder %s39_s20, 0  ;;  %p49_p1 = scmp.ne.s32.totalorder %s1222_s16, %s1218_s15 }
   0x5   : > { %p50_p2 = scmp.eq.s32.totalorder %s1226_s17, 0  ;;  %p121_p3 = scmp.eq.s32.totalorder %s1039_s18, 1 }
   0x6   : > { %s1282_s22 = scalar_select %p40_p0, %s1222_s16, %s42_s21  }
   0x7   : > { %p51_p4 = por %p50_p2, %p49_p1  ;;  %p1284_p5 = por %p121_p3, %p49_p1 }
   0x8   : > { %p1042_p6 = scmp.ge.s32.totalorder %s1226_s17, 2 }
   0xa   : > { %152 = sbr.rel (%p1042_p6) target bundleno = 36 (0x24), region = 28 }
  0x11   : > { %155 = sbr.rel (!%p51_p4) target bundleno = 36 (0x24), region = 32  ;;  %s157_s24 = sand.u32 (%p51_p4), 1, %s1222_s16  }
  0x12   : > { %s1106_s25 = smul.u32 (%p51_p4), 12, %s1226_s17 }
  0x13   : > { %s1150_s26 = smul.u32 (%p51_p4), 144, %s157_s24 }
  0x14   : > { %s1294_s29 = scalar_lea.vmem (%p51_p4), %s1745_s1, %s1106_s25 }
  0x15   : > { %v177_v0 = vld [vmem:[%s1294_s29] sm:$0xff] (%p51_p4)  ;;  %v179_v1 = vld [vmem:[%s1294_s29 + $0x18] sm:$0xff] (%p51_p4)  ;;  %v181_v2 = vld [vmem:[%s1294_s29 + $0x30] sm:$0xff] (%p51_p4)  ;;  %s1299_s30 = scalar_lea.vmem (%p51_p4), [#allocation2], %s1150_s26 }
  0x16   : > { %178 = vst [vmem:[%s1299_s30] sm:$0xff] (%p51_p4), %v177_v0  ;;  %180 = vst [vmem:[%s1299_s30 + $0xc] sm:$0xff] (%p51_p4), %v179_v1  ;;  %v183_v3 = vld [vmem:[%s1294_s29 + $0x48] sm:$0xff] (%p51_p4)  ;;  %v185_v4 = vld [vmem:[%s1294_s29 + $0x60] sm:$0xff] (%p51_p4) }
  0x17   : > { %182 = vst [vmem:[%s1299_s30 + $0x18] sm:$0xff] (%p51_p4), %v181_v2  ;;  %v187_v5 = vld [vmem:[%s1294_s29 + $0x78] sm:$0xff] (%p51_p4)  ;;  %184 = vst [vmem:[%s1299_s30 + $0x24] sm:$0xff] (%p51_p4), %v183_v3  ;;  %v189_v6 = vld [vmem:[%s1294_s29 + $0x90] sm:$0xff] (%p51_p4) }
  0x18   : > { %186 = vst [vmem:[%s1299_s30 + $0x30] sm:$0xff] %v185_v4  ;;  %188 = vst [vmem:[%s1299_s30 + $0x3c] sm:$0xff] %v187_v5  ;;  %v191_v7 = vld [vmem:[%s1294_s29 + $0xa8] sm:$0xff]  ;;  %v193_v8 = vld [vmem:[%s1294_s29 + $0xc0] sm:$0xff] }
  0x19   : > { %190 = vst [vmem:[%s1299_s30 + $0x48] sm:$0xff] %v189_v6  ;;  %192 = vst [vmem:[%s1299_s30 + $0x54] sm:$0xff] %v191_v7  ;;  %v195_v9 = vld [vmem:[%s1294_s29 + $0xd8] sm:$0xff]  ;;  %v197_v10 = vld [vmem:[%s1294_s29 + $0xf0] sm:$0xff] }
  0x1a   : > { %194 = vst [vmem:[%s1299_s30 + $0x60] sm:$0xff] %v193_v8  ;;  %v199_v11 = vld [vmem:[%s1294_s29 + $0x108] sm:$0xff]  ;;  %196 = vst [vmem:[%s1299_s30 + $0x6c] sm:$0xff] %v195_v9  ;;  %v1046_v13 = vld [vmem:[%s1294_s29 + $0x20] sm:$0xf] }
  0x1b   : > { %198 = vst [vmem:[%s1299_s30 + $0x78] sm:$0xff] %v197_v10  ;;  %200 = vst [vmem:[%s1299_s30 + $0x84] sm:$0xff] %v199_v11  ;;  %v1044_v12 = vld [vmem:[%s1294_s29 + $0x8] sm:$0xf]  ;;  %v1048_v14 = vld [vmem:[%s1294_s29 + $0x38] sm:$0xf] }
  0x1c   : > { %1045 = vst [vmem:[%s1299_s30 + $0x8] sm:$0xf] %v1044_v12  ;;  %1047 = vst [vmem:[%s1299_s30 + $0x14] sm:$0xf] %v1046_v13  ;;  %v1050_v15 = vld [vmem:[%s1294_s29 + $0x50] sm:$0xf] }
  0x1d   : > { %1049 = vst [vmem:[%s1299_s30 + $0x20] sm:$0xf] %v1048_v14  ;;  %v1052_v16 = vld [vmem:[%s1294_s29 + $0x68] sm:$0xf]  ;;  %v1054_v17 = vld [vmem:[%s1294_s29 + $0x80] sm:$0xf] }
  0x1e   : > { %1051 = vst [vmem:[%s1299_s30 + $0x2c] sm:$0xf] %v1050_v15  ;;  %1053 = vst [vmem:[%s1299_s30 + $0x38] sm:$0xf] %v1052_v16  ;;  %v1056_v18 = vld [vmem:[%s1294_s29 + $0x98] sm:$0xf] }
  0x1f   : > { %1055 = vst [vmem:[%s1299_s30 + $0x44] sm:$0xf] %v1054_v17  ;;  %v1058_v19 = vld [vmem:[%s1294_s29 + $0xb0] sm:$0xf]  ;;  %v1060_v20 = vld [vmem:[%s1294_s29 + $0xc8] sm:$0xf] }
  0x20   : > { %1057 = vst [vmem:[%s1299_s30 + $0x50] sm:$0xf] %v1056_v18  ;;  %1059 = vst [vmem:[%s1299_s30 + $0x5c] sm:$0xf] %v1058_v19  ;;  %v1062_v21 = vld [vmem:[%s1294_s29 + $0xe0] sm:$0xf] }
  0x21   : > { %1061 = vst [vmem:[%s1299_s30 + $0x68] sm:$0xf] %v1060_v20  ;;  %v1064_v22 = vld [vmem:[%s1294_s29 + $0xf8] sm:$0xf]  ;;  %v1066_v23 = vld [vmem:[%s1294_s29 + $0x110] sm:$0xf] }
  0x22   : > { %1063 = vst [vmem:[%s1299_s30 + $0x74] sm:$0xf] %v1062_v21  ;;  %1065 = vst [vmem:[%s1299_s30 + $0x80] sm:$0xf] %v1064_v22 }
  0x23   : > { %1067 = vst [vmem:[%s1299_s30 + $0x8c] sm:$0xf] %v1066_v23 }
  0x24 PF: > { %p1068_p7 = scmp.ge.s32.totalorder %s1226_s17, 1  ;;  %p236_p8 = scmp.lt.s32.totalorder %s1226_s17, 3 }
  0x26   : > { %p237_p9 = pnand %p1068_p7, %p236_p8 }
  0x27   : > { %s243_s5 = sand.u32 (!%p237_p9), 1, %s1218_s15   ;;  %v1352_v24 = vld [vmem:[%s1744_s0] sm:$0xff] (!%p237_p9)  ;;  %v1357_v25 = vld [vmem:[%s1744_s0 + $0x8] sm:$0xff] (!%p237_p9)  ;;  %v1362_v26 = vld [vmem:[%s1744_s0 + $0x10] sm:$0xff] (!%p237_p9)  ;;  %vm286_vm0 = vcmask (!%p237_p9), 785408   ;;  %v1228_v27 = vmov (!%p237_p9), 0  }
  0x28   : > { %240 = sbr.rel (%p237_p9) target bundleno = 397 (0x18d), region = 58  ;;  %632 = vmatprep.mubr.bf16.mxu0 (!%p237_p9), %v1228_v27  ;;  %v1370_v28 = vld [vmem:[%s1744_s0 + $0x18] sm:$0xff] (!%p237_p9)  ;;  %v287_v29 = vsel (!%p237_p9), %vm286_vm0, %v1352_v24, 0.0  ;;  %v288_v30 = vsel (!%p237_p9), %vm286_vm0, %v1357_v25, 0.0  ;;  %v1379_v31 = vld [vmem:[%s1744_s0 + $0x20] sm:$0xff] (!%p237_p9)  ;;  %v290_v33 = vsel (!%p237_p9), %vm286_vm0, %v1362_v26, 0.0  ;;  %v325_v38 = vmul.f32 (!%p237_p9), %v1352_v24, %v1352_v24 }
  0x29   : > { %s1151_s12 = smul.u32 (!%p237_p9), 144, %s243_s5  ;;  %v289_v32 = vadd.f32 (!%p237_p9), %v288_v30, %v287_v29  ;;  %v1386_v34 = vld [vmem:[%s1744_s0 + $0x28] sm:$0xff] (!%p237_p9)  ;;  %v292_v35 = vsel (!%p237_p9), %vm286_vm0, %v1370_v28, 0.0  ;;  %v294_v40 = vsel (!%p237_p9), %vm286_vm0, %v1379_v31, 0.0  ;;  %v326_v41 = vmul.f32 (!%p237_p9), %v1357_v25, %v1357_v25  ;;  %v1406_v44 = vld [vmem:[%s1744_s0 + $0x30] sm:$0xff] (!%p237_p9)  ;;  %v1412_v47 = vld [vmem:[%s1744_s0 + $0x38] sm:$0xff] (!%p237_p9) }
  0x2a   : > { %v327_v42 = vmul.f32 (!%p237_p9), %v1362_v26, %v1362_v26  ;;  %v296_v48 = vsel (!%p237_p9), %vm286_vm0, %v1386_v34, 0.0  ;;  %v328_v51 = vmul.f32 (!%p237_p9), %v1370_v28, %v1370_v28  ;;  %v341_v52 = vsel (!%p237_p9), %vm286_vm0, %v325_v38, 0.0  ;;  %v1427_v56 = vld [vmem:[%s1744_s0 + $0x40] sm:$0xff] (!%p237_p9)  ;;  %v1435_v61 = vld [vmem:[%s1744_s0 + $0x48] sm:$0xff] (!%p237_p9)  ;;  %v1448_v5 = vld [vmem:[%s1744_s0 + $0x50] sm:$0xff] (!%p237_p9)  ;;  %s1152_s8 = smul.u32 (!%p237_p9), 384, %s243_s5 }
  0x2b   : > { %s1390_s26 = scalar_lea.vmem (!%p237_p9), [#allocation2], %s1151_s12  ;;  %v291_v37 = vadd.f32 (!%p237_p9), %v290_v33, %v289_v32  ;;  %v298_v53 = vsel (!%p237_p9), %vm286_vm0, %v1406_v44, 0.0  ;;  %v342_v54 = vsel (!%p237_p9), %vm286_vm0, %v326_v41, 0.0  ;;  %v329_v58 = vmul.f32 (!%p237_p9), %v1379_v31, %v1379_v31  ;;  %v1453_v6 = vld [vmem:[%s1744_s0 + $0x58] sm:$0xff] (!%p237_p9)  ;;  %v1474_v22 = vld [vmem:[%s1744_s0 + $0x60] sm:$0xff] (!%p237_p9) }
  0x2c   : > { %v1178_v36 = vld [vmem:[%s1390_s26 + $0x4] ss:$12 sps:$4 sm:$0xff] (!%p237_p9)   ;;  %v1180_v39 = vld [vmem:[%s1390_s26] ss:$12 sps:$4 sm:$0xff] (!%p237_p9)   ;;  %v1181_v43 = vld [vmem:[%s1390_s26 + $0x1c] ss:$12 sps:$4 sm:$0xff] (!%p237_p9)   ;;  %v343_v59 = vadd.f32 (!%p237_p9), %v342_v54, %v341_v52  ;;  %v330_v1 = vmul.f32 (!%p237_p9), %v1386_v34, %v1386_v34  ;;  %v331_v9 = vmul.f32 (!%p237_p9), %v1406_v44, %v1406_v44  ;;  %v332_v16 = vmul.f32 (!%p237_p9), %v1412_v47, %v1412_v47 }
  0x2d   : > { %600 = vmatprep.subr.bf16.mxu0 (!%p237_p9), %v1178_v36  ;;  %v293_v45 = vadd.f32 (!%p237_p9), %v292_v35, %v291_v37  ;;  %v1183_v46 = vld [vmem:[%s1390_s26 + $0x18] ss:$12 sps:$4 sm:$0xff] (!%p237_p9)   ;;  %v1184_v49 = vld [vmem:[%s1390_s26 + $0x34] ss:$12 sps:$4 sm:$0xff] (!%p237_p9)   ;;  %v344_v55 = vsel (!%p237_p9), %vm286_vm0, %v327_v42, 0.0  ;;  %v300_v62 = vsel (!%p237_p9), %vm286_vm0, %v1412_v47, 0.0  ;;  %v333_v29 = vmul.f32 (!%p237_p9), %v1427_v56, %v1427_v56 }
  0x2e   : > { %601 = vmatpush1.bf16.msra.mxu0 (!%p237_p9), %v1180_v39  ;;  %v1186_v60 = vld [vmem:[%s1390_s26 + $0x30] ss:$12 sps:$4 sm:$0xff] (!%p237_p9)   ;;  %v1187_v63 = vld [vmem:[%s1390_s26 + $0x4c] ss:$12 sps:$4 sm:$0xff] (!%p237_p9)   ;;  %v345_v2 = vadd.f32 (!%p237_p9), %v344_v55, %v343_v59  ;;  %v346_v3 = vsel (!%p237_p9), %vm286_vm0, %v328_v51, 0.0  ;;  %v302_v4 = vsel (!%p237_p9), %vm286_vm0, %v1427_v56, 0.0  ;;  %v334_v39 = vmul.f32 (!%p237_p9), %v1435_v61, %v1435_v61 }
  0x2f   : > { %602 = vmatprep.subr.bf16.mxu0 %v1181_v43  ;;  %v295_v50 = vadd.f32 %v294_v40, %v293_v45  ;;  %v304_v8 = vsel %vm286_vm0, %v1435_v61, 0.0  ;;  %v348_v10 = vsel %vm286_vm0, %v329_v58, 0.0  ;;  %v1189_v11 = vld [vmem:[%s1390_s26 + $0x48] ss:$12 sps:$4 sm:$0xff]   ;;  %v1190_v14 = vld [vmem:[%s1390_s26 + $0x64] ss:$12 sps:$4 sm:$0xff]   ;;  %v336_v55 = vmul.f32 %v1453_v6, %v1453_v6 }
  0x30   : > { %v347_v12 = vadd.f32 %v346_v3, %v345_v2  ;;  %v1196_v13 = vld [vmem:[%s1390_s26 + $0x8] ss:$12 sps:$4 sm:$0xff]   ;;  %v350_v17 = vsel %vm286_vm0, %v330_v1, 0.0  ;;  %v1192_v18 = vld [vmem:[%s1390_s26 + $0x60] ss:$12 sps:$4 sm:$0xff]   ;;  %v306_v19 = vsel %vm286_vm0, %v1448_v5, 0.0 }
  0x31   : > { %v297_v57 = vadd.f32 %v296_v48, %v295_v50  ;;  %v308_v20 = vsel %vm286_vm0, %v1453_v6, 0.0  ;;  %1122 = vmatprep.subr.bf16.mxu1 %v1196_v13  ;;  %v352_v30 = vsel %vm286_vm0, %v331_v9, 0.0  ;;  %v1197_v32 = vld [vmem:[%s1390_s26 + $0x20] ss:$12 sps:$4 sm:$0xff]   ;;  %v1198_v35 = vld [vmem:[%s1390_s26 + $0x38] ss:$12 sps:$4 sm:$0xff]  }
  0x32   : > { %603 = vmatpush1.bf16.msra.mxu0 %v1183_v46  ;;  %v349_v21 = vadd.f32 %v348_v10, %v347_v12  ;;  %1123 = vmatpush3.bf16.msra.mxu1 %v1196_v13  ;;  %v1193_v36 = vld [vmem:[%s1390_s26 + $0x7c] ss:$12 sps:$4 sm:$0xff]   ;;  %v354_v40 = vsel %vm286_vm0, %v332_v16, 0.0  ;;  %v310_v41 = vsel %vm286_vm0, %v1474_v22, 0.0  ;;  %v1495_v43 = vld [vmem:[%s1744_s0 + $0x70] sm:$0xff]  ;;  %v335_v46 = vmul.f32 %v1448_v5, %v1448_v5  ;;  %s1579_s9 = scalar_lea.vmem [#allocation3], %s1152_s8 }
  0x33   : > { %604 = vmatprep.subr.bf16.mxu0 %v1184_v49  ;;  %v299_v0 = vadd.f32 %v298_v53, %v297_v57  ;;  %v1485_v37 = vld [vmem:[%s1744_s0 + $0x68] sm:$0xff]  ;;  %1124 = vmatprep.subr.bf16.mxu1 %v1197_v32  ;;  %v356_v48 = vsel %vm286_vm0, %v333_v29, 0.0  ;;  %v1507_v53 = vld [vmem:[%s1744_s0 + $0x78] sm:$0xff]  ;;  %v358_v57 = vsel %vm286_vm0, %v334_v39, 0.0  ;;  %v314_v58 = vsel %vm286_vm0, %v1495_v43, 0.0  ;;  %s1107_s15 = smul.u32 (%p1284_p5), 24, %s1039_s18 }
  0x34   : > { %v351_v33 = vadd.f32 %v350_v17, %v349_v21  ;;  %v1195_v49 = vld [vmem:[%s1390_s26 + $0x78] ss:$12 sps:$4 sm:$0xff]   ;;  %v312_v50 = vsel %vm286_vm0, %v1485_v37, 0.0  ;;  %v1199_v52 = vld [vmem:[%s1390_s26 + $0x50] ss:$12 sps:$4 sm:$0xff]   ;;  %v339_v10 = vmul.f32 %v1495_v43, %v1495_v43 }
  0x35   : > { %v301_v7 = vadd.f32 %v300_v62, %v299_v0  ;;  %v337_v62 = vmul.f32 %v1474_v22, %v1474_v22  ;;  %v316_v0 = vsel %vm286_vm0, %v1507_v53, 0.0  ;;  %v1200_v2 = vld [vmem:[%s1390_s26 + $0x68] ss:$12 sps:$4 sm:$0xff]   ;;  %v1201_v13 = vld [vmem:[%s1390_s26 + $0x80] ss:$12 sps:$4 sm:$0xff]   ;;  %s1642_s5 = scalar_lea.vmem (%p1284_p5), %s1748_s4, %s1107_s15 }
  0x36   : > { %605 = vmatpush1.bf16.msra.mxu0 %v1186_v60  ;;  %v353_v42 = vadd.f32 %v352_v30, %v351_v33  ;;  %1125 = vmatpush3.bf16.msra.mxu1 %v1197_v32 }
  0x37   : > { %606 = vmatprep.subr.bf16.mxu0 %v1187_v63  ;;  %v303_v15 = vadd.f32 %v302_v4, %v301_v7  ;;  %1126 = vmatprep.subr.bf16.mxu1 %v1198_v35  ;;  %v360_v63 = vsel %vm286_vm0, %v335_v46, 0.0  ;;  %v338_v4 = vmul.f32 %v1485_v37, %v1485_v37  ;;  %v362_v7 = vsel %vm286_vm0, %v336_v55, 0.0 }
  0x38   : > { %v355_v51 = vadd.f32 %v354_v40, %v353_v42 }
  0x39   : > { %v305_v23 = vadd.f32 %v304_v8, %v303_v15  ;;  %v340_v15 = vmul.f32 %v1507_v53, %v1507_v53  ;;  %v366_v16 = vsel %vm286_vm0, %v338_v4, 0.0 }
  0x3a   : > { %607 = vmatpush1.bf16.msra.mxu0 %v1189_v11  ;;  %v357_v59 = vadd.f32 %v356_v48, %v355_v51  ;;  %1127 = vmatpush3.bf16.msra.mxu1 %v1198_v35  ;;  %v364_v11 = vsel %vm286_vm0, %v337_v62, 0.0  ;;  %v389_v51 = vlaneseq }
  0x3b   : > { %608 = vmatprep.subr.bf16.mxu0 %v1190_v14  ;;  %v307_v38 = vadd.f32 %v306_v19, %v305_v23  ;;  %1128 = vmatprep.subr.bf16.mxu1 %v1199_v52  ;;  %v368_v19 = vsel %vm286_vm0, %v339_v10, 0.0  ;;  %v370_v23 = vsel %vm286_vm0, %v340_v15, 0.0 }
  0x3c   : > { %v359_v1 = vadd.f32 %v358_v57, %v357_v59  ;;  %v385_v59 = vld [vmem:[%s1747_s3] sm:$0x1] }
  0x3d   : > { %v309_v45 = vadd.f32 %v308_v20, %v307_v38 }
  0x3e   : > { %609 = vmatpush1.bf16.msra.mxu0 %v1192_v18  ;;  %v361_v8 = vadd.f32 %v360_v63, %v359_v1  ;;  %1129 = vmatpush3.bf16.msra.mxu1 %v1199_v52  ;;  %v390_v52 = vshrl.u32 %v389_v51, 7 }
  0x3f   : > { %610 = vmatprep.subr.bf16.mxu0 %v1193_v36  ;;  %v311_v54 = vadd.f32 %v310_v41, %v309_v45  ;;  %1130 = vmatprep.subr.bf16.mxu1 %v1200_v2 }
  0x40   : > { %v363_v12 = vadd.f32 %v362_v7, %v361_v8  ;;  %v391_v55 = vsub.s32 0, %v390_v52 }
  0x41   : > { %v313_v60 = vadd.f32 %v312_v50, %v311_v54  ;;  %v381_v54 = vld [vmem:[%s1746_s2] sm:$0x1] }
  0x42   : > { %611 = vmatpush1.bf16.msra.mxu0 %v1195_v49  ;;  %v365_v17 = vadd.f32 %v364_v11, %v363_v12  ;;  %1131 = vmatpush3.bf16.msra.mxu1 %v1200_v2 }
  0x43   : > { %v315_v3 = vadd.f32 %v314_v58, %v313_v60  ;;  %1132 = vmatprep.subr.bf16.mxu1 %v1201_v13 }
  0x44   : > { %v367_v20 = vadd.f32 %v366_v16, %v365_v17 }
  0x45   : > { %v317_v9 = vadd.f32 %v316_v0, %v315_v3 }
  0x46   : > { %v369_v29 = vadd.f32 %v368_v19, %v367_v20  ;;  %1133 = vmatpush3.bf16.msra.mxu1 %v1201_v13 }
  0x47   : > { %v318_v14 = vrot.slane %v317_v9, 4 }
  0x48   : > { %v371_v32 = vadd.f32 %v370_v23, %v369_v29 }
  0x49   : > { %v319_v18 = vadd.f32 %v318_v14, %v317_v9 }
  0x4a   : > { %v372_v35 = vrot.slane %v371_v32, 4 }
  0x4b   : > { %v320_v21 = vrot.slane %v319_v18, 2 }
  0x4c   : > { %v373_v38 = vadd.f32 %v372_v35, %v371_v32 }
  0x4d   : > { %v321_v30 = vadd.f32 %v320_v21, %v319_v18 }
  0x4e   : > { %v374_v39 = vrot.slane %v373_v38, 2 }
  0x4f   : > { %v322_v33 = vrot.slane %v321_v30, 1 }
  0x50   : > { %v375_v41 = vadd.f32 %v374_v39, %v373_v38 }
  0x51   : > { %v323_v36 = vadd.f32 %v322_v33, %v321_v30 }
  0x52   : > { %v376_v42 = vrot.slane %v375_v41, 1 }
  0x53   : > { %v324_v40 = vmul.f32 0.0078125, %v323_v36 }
  0x54   : > { %v377_v45 = vadd.f32 %v376_v42, %v375_v41 }
  0x55   : > { %v379_v46 = vmul.f32 %v324_v40, %v324_v40 }
  0x56   : > { %v378_v48 = vmul.f32 0.0078125, %v377_v45 }
  0x58   : > { %v380_v49 = vsub.f32 %v378_v48, %v379_v46 }
  0x5a   : > { %v382_v50 = vadd.f32 1e-05, %v380_v49 }
  0x5c   : > { %1202 = vrsqrt.f32 %v382_v50 }
  0x66   : > { %v1203_v57 = vpop.eup %1202 }
  0x67   : > { %v384_v58 = vmul.f32 %v1203_v57, %v381_v54 }
  0x69   : > { %v386_v60 = vmul.f32 %v384_v58, %v324_v40  ;;  %v392_v62 = vrot.slane %v384_v58, %v391_v55 }
  0x6b   : > { %v387_v63 = vsub.f32 %v385_v59, %v386_v60  ;;  %v394_v0 = vmul.f32 %v392_v62, %v1352_v24  ;;  %v395_v1 = vmul.f32 %v392_v62, %v1357_v25  ;;  %v396_v2 = vmul.f32 %v392_v62, %v1362_v26 }
  0x6c   : > { %v397_v3 = vmul.f32 %v392_v62, %v1370_v28  ;;  %v398_v4 = vmul.f32 %v392_v62, %v1379_v31  ;;  %v399_v7 = vmul.f32 %v392_v62, %v1386_v34  ;;  %v400_v9 = vmul.f32 %v392_v62, %v1406_v44 }
  0x6d   : > { %v414_v8 = vrot.slane %v387_v63, %v391_v55  ;;  %v401_v10 = vmul.f32 %v392_v62, %v1412_v47  ;;  %v402_v25 = vmul.f32 %v392_v62, %v1427_v56  ;;  %v403_v26 = vmul.f32 %v392_v62, %v1435_v61 }
  0x6e   : > { %v404_v30 = vmul.f32 %v392_v62, %v1448_v5  ;;  %v405_v32 = vmul.f32 %v392_v62, %v1453_v6  ;;  %v406_v36 = vmul.f32 %v392_v62, %v1474_v22  ;;  %v407_v38 = vmul.f32 %v392_v62, %v1485_v37 }
  0x6f   : > { %v416_v11 = vadd.f32 %v414_v8, %v394_v0  ;;  %v417_v12 = vadd.f32 %v414_v8, %v395_v1  ;;  %v418_v13 = vadd.f32 %v414_v8, %v396_v2  ;;  %v419_v14 = vadd.f32 %v414_v8, %v397_v3 }
  0x70   : > { %v420_v24 = vadd.f32 %v414_v8, %v398_v4  ;;  %v421_v15 = vadd.f32 %v414_v8, %v399_v7  ;;  %v422_v20 = vadd.f32 %v414_v8, %v400_v9  ;;  %v423_v47 = vadd.f32 %v414_v8, %v401_v10 }
  0x71   : > { %v432_v28 = vmax.f32 %v416_v11, 0.0  ;;  %v433_v16 = vmax.f32 %v417_v12, 0.0  ;;  %v434_v31 = vmax.f32 %v418_v13, 0.0  ;;  %v435_v17 = vmax.f32 %v419_v14, 0.0 }
  0x72   : > { %v436_v34 = vmax.f32 %v420_v24, 0.0  ;;  %v437_v18 = vmax.f32 %v421_v15, 0.0  ;;  %v424_v23 = vadd.f32 %v414_v8, %v402_v25  ;;  %v425_v29 = vadd.f32 %v414_v8, %v403_v26 }
  0x73   : > { %v448_v19 = vpack.c.bf16 %v433_v16, %v432_v28  ;;  %v449_v44 = vpack.c.bf16 %v435_v17, %v434_v31  ;;  %v438_v56 = vmax.f32 %v422_v20, 0.0  ;;  %v439_v61 = vmax.f32 %v423_v47, 0.0 }
  0x74   : > { %v450_v21 = vpack.c.bf16 %v437_v18, %v436_v34  ;;  %v440_v33 = vmax.f32 %v424_v23, 0.0  ;;  %v441_v35 = vmax.f32 %v425_v29, 0.0  ;;  %v426_v40 = vadd.f32 %v414_v8, %v404_v30 }
  0x75   : > { %1087 = vmatmul.mubr.msk.bf16.vlgmr.msra.gmra.mrb[0].mxu0 %vm286_vm0, %v448_v19  ;;  %1134 = vmatprep.mubr.msk.bf16.mxu1 %vm286_vm0, %v448_v19  ;;  %v451_v39 = vpack.c.bf16 %v439_v61, %v438_v56  ;;  %v427_v41 = vadd.f32 %v414_v8, %v405_v32  ;;  %v428_v45 = vadd.f32 %v414_v8, %v406_v36 }
  0x76   : > { %642 = vmatprep.mubr.bf16.mxu0 %v1228_v27  ;;  %1135 = vmatmul.mubr.msk.bf16.vlgmr.msra.gmra.mrb[0].mxu1 %vm286_vm0, %v449_v44  ;;  %v452_v42 = vpack.c.bf16 %v441_v35, %v440_v33  ;;  %v429_v46 = vadd.f32 %v414_v8, %v407_v38  ;;  %v408_v5 = vmul.f32 %v392_v62, %v1495_v43  ;;  %v442_v22 = vmax.f32 %v426_v40, 0.0 }
  0x77   : > { %1138 = vmatprep.mubr.msk.bf16.mxu1 %vm286_vm0, %v450_v21  ;;  %v409_v6 = vmul.f32 %v392_v62, %v1507_v53  ;;  %v443_v37 = vmax.f32 %v427_v41, 0.0  ;;  %v444_v48 = vmax.f32 %v428_v45, 0.0 }
  0x78   : > { %v445_v49 = vmax.f32 %v429_v46, 0.0  ;;  %v430_v50 = vadd.f32 %v414_v8, %v408_v5 }
  0x79   : > { %v431_v51 = vadd.f32 %v414_v8, %v409_v6  ;;  %v453_v52 = vpack.c.bf16 %v443_v37, %v442_v22 }
  0x7a   : > { %v454_v54 = vpack.c.bf16 %v445_v49, %v444_v48  ;;  %v446_v43 = vmax.f32 %v430_v50, 0.0 }
  0x7b   : > { %v447_v55 = vmax.f32 %v431_v51, 0.0 }
  0x7d   : > { %1088 = vmatmul.mubr.msk.bf16.gmra.mrb[4].mxu0 %vm286_vm0, %v449_v44  ;;  %v455_v53 = vpack.c.bf16 %v447_v55, %v446_v43 }
  0x7e   : > { %652 = vmatprep.mubr.bf16.mxu0 %v1228_v27  ;;  %1139 = vmatmul.mubr.msk.bf16.gmra.mrb[4].mxu1 %vm286_vm0, %v451_v39 }
  0x7f   : > { %1142 = vmatprep.mubr.msk.bf16.mxu1 %vm286_vm0, %v452_v42 }
  0x85   : > { %1089 = vmatmul.mubr.msk.bf16.gmra.mrb[8].mxu0 %vm286_vm0, %v450_v21 }
  0x86   : > { %662 = vmatprep.mubr.bf16.mxu0 %v1228_v27  ;;  %1143 = vmatmul.mubr.msk.bf16.gmra.mrb[8].mxu1 %vm286_vm0, %v453_v52 }
  0x87   : > { %1146 = vmatprep.mubr.msk.bf16.mxu1 %vm286_vm0, %v454_v54 }
  0x8d   : > { %1090 = vmatmul.mubr.msk.bf16.gmra.mrb[12].mxu0 %vm286_vm0, %v451_v39 }
  0x8e   : > { %672 = vmatprep.mubr.bf16.mxu0 %v1228_v27  ;;  %1147 = vmatmul.mubr.msk.bf16.gmra.mrb[12].mxu1 %vm286_vm0, %v455_v53 }
  0x95   : > { %1091 = vmatmul.mubr.msk.bf16.gmra.mrb[16].mxu0 %vm286_vm0, %v452_v42 }
  0x96   : > { %682 = vmatprep.mubr.bf16.mxu0 %v1228_v27 }
  0x9d   : > { %1092 = vmatmul.mubr.msk.bf16.gmra.mrb[20].mxu0 %vm286_vm0, %v453_v52 }
  0x9e   : > { %692 = vmatprep.mubr.bf16.mxu0 %v1228_v27 }
  0xa5   : > { %1093 = vmatmul.mubr.msk.bf16.gmra.mrb[24].mxu0 %vm286_vm0, %v454_v54 }
  0xa6   : > { %702 = vmatprep.mubr.bf16.mxu0 %v1228_v27 }
  0xad   : > { %1094 = vmatmul.mubr.msk.bf16.gmra.mrb[28].mxu0 %vm286_vm0, %v455_v53 }
 0x148   : > { %v634_v57 = vpop.f32.mrb[0].mxu0 }
 0x149   : > { %810 = vst [vmem:[%s1579_s9] sm:$0xff] %v634_v57  ;;  %v636_v58 = vpop.f32.mrb[1].mxu0  ;;  %v1136_v59 = vpop.f32.mrb[0].mxu1 }
 0x14a   : > { %811 = vst [vmem:[%s1579_s9 + $0x8] sm:$0xff] %v636_v58  ;;  %v638_v27 = vpop.f32.mrb[2].mxu0  ;;  %818 = vst [vmem:[%s1579_s9 + $0x40] sm:$0xff] %v1136_v59  ;;  %v747_v60 = vpop.f32.mrb[1].mxu1 }
 0x14b   : > { %813 = vst [vmem:[%s1579_s9 + $0x18] sm:$0xff] %v638_v27  ;;  %v640_v62 = vpop.f32.mrb[3].mxu0  ;;  %812 = vst [vmem:[%s1579_s9 + $0x10] sm:$0xff] %v747_v60  ;;  %v1137_v63 = vpop.f32.mrb[2].mxu1 }
 0x14c   : > { %814 = vst [vmem:[%s1579_s9 + $0x20] sm:$0xff] %v640_v62  ;;  %821 = vst [vmem:[%s1579_s9 + $0x58] sm:$0xff] %v1137_v63  ;;  %v750_v0 = vpop.f32.mrb[3].mxu1 }
 0x14d   : > { %815 = vst [vmem:[%s1579_s9 + $0x28] sm:$0xff] %v750_v0 }
 0x150   : > { %v644_v1 = vpop.f32.mrb[4].mxu0  ;;  %v880_v42 = vld [vmem:[%s1579_s9] sm:$0xff] (%p1284_p5) }
 0x151   : > { %816 = vst [vmem:[%s1579_s9 + $0x30] sm:$0xff] %v644_v1  ;;  %v646_v2 = vpop.f32.mrb[5].mxu0  ;;  %v1140_v3 = vpop.f32.mrb[4].mxu1  ;;  %v882_v45 = vld [vmem:[%s1579_s9 + $0x8] sm:$0xff] (%p1284_p5)  ;;  %v896_v49 = vld [vmem:[%s1579_s9 + $0x40] sm:$0xff] (%p1284_p5)  ;;  %881 = vst [vmem:[%s1642_s5] sm:$0xff] (%p1284_p5), %v880_v42 }
 0x152   : > { %817 = vst [vmem:[%s1579_s9 + $0x38] sm:$0xff] %v646_v2  ;;  %v648_v4 = vpop.f32.mrb[6].mxu0  ;;  %830 = vst [vmem:[%s1579_s9 + $0xa0] sm:$0xff] %v1140_v3  ;;  %v763_v7 = vpop.f32.mrb[5].mxu1  ;;  %v884_v46 = vld [vmem:[%s1579_s9 + $0x10] sm:$0xff] (%p1284_p5)  ;;  %v886_v5 = vld [vmem:[%s1579_s9 + $0x18] sm:$0xff] (%p1284_p5) }
 0x153   : > { %819 = vst [vmem:[%s1579_s9 + $0x48] sm:$0xff] %v648_v4  ;;  %v650_v8 = vpop.f32.mrb[7].mxu0  ;;  %824 = vst [vmem:[%s1579_s9 + $0x70] sm:$0xff] %v763_v7  ;;  %v1141_v9 = vpop.f32.mrb[6].mxu1  ;;  %v888_v6 = vld [vmem:[%s1579_s9 + $0x20] sm:$0xff] (%p1284_p5)  ;;  %v902_v52 = vld [vmem:[%s1579_s9 + $0x58] sm:$0xff] (%p1284_p5) }
 0x154   : > { %820 = vst [vmem:[%s1579_s9 + $0x50] sm:$0xff] %v650_v8  ;;  %833 = vst [vmem:[%s1579_s9 + $0xb8] sm:$0xff] %v1141_v9  ;;  %v766_v10 = vpop.f32.mrb[7].mxu1  ;;  %v890_v22 = vld [vmem:[%s1579_s9 + $0x28] sm:$0xff] (%p1284_p5) }
 0x155   : > { %827 = vst [vmem:[%s1579_s9 + $0x88] sm:$0xff] %v766_v10  ;;  %883 = vst [vmem:[%s1642_s5 + $0x8] sm:$0xff] (%p1284_p5), %v882_v45 }
 0x156   : > { %885 = vst [vmem:[%s1642_s5 + $0x10] sm:$0xff] (%p1284_p5), %v884_v46  ;;  %887 = vst [vmem:[%s1642_s5 + $0x30] sm:$0xff] (%p1284_p5), %v886_v5 }
 0x157   : > { %889 = vst [vmem:[%s1642_s5 + $0x38] sm:$0xff] (%p1284_p5), %v888_v6  ;;  %891 = vst [vmem:[%s1642_s5 + $0x40] sm:$0xff] (%p1284_p5), %v890_v22 }
 0x158   : > { %v654_v11 = vpop.f32.mrb[8].mxu0  ;;  %v892_v37 = vld [vmem:[%s1579_s9 + $0x30] sm:$0xff] (%p1284_p5)  ;;  %897 = vst [vmem:[%s1642_s5 + $0x70] sm:$0xff] (%p1284_p5), %v896_v49  ;;  %903 = vst [vmem:[%s1642_s5 + $0xa0] sm:$0xff] (%p1284_p5), %v902_v52 }
 0x159   : > { %822 = vst [vmem:[%s1579_s9 + $0x60] sm:$0xff] %v654_v11  ;;  %v656_v12 = vpop.f32.mrb[9].mxu0  ;;  %v1144_v13 = vpop.f32.mrb[8].mxu1  ;;  %v894_v48 = vld [vmem:[%s1579_s9 + $0x38] sm:$0xff] (%p1284_p5)  ;;  %893 = vst [vmem:[%s1642_s5 + $0x60] sm:$0xff] (%p1284_p5), %v892_v37  ;;  %v920_v60 = vld [vmem:[%s1579_s9 + $0xa0] sm:$0xff] (%p1284_p5) }
 0x15a   : > { %823 = vst [vmem:[%s1579_s9 + $0x68] sm:$0xff] %v656_v12  ;;  %v658_v14 = vpop.f32.mrb[10].mxu0  ;;  %842 = vst [vmem:[%s1579_s9 + $0x100] sm:$0xff] %v1144_v13  ;;  %v779_v24 = vpop.f32.mrb[9].mxu1  ;;  %v898_v50 = vld [vmem:[%s1579_s9 + $0x48] sm:$0xff] (%p1284_p5)  ;;  %v908_v55 = vld [vmem:[%s1579_s9 + $0x70] sm:$0xff] (%p1284_p5) }
 0x15b   : > { %825 = vst [vmem:[%s1579_s9 + $0x78] sm:$0xff] %v658_v14  ;;  %v660_v15 = vpop.f32.mrb[11].mxu0  ;;  %836 = vst [vmem:[%s1579_s9 + $0xd0] sm:$0xff] %v779_v24  ;;  %v1145_v25 = vpop.f32.mrb[10].mxu1  ;;  %v900_v51 = vld [vmem:[%s1579_s9 + $0x50] sm:$0xff] (%p1284_p5)  ;;  %v926_v0 = vld [vmem:[%s1579_s9 + $0xb8] sm:$0xff] (%p1284_p5) }
 0x15c   : > { %826 = vst [vmem:[%s1579_s9 + $0x80] sm:$0xff] %v660_v15  ;;  %845 = vst [vmem:[%s1579_s9 + $0x118] sm:$0xff] %v1145_v25  ;;  %v782_v26 = vpop.f32.mrb[11].mxu1  ;;  %v914_v58 = vld [vmem:[%s1579_s9 + $0x88] sm:$0xff] (%p1284_p5) }
 0x15d   : > { %839 = vst [vmem:[%s1579_s9 + $0xe8] sm:$0xff] %v782_v26  ;;  %895 = vst [vmem:[%s1642_s5 + $0x68] sm:$0xff] (%p1284_p5), %v894_v48 }
 0x15e   : > { %899 = vst [vmem:[%s1642_s5 + $0x90] sm:$0xff] (%p1284_p5), %v898_v50  ;;  %901 = vst [vmem:[%s1642_s5 + $0x98] sm:$0xff] (%p1284_p5), %v900_v51 }
 0x15f   : > { %909 = vst [vmem:[%s1642_s5 + $0xd0] sm:$0xff] (%p1284_p5), %v908_v55  ;;  %915 = vst [vmem:[%s1642_s5 + $0x100] sm:$0xff] (%p1284_p5), %v914_v58 }
 0x160   : > { %v664_v28 = vpop.f32.mrb[12].mxu0  ;;  %v904_v54 = vld [vmem:[%s1579_s9 + $0x60] sm:$0xff] (%p1284_p5)  ;;  %921 = vst [vmem:[%s1642_s5 + $0x130] sm:$0xff] (%p1284_p5), %v920_v60  ;;  %927 = vst [vmem:[%s1642_s5 + $0x160] sm:$0xff] (%p1284_p5), %v926_v0 }
 0x161   : > { %828 = vst [vmem:[%s1579_s9 + $0x90] sm:$0xff] %v664_v28  ;;  %v666_v16 = vpop.f32.mrb[13].mxu0  ;;  %v1148_v31 = vpop.f32.mrb[12].mxu1  ;;  %v906_v43 = vld [vmem:[%s1579_s9 + $0x68] sm:$0xff] (%p1284_p5)  ;;  %905 = vst [vmem:[%s1642_s5 + $0xc0] sm:$0xff] (%p1284_p5), %v904_v54  ;;  %v944_v11 = vld [vmem:[%s1579_s9 + $0x100] sm:$0xff] (%p1284_p5) }
 0x162   : > { %829 = vst [vmem:[%s1579_s9 + $0x98] sm:$0xff] %v666_v16  ;;  %v668_v17 = vpop.f32.mrb[14].mxu0  ;;  %854 = vst [vmem:[%s1579_s9 + $0x160] sm:$0xff] %v1148_v31  ;;  %v795_v34 = vpop.f32.mrb[13].mxu1  ;;  %v910_v53 = vld [vmem:[%s1579_s9 + $0x78] sm:$0xff] (%p1284_p5)  ;;  %v932_v3 = vld [vmem:[%s1579_s9 + $0xd0] sm:$0xff] (%p1284_p5) }
 0x163   : > { %831 = vst [vmem:[%s1579_s9 + $0xa8] sm:$0xff] %v668_v17  ;;  %v670_v18 = vpop.f32.mrb[15].mxu0  ;;  %848 = vst [vmem:[%s1579_s9 + $0x130] sm:$0xff] %v795_v34  ;;  %v1149_v19 = vpop.f32.mrb[14].mxu1  ;;  %v912_v57 = vld [vmem:[%s1579_s9 + $0x80] sm:$0xff] (%p1284_p5)  ;;  %v950_v14 = vld [vmem:[%s1579_s9 + $0x118] sm:$0xff] (%p1284_p5) }
 0x164   : > { %832 = vst [vmem:[%s1579_s9 + $0xb0] sm:$0xff] %v670_v18  ;;  %857 = vst [vmem:[%s1579_s9 + $0x178] sm:$0xff] %v1149_v19  ;;  %v798_v44 = vpop.f32.mrb[15].mxu1  ;;  %v938_v8 = vld [vmem:[%s1579_s9 + $0xe8] sm:$0xff] (%p1284_p5) }
 0x165   : > { %851 = vst [vmem:[%s1579_s9 + $0x148] sm:$0xff] %v798_v44  ;;  %907 = vst [vmem:[%s1642_s5 + $0xc8] sm:$0xff] (%p1284_p5), %v906_v43 }
 0x166   : > { %911 = vst [vmem:[%s1642_s5 + $0xf0] sm:$0xff] (%p1284_p5), %v910_v53  ;;  %913 = vst [vmem:[%s1642_s5 + $0xf8] sm:$0xff] (%p1284_p5), %v912_v57 }
 0x167   : > { %933 = vst [vmem:[%s1642_s5 + $0x190] sm:$0xff] (%p1284_p5), %v932_v3  ;;  %939 = vst [vmem:[%s1642_s5 + $0x1c0] sm:$0xff] (%p1284_p5), %v938_v8 }
 0x168   : > { %v674_v20 = vpop.f32.mrb[16].mxu0  ;;  %v916_v59 = vld [vmem:[%s1579_s9 + $0x90] sm:$0xff] (%p1284_p5)  ;;  %945 = vst [vmem:[%s1642_s5 + $0x1f0] sm:$0xff] (%p1284_p5), %v944_v11  ;;  %951 = vst [vmem:[%s1642_s5 + $0x220] sm:$0xff] (%p1284_p5), %v950_v14 }
 0x169   : > { %834 = vst [vmem:[%s1579_s9 + $0xc0] sm:$0xff] %v674_v20  ;;  %v676_v47 = vpop.f32.mrb[17].mxu0  ;;  %v918_v27 = vld [vmem:[%s1579_s9 + $0x98] sm:$0xff] (%p1284_p5)  ;;  %917 = vst [vmem:[%s1642_s5 + $0x120] sm:$0xff] (%p1284_p5), %v916_v59  ;;  %v968_v34 = vld [vmem:[%s1579_s9 + $0x160] sm:$0xff] (%p1284_p5) }
 0x16a   : > { %835 = vst [vmem:[%s1579_s9 + $0xc8] sm:$0xff] %v676_v47  ;;  %v678_v21 = vpop.f32.mrb[18].mxu0  ;;  %919 = vst [vmem:[%s1642_s5 + $0x128] sm:$0xff] (%p1284_p5), %v918_v27  ;;  %v922_v62 = vld [vmem:[%s1579_s9 + $0xa8] sm:$0xff] (%p1284_p5)  ;;  %v956_v25 = vld [vmem:[%s1579_s9 + $0x130] sm:$0xff] (%p1284_p5) }
 0x16b   : > { %837 = vst [vmem:[%s1579_s9 + $0xd8] sm:$0xff] %v678_v21  ;;  %v680_v23 = vpop.f32.mrb[19].mxu0  ;;  %v924_v63 = vld [vmem:[%s1579_s9 + $0xb0] sm:$0xff] (%p1284_p5)  ;;  %923 = vst [vmem:[%s1642_s5 + $0x150] sm:$0xff] (%p1284_p5), %v922_v62  ;;  %v974_v44 = vld [vmem:[%s1579_s9 + $0x178] sm:$0xff] (%p1284_p5) }
 0x16c   : > { %838 = vst [vmem:[%s1579_s9 + $0xe0] sm:$0xff] %v680_v23  ;;  %925 = vst [vmem:[%s1642_s5 + $0x158] sm:$0xff] (%p1284_p5), %v924_v63  ;;  %v962_v16 = vld [vmem:[%s1579_s9 + $0x148] sm:$0xff] (%p1284_p5) }
 0x16d   : > { %957 = vst [vmem:[%s1642_s5 + $0x250] sm:$0xff] (%p1284_p5), %v956_v25  ;;  %963 = vst [vmem:[%s1642_s5 + $0x280] sm:$0xff] (%p1284_p5), %v962_v16 }
 0x16e   : > { %969 = vst [vmem:[%s1642_s5 + $0x2b0] sm:$0xff] (%p1284_p5), %v968_v34  ;;  %975 = vst [vmem:[%s1642_s5 + $0x2e0] sm:$0xff] (%p1284_p5), %v974_v44 }
 0x170   : > { %v684_v29 = vpop.f32.mrb[20].mxu0  ;;  %v928_v1 = vld [vmem:[%s1579_s9 + $0xc0] sm:$0xff] (%p1284_p5) }
 0x171   : > { %840 = vst [vmem:[%s1579_s9 + $0xf0] sm:$0xff] %v684_v29  ;;  %v686_v56 = vpop.f32.mrb[21].mxu0  ;;  %v930_v2 = vld [vmem:[%s1579_s9 + $0xc8] sm:$0xff] (%p1284_p5)  ;;  %929 = vst [vmem:[%s1642_s5 + $0x180] sm:$0xff] (%p1284_p5), %v928_v1 }
 0x172   : > { %841 = vst [vmem:[%s1579_s9 + $0xf8] sm:$0xff] %v686_v56  ;;  %v688_v61 = vpop.f32.mrb[22].mxu0  ;;  %931 = vst [vmem:[%s1642_s5 + $0x188] sm:$0xff] (%p1284_p5), %v930_v2  ;;  %v934_v4 = vld [vmem:[%s1579_s9 + $0xd8] sm:$0xff] (%p1284_p5) }
 0x173   : > { %843 = vst [vmem:[%s1579_s9 + $0x108] sm:$0xff] %v688_v61  ;;  %v690_v30 = vpop.f32.mrb[23].mxu0  ;;  %v936_v7 = vld [vmem:[%s1579_s9 + $0xe0] sm:$0xff] (%p1284_p5)  ;;  %935 = vst [vmem:[%s1642_s5 + $0x1b0] sm:$0xff] (%p1284_p5), %v934_v4 }
 0x174   : > { %844 = vst [vmem:[%s1579_s9 + $0x110] sm:$0xff] %v690_v30  ;;  %937 = vst [vmem:[%s1642_s5 + $0x1b8] sm:$0xff] (%p1284_p5), %v936_v7 }
 0x178   : > { %v694_v32 = vpop.f32.mrb[24].mxu0  ;;  %v940_v9 = vld [vmem:[%s1579_s9 + $0xf0] sm:$0xff] (%p1284_p5) }
 0x179   : > { %846 = vst [vmem:[%s1579_s9 + $0x120] sm:$0xff] %v694_v32  ;;  %v696_v33 = vpop.f32.mrb[25].mxu0  ;;  %v942_v10 = vld [vmem:[%s1579_s9 + $0xf8] sm:$0xff] (%p1284_p5)  ;;  %941 = vst [vmem:[%s1642_s5 + $0x1e0] sm:$0xff] (%p1284_p5), %v940_v9 }
 0x17a   : > { %847 = vst [vmem:[%s1579_s9 + $0x128] sm:$0xff] %v696_v33  ;;  %v698_v35 = vpop.f32.mrb[26].mxu0  ;;  %943 = vst [vmem:[%s1642_s5 + $0x1e8] sm:$0xff] (%p1284_p5), %v942_v10  ;;  %v946_v12 = vld [vmem:[%s1579_s9 + $0x108] sm:$0xff] (%p1284_p5) }
 0x17b   : > { %849 = vst [vmem:[%s1579_s9 + $0x138] sm:$0xff] %v698_v35  ;;  %v700_v36 = vpop.f32.mrb[27].mxu0  ;;  %v948_v13 = vld [vmem:[%s1579_s9 + $0x110] sm:$0xff] (%p1284_p5)  ;;  %947 = vst [vmem:[%s1642_s5 + $0x210] sm:$0xff] (%p1284_p5), %v946_v12 }
 0x17c   : > { %850 = vst [vmem:[%s1579_s9 + $0x140] sm:$0xff] %v700_v36  ;;  %949 = vst [vmem:[%s1642_s5 + $0x218] sm:$0xff] (%p1284_p5), %v948_v13 }
 0x17e   : > { %864 = sbr.rel (!%p1284_p5) target bundleno = 397 (0x18d), region = 66 }
 0x180   : > { %v704_v38 = vpop.f32.mrb[28].mxu0  ;;  %v952_v24 = vld [vmem:[%s1579_s9 + $0x120] sm:$0xff] (%p1284_p5) }
 0x181   : > { %852 = vst [vmem:[%s1579_s9 + $0x150] sm:$0xff] %v704_v38  ;;  %v706_v39 = vpop.f32.mrb[29].mxu0  ;;  %v954_v15 = vld [vmem:[%s1579_s9 + $0x128] sm:$0xff] (%p1284_p5)  ;;  %953 = vst [vmem:[%s1642_s5 + $0x240] sm:$0xff] (%p1284_p5), %v952_v24 }
 0x182   : > { %853 = vst [vmem:[%s1579_s9 + $0x158] sm:$0xff] %v706_v39  ;;  %v708_v40 = vpop.f32.mrb[30].mxu0  ;;  %955 = vst [vmem:[%s1642_s5 + $0x248] sm:$0xff] (%p1284_p5), %v954_v15  ;;  %v958_v26 = vld [vmem:[%s1579_s9 + $0x138] sm:$0xff] (%p1284_p5) }
 0x183   : > { %855 = vst [vmem:[%s1579_s9 + $0x168] sm:$0xff] %v708_v40  ;;  %v710_v41 = vpop.f32.mrb[31].mxu0  ;;  %v960_v28 = vld [vmem:[%s1579_s9 + $0x140] sm:$0xff] (%p1284_p5)  ;;  %959 = vst [vmem:[%s1642_s5 + $0x270] sm:$0xff] (%p1284_p5), %v958_v26 }
 0x184   : > { %856 = vst [vmem:[%s1579_s9 + $0x170] sm:$0xff] %v710_v41  ;;  %961 = vst [vmem:[%s1642_s5 + $0x278] sm:$0xff] (%p1284_p5), %v960_v28 }
 0x188   : > { %v964_v31 = vld [vmem:[%s1579_s9 + $0x150] sm:$0xff] }
 0x189   : > { %v966_v17 = vld [vmem:[%s1579_s9 + $0x158] sm:$0xff]  ;;  %965 = vst [vmem:[%s1642_s5 + $0x2a0] sm:$0xff] %v964_v31 }
 0x18a   : > { %967 = vst [vmem:[%s1642_s5 + $0x2a8] sm:$0xff] %v966_v17  ;;  %v970_v18 = vld [vmem:[%s1579_s9 + $0x168] sm:$0xff] }
 0x18b   : > { %v972_v19 = vld [vmem:[%s1579_s9 + $0x170] sm:$0xff]  ;;  %971 = vst [vmem:[%s1642_s5 + $0x2d0] sm:$0xff] %v970_v18 }
 0x18c   : > { %973 = vst [vmem:[%s1642_s5 + $0x2d8] sm:$0xff] %v972_v19 }
 0x18d PF: > { %p11_p10 = scmp.ge.s32.totalorder %s1271_s19, 4   ;;  %s1750_s15 = smov %s1222_s16 }
 0x18e   : > { %s1751_s16 = smov %s1282_s22  ;;  %s1752_s17 = smov %s1271_s19 }
 0x18f   :  { %13 = sbr.rel (!%p11_p10) target bundleno = 2 (0x2), region = 126 }

// kernel: generator_forward.5
= control target key start
LH: loop header
LB: loop body
LE: loop exit
PB: predicated region body
PF: predicated region fallthrough
CT: control target
= control target key end

     0   :  { %9 = vsyncpa [#allocation3], 0  ;;  %s6109_s0 = inlined_call_operand.hbm [shape: f32[2,110], index: 0, kind: input, shape index: {}]   ;;  %s6110_s1 = inlined_call_operand.hbm [shape: bf16[110,384], index: 1, kind: input, shape index: {}]   ;;  %s6111_s2 = inlined_call_operand.hbm [shape: f32[1,384], index: 2, kind: input, shape index: {}]   ;;  %s6112_s3 = inlined_call_operand.hbm [shape: bf16[384,3072], index: 3, kind: input, shape index: {}]   ;;  %s6113_s4 = inlined_call_operand.vmem [shape: f32[2,3072], index: 4, kind: output, shape index: {}]  }
   0x1   :  { %10 = vsyncpa [#allocation5], 0 }
   0x2   :  { %11 = vsyncpa [#allocation8], 0 }
   0x3   :  { %16 = vsyncadd [#allocation3], 96  ;;  %s5901_s15 = smov [#allocation4]   ;;  %s5807_s19 = scalar_lea.hbm %s6110_s1, 2688 }
   0x4   :  { %s29_s16 = sshll.u32 %s5901_s15, 4  ;;  %p5808_p0 = scmp.ne.s32.totalorder %s6110_s1, %s5807_s19  ;;  %s30_s16 = int_to_ptr.vmem [resolvable:$true] %s29_s16 }
   0x5   :  { %p5811_p1 = scmp.lt.u32.totalorder %s5807_s19, %s6110_s1 }
   0x7   :  { %p5813_p2 = pnand %p5811_p1, %p5808_p0 }
   0x9   :  { %5816 = shalt.err (!%p5813_p2)
}
   0xa   :  { %s5817_s24 = scalar_lea.vmem %s30_s16, 2688  ;;  %p5822_p4 = scmp.lt.s32.totalorder %s30_s16, %s30_s16 }
   0xb   :  { %p5818_p3 = scmp.ne.s32.totalorder %s30_s16, %s5817_s24  ;;  %p5823_p5 = scmp.lt.s32.totalorder %s5817_s24, %s5817_s24 }
   0xd   :  { %p5824_p6 = por %p5823_p5, %p5822_p4 }
   0xf   :  { %p5825_p7 = pnand %p5824_p6, %p5818_p3 }
  0x11   :  { %5828 = shalt.err (!%p5825_p7)
}
  0x12   :  { %s5902_s25 = smov 192   ;;  %s5903_s26 = smov 12  }
  0x13   :  { %35 = dma.hbm_to_vmem [thread:$0]  %s6110_s1, 2688, %s30_s16, [#allocation5], %s5902_s25, %s5902_s25, %s5903_s26  }
  0x14   :  { %s5904_s29 = smov [#allocation2]   ;;  %s5829_s7 = scalar_lea.hbm %s6109_s0, 32 }
  0x15   :  { %s17_s30 = sshll.u32 %s5904_s29, 4  ;;  %p5830_p8 = scmp.ne.s32.totalorder %s6109_s0, %s5829_s7  ;;  %s18_s30 = int_to_ptr.vmem [resolvable:$true] %s17_s30 }
  0x16   :  { %p5833_p9 = scmp.lt.u32.totalorder %s5829_s7, %s6109_s0 }
  0x18   :  { %p5835_p10 = pnand %p5833_p9, %p5830_p8 }
  0x1a   :  { %5838 = shalt.err (!%p5835_p10)
}
  0x1b   :  { %s5839_s12 = scalar_lea.vmem %s18_s30, 32  ;;  %s5843_s1 = scalar_lea.vmem %s18_s30, 128 }
  0x1c   :  { %p5840_p11 = scmp.ne.s32.totalorder %s18_s30, %s5839_s12  ;;  %p5844_p12 = scmp.lt.s32.totalorder %s18_s30, %s18_s30 }
  0x1d   :  { %p5845_p13 = scmp.lt.s32.totalorder %s5843_s1, %s5839_s12 }
  0x1f   :  { %p5846_p0 = por %p5845_p13, %p5844_p12 }
  0x21   :  { %p5847_p1 = pnand %p5846_p0, %p5840_p11 }
  0x23   :  { %5850 = shalt.err (!%p5847_p1)
}
  0x24   :  { %s5905_s13 = smov 32   ;;  %s5906_s14 = smov 2  }
  0x25   :  { %23 = dma.hbm_to_vmem [thread:$0]  %s6109_s0, 32, %s18_s30, [#allocation3], %s5905_s13, %s5905_s13, %s5906_s14  }
  0x26   :  { %s5907_s17 = smov [#allocation6]   ;;  %s5908_s19 = smov [#allocation7]  }
  0x27   :  { %s42_s18 = sshll.u32 %s5907_s17, 4  ;;  %s51_s20 = sshll.u32 %s5908_s19, 4  ;;  %s43_s18 = int_to_ptr.vmem [resolvable:$true] %s42_s18  ;;  %s5964_s20 = int_to_ptr.vmem [resolvable:$true] %s51_s20 }
  0x28   :  { %s5851_s23 = scalar_lea.hbm %s6111_s2, 48 }
  0x29   :  { %p5852_p2 = scmp.ne.s32.totalorder %s6111_s2, %s5851_s23  ;;  %p5855_p3 = scmp.lt.u32.totalorder %s5851_s23, %s6111_s2 }
  0x2b   :  { %p5857_p4 = pnand %p5855_p3, %p5852_p2 }
  0x2d   :  { %5860 = shalt.err (!%p5857_p4)
}
  0x2e   :  { %s5861_s0 = scalar_lea.vmem %s43_s18, 48  ;;  %s5865_s28 = scalar_lea.vmem %s43_s18, 64 }
  0x2f   :  { %p5862_p5 = scmp.ne.s32.totalorder %s43_s18, %s5861_s0  ;;  %p5866_p6 = scmp.lt.s32.totalorder %s43_s18, %s43_s18 }
  0x30   :  { %p5867_p7 = scmp.lt.s32.totalorder %s5865_s28, %s5861_s0 }
  0x32   :  { %p5868_p8 = por %p5867_p7, %p5866_p6 }
  0x34   :  { %p5869_p9 = pnand %p5868_p8, %p5862_p5 }
  0x36   :  { %5872 = shalt.err (!%p5869_p9)
}
  0x37   :  { %45 = dma.hbm_to_vmem [thread:$0]  %s6111_s2, 48, %s43_s18, [#allocation5]  }
  0x38   :  { %s5873_s7 = scalar_lea.hbm %s6112_s3, 73728 }
  0x39   :  { %p5874_p10 = scmp.ne.s32.totalorder %s6112_s3, %s5873_s7  ;;  %p5877_p11 = scmp.lt.u32.totalorder %s5873_s7, %s6112_s3 }
  0x3b   :  { %p5879_p12 = pnand %p5877_p11, %p5874_p10 }
  0x3d   :  { %5882 = shalt.err (!%p5879_p12)
}
  0x3e   :  { %s5883_s12 = scalar_lea.vmem %s5964_s20, 73728  ;;  %p5888_p0 = scmp.lt.s32.totalorder %s5964_s20, %s5964_s20 }
  0x3f   :  { %p5884_p13 = scmp.ne.s32.totalorder %s5964_s20, %s5883_s12  ;;  %p5889_p1 = scmp.lt.s32.totalorder %s5883_s12, %s5883_s12 }
  0x41   :  { %p5890_p2 = por %p5889_p1, %p5888_p0 }
  0x43   :  { %p5891_p3 = pnand %p5890_p2, %p5884_p13 }
  0x45   :  { %5894 = shalt.err (!%p5891_p3)
}
  0x46   :  { %s5909_s2 = smov 1536   ;;  %s5910_s1 = smov 96  }
  0x47   :  { %57 = dma.hbm_to_vmem [thread:$0]  %s6112_s3, 73728, %s5964_s20, [#allocation8], %s5909_s2, %s5909_s2, %s5910_s1  }
  0x48   :  { %5895 = dma.done.wait [#allocation3], 128  }
  0x49   :  { %5896 = vsyncadd [#allocation3], 4294967168 }
  0x4a   :  { %5897 = dma.done.wait [#allocation5], 2736  }
  0x4b   :  { %5898 = vsyncadd [#allocation5], 4294964560 }
  0x4c   :  { %5899 = dma.done.wait [#allocation8], 73728  }
  0x4d   :  { %5900 = vsyncadd [#allocation8], 4294893568  ;;  %v5911_v0 = vmov 0   ;;  %v5912_v1 = vmov 0.0   ;;  %vm5913_vm0 = vmmov 0   ;;  %vm231_vm1 = vcmask 1046528  }
  0x4e   :  { %273 = vmatprep.mubr.bf16.mxu0 %v5911_v0  ;;  %5699 = vmatprep.subr.bf16.mxu1 %v5912_v1  ;;  %v5779_v2 = vld [vmem:[#allocation4 + $0x4] ss:$12 sps:$4 sm:$0xff]   ;;  %v5781_v3 = vld [vmem:[#allocation4] ss:$12 sps:$4 sm:$0xff]   ;;  %v5782_v4 = vld [vmem:[#allocation4 + $0x1c] ss:$12 sps:$4 sm:$0xff]  }
  0x4f   :  { %5713 = vmatprep.mubr.msk.bf16.mxu1 %vm5913_vm0, %v5912_v1  ;;  %241 = vmatprep.subr.bf16.mxu0 %v5779_v2  ;;  %v5784_v5 = vld [vmem:[#allocation4 + $0x18] ss:$12 sps:$4 sm:$0xff]   ;;  %v5785_v6 = vld [vmem:[#allocation4 + $0x34] ss:$12 sps:$4 sm:$0xff]   ;;  %v5787_v7 = vld [vmem:[#allocation4 + $0x30] ss:$12 sps:$4 sm:$0xff]  }
  0x50   :  { %242 = vmatpush1.bf16.msra.mxu0 %v5781_v3  ;;  %v5788_v8 = vld [vmem:[#allocation4 + $0x4c] ss:$12 sps:$4 sm:$0xff]   ;;  %v5800_v9 = vld [vmem:[#allocation4 + $0x8] ss:$12 sps:$4 sm:$0xff]   ;;  %v5791_v11 = vld [vmem:[#allocation4 + $0x64] ss:$12 sps:$4 sm:$0xff]  }
  0x51   :  { %243 = vmatprep.subr.bf16.mxu0 %v5782_v4  ;;  %v5790_v10 = vld [vmem:[#allocation4 + $0x48] ss:$12 sps:$4 sm:$0xff]   ;;  %5700 = vmatpush3.bf16.msra.mxu1 %v5800_v9  ;;  %v5801_v12 = vld [vmem:[#allocation4 + $0x20] ss:$12 sps:$4 sm:$0xff]   ;;  %v5802_v15 = vld [vmem:[#allocation4 + $0x38] ss:$12 sps:$4 sm:$0xff]  }
  0x52   :  { %5701 = vmatprep.subr.bf16.mxu1 %v5912_v1  ;;  %v5793_v13 = vld [vmem:[#allocation4 + $0x60] ss:$12 sps:$4 sm:$0xff]   ;;  %v5794_v14 = vld [vmem:[#allocation4 + $0x7c] ss:$12 sps:$4 sm:$0xff]   ;;  %v5796_v16 = vld [vmem:[#allocation4 + $0x78] ss:$12 sps:$4 sm:$0xff]  }
  0x53   :  { %v5797_v17 = vld [vmem:[#allocation4 + $0x94] ss:$12 sps:$4 sm:$0x7f]   ;;  %v5799_v18 = vld [vmem:[#allocation4 + $0x90] ss:$12 sps:$4 sm:$0x7f]  }
  0x54   :  { %244 = vmatpush1.bf16.msra.mxu0 %v5784_v5  ;;  %v5803_v19 = vld [vmem:[#allocation4 + $0x50] ss:$12 sps:$4 sm:$0xff]   ;;  %v233_v23 = vsel %vm231_vm1, %v5799_v18, 0  ;;  %v5804_v24 = vld [vmem:[#allocation4 + $0x68] ss:$12 sps:$4 sm:$0xff]   ;;  %vm227_vm2 = vcmask 900096  }
  0x55   :  { %245 = vmatprep.subr.bf16.mxu0 %v5785_v6  ;;  %5702 = vmatpush3.bf16.msra.mxu1 %v5801_v12  ;;  %v325_v20 = vld [vmem:[#allocation7] sm:$0xff]  ;;  %v71_v22 = vld [vmem:[#allocation2] sm:$0xff] }
  0x56   :  { %5703 = vmatprep.subr.bf16.mxu1 %v5912_v1  ;;  %v337_v21 = vld [vmem:[#allocation7 + $0x60] sm:$0xff]  ;;  %v72_v28 = vpack.c.bf16 %v71_v22, %v71_v22  ;;  %v5806_v32 = vld [vmem:[#allocation4 + $0x98] ss:$12 sps:$4 sm:$0x7f]  }
  0x57   :  { %v5116_v25 = vcombine.high %v325_v20, %v337_v21  ;;  %v349_v26 = vld [vmem:[#allocation7 + $0xc0] sm:$0xff]  ;;  %v5115_v29 = vcombine.low %v325_v20, %v337_v21  ;;  %v326_v35 = vld [vmem:[#allocation7 + $0x8] sm:$0xff]  ;;  %v239_v39 = vsel %vm231_vm1, %v5806_v32, 0 }
  0x58   :  { %246 = vmatpush1.bf16.msra.mxu0 %v5787_v7  ;;  %v361_v27 = vld [vmem:[#allocation7 + $0x120] sm:$0xff]  ;;  %v338_v36 = vld [vmem:[#allocation7 + $0x68] sm:$0xff] }
  0x59   :  { %247 = vmatprep.subr.bf16.mxu0 %v5788_v8  ;;  %5704 = vmatpush3.bf16.msra.mxu1 %v5802_v15  ;;  %v5805_v30 = vld [vmem:[#allocation4 + $0x80] ss:$12 sps:$4 sm:$0xff]   ;;  %v5140_v31 = vcombine.high %v349_v26, %v361_v27  ;;  %v5139_v37 = vcombine.low %v349_v26, %v361_v27  ;;  %v5118_v40 = vcombine.high %v326_v35, %v338_v36  ;;  %v350_v43 = vld [vmem:[#allocation7 + $0xc8] sm:$0xff] }
  0x5a   :  { %5705 = vmatprep.subr.bf16.mxu1 %v5912_v1  ;;  %v373_v33 = vld [vmem:[#allocation7 + $0x180] sm:$0xff]  ;;  %v362_v44 = vld [vmem:[#allocation7 + $0x128] sm:$0xff]  ;;  %v5117_v46 = vcombine.low %v326_v35, %v338_v36 }
  0x5b   :  { %v385_v34 = vld [vmem:[#allocation7 + $0x1e0] sm:$0xff]  ;;  %v5142_v48 = vcombine.high %v350_v43, %v362_v44  ;;  %v374_v51 = vld [vmem:[#allocation7 + $0x188] sm:$0xff]  ;;  %v5141_v54 = vcombine.low %v350_v43, %v362_v44 }
  0x5c   :  { %248 = vmatpush1.bf16.msra.mxu0 %v5790_v10  ;;  %v5164_v38 = vcombine.high %v373_v33, %v385_v34  ;;  %v397_v41 = vld [vmem:[#allocation7 + $0x240] sm:$0xff]  ;;  %v5163_v45 = vcombine.low %v373_v33, %v385_v34  ;;  %v386_v52 = vld [vmem:[#allocation7 + $0x1e8] sm:$0xff] }
  0x5d   :  { %249 = vmatprep.subr.bf16.mxu0 %v5791_v11  ;;  %5706 = vmatpush3.bf16.msra.mxu1 %v5803_v19  ;;  %v409_v42 = vld [vmem:[#allocation7 + $0x2a0] sm:$0xff]  ;;  %v5166_v56 = vcombine.high %v374_v51, %v386_v52  ;;  %v398_v59 = vld [vmem:[#allocation7 + $0x248] sm:$0xff]  ;;  %v5165_v62 = vcombine.low %v374_v51, %v386_v52 }
  0x5e   :  { %5707 = vmatprep.subr.bf16.mxu1 %v5912_v1  ;;  %v5188_v47 = vcombine.high %v397_v41, %v409_v42  ;;  %v421_v49 = vld [vmem:[#allocation7 + $0x300] sm:$0xff]  ;;  %v5187_v53 = vcombine.low %v397_v41, %v409_v42  ;;  %v410_v60 = vld [vmem:[#allocation7 + $0x2a8] sm:$0xff] }
  0x5f   :  { %v433_v50 = vld [vmem:[#allocation7 + $0x360] sm:$0xff]  ;;  %v422_v4 = vld [vmem:[#allocation7 + $0x308] sm:$0xff]  ;;  %v5189_v7 = vcombine.low %v398_v59, %v410_v60 }
  0x60   :  { %250 = vmatpush1.bf16.msra.mxu0 %v5793_v13  ;;  %v5212_v55 = vcombine.high %v421_v49, %v433_v50  ;;  %v445_v57 = vld [vmem:[#allocation7 + $0x3c0] sm:$0xff]  ;;  %v5211_v61 = vcombine.low %v421_v49, %v433_v50  ;;  %v434_v5 = vld [vmem:[#allocation7 + $0x368] sm:$0xff] }
  0x61   :  { %251 = vmatprep.subr.bf16.mxu0 %v5794_v14  ;;  %5708 = vmatpush3.bf16.msra.mxu1 %v5804_v24  ;;  %v457_v58 = vld [vmem:[#allocation7 + $0x420] sm:$0xff]  ;;  %v5214_v9 = vcombine.high %v422_v4, %v434_v5  ;;  %v446_v12 = vld [vmem:[#allocation7 + $0x3c8] sm:$0xff]  ;;  %v5213_v15 = vcombine.low %v422_v4, %v434_v5 }
  0x62   :  { %5709 = vmatprep.subr.bf16.mxu1 %v5912_v1  ;;  %v5236_v63 = vcombine.high %v445_v57, %v457_v58  ;;  %v469_v2 = vld [vmem:[#allocation7 + $0x480] sm:$0xff]  ;;  %v5235_v6 = vcombine.low %v445_v57, %v457_v58  ;;  %v458_v13 = vld [vmem:[#allocation7 + $0x428] sm:$0xff] }
  0x63   :  { %v481_v3 = vld [vmem:[#allocation7 + $0x4e0] sm:$0xff]  ;;  %v470_v20 = vld [vmem:[#allocation7 + $0x488] sm:$0xff] }
  0x64   :  { %252 = vmatpush1.bf16.msra.mxu0 %v5796_v16  ;;  %v5260_v8 = vcombine.high %v469_v2, %v481_v3  ;;  %v493_v10 = vld [vmem:[#allocation7 + $0x540] sm:$0xff]  ;;  %v5259_v14 = vcombine.low %v469_v2, %v481_v3  ;;  %v482_v21 = vld [vmem:[#allocation7 + $0x4e8] sm:$0xff] }
  0x65   :  { %5112 = vmatprep.subr.msk.bf16.mxu0 %vm231_vm1, %v5797_v17  ;;  %5710 = vmatpush3.bf16.msra.mxu1 %v5805_v30  ;;  %v505_v11 = vld [vmem:[#allocation7 + $0x5a0] sm:$0xff]  ;;  %v5238_v17 = vcombine.high %v446_v12, %v458_v13  ;;  %v518_v36 = vld [vmem:[#allocation7 + $0x608] sm:$0xff] }
  0x66   :  { %5711 = vmatprep.subr.bf16.mxu1 %v5912_v1  ;;  %v5190_v1 = vcombine.high %v398_v59, %v410_v60  ;;  %v5284_v16 = vcombine.high %v493_v10, %v505_v11  ;;  %v517_v18 = vld [vmem:[#allocation7 + $0x600] sm:$0xff]  ;;  %v5283_v22 = vcombine.low %v493_v10, %v505_v11  ;;  %v542_v44 = vld [vmem:[#allocation7 + $0x6c8] sm:$0xff] }
  0x67   :  { %v529_v19 = vld [vmem:[#allocation7 + $0x660] sm:$0xff]  ;;  %v566_v52 = vld [vmem:[#allocation7 + $0x788] sm:$0xff] }
  0x68   :  { %254 = vmatpush1.bf16.msra.mxu0 %v233_v23  ;;  %v5237_v23 = vcombine.low %v446_v12, %v458_v13  ;;  %v5308_v24 = vcombine.high %v517_v18, %v529_v19  ;;  %v541_v26 = vld [vmem:[#allocation7 + $0x6c0] sm:$0xff]  ;;  %v5307_v30 = vcombine.low %v517_v18, %v529_v19  ;;  %v590_v60 = vld [vmem:[#allocation7 + $0x848] sm:$0xff] }
  0x69   :  { %3781 = vmatprep.subr.bf16.mxu0 %v5116_v25  ;;  %5712 = vmatpush3.bf16.msra.mxu1 %v239_v39  ;;  %v5262_v25 = vcombine.high %v470_v20, %v482_v21  ;;  %v553_v27 = vld [vmem:[#allocation7 + $0x720] sm:$0xff]  ;;  %v614_v5 = vld [vmem:[#allocation7 + $0x908] sm:$0xff] }
  0x6a   :  { %3863 = vmatprep.subr.bf16.mxu1 %v5118_v40  ;;  %v5332_v32 = vcombine.high %v541_v26, %v553_v27  ;;  %v565_v34 = vld [vmem:[#allocation7 + $0x780] sm:$0xff]  ;;  %v638_v11 = vld [vmem:[#allocation7 + $0x9c8] sm:$0xff] }
  0x6b   :  { %5113 = vmatmul.mubr.msk.bf16.vlgmr.msra.gmra.mrb[0].mxu0 %vm227_vm2, %v72_v28  ;;  %v577_v35 = vld [vmem:[#allocation7 + $0x7e0] sm:$0xff]  ;;  %v650_v12 = vld [vmem:[#allocation7 + $0xa28] sm:$0xff] }
  0x6c   :  { %3782 = vmatpush1.bf16.msra.mxu0 %v5115_v29  ;;  %5714 = vmatmul.mubr.msk.bf16.vlgmr.msra.gmra.mrb[0].mxu1 %vm227_vm2, %v72_v28  ;;  %v494_v28 = vld [vmem:[#allocation7 + $0x548] sm:$0xff]  ;;  %v5356_v40 = vcombine.high %v565_v34, %v577_v35  ;;  %v589_v42 = vld [vmem:[#allocation7 + $0x840] sm:$0xff]  ;;  %v5429_v18 = vcombine.low %v638_v11, %v650_v12 }
  0x6d   :  { %3783 = vmatprep.subr.bf16.mxu0 %v5140_v31  ;;  %3864 = vmatpush1.bf16.msra.mxu1 %v5117_v46  ;;  %v506_v29 = vld [vmem:[#allocation7 + $0x5a8] sm:$0xff]  ;;  %v5261_v31 = vcombine.low %v470_v20, %v482_v21  ;;  %v601_v43 = vld [vmem:[#allocation7 + $0x8a0] sm:$0xff]  ;;  %v5355_v46 = vcombine.low %v565_v34, %v577_v35 }
  0x6e   :  { %3865 = vmatprep.subr.bf16.mxu1 %v5142_v48  ;;  %v5286_v33 = vcombine.high %v494_v28, %v506_v29  ;;  %v5285_v39 = vcombine.low %v494_v28, %v506_v29  ;;  %v5380_v48 = vcombine.high %v589_v42, %v601_v43  ;;  %v613_v50 = vld [vmem:[#allocation7 + $0x900] sm:$0xff] }
  0x6f   :  { %v625_v51 = vld [vmem:[#allocation7 + $0x960] sm:$0xff] }
  0x70   :  { %3784 = vmatpush1.bf16.msra.mxu0 %v5139_v37  ;;  %v530_v37 = vld [vmem:[#allocation7 + $0x668] sm:$0xff]  ;;  %v637_v58 = vld [vmem:[#allocation7 + $0x9c0] sm:$0xff] }
  0x71   :  { %3785 = vmatprep.subr.bf16.mxu0 %v5164_v38  ;;  %3866 = vmatpush1.bf16.msra.mxu1 %v5141_v54  ;;  %v5331_v38 = vcombine.low %v541_v26, %v553_v27  ;;  %v5310_v41 = vcombine.high %v518_v36, %v530_v37  ;;  %v5379_v54 = vcombine.low %v589_v42, %v601_v43  ;;  %v649_v59 = vld [vmem:[#allocation7 + $0xa20] sm:$0xff] }
  0x72   :  { %3867 = vmatprep.subr.bf16.mxu1 %v5166_v56  ;;  %v5404_v56 = vcombine.high %v613_v50, %v625_v51  ;;  %v661_v3 = vld [vmem:[#allocation7 + $0xa80] sm:$0xff] }
  0x73   :  { %v673_v4 = vld [vmem:[#allocation7 + $0xae0] sm:$0xff] }
  0x74   :  { %3786 = vmatpush1.bf16.msra.mxu0 %v5163_v45  ;;  %v554_v45 = vld [vmem:[#allocation7 + $0x728] sm:$0xff]  ;;  %v5451_v13 = vcombine.low %v661_v3, %v673_v4  ;;  %v685_v21 = vld [vmem:[#allocation7 + $0xb40] sm:$0xff] }
  0x75   :  { %3787 = vmatprep.subr.bf16.mxu0 %v5188_v47  ;;  %3868 = vmatpush1.bf16.msra.mxu1 %v5165_v62  ;;  %v5309_v47 = vcombine.low %v518_v36, %v530_v37  ;;  %v5334_v49 = vcombine.high %v542_v44, %v554_v45  ;;  %v5403_v62 = vcombine.low %v613_v50, %v625_v51  ;;  %v709_v29 = vld [vmem:[#allocation7 + $0xc00] sm:$0xff]  ;;  %v103_v37 = vlaneseq  ;;  %v734_v51 = vld [vmem:[#allocation7 + $0xcc8] sm:$0xff] }
  0x76   :  { %3869 = vmatprep.subr.bf16.mxu1 %v5190_v1  ;;  %v5428_v1 = vcombine.high %v637_v58, %v649_v59  ;;  %v745_v50 = vld [vmem:[#allocation7 + $0xd20] sm:$0xff] }
  0x78   :  { %3788 = vmatpush1.bf16.msra.mxu0 %v5187_v53  ;;  %v578_v53 = vld [vmem:[#allocation7 + $0x7e8] sm:$0xff] }
  0x79   :  { %3789 = vmatprep.subr.bf16.mxu0 %v5212_v55  ;;  %3870 = vmatpush1.bf16.msra.mxu1 %v5189_v7  ;;  %v5333_v55 = vcombine.low %v542_v44, %v554_v45  ;;  %v5358_v57 = vcombine.high %v566_v52, %v578_v53  ;;  %v5427_v7 = vcombine.low %v637_v58, %v649_v59  ;;  %v757_v58 = vld [vmem:[#allocation7 + $0xd80] sm:$0xff] }
  0x7a   :  { %3871 = vmatprep.subr.bf16.mxu1 %v5214_v9  ;;  %v5452_v9 = vcombine.high %v661_v3, %v673_v4  ;;  %v769_v59 = vld [vmem:[#allocation7 + $0xde0] sm:$0xff] }
  0x7b   :  { %v781_v3 = vld [vmem:[#allocation7 + $0xe40] sm:$0xff] }
  0x7c   :  { %3790 = vmatpush1.bf16.msra.mxu0 %v5211_v61  ;;  %v602_v61 = vld [vmem:[#allocation7 + $0x8a8] sm:$0xff] }
  0x7d   :  { %3791 = vmatprep.subr.bf16.mxu0 %v5236_v63  ;;  %3872 = vmatpush1.bf16.msra.mxu1 %v5213_v15  ;;  %v5357_v63 = vcombine.low %v566_v52, %v578_v53  ;;  %v5382_v2 = vcombine.high %v590_v60, %v602_v61  ;;  %v5430_v15 = vcombine.high %v638_v11, %v650_v12  ;;  %v746_v52 = vld [vmem:[#allocation7 + $0xd28] sm:$0xff] }
  0x7e   :  { %3873 = vmatprep.subr.bf16.mxu1 %v5238_v17  ;;  %v674_v17 = vld [vmem:[#allocation7 + $0xae8] sm:$0xff] }
  0x80   :  { %3792 = vmatpush1.bf16.msra.mxu0 %v5235_v6  ;;  %v626_v6 = vld [vmem:[#allocation7 + $0x968] sm:$0xff] }
  0x81   :  { %3793 = vmatprep.subr.bf16.mxu0 %v5260_v8  ;;  %3874 = vmatpush1.bf16.msra.mxu1 %v5237_v23  ;;  %v5381_v8 = vcombine.low %v590_v60, %v602_v61  ;;  %v5406_v10 = vcombine.high %v614_v5, %v626_v6  ;;  %v686_v23 = vld [vmem:[#allocation7 + $0xb48] sm:$0xff] }
  0x82   :  { %3875 = vmatprep.subr.bf16.mxu1 %v5262_v25  ;;  %v698_v25 = vld [vmem:[#allocation7 + $0xba8] sm:$0xff] }
  0x83   :  { %v5477_v27 = vcombine.low %v686_v23, %v698_v25  ;;  %v5478_v28 = vcombine.high %v686_v23, %v698_v25  ;;  %v758_v60 = vld [vmem:[#allocation7 + $0xd88] sm:$0xff]  ;;  %v829_v23 = vld [vmem:[#allocation7 + $0xfc0] sm:$0xff] }
  0x84   :  { %3794 = vmatpush1.bf16.msra.mxu0 %v5259_v14  ;;  %v5405_v14 = vcombine.low %v614_v5, %v626_v6  ;;  %v770_v61 = vld [vmem:[#allocation7 + $0xde8] sm:$0xff]  ;;  %v793_v5 = vld [vmem:[#allocation7 + $0xea0] sm:$0xff] }
  0x85   :  { %3795 = vmatprep.subr.bf16.mxu0 %v5284_v16  ;;  %3876 = vmatpush1.bf16.msra.mxu1 %v5261_v31  ;;  %v662_v16 = vld [vmem:[#allocation7 + $0xa88] sm:$0xff]  ;;  %v5549_v11 = vcombine.low %v758_v60, %v770_v61 }
  0x86   :  { %3877 = vmatprep.subr.bf16.mxu1 %v5286_v33  ;;  %v5454_v19 = vcombine.high %v662_v16, %v674_v17  ;;  %v5453_v20 = vcombine.low %v662_v16, %v674_v17  ;;  %v710_v31 = vld [vmem:[#allocation7 + $0xc08] sm:$0xff]  ;;  %v817_v16 = vld [vmem:[#allocation7 + $0xf60] sm:$0xff] }
  0x87   :  { %v722_v33 = vld [vmem:[#allocation7 + $0xc68] sm:$0xff] }
  0x88   :  { %3796 = vmatpush1.bf16.msra.mxu0 %v5283_v22  ;;  %v697_v22 = vld [vmem:[#allocation7 + $0xba0] sm:$0xff]  ;;  %v5501_v35 = vcombine.low %v710_v31, %v722_v33  ;;  %v5502_v36 = vcombine.high %v710_v31, %v722_v33  ;;  %v782_v6 = vld [vmem:[#allocation7 + $0xe48] sm:$0xff] }
  0x89   :  { %3797 = vmatprep.subr.bf16.mxu0 %v5308_v24  ;;  %3878 = vmatpush1.bf16.msra.mxu1 %v5285_v39  ;;  %v5476_v24 = vcombine.high %v685_v21, %v697_v22  ;;  %v5475_v26 = vcombine.low %v685_v21, %v697_v22  ;;  %v806_v17 = vld [vmem:[#allocation7 + $0xf08] sm:$0xff]  ;;  %v853_v31 = vld [vmem:[#allocation7 + $0x1080] sm:$0xff] }
  0x8a   :  { %3879 = vmatprep.subr.bf16.mxu1 %v5310_v41  ;;  %v830_v25 = vld [vmem:[#allocation7 + $0xfc8] sm:$0xff] }
  0x8b   :  { %v854_v33 = vld [vmem:[#allocation7 + $0x1088] sm:$0xff] }
  0x8c   :  { %3798 = vmatpush1.bf16.msra.mxu0 %v5307_v30  ;;  %v721_v30 = vld [vmem:[#allocation7 + $0xc60] sm:$0xff] }
  0x8d   :  { %3799 = vmatprep.subr.bf16.mxu0 %v5332_v32  ;;  %3880 = vmatpush1.bf16.msra.mxu1 %v5309_v47  ;;  %v5500_v32 = vcombine.high %v709_v29, %v721_v30  ;;  %v5499_v34 = vcombine.low %v709_v29, %v721_v30  ;;  %v733_v47 = vld [vmem:[#allocation7 + $0xcc0] sm:$0xff] }
  0x8e   :  { %3881 = vmatprep.subr.bf16.mxu1 %v5334_v49 }
  0x90   :  { %3800 = vmatpush1.bf16.msra.mxu0 %v5331_v38  ;;  %v6009_v38 = vshrl.u32 %v103_v37, 7 }
  0x91   :  { %3801 = vmatprep.subr.bf16.mxu0 %v5356_v40  ;;  %3882 = vmatpush1.bf16.msra.mxu1 %v5333_v55  ;;  %v6012_v40 = vld [vmem:[#allocation6] sm:$0x7] }
  0x92   :  { %3883 = vmatprep.subr.bf16.mxu1 %v5358_v57  ;;  %v105_v39 = vsub.s32 0, %v6009_v38  ;;  %v109_v41 = vsub.s32 1, %v6009_v38  ;;  %v5526_v57 = vcombine.high %v734_v51, %v746_v52 }
  0x94   :  { %3802 = vmatpush1.bf16.msra.mxu0 %v5355_v46  ;;  %v106_v42 = vrot.slane %v6012_v40, %v105_v39  ;;  %v110_v43 = vrot.slane %v6012_v40, %v109_v41 }
  0x95   :  { %3803 = vmatprep.subr.bf16.mxu0 %v5380_v48  ;;  %3884 = vmatpush1.bf16.msra.mxu1 %v5357_v63  ;;  %v5525_v63 = vcombine.low %v734_v51, %v746_v52  ;;  %v327_v51 = vld [vmem:[#allocation7 + $0x10] sm:$0xff] }
  0x96   :  { %3885 = vmatprep.subr.bf16.mxu1 %v5382_v2  ;;  %v5550_v2 = vcombine.high %v758_v60, %v770_v61  ;;  %v339_v52 = vld [vmem:[#allocation7 + $0x70] sm:$0xff] }
  0x97   :  { %v351_v61 = vld [vmem:[#allocation7 + $0xd0] sm:$0xff] }
  0x98   :  { %3804 = vmatpush1.bf16.msra.mxu0 %v5379_v54 }
  0x99   :  { %3805 = vmatprep.subr.bf16.mxu0 %v5404_v56  ;;  %3886 = vmatpush1.bf16.msra.mxu1 %v5381_v8  ;;  %v5524_v56 = vcombine.high %v733_v47, %v745_v50 }
  0x9a   :  { %3887 = vmatprep.subr.bf16.mxu1 %v5406_v10  ;;  %v5547_v10 = vcombine.low %v757_v58, %v769_v59 }
  0x9c   :  { %3806 = vmatpush1.bf16.msra.mxu0 %v5403_v62  ;;  %v5523_v62 = vcombine.low %v733_v47, %v745_v50 }
  0x9d   :  { %3807 = vmatprep.subr.bf16.mxu0 %v5428_v1  ;;  %3888 = vmatpush1.bf16.msra.mxu1 %v5405_v14  ;;  %v5548_v1 = vcombine.high %v757_v58, %v769_v59 }
  0x9e   :  { %3889 = vmatprep.subr.bf16.mxu1 %v5430_v15  ;;  %v805_v15 = vld [vmem:[#allocation7 + $0xf00] sm:$0xff] }
  0x9f   :  { %v5596_v21 = vcombine.high %v805_v15, %v817_v16 }
  0xa0   :  { %3808 = vmatpush1.bf16.msra.mxu0 %v5427_v7  ;;  %v794_v7 = vld [vmem:[#allocation7 + $0xea8] sm:$0xff] }
  0xa1   :  { %3809 = vmatprep.subr.bf16.mxu0 %v5452_v9  ;;  %3890 = vmatpush1.bf16.msra.mxu1 %v5429_v18  ;;  %v5574_v14 = vcombine.high %v782_v6, %v794_v7  ;;  %v818_v18 = vld [vmem:[#allocation7 + $0xf68] sm:$0xff] }
  0xa2   :  { %3891 = vmatprep.subr.bf16.mxu1 %v5454_v19  ;;  %v5571_v19 = vcombine.low %v781_v3, %v793_v5  ;;  %v5598_v22 = vcombine.high %v806_v17, %v818_v18 }
  0xa4   :  { %3810 = vmatpush1.bf16.msra.mxu0 %v5451_v13  ;;  %v5572_v13 = vcombine.high %v781_v3, %v793_v5  ;;  %v5119_v3 = vcombine.low %v327_v51, %v339_v52 }
  0xa5   :  { %3892 = vmatpush1.bf16.msra.mxu1 %v5453_v20  ;;  %3811 = vmatprep.subr.bf16.mxu0 %v5476_v24  ;;  %v5573_v20 = vcombine.low %v782_v6, %v794_v7  ;;  %v841_v24 = vld [vmem:[#allocation7 + $0x1020] sm:$0xff]  ;;  %v375_v7 = vld [vmem:[#allocation7 + $0x190] sm:$0xff] }
  0xa6   :  { %3893 = vmatprep.subr.bf16.mxu1 %v5478_v28  ;;  %v5597_v28 = vcombine.low %v806_v17, %v818_v18  ;;  %v5620_v29 = vcombine.high %v829_v23, %v841_v24  ;;  %v400_v17 = vld [vmem:[#allocation7 + $0x258] sm:$0xff] }
  0xa7   :  { %v412_v18 = vld [vmem:[#allocation7 + $0x2b8] sm:$0xff] }
  0xa8   :  { %3812 = vmatpush1.bf16.msra.mxu0 %v5475_v26  ;;  %v842_v26 = vld [vmem:[#allocation7 + $0x1028] sm:$0xff] }
  0xa9   :  { %3894 = vmatpush1.bf16.msra.mxu1 %v5477_v27  ;;  %3822 = vmatprep.subr.bf16.mxu0 %v5500_v32  ;;  %v5595_v27 = vcombine.low %v805_v15, %v817_v16  ;;  %v5622_v30 = vcombine.high %v830_v25, %v842_v26  ;;  %v865_v32 = vld [vmem:[#allocation7 + $0x10e0] sm:$0xff]  ;;  %v5621_v37 = vcombine.low %v830_v25, %v842_v26  ;;  %v399_v15 = vld [vmem:[#allocation7 + $0x250] sm:$0xff]  ;;  %v424_v25 = vld [vmem:[#allocation7 + $0x318] sm:$0xff] }
  0xaa   :  { %3904 = vmatprep.subr.bf16.mxu1 %v5502_v36  ;;  %v5619_v36 = vcombine.low %v829_v23, %v841_v24  ;;  %v5644_v39 = vcombine.high %v853_v31, %v865_v32  ;;  %v5643_v47 = vcombine.low %v853_v31, %v865_v32  ;;  %v411_v16 = vld [vmem:[#allocation7 + $0x2b0] sm:$0xff]  ;;  %v436_v26 = vld [vmem:[#allocation7 + $0x378] sm:$0xff] }
  0xab   :  { %v423_v23 = vld [vmem:[#allocation7 + $0x310] sm:$0xff] }
  0xac   :  { %v435_v24 = vld [vmem:[#allocation7 + $0x370] sm:$0xff] }
  0xad   :  { %v447_v31 = vld [vmem:[#allocation7 + $0x3d0] sm:$0xff] }
  0xae   :  { %v459_v32 = vld [vmem:[#allocation7 + $0x430] sm:$0xff] }
 0x13e   :  { %v275_v44 = vpop.f32.mrb[0].mxu0 }
 0x13f   :  { %v276_v45 = vadd.f32 %v275_v44, %v106_v42  ;;  %v277_v46 = vpop.f32.mrb[1].mxu0  ;;  %v6025_v4 = vpop.f32.mrb[0].mxu1  ;;  %v877_v42 = vld [vmem:[#allocation7 + $0x1140] sm:$0xff]  ;;  %v878_v44 = vld [vmem:[#allocation7 + $0x1148] sm:$0xff] }
 0x140   :  { %v278_v48 = vadd.f32 %v277_v46, %v110_v43  ;;  %v279_v49 = vpop.f32.mrb[2].mxu0  ;;  %v5715_v8 = vpop.f32.mrb[1].mxu1  ;;  %v889_v43 = vld [vmem:[#allocation7 + $0x11a0] sm:$0xff] }
 0x141   :  { %v280_v53 = vpop.f32.mrb[3].mxu0  ;;  %v6019_v55 = vpack.c.bf16 %v276_v45, %v276_v45  ;;  %v319_v9 = vpop.f32.mrb[2].mxu1  ;;  %v890_v45 = vld [vmem:[#allocation7 + $0x11a8] sm:$0xff]  ;;  %v5668_v49 = vcombine.high %v877_v42, %v889_v43  ;;  %v5667_v58 = vcombine.low %v877_v42, %v889_v43  ;;  %v387_v8 = vld [vmem:[#allocation7 + $0x1f0] sm:$0xff]  ;;  %v472_v43 = vld [vmem:[#allocation7 + $0x498] sm:$0xff] }
 0x142   :  { %v6017_v54 = vpack.c.bf16 %v278_v48, %v278_v48  ;;  %v5716_v12 = vpop.f32.mrb[3].mxu1  ;;  %v5670_v50 = vcombine.high %v878_v44, %v890_v45  ;;  %v328_v53 = vld [vmem:[#allocation7 + $0x18] sm:$0xff]  ;;  %v5669_v59 = vcombine.low %v878_v44, %v890_v45  ;;  %v483_v42 = vld [vmem:[#allocation7 + $0x4f0] sm:$0xff]  ;;  %v5239_v45 = vcombine.low %v447_v31, %v459_v32 }
 0x143   :  { %v376_v9 = vld [vmem:[#allocation7 + $0x198] sm:$0xff] }
 0x144   :  { %3813 = vmatprep.mubr.bf16.mxu0 %v6017_v54  ;;  %3895 = vmatprep.mubr.bf16.mxu1 %v6017_v54  ;;  %v484_v44 = vld [vmem:[#allocation7 + $0x4f8] sm:$0xff] }
 0x145   :  { %3814 = vmatmul.mubr.bf16.vlgmr.msra.gmra.mrb[4].mxu0 %v6019_v55  ;;  %3896 = vmatmul.mubr.bf16.vlgmr.msra.gmra.mrb[4].mxu1 %v6019_v55 }
 0x146   :  { %3823 = vmatpush1.bf16.msra.mxu0 %v5499_v34  ;;  %3905 = vmatpush1.bf16.msra.mxu1 %v5501_v35  ;;  %v866_v34 = vld [vmem:[#allocation7 + $0x10e8] sm:$0xff]  ;;  %v113_v35 = vsub.s32 2, %v6009_v38 }
 0x147   :  { %3824 = vmatprep.subr.bf16.mxu0 %v5524_v56  ;;  %3906 = vmatprep.subr.bf16.mxu1 %v5526_v57  ;;  %v5646_v41 = vcombine.high %v854_v33, %v866_v34  ;;  %v5645_v48 = vcombine.low %v854_v33, %v866_v34  ;;  %v340_v56 = vld [vmem:[#allocation7 + $0x78] sm:$0xff] }
 0x148   :  { %3854 = vmatprep.mubr.bf16.mxu0 %v5911_v0  ;;  %3936 = vmatprep.mubr.bf16.mxu1 %v5911_v0  ;;  %v114_v46 = vrot.slane %v6012_v40, %v113_v35  ;;  %v5120_v40 = vcombine.high %v327_v51, %v339_v52  ;;  %v5122_v60 = vcombine.high %v328_v53, %v340_v56  ;;  %v448_v33 = vld [vmem:[#allocation7 + $0x3d8] sm:$0xff] }
 0x149   :  { %v5121_v5 = vcombine.low %v328_v53, %v340_v56  ;;  %v460_v34 = vld [vmem:[#allocation7 + $0x438] sm:$0xff]  ;;  %v5215_v35 = vcombine.low %v423_v23, %v435_v24  ;;  %v5265_v56 = vcombine.low %v472_v43, %v484_v44 }
 0x14a   :  { %3825 = vmatpush1.bf16.msra.mxu0 %v5523_v62  ;;  %3907 = vmatpush1.bf16.msra.mxu1 %v5525_v63  ;;  %v317_v57 = vadd.f32 %v6025_v4, %v114_v46  ;;  %v363_v63 = vld [vmem:[#allocation7 + $0x130] sm:$0xff]  ;;  %v5241_v46 = vcombine.low %v448_v33, %v460_v34  ;;  %v496_v51 = vld [vmem:[#allocation7 + $0x558] sm:$0xff] }
 0x14b   :  { %3826 = vmatprep.subr.bf16.mxu0 %v5548_v1  ;;  %3908 = vmatprep.subr.bf16.mxu1 %v5550_v2  ;;  %v352_v1 = vld [vmem:[#allocation7 + $0xd8] sm:$0xff]  ;;  %v5144_v4 = vcombine.high %v351_v61, %v363_v63 }
 0x14c   :  { %v6032_v62 = vpack.c.bf16 %v317_v57, %v317_v57  ;;  %v364_v2 = vld [vmem:[#allocation7 + $0x138] sm:$0xff] }
 0x14d   :  { %v5146_v6 = vcombine.high %v352_v1, %v364_v2  ;;  %v5145_v12 = vcombine.low %v352_v1, %v364_v2  ;;  %v508_v52 = vld [vmem:[#allocation7 + $0x5b8] sm:$0xff] }
 0x14e   :  { %3827 = vmatpush1.bf16.msra.mxu0 %v5547_v10  ;;  %3909 = vmatpush1.bf16.msra.mxu1 %v5549_v11  ;;  %v388_v10 = vld [vmem:[#allocation7 + $0x1f8] sm:$0xff]  ;;  %v5143_v11 = vcombine.low %v351_v61, %v363_v63  ;;  %v5289_v1 = vcombine.low %v496_v51, %v508_v52 }
 0x14f   :  { %3828 = vmatprep.subr.bf16.mxu0 %v5572_v13  ;;  %3910 = vmatprep.subr.bf16.mxu1 %v5574_v14  ;;  %v5168_v13 = vcombine.high %v375_v7, %v387_v8  ;;  %v5170_v14 = vcombine.high %v376_v9, %v388_v10  ;;  %v532_v61 = vld [vmem:[#allocation7 + $0x678] sm:$0xff] }
 0x152   :  { %3829 = vmatpush1.bf16.msra.mxu0 %v5571_v19  ;;  %3911 = vmatpush1.bf16.msra.mxu1 %v5573_v20  ;;  %v5167_v19 = vcombine.low %v375_v7, %v387_v8  ;;  %v5169_v20 = vcombine.low %v376_v9, %v388_v10  ;;  %v556_v7 = vld [vmem:[#allocation7 + $0x738] sm:$0xff] }
 0x153   :  { %3830 = vmatprep.subr.bf16.mxu0 %v5596_v21  ;;  %3912 = vmatprep.subr.bf16.mxu1 %v5598_v22  ;;  %v5192_v21 = vcombine.high %v399_v15, %v411_v16  ;;  %v5194_v22 = vcombine.high %v400_v17, %v412_v18 }
 0x156   :  { %3831 = vmatpush1.bf16.msra.mxu0 %v5595_v27  ;;  %3913 = vmatpush1.bf16.msra.mxu1 %v5597_v28  ;;  %v5191_v27 = vcombine.low %v399_v15, %v411_v16  ;;  %v5193_v28 = vcombine.low %v400_v17, %v412_v18  ;;  %v580_v15 = vld [vmem:[#allocation7 + $0x7f8] sm:$0xff] }
 0x157   :  { %3832 = vmatprep.subr.bf16.mxu0 %v5620_v29  ;;  %3914 = vmatprep.subr.bf16.mxu1 %v5622_v30  ;;  %v5216_v29 = vcombine.high %v423_v23, %v435_v24  ;;  %v5218_v30 = vcombine.high %v424_v25, %v436_v26  ;;  %v604_v23 = vld [vmem:[#allocation7 + $0x8b8] sm:$0xff] }
 0x15a   :  { %3833 = vmatpush1.bf16.msra.mxu0 %v5619_v36  ;;  %3915 = vmatpush1.bf16.msra.mxu1 %v5621_v37  ;;  %v5217_v36 = vcombine.low %v424_v25, %v436_v26  ;;  %v5240_v37 = vcombine.high %v447_v31, %v459_v32  ;;  %v628_v31 = vld [vmem:[#allocation7 + $0x978] sm:$0xff] }
 0x15b   :  { %3834 = vmatprep.subr.bf16.mxu0 %v5644_v39  ;;  %3916 = vmatprep.subr.bf16.mxu1 %v5646_v41  ;;  %v5242_v39 = vcombine.high %v448_v33, %v460_v34  ;;  %v471_v41 = vld [vmem:[#allocation7 + $0x490] sm:$0xff] }
 0x15c   :  { %v5263_v53 = vcombine.low %v471_v41, %v483_v42 }
 0x15e   :  { %3835 = vmatpush1.bf16.msra.mxu0 %v5643_v47  ;;  %3917 = vmatpush1.bf16.msra.mxu1 %v5645_v48  ;;  %v5264_v47 = vcombine.high %v471_v41, %v483_v42  ;;  %v5266_v48 = vcombine.high %v472_v43, %v484_v44  ;;  %v652_v41 = vld [vmem:[#allocation7 + $0xa38] sm:$0xff] }
 0x15f   :  { %3836 = vmatprep.subr.bf16.mxu0 %v5668_v49  ;;  %3918 = vmatprep.subr.bf16.mxu1 %v5670_v50  ;;  %v495_v49 = vld [vmem:[#allocation7 + $0x550] sm:$0xff] }
 0x160   :  { %v507_v50 = vld [vmem:[#allocation7 + $0x5b0] sm:$0xff] }
 0x161   :  { %v5288_v57 = vcombine.high %v495_v49, %v507_v50  ;;  %v5287_v63 = vcombine.low %v495_v49, %v507_v50  ;;  %v676_v49 = vld [vmem:[#allocation7 + $0xaf8] sm:$0xff] }
 0x162   :  { %3837 = vmatpush1.bf16.msra.mxu0 %v5667_v58  ;;  %3919 = vmatpush1.bf16.msra.mxu1 %v5669_v59  ;;  %v5290_v58 = vcombine.high %v496_v51, %v508_v52  ;;  %v519_v59 = vld [vmem:[#allocation7 + $0x610] sm:$0xff] }
 0x163   :  { %3945 = vmatprep.subr.bf16.mxu0 %v5120_v40  ;;  %4027 = vmatprep.subr.bf16.mxu1 %v5122_v60  ;;  %v531_v40 = vld [vmem:[#allocation7 + $0x670] sm:$0xff]  ;;  %v520_v60 = vld [vmem:[#allocation7 + $0x618] sm:$0xff] }
 0x164   :  { %v5312_v2 = vcombine.high %v519_v59, %v531_v40  ;;  %v5311_v8 = vcombine.low %v519_v59, %v531_v40  ;;  %v5313_v9 = vcombine.low %v520_v60, %v532_v61  ;;  %v700_v59 = vld [vmem:[#allocation7 + $0xbb8] sm:$0xff] }
 0x165   :  { %3855 = vmatmul.mubr.bf16.vlgmr.msra.gmra.mrb[4].mxu0 %v6032_v62  ;;  %3937 = vmatmul.mubr.bf16.vlgmr.msra.gmra.mrb[4].mxu1 %v6032_v62 }
 0x166   :  { %3946 = vmatpush1.bf16.msra.mxu0 %v5119_v3  ;;  %3977 = vmatprep.mubr.bf16.mxu0 %v6017_v54  ;;  %v5314_v3 = vcombine.high %v520_v60, %v532_v61 }
 0x167   :  { %4028 = vmatpush1.bf16.msra.mxu1 %v5121_v5  ;;  %4059 = vmatprep.mubr.bf16.mxu1 %v6017_v54  ;;  %v543_v5 = vld [vmem:[#allocation7 + $0x6d0] sm:$0xff] }
 0x168   :  { %3947 = vmatprep.subr.bf16.mxu0 %v5144_v4  ;;  %4029 = vmatprep.subr.bf16.mxu1 %v5146_v6  ;;  %v555_v4 = vld [vmem:[#allocation7 + $0x730] sm:$0xff]  ;;  %v544_v6 = vld [vmem:[#allocation7 + $0x6d8] sm:$0xff] }
 0x169   :  { %v5336_v10 = vcombine.high %v543_v5, %v555_v4  ;;  %v5335_v16 = vcombine.low %v543_v5, %v555_v4  ;;  %v5337_v17 = vcombine.low %v544_v6, %v556_v7  ;;  %v724_v5 = vld [vmem:[#allocation7 + $0xc78] sm:$0xff] }
 0x16a   :  { %3948 = vmatpush1.bf16.msra.mxu0 %v5143_v11  ;;  %v5338_v11 = vcombine.high %v544_v6, %v556_v7 }
 0x16b   :  { %4030 = vmatpush1.bf16.msra.mxu1 %v5145_v12  ;;  %3949 = vmatprep.subr.bf16.mxu0 %v5168_v13  ;;  %v567_v12 = vld [vmem:[#allocation7 + $0x790] sm:$0xff] }
 0x16c   :  { %4031 = vmatprep.subr.bf16.mxu1 %v5170_v14  ;;  %v579_v13 = vld [vmem:[#allocation7 + $0x7f0] sm:$0xff]  ;;  %v568_v14 = vld [vmem:[#allocation7 + $0x798] sm:$0xff] }
 0x16d   :  { %v5360_v18 = vcombine.high %v567_v12, %v579_v13  ;;  %v5359_v24 = vcombine.low %v567_v12, %v579_v13  ;;  %v5361_v25 = vcombine.low %v568_v14, %v580_v15  ;;  %v748_v12 = vld [vmem:[#allocation7 + $0xd38] sm:$0xff] }
 0x16e   :  { %3950 = vmatpush1.bf16.msra.mxu0 %v5167_v19  ;;  %v5362_v19 = vcombine.high %v568_v14, %v580_v15 }
 0x16f   :  { %4032 = vmatpush1.bf16.msra.mxu1 %v5169_v20  ;;  %3951 = vmatprep.subr.bf16.mxu0 %v5192_v21  ;;  %v591_v20 = vld [vmem:[#allocation7 + $0x850] sm:$0xff] }
 0x170   :  { %4033 = vmatprep.subr.bf16.mxu1 %v5194_v22  ;;  %v603_v21 = vld [vmem:[#allocation7 + $0x8b0] sm:$0xff]  ;;  %v592_v22 = vld [vmem:[#allocation7 + $0x858] sm:$0xff] }
 0x171   :  { %v5384_v26 = vcombine.high %v591_v20, %v603_v21  ;;  %v5383_v32 = vcombine.low %v591_v20, %v603_v21  ;;  %v5385_v33 = vcombine.low %v592_v22, %v604_v23  ;;  %v772_v20 = vld [vmem:[#allocation7 + $0xdf8] sm:$0xff] }
 0x172   :  { %3952 = vmatpush1.bf16.msra.mxu0 %v5191_v27  ;;  %v5386_v27 = vcombine.high %v592_v22, %v604_v23 }
 0x173   :  { %4034 = vmatpush1.bf16.msra.mxu1 %v5193_v28  ;;  %3953 = vmatprep.subr.bf16.mxu0 %v5216_v29  ;;  %v615_v28 = vld [vmem:[#allocation7 + $0x910] sm:$0xff] }
 0x174   :  { %4035 = vmatprep.subr.bf16.mxu1 %v5218_v30  ;;  %v627_v29 = vld [vmem:[#allocation7 + $0x970] sm:$0xff]  ;;  %v616_v30 = vld [vmem:[#allocation7 + $0x918] sm:$0xff] }
 0x175   :  { %v5408_v34 = vcombine.high %v615_v28, %v627_v29  ;;  %v5407_v42 = vcombine.low %v615_v28, %v627_v29  ;;  %v5409_v43 = vcombine.low %v616_v30, %v628_v31  ;;  %v796_v28 = vld [vmem:[#allocation7 + $0xeb8] sm:$0xff] }
 0x176   :  { %3954 = vmatpush1.bf16.msra.mxu0 %v5215_v35  ;;  %v5410_v35 = vcombine.high %v616_v30, %v628_v31 }
 0x177   :  { %4036 = vmatpush1.bf16.msra.mxu1 %v5217_v36  ;;  %3955 = vmatprep.subr.bf16.mxu0 %v5240_v37  ;;  %v639_v36 = vld [vmem:[#allocation7 + $0x9d0] sm:$0xff] }
 0x178   :  { %4037 = vmatprep.subr.bf16.mxu1 %v5242_v39  ;;  %v651_v37 = vld [vmem:[#allocation7 + $0xa30] sm:$0xff]  ;;  %v640_v39 = vld [vmem:[#allocation7 + $0x9d8] sm:$0xff] }
 0x179   :  { %v5432_v44 = vcombine.high %v639_v36, %v651_v37  ;;  %v5431_v50 = vcombine.low %v639_v36, %v651_v37  ;;  %v5433_v51 = vcombine.low %v640_v39, %v652_v41  ;;  %v820_v36 = vld [vmem:[#allocation7 + $0xf78] sm:$0xff] }
 0x17a   :  { %3956 = vmatpush1.bf16.msra.mxu0 %v5239_v45  ;;  %v5434_v45 = vcombine.high %v640_v39, %v652_v41 }
 0x17b   :  { %4038 = vmatpush1.bf16.msra.mxu1 %v5241_v46  ;;  %3957 = vmatprep.subr.bf16.mxu0 %v5264_v47  ;;  %v663_v46 = vld [vmem:[#allocation7 + $0xa90] sm:$0xff] }
 0x17c   :  { %4039 = vmatprep.subr.bf16.mxu1 %v5266_v48  ;;  %v675_v47 = vld [vmem:[#allocation7 + $0xaf0] sm:$0xff]  ;;  %v664_v48 = vld [vmem:[#allocation7 + $0xa98] sm:$0xff] }
 0x17d   :  { %v5456_v52 = vcombine.high %v663_v46, %v675_v47  ;;  %v5455_v40 = vcombine.low %v663_v46, %v675_v47  ;;  %v5457_v60 = vcombine.low %v664_v48, %v676_v49  ;;  %v844_v46 = vld [vmem:[#allocation7 + $0x1038] sm:$0xff] }
 0x17e   :  { %3958 = vmatpush1.bf16.msra.mxu0 %v5263_v53  ;;  %v5458_v53 = vcombine.high %v664_v48, %v676_v49 }
 0x17f   :  { %4040 = vmatpush1.bf16.msra.mxu1 %v5265_v56  ;;  %3959 = vmatprep.subr.bf16.mxu0 %v5288_v57  ;;  %v687_v56 = vld [vmem:[#allocation7 + $0xb50] sm:$0xff] }
 0x180   :  { %4041 = vmatprep.subr.bf16.mxu1 %v5290_v58  ;;  %v699_v57 = vld [vmem:[#allocation7 + $0xbb0] sm:$0xff]  ;;  %v688_v58 = vld [vmem:[#allocation7 + $0xb58] sm:$0xff] }
 0x181   :  { %v5480_v61 = vcombine.high %v687_v56, %v699_v57  ;;  %v5479_v4 = vcombine.low %v687_v56, %v699_v57  ;;  %v5481_v6 = vcombine.low %v688_v58, %v700_v59  ;;  %v868_v56 = vld [vmem:[#allocation7 + $0x10f8] sm:$0xff] }
 0x182   :  { %3960 = vmatpush1.bf16.msra.mxu0 %v5287_v63  ;;  %v5482_v63 = vcombine.high %v688_v58, %v700_v59 }
 0x183   :  { %4042 = vmatpush1.bf16.msra.mxu1 %v5289_v1  ;;  %3961 = vmatprep.subr.bf16.mxu0 %v5312_v2  ;;  %v711_v1 = vld [vmem:[#allocation7 + $0xc10] sm:$0xff] }
 0x184   :  { %4043 = vmatprep.subr.bf16.mxu1 %v5314_v3  ;;  %v723_v2 = vld [vmem:[#allocation7 + $0xc70] sm:$0xff]  ;;  %v712_v3 = vld [vmem:[#allocation7 + $0xc18] sm:$0xff] }
 0x185   :  { %v5504_v7 = vcombine.high %v711_v1, %v723_v2  ;;  %v5503_v13 = vcombine.low %v711_v1, %v723_v2  ;;  %v5505_v14 = vcombine.low %v712_v3, %v724_v5  ;;  %v892_v1 = vld [vmem:[#allocation7 + $0x11b8] sm:$0xff] }
 0x186   :  { %3962 = vmatpush1.bf16.msra.mxu0 %v5311_v8  ;;  %v5506_v8 = vcombine.high %v712_v3, %v724_v5 }
 0x187   :  { %4044 = vmatpush1.bf16.msra.mxu1 %v5313_v9  ;;  %3963 = vmatprep.subr.bf16.mxu0 %v5336_v10  ;;  %v735_v9 = vld [vmem:[#allocation7 + $0xcd0] sm:$0xff] }
 0x188   :  { %4045 = vmatprep.subr.bf16.mxu1 %v5338_v11  ;;  %v747_v10 = vld [vmem:[#allocation7 + $0xd30] sm:$0xff]  ;;  %v736_v11 = vld [vmem:[#allocation7 + $0xcd8] sm:$0xff] }
 0x189   :  { %v5528_v15 = vcombine.high %v735_v9, %v747_v10  ;;  %v5527_v21 = vcombine.low %v735_v9, %v747_v10  ;;  %v5529_v22 = vcombine.low %v736_v11, %v748_v12  ;;  %v342_v9 = vld [vmem:[#allocation7 + $0x88] sm:$0xff] }
 0x18a   :  { %3964 = vmatpush1.bf16.msra.mxu0 %v5335_v16  ;;  %v5530_v16 = vcombine.high %v736_v11, %v748_v12 }
 0x18b   :  { %4046 = vmatpush1.bf16.msra.mxu1 %v5337_v17  ;;  %3965 = vmatprep.subr.bf16.mxu0 %v5360_v18  ;;  %v759_v17 = vld [vmem:[#allocation7 + $0xd90] sm:$0xff] }
 0x18c   :  { %4047 = vmatprep.subr.bf16.mxu1 %v5362_v19  ;;  %v771_v18 = vld [vmem:[#allocation7 + $0xdf0] sm:$0xff]  ;;  %v760_v19 = vld [vmem:[#allocation7 + $0xd98] sm:$0xff] }
 0x18d   :  { %v5552_v23 = vcombine.high %v759_v17, %v771_v18  ;;  %v5551_v29 = vcombine.low %v759_v17, %v771_v18  ;;  %v5553_v30 = vcombine.low %v760_v19, %v772_v20  ;;  %v354_v17 = vld [vmem:[#allocation7 + $0xe8] sm:$0xff] }
 0x18e   :  { %3966 = vmatpush1.bf16.msra.mxu0 %v5359_v24  ;;  %v5554_v24 = vcombine.high %v760_v19, %v772_v20  ;;  %v366_v18 = vld [vmem:[#allocation7 + $0x148] sm:$0xff] }
 0x18f   :  { %4048 = vmatpush1.bf16.msra.mxu1 %v5361_v25  ;;  %3967 = vmatprep.subr.bf16.mxu0 %v5384_v26  ;;  %v783_v25 = vld [vmem:[#allocation7 + $0xe50] sm:$0xff] }
 0x190   :  { %4049 = vmatprep.subr.bf16.mxu1 %v5386_v27  ;;  %v795_v26 = vld [vmem:[#allocation7 + $0xeb0] sm:$0xff]  ;;  %v784_v27 = vld [vmem:[#allocation7 + $0xe58] sm:$0xff] }
 0x191   :  { %v5576_v31 = vcombine.high %v783_v25, %v795_v26  ;;  %v5575_v37 = vcombine.low %v783_v25, %v795_v26  ;;  %v5577_v39 = vcombine.low %v784_v27, %v796_v28  ;;  %v390_v25 = vld [vmem:[#allocation7 + $0x208] sm:$0xff] }
 0x192   :  { %3968 = vmatpush1.bf16.msra.mxu0 %v5383_v32  ;;  %v5578_v32 = vcombine.high %v784_v27, %v796_v28  ;;  %v5149_v27 = vcombine.low %v354_v17, %v366_v18 }
 0x193   :  { %4050 = vmatpush1.bf16.msra.mxu1 %v5385_v33  ;;  %3969 = vmatprep.subr.bf16.mxu0 %v5408_v34  ;;  %v807_v33 = vld [vmem:[#allocation7 + $0xf10] sm:$0xff] }
 0x194   :  { %4051 = vmatprep.subr.bf16.mxu1 %v5410_v35  ;;  %v819_v34 = vld [vmem:[#allocation7 + $0xf70] sm:$0xff]  ;;  %v808_v35 = vld [vmem:[#allocation7 + $0xf18] sm:$0xff] }
 0x195   :  { %v5600_v41 = vcombine.high %v807_v33, %v819_v34  ;;  %v5599_v47 = vcombine.low %v807_v33, %v819_v34  ;;  %v5601_v48 = vcombine.low %v808_v35, %v820_v36  ;;  %v414_v33 = vld [vmem:[#allocation7 + $0x2c8] sm:$0xff] }
 0x196   :  { %3970 = vmatpush1.bf16.msra.mxu0 %v5407_v42  ;;  %v5602_v42 = vcombine.high %v808_v35, %v820_v36 }
 0x197   :  { %4052 = vmatpush1.bf16.msra.mxu1 %v5409_v43  ;;  %3971 = vmatprep.subr.bf16.mxu0 %v5432_v44  ;;  %v831_v43 = vld [vmem:[#allocation7 + $0xfd0] sm:$0xff] }
 0x198   :  { %4053 = vmatprep.subr.bf16.mxu1 %v5434_v45  ;;  %v843_v44 = vld [vmem:[#allocation7 + $0x1030] sm:$0xff]  ;;  %v832_v45 = vld [vmem:[#allocation7 + $0xfd8] sm:$0xff] }
 0x199   :  { %v5624_v49 = vcombine.high %v831_v43, %v843_v44  ;;  %v5623_v57 = vcombine.low %v831_v43, %v843_v44  ;;  %v5625_v58 = vcombine.low %v832_v45, %v844_v46  ;;  %v438_v43 = vld [vmem:[#allocation7 + $0x388] sm:$0xff] }
 0x19a   :  { %3972 = vmatpush1.bf16.msra.mxu0 %v5431_v50  ;;  %v5626_v50 = vcombine.high %v832_v45, %v844_v46 }
 0x19b   :  { %4054 = vmatpush1.bf16.msra.mxu1 %v5433_v51  ;;  %3973 = vmatprep.subr.bf16.mxu0 %v5456_v52  ;;  %v855_v51 = vld [vmem:[#allocation7 + $0x1090] sm:$0xff] }
 0x19c   :  { %4055 = vmatprep.subr.bf16.mxu1 %v5458_v53  ;;  %v867_v52 = vld [vmem:[#allocation7 + $0x10f0] sm:$0xff]  ;;  %v856_v53 = vld [vmem:[#allocation7 + $0x1098] sm:$0xff] }
 0x19d   :  { %v5648_v59 = vcombine.high %v855_v51, %v867_v52  ;;  %v5647_v2 = vcombine.low %v855_v51, %v867_v52  ;;  %v5649_v3 = vcombine.low %v856_v53, %v868_v56  ;;  %v462_v51 = vld [vmem:[#allocation7 + $0x448] sm:$0xff] }
 0x19e   :  { %3974 = vmatpush1.bf16.msra.mxu0 %v5455_v40  ;;  %v5650_v40 = vcombine.high %v856_v53, %v868_v56 }
 0x19f   :  { %4056 = vmatpush1.bf16.msra.mxu1 %v5457_v60  ;;  %3975 = vmatprep.subr.bf16.mxu0 %v5480_v61  ;;  %v879_v60 = vld [vmem:[#allocation7 + $0x1150] sm:$0xff] }
 0x1a0   :  { %4057 = vmatprep.subr.bf16.mxu1 %v5482_v63  ;;  %v891_v61 = vld [vmem:[#allocation7 + $0x11b0] sm:$0xff]  ;;  %v880_v63 = vld [vmem:[#allocation7 + $0x1158] sm:$0xff] }
 0x1a1   :  { %v5672_v5 = vcombine.high %v879_v60, %v891_v61  ;;  %v5671_v10 = vcombine.low %v879_v60, %v891_v61  ;;  %v5673_v11 = vcombine.low %v880_v63, %v892_v1  ;;  %v486_v60 = vld [vmem:[#allocation7 + $0x508] sm:$0xff] }
 0x1a2   :  { %3976 = vmatpush1.bf16.msra.mxu0 %v5479_v4  ;;  %v5674_v4 = vcombine.high %v880_v63, %v892_v1 }
 0x1a3   :  { %4058 = vmatpush1.bf16.msra.mxu1 %v5481_v6  ;;  %3986 = vmatprep.subr.bf16.mxu0 %v5504_v7  ;;  %v329_v6 = vld [vmem:[#allocation7 + $0x20] sm:$0xff] }
 0x1a4   :  { %4068 = vmatprep.subr.bf16.mxu1 %v5506_v8  ;;  %v341_v7 = vld [vmem:[#allocation7 + $0x80] sm:$0xff]  ;;  %v330_v8 = vld [vmem:[#allocation7 + $0x28] sm:$0xff] }
 0x1a5   :  { %3978 = vmatmul.mubr.bf16.vlgmr.msra.gmra.mrb[8].mxu0 %v6019_v55  ;;  %v5124_v12 = vcombine.high %v329_v6, %v341_v7  ;;  %v5125_v19 = vcombine.low %v330_v8, %v342_v9 }
 0x1a6   :  { %4060 = vmatmul.mubr.bf16.vlgmr.msra.gmra.mrb[8].mxu1 %v6019_v55  ;;  %3987 = vmatpush1.bf16.msra.mxu0 %v5503_v13  ;;  %v5126_v13 = vcombine.high %v330_v8, %v342_v9 }
 0x1a7   :  { %4069 = vmatpush1.bf16.msra.mxu1 %v5505_v14  ;;  %3988 = vmatprep.subr.bf16.mxu0 %v5528_v15  ;;  %v353_v14 = vld [vmem:[#allocation7 + $0xe0] sm:$0xff] }
 0x1a8   :  { %4070 = vmatprep.subr.bf16.mxu1 %v5530_v16  ;;  %4018 = vmatprep.mubr.bf16.mxu0 %v5911_v0  ;;  %v365_v15 = vld [vmem:[#allocation7 + $0x140] sm:$0xff]  ;;  %v5123_v16 = vcombine.low %v329_v6, %v341_v7  ;;  %v510_v6 = vld [vmem:[#allocation7 + $0x5c8] sm:$0xff] }
 0x1a9   :  { %4100 = vmatprep.mubr.bf16.mxu1 %v5911_v0  ;;  %v5148_v20 = vcombine.high %v353_v14, %v365_v15  ;;  %v5147_v26 = vcombine.low %v353_v14, %v365_v15  ;;  %v534_v14 = vld [vmem:[#allocation7 + $0x688] sm:$0xff] }
 0x1aa   :  { %3989 = vmatpush1.bf16.msra.mxu0 %v5527_v21  ;;  %v377_v21 = vld [vmem:[#allocation7 + $0x1a0] sm:$0xff] }
 0x1ab   :  { %4071 = vmatpush1.bf16.msra.mxu1 %v5529_v22  ;;  %3990 = vmatprep.subr.bf16.mxu0 %v5552_v23  ;;  %v389_v22 = vld [vmem:[#allocation7 + $0x200] sm:$0xff]  ;;  %v5150_v23 = vcombine.high %v354_v17, %v366_v18 }
 0x1ac   :  { %4072 = vmatprep.subr.bf16.mxu1 %v5554_v24  ;;  %v378_v24 = vld [vmem:[#allocation7 + $0x1a8] sm:$0xff]  ;;  %v5172_v28 = vcombine.high %v377_v21, %v389_v22  ;;  %v5171_v34 = vcombine.low %v377_v21, %v389_v22 }
 0x1ad   :  { %v5173_v35 = vcombine.low %v378_v24, %v390_v25  ;;  %v546_v21 = vld [vmem:[#allocation7 + $0x6e8] sm:$0xff] }
 0x1ae   :  { %3991 = vmatpush1.bf16.msra.mxu0 %v5551_v29  ;;  %v5174_v29 = vcombine.high %v378_v24, %v390_v25  ;;  %v558_v22 = vld [vmem:[#allocation7 + $0x748] sm:$0xff] }
 0x1af   :  { %4073 = vmatpush1.bf16.msra.mxu1 %v5553_v30  ;;  %3992 = vmatprep.subr.bf16.mxu0 %v5576_v31  ;;  %v401_v30 = vld [vmem:[#allocation7 + $0x260] sm:$0xff] }
 0x1b0   :  { %4074 = vmatprep.subr.bf16.mxu1 %v5578_v32  ;;  %v413_v31 = vld [vmem:[#allocation7 + $0x2c0] sm:$0xff]  ;;  %v402_v32 = vld [vmem:[#allocation7 + $0x268] sm:$0xff] }
 0x1b1   :  { %v5196_v36 = vcombine.high %v401_v30, %v413_v31  ;;  %v5195_v44 = vcombine.low %v401_v30, %v413_v31  ;;  %v5197_v45 = vcombine.low %v402_v32, %v414_v33  ;;  %v582_v30 = vld [vmem:[#allocation7 + $0x808] sm:$0xff] }
 0x1b2   :  { %3993 = vmatpush1.bf16.msra.mxu0 %v5575_v37  ;;  %v5198_v37 = vcombine.high %v402_v32, %v414_v33  ;;  %v5341_v32 = vcombine.low %v546_v21, %v558_v22 }
 0x1b3   :  { %4075 = vmatpush1.bf16.msra.mxu1 %v5577_v39  ;;  %3994 = vmatprep.subr.bf16.mxu0 %v5600_v41  ;;  %v425_v39 = vld [vmem:[#allocation7 + $0x320] sm:$0xff] }
 0x1b4   :  { %4076 = vmatprep.subr.bf16.mxu1 %v5602_v42  ;;  %v437_v41 = vld [vmem:[#allocation7 + $0x380] sm:$0xff]  ;;  %v426_v42 = vld [vmem:[#allocation7 + $0x328] sm:$0xff] }
 0x1b5   :  { %v5220_v46 = vcombine.high %v425_v39, %v437_v41  ;;  %v5219_v52 = vcombine.low %v425_v39, %v437_v41  ;;  %v5221_v53 = vcombine.low %v426_v42, %v438_v43  ;;  %v606_v39 = vld [vmem:[#allocation7 + $0x8c8] sm:$0xff] }
 0x1b6   :  { %3995 = vmatpush1.bf16.msra.mxu0 %v5599_v47  ;;  %v5222_v47 = vcombine.high %v426_v42, %v438_v43 }
 0x1b7   :  { %4077 = vmatpush1.bf16.msra.mxu1 %v5601_v48  ;;  %3996 = vmatprep.subr.bf16.mxu0 %v5624_v49  ;;  %v449_v48 = vld [vmem:[#allocation7 + $0x3e0] sm:$0xff] }
 0x1b8   :  { %4078 = vmatprep.subr.bf16.mxu1 %v5626_v50  ;;  %v461_v49 = vld [vmem:[#allocation7 + $0x440] sm:$0xff]  ;;  %v450_v50 = vld [vmem:[#allocation7 + $0x3e8] sm:$0xff] }
 0x1b9   :  { %v5244_v56 = vcombine.high %v449_v48, %v461_v49  ;;  %v5243_v61 = vcombine.low %v449_v48, %v461_v49  ;;  %v5245_v63 = vcombine.low %v450_v50, %v462_v51  ;;  %v630_v48 = vld [vmem:[#allocation7 + $0x988] sm:$0xff] }
 0x1ba   :  { %3997 = vmatpush1.bf16.msra.mxu0 %v5623_v57  ;;  %v5246_v57 = vcombine.high %v450_v50, %v462_v51 }
 0x1bb   :  { %4079 = vmatpush1.bf16.msra.mxu1 %v5625_v58  ;;  %3998 = vmatprep.subr.bf16.mxu0 %v5648_v59  ;;  %v473_v58 = vld [vmem:[#allocation7 + $0x4a0] sm:$0xff] }
 0x1bc   :  { %4080 = vmatprep.subr.bf16.mxu1 %v5650_v40  ;;  %v485_v59 = vld [vmem:[#allocation7 + $0x500] sm:$0xff]  ;;  %v474_v40 = vld [vmem:[#allocation7 + $0x4a8] sm:$0xff] }
 0x1bd   :  { %v5268_v1 = vcombine.high %v473_v58, %v485_v59  ;;  %v5267_v7 = vcombine.low %v473_v58, %v485_v59  ;;  %v5269_v8 = vcombine.low %v474_v40, %v486_v60  ;;  %v654_v58 = vld [vmem:[#allocation7 + $0xa48] sm:$0xff] }
 0x1be   :  { %3999 = vmatpush1.bf16.msra.mxu0 %v5647_v2  ;;  %v5270_v2 = vcombine.high %v474_v40, %v486_v60 }
 0x1bf   :  { %4081 = vmatpush1.bf16.msra.mxu1 %v5649_v3  ;;  %4000 = vmatprep.subr.bf16.mxu0 %v5672_v5  ;;  %v497_v3 = vld [vmem:[#allocation7 + $0x560] sm:$0xff] }
 0x1c0   :  { %4082 = vmatprep.subr.bf16.mxu1 %v5674_v4  ;;  %v509_v5 = vld [vmem:[#allocation7 + $0x5c0] sm:$0xff]  ;;  %v498_v4 = vld [vmem:[#allocation7 + $0x568] sm:$0xff] }
 0x1c1   :  { %v5292_v9 = vcombine.high %v497_v3, %v509_v5  ;;  %v5291_v15 = vcombine.low %v497_v3, %v509_v5  ;;  %v678_v3 = vld [vmem:[#allocation7 + $0xb08] sm:$0xff] }
 0x1c2   :  { %4001 = vmatpush1.bf16.msra.mxu0 %v5671_v10  ;;  %v5294_v10 = vcombine.high %v498_v4, %v510_v6 }
 0x1c3   :  { %4083 = vmatpush1.bf16.msra.mxu1 %v5673_v11  ;;  %4109 = vmatprep.subr.bf16.mxu0 %v5124_v12  ;;  %v521_v11 = vld [vmem:[#allocation7 + $0x620] sm:$0xff] }
 0x1c4   :  { %4191 = vmatprep.subr.bf16.mxu1 %v5126_v13  ;;  %v533_v12 = vld [vmem:[#allocation7 + $0x680] sm:$0xff]  ;;  %v522_v13 = vld [vmem:[#allocation7 + $0x628] sm:$0xff] }
 0x1c5   :  { %4019 = vmatmul.mubr.bf16.vlgmr.msra.gmra.mrb[8].mxu0 %v6032_v62  ;;  %v5316_v17 = vcombine.high %v521_v11, %v533_v12  ;;  %v5318_v18 = vcombine.high %v522_v13, %v534_v14  ;;  %v5317_v24 = vcombine.low %v522_v13, %v534_v14 }
 0x1c6   :  { %4101 = vmatmul.mubr.bf16.vlgmr.msra.gmra.mrb[8].mxu1 %v6032_v62  ;;  %4110 = vmatpush1.bf16.msra.mxu0 %v5123_v16  ;;  %v5293_v16 = vcombine.low %v498_v4, %v510_v6 }
 0x1c7   :  { %4141 = vmatprep.mubr.bf16.mxu0 %v6017_v54  ;;  %4192 = vmatpush1.bf16.msra.mxu1 %v5125_v19  ;;  %v545_v19 = vld [vmem:[#allocation7 + $0x6e0] sm:$0xff] }
 0x1c8   :  { %4223 = vmatprep.mubr.bf16.mxu1 %v6017_v54  ;;  %4111 = vmatprep.subr.bf16.mxu0 %v5148_v20  ;;  %v557_v20 = vld [vmem:[#allocation7 + $0x740] sm:$0xff] }
 0x1c9   :  { %4193 = vmatprep.subr.bf16.mxu1 %v5150_v23  ;;  %v5315_v23 = vcombine.low %v521_v11, %v533_v12  ;;  %v5340_v25 = vcombine.high %v545_v19, %v557_v20  ;;  %v5339_v31 = vcombine.low %v545_v19, %v557_v20  ;;  %v702_v11 = vld [vmem:[#allocation7 + $0xbc8] sm:$0xff] }
 0x1ca   :  { %4112 = vmatpush1.bf16.msra.mxu0 %v5147_v26  ;;  %v5342_v26 = vcombine.high %v546_v21, %v558_v22  ;;  %v726_v19 = vld [vmem:[#allocation7 + $0xc88] sm:$0xff] }
 0x1cb   :  { %4194 = vmatpush1.bf16.msra.mxu1 %v5149_v27  ;;  %4113 = vmatprep.subr.bf16.mxu0 %v5172_v28  ;;  %v569_v27 = vld [vmem:[#allocation7 + $0x7a0] sm:$0xff] }
 0x1cc   :  { %4195 = vmatprep.subr.bf16.mxu1 %v5174_v29  ;;  %v581_v28 = vld [vmem:[#allocation7 + $0x800] sm:$0xff]  ;;  %v570_v29 = vld [vmem:[#allocation7 + $0x7a8] sm:$0xff] }
 0x1cd   :  { %v5364_v33 = vcombine.high %v569_v27, %v581_v28  ;;  %v5363_v41 = vcombine.low %v569_v27, %v581_v28  ;;  %v5365_v42 = vcombine.low %v570_v29, %v582_v30  ;;  %v750_v27 = vld [vmem:[#allocation7 + $0xd48] sm:$0xff] }
 0x1ce   :  { %4114 = vmatpush1.bf16.msra.mxu0 %v5171_v34  ;;  %v5366_v34 = vcombine.high %v570_v29, %v582_v30 }
 0x1cf   :  { %4196 = vmatpush1.bf16.msra.mxu1 %v5173_v35  ;;  %4115 = vmatprep.subr.bf16.mxu0 %v5196_v36  ;;  %v593_v35 = vld [vmem:[#allocation7 + $0x860] sm:$0xff] }
 0x1d0   :  { %4197 = vmatprep.subr.bf16.mxu1 %v5198_v37  ;;  %v605_v36 = vld [vmem:[#allocation7 + $0x8c0] sm:$0xff]  ;;  %v594_v37 = vld [vmem:[#allocation7 + $0x868] sm:$0xff] }
 0x1d1   :  { %v5388_v43 = vcombine.high %v593_v35, %v605_v36  ;;  %v5387_v49 = vcombine.low %v593_v35, %v605_v36  ;;  %v5389_v50 = vcombine.low %v594_v37, %v606_v39  ;;  %v774_v35 = vld [vmem:[#allocation7 + $0xe08] sm:$0xff] }
 0x1d2   :  { %4116 = vmatpush1.bf16.msra.mxu0 %v5195_v44  ;;  %v5390_v44 = vcombine.high %v594_v37, %v606_v39 }
 0x1d3   :  { %4198 = vmatpush1.bf16.msra.mxu1 %v5197_v45  ;;  %4117 = vmatprep.subr.bf16.mxu0 %v5220_v46  ;;  %v617_v45 = vld [vmem:[#allocation7 + $0x920] sm:$0xff] }
 0x1d4   :  { %4199 = vmatprep.subr.bf16.mxu1 %v5222_v47  ;;  %v629_v46 = vld [vmem:[#allocation7 + $0x980] sm:$0xff]  ;;  %v618_v47 = vld [vmem:[#allocation7 + $0x928] sm:$0xff] }
 0x1d5   :  { %v5412_v51 = vcombine.high %v617_v45, %v629_v46  ;;  %v5411_v59 = vcombine.low %v617_v45, %v629_v46  ;;  %v5413_v40 = vcombine.low %v618_v47, %v630_v48  ;;  %v798_v45 = vld [vmem:[#allocation7 + $0xec8] sm:$0xff] }
 0x1d6   :  { %4118 = vmatpush1.bf16.msra.mxu0 %v5219_v52  ;;  %v5414_v52 = vcombine.high %v618_v47, %v630_v48 }
 0x1d7   :  { %4200 = vmatpush1.bf16.msra.mxu1 %v5221_v53  ;;  %4119 = vmatprep.subr.bf16.mxu0 %v5244_v56  ;;  %v641_v53 = vld [vmem:[#allocation7 + $0x9e0] sm:$0xff] }
 0x1d8   :  { %4201 = vmatprep.subr.bf16.mxu1 %v5246_v57  ;;  %v653_v56 = vld [vmem:[#allocation7 + $0xa40] sm:$0xff]  ;;  %v642_v57 = vld [vmem:[#allocation7 + $0x9e8] sm:$0xff] }
 0x1d9   :  { %v5436_v60 = vcombine.high %v641_v53, %v653_v56  ;;  %v5435_v5 = vcombine.low %v641_v53, %v653_v56  ;;  %v5437_v4 = vcombine.low %v642_v57, %v654_v58  ;;  %v822_v53 = vld [vmem:[#allocation7 + $0xf88] sm:$0xff] }
 0x1da   :  { %4120 = vmatpush1.bf16.msra.mxu0 %v5243_v61  ;;  %v5438_v61 = vcombine.high %v642_v57, %v654_v58 }
 0x1db   :  { %4202 = vmatpush1.bf16.msra.mxu1 %v5245_v63  ;;  %4121 = vmatprep.subr.bf16.mxu0 %v5268_v1  ;;  %v665_v63 = vld [vmem:[#allocation7 + $0xaa0] sm:$0xff] }
 0x1dc   :  { %4203 = vmatprep.subr.bf16.mxu1 %v5270_v2  ;;  %v677_v1 = vld [vmem:[#allocation7 + $0xb00] sm:$0xff]  ;;  %v666_v2 = vld [vmem:[#allocation7 + $0xaa8] sm:$0xff] }
 0x1dd   :  { %v5460_v6 = vcombine.high %v665_v63, %v677_v1  ;;  %v5459_v12 = vcombine.low %v665_v63, %v677_v1  ;;  %v5461_v13 = vcombine.low %v666_v2, %v678_v3  ;;  %v846_v63 = vld [vmem:[#allocation7 + $0x1048] sm:$0xff] }
 0x1de   :  { %4122 = vmatpush1.bf16.msra.mxu0 %v5267_v7  ;;  %v5462_v7 = vcombine.high %v666_v2, %v678_v3 }
 0x1df   :  { %4204 = vmatpush1.bf16.msra.mxu1 %v5269_v8  ;;  %4123 = vmatprep.subr.bf16.mxu0 %v5292_v9  ;;  %v689_v8 = vld [vmem:[#allocation7 + $0xb60] sm:$0xff] }
 0x1e0   :  { %4205 = vmatprep.subr.bf16.mxu1 %v5294_v10  ;;  %v701_v9 = vld [vmem:[#allocation7 + $0xbc0] sm:$0xff]  ;;  %v690_v10 = vld [vmem:[#allocation7 + $0xb68] sm:$0xff] }
 0x1e1   :  { %v5484_v14 = vcombine.high %v689_v8, %v701_v9  ;;  %v5483_v20 = vcombine.low %v689_v8, %v701_v9  ;;  %v5485_v21 = vcombine.low %v690_v10, %v702_v11  ;;  %v870_v8 = vld [vmem:[#allocation7 + $0x1108] sm:$0xff] }
 0x1e2   :  { %4124 = vmatpush1.bf16.msra.mxu0 %v5291_v15  ;;  %v5486_v15 = vcombine.high %v690_v10, %v702_v11 }
 0x1e3   :  { %4206 = vmatpush1.bf16.msra.mxu1 %v5293_v16  ;;  %4125 = vmatprep.subr.bf16.mxu0 %v5316_v17  ;;  %v713_v16 = vld [vmem:[#allocation7 + $0xc20] sm:$0xff] }
 0x1e4   :  { %4207 = vmatprep.subr.bf16.mxu1 %v5318_v18  ;;  %v725_v17 = vld [vmem:[#allocation7 + $0xc80] sm:$0xff]  ;;  %v714_v18 = vld [vmem:[#allocation7 + $0xc28] sm:$0xff] }
 0x1e5   :  { %v5508_v22 = vcombine.high %v713_v16, %v725_v17  ;;  %v5507_v28 = vcombine.low %v713_v16, %v725_v17  ;;  %v5509_v29 = vcombine.low %v714_v18, %v726_v19  ;;  %v894_v16 = vld [vmem:[#allocation7 + $0x11c8] sm:$0xff] }
 0x1e6   :  { %4126 = vmatpush1.bf16.msra.mxu0 %v5315_v23  ;;  %v5510_v23 = vcombine.high %v714_v18, %v726_v19 }
 0x1e7   :  { %4208 = vmatpush1.bf16.msra.mxu1 %v5317_v24  ;;  %4127 = vmatprep.subr.bf16.mxu0 %v5340_v25  ;;  %v737_v24 = vld [vmem:[#allocation7 + $0xce0] sm:$0xff] }
 0x1e8   :  { %4209 = vmatprep.subr.bf16.mxu1 %v5342_v26  ;;  %v749_v25 = vld [vmem:[#allocation7 + $0xd40] sm:$0xff]  ;;  %v738_v26 = vld [vmem:[#allocation7 + $0xce8] sm:$0xff] }
 0x1e9   :  { %v5532_v30 = vcombine.high %v737_v24, %v749_v25  ;;  %v5531_v36 = vcombine.low %v737_v24, %v749_v25  ;;  %v5533_v37 = vcombine.low %v738_v26, %v750_v27  ;;  %v344_v24 = vld [vmem:[#allocation7 + $0x98] sm:$0xff] }
 0x1ea   :  { %4128 = vmatpush1.bf16.msra.mxu0 %v5339_v31  ;;  %v5534_v31 = vcombine.high %v738_v26, %v750_v27 }
 0x1eb   :  { %4210 = vmatpush1.bf16.msra.mxu1 %v5341_v32  ;;  %4129 = vmatprep.subr.bf16.mxu0 %v5364_v33  ;;  %v761_v32 = vld [vmem:[#allocation7 + $0xda0] sm:$0xff] }
 0x1ec   :  { %4211 = vmatprep.subr.bf16.mxu1 %v5366_v34  ;;  %v773_v33 = vld [vmem:[#allocation7 + $0xe00] sm:$0xff]  ;;  %v762_v34 = vld [vmem:[#allocation7 + $0xda8] sm:$0xff] }
 0x1ed   :  { %v5556_v39 = vcombine.high %v761_v32, %v773_v33  ;;  %v5555_v46 = vcombine.low %v761_v32, %v773_v33  ;;  %v5557_v47 = vcombine.low %v762_v34, %v774_v35  ;;  %v356_v32 = vld [vmem:[#allocation7 + $0xf8] sm:$0xff] }
 0x1ee   :  { %4130 = vmatpush1.bf16.msra.mxu0 %v5363_v41  ;;  %v5558_v41 = vcombine.high %v762_v34, %v774_v35  ;;  %v368_v33 = vld [vmem:[#allocation7 + $0x158] sm:$0xff] }
 0x1ef   :  { %4212 = vmatpush1.bf16.msra.mxu1 %v5365_v42  ;;  %4131 = vmatprep.subr.bf16.mxu0 %v5388_v43  ;;  %v785_v42 = vld [vmem:[#allocation7 + $0xe60] sm:$0xff] }
 0x1f0   :  { %4213 = vmatprep.subr.bf16.mxu1 %v5390_v44  ;;  %v797_v43 = vld [vmem:[#allocation7 + $0xec0] sm:$0xff]  ;;  %v786_v44 = vld [vmem:[#allocation7 + $0xe68] sm:$0xff] }
 0x1f1   :  { %v5580_v48 = vcombine.high %v785_v42, %v797_v43  ;;  %v5579_v56 = vcombine.low %v785_v42, %v797_v43  ;;  %v5581_v57 = vcombine.low %v786_v44, %v798_v45  ;;  %v392_v42 = vld [vmem:[#allocation7 + $0x218] sm:$0xff] }
 0x1f2   :  { %4132 = vmatpush1.bf16.msra.mxu0 %v5387_v49  ;;  %v5582_v49 = vcombine.high %v786_v44, %v798_v45  ;;  %v5153_v44 = vcombine.low %v356_v32, %v368_v33 }
 0x1f3   :  { %4214 = vmatpush1.bf16.msra.mxu1 %v5389_v50  ;;  %4133 = vmatprep.subr.bf16.mxu0 %v5412_v51  ;;  %v809_v50 = vld [vmem:[#allocation7 + $0xf20] sm:$0xff] }
 0x1f4   :  { %4215 = vmatprep.subr.bf16.mxu1 %v5414_v52  ;;  %v821_v51 = vld [vmem:[#allocation7 + $0xf80] sm:$0xff]  ;;  %v810_v52 = vld [vmem:[#allocation7 + $0xf28] sm:$0xff] }
 0x1f5   :  { %v5604_v58 = vcombine.high %v809_v50, %v821_v51  ;;  %v5603_v1 = vcombine.low %v809_v50, %v821_v51  ;;  %v5605_v2 = vcombine.low %v810_v52, %v822_v53  ;;  %v416_v50 = vld [vmem:[#allocation7 + $0x2d8] sm:$0xff] }
 0x1f6   :  { %4134 = vmatpush1.bf16.msra.mxu0 %v5411_v59  ;;  %v5606_v59 = vcombine.high %v810_v52, %v822_v53 }
 0x1f7   :  { %4216 = vmatpush1.bf16.msra.mxu1 %v5413_v40  ;;  %4135 = vmatprep.subr.bf16.mxu0 %v5436_v60  ;;  %v833_v40 = vld [vmem:[#allocation7 + $0xfe0] sm:$0xff] }
 0x1f8   :  { %4217 = vmatprep.subr.bf16.mxu1 %v5438_v61  ;;  %v845_v60 = vld [vmem:[#allocation7 + $0x1040] sm:$0xff]  ;;  %v834_v61 = vld [vmem:[#allocation7 + $0xfe8] sm:$0xff] }
 0x1f9   :  { %v5628_v3 = vcombine.high %v833_v40, %v845_v60  ;;  %v5627_v9 = vcombine.low %v833_v40, %v845_v60  ;;  %v5629_v10 = vcombine.low %v834_v61, %v846_v63  ;;  %v440_v40 = vld [vmem:[#allocation7 + $0x398] sm:$0xff] }
 0x1fa   :  { %4136 = vmatpush1.bf16.msra.mxu0 %v5435_v5  ;;  %v5630_v5 = vcombine.high %v834_v61, %v846_v63 }
 0x1fb   :  { %4218 = vmatpush1.bf16.msra.mxu1 %v5437_v4  ;;  %4137 = vmatprep.subr.bf16.mxu0 %v5460_v6  ;;  %v857_v4 = vld [vmem:[#allocation7 + $0x10a0] sm:$0xff] }
 0x1fc   :  { %4219 = vmatprep.subr.bf16.mxu1 %v5462_v7  ;;  %v869_v6 = vld [vmem:[#allocation7 + $0x1100] sm:$0xff]  ;;  %v858_v7 = vld [vmem:[#allocation7 + $0x10a8] sm:$0xff] }
 0x1fd   :  { %v5652_v11 = vcombine.high %v857_v4, %v869_v6  ;;  %v5651_v17 = vcombine.low %v857_v4, %v869_v6  ;;  %v5653_v18 = vcombine.low %v858_v7, %v870_v8  ;;  %v463_v4 = vld [vmem:[#allocation7 + $0x450] sm:$0xff]  ;;  %v452_v6 = vld [vmem:[#allocation7 + $0x3f8] sm:$0xff] }
 0x1fe   :  { %4138 = vmatpush1.bf16.msra.mxu0 %v5459_v12  ;;  %v5654_v12 = vcombine.high %v858_v7, %v870_v8  ;;  %v464_v7 = vld [vmem:[#allocation7 + $0x458] sm:$0xff] }
 0x1ff   :  { %4220 = vmatpush1.bf16.msra.mxu1 %v5461_v13  ;;  %4139 = vmatprep.subr.bf16.mxu0 %v5484_v14  ;;  %v881_v13 = vld [vmem:[#allocation7 + $0x1160] sm:$0xff] }
 0x200   :  { %4221 = vmatprep.subr.bf16.mxu1 %v5486_v15  ;;  %v893_v14 = vld [vmem:[#allocation7 + $0x11c0] sm:$0xff]  ;;  %v882_v15 = vld [vmem:[#allocation7 + $0x1168] sm:$0xff] }
 0x201   :  { %v5676_v19 = vcombine.high %v881_v13, %v893_v14  ;;  %v5675_v25 = vcombine.low %v881_v13, %v893_v14  ;;  %v5677_v26 = vcombine.low %v882_v15, %v894_v16  ;;  %v475_v13 = vld [vmem:[#allocation7 + $0x4b0] sm:$0xff] }
 0x202   :  { %4140 = vmatpush1.bf16.msra.mxu0 %v5483_v20  ;;  %v5678_v20 = vcombine.high %v882_v15, %v894_v16  ;;  %v487_v14 = vld [vmem:[#allocation7 + $0x510] sm:$0xff]  ;;  %v476_v15 = vld [vmem:[#allocation7 + $0x4b8] sm:$0xff] }
 0x203   :  { %4222 = vmatpush1.bf16.msra.mxu1 %v5485_v21  ;;  %4150 = vmatprep.subr.bf16.mxu0 %v5508_v22  ;;  %v331_v21 = vld [vmem:[#allocation7 + $0x30] sm:$0xff]  ;;  %v488_v16 = vld [vmem:[#allocation7 + $0x518] sm:$0xff] }
 0x204   :  { %4232 = vmatprep.subr.bf16.mxu1 %v5510_v23  ;;  %v343_v22 = vld [vmem:[#allocation7 + $0x90] sm:$0xff]  ;;  %v332_v23 = vld [vmem:[#allocation7 + $0x38] sm:$0xff] }
 0x205   :  { %4142 = vmatmul.mubr.bf16.vlgmr.msra.gmra.mrb[12].mxu0 %v6019_v55  ;;  %v5128_v27 = vcombine.high %v331_v21, %v343_v22  ;;  %v5129_v34 = vcombine.low %v332_v23, %v344_v24 }
 0x206   :  { %4224 = vmatmul.mubr.bf16.vlgmr.msra.gmra.mrb[12].mxu1 %v6019_v55  ;;  %4151 = vmatpush1.bf16.msra.mxu0 %v5507_v28  ;;  %v5130_v28 = vcombine.high %v332_v23, %v344_v24  ;;  %v5274_v23 = vcombine.high %v476_v15, %v488_v16  ;;  %v499_v24 = vld [vmem:[#allocation7 + $0x570] sm:$0xff] }
 0x207   :  { %4233 = vmatpush1.bf16.msra.mxu1 %v5509_v29  ;;  %4152 = vmatprep.subr.bf16.mxu0 %v5532_v30  ;;  %v355_v29 = vld [vmem:[#allocation7 + $0xf0] sm:$0xff] }
 0x208   :  { %4234 = vmatprep.subr.bf16.mxu1 %v5534_v31  ;;  %4182 = vmatprep.mubr.bf16.mxu0 %v5911_v0  ;;  %v367_v30 = vld [vmem:[#allocation7 + $0x150] sm:$0xff]  ;;  %v5127_v31 = vcombine.low %v331_v21, %v343_v22 }
 0x209   :  { %4264 = vmatprep.mubr.bf16.mxu1 %v5911_v0  ;;  %v5152_v35 = vcombine.high %v355_v29, %v367_v30  ;;  %v5151_v43 = vcombine.low %v355_v29, %v367_v30  ;;  %v512_v29 = vld [vmem:[#allocation7 + $0x5d8] sm:$0xff] }
 0x20a   :  { %4153 = vmatpush1.bf16.msra.mxu0 %v5531_v36  ;;  %v379_v36 = vld [vmem:[#allocation7 + $0x1b0] sm:$0xff] }
 0x20b   :  { %4235 = vmatpush1.bf16.msra.mxu1 %v5533_v37  ;;  %4154 = vmatprep.subr.bf16.mxu0 %v5556_v39  ;;  %v391_v37 = vld [vmem:[#allocation7 + $0x210] sm:$0xff]  ;;  %v5154_v39 = vcombine.high %v356_v32, %v368_v33 }
 0x20c   :  { %4236 = vmatprep.subr.bf16.mxu1 %v5558_v41  ;;  %v380_v41 = vld [vmem:[#allocation7 + $0x1b8] sm:$0xff]  ;;  %v5176_v45 = vcombine.high %v379_v36, %v391_v37  ;;  %v5175_v51 = vcombine.low %v379_v36, %v391_v37  ;;  %v5273_v36 = vcombine.low %v476_v15, %v488_v16  ;;  %v619_v15 = vld [vmem:[#allocation7 + $0x930] sm:$0xff] }
 0x20d   :  { %v5177_v52 = vcombine.low %v380_v41, %v392_v42  ;;  %v631_v16 = vld [vmem:[#allocation7 + $0x990] sm:$0xff] }
 0x20e   :  { %4155 = vmatpush1.bf16.msra.mxu0 %v5555_v46  ;;  %v5178_v46 = vcombine.high %v380_v41, %v392_v42 }
 0x20f   :  { %4237 = vmatpush1.bf16.msra.mxu1 %v5557_v47  ;;  %4156 = vmatprep.subr.bf16.mxu0 %v5580_v48  ;;  %v403_v47 = vld [vmem:[#allocation7 + $0x270] sm:$0xff] }
 0x210   :  { %4238 = vmatprep.subr.bf16.mxu1 %v5582_v49  ;;  %v415_v48 = vld [vmem:[#allocation7 + $0x2d0] sm:$0xff]  ;;  %v404_v49 = vld [vmem:[#allocation7 + $0x278] sm:$0xff] }
 0x211   :  { %v5200_v53 = vcombine.high %v403_v47, %v415_v48  ;;  %v5199_v60 = vcombine.low %v403_v47, %v415_v48  ;;  %v5201_v61 = vcombine.low %v404_v49, %v416_v50 }
 0x212   :  { %4157 = vmatpush1.bf16.msra.mxu0 %v5579_v56  ;;  %v5202_v56 = vcombine.high %v404_v49, %v416_v50 }
 0x213   :  { %4239 = vmatpush1.bf16.msra.mxu1 %v5581_v57  ;;  %4158 = vmatprep.subr.bf16.mxu0 %v5604_v58  ;;  %v427_v57 = vld [vmem:[#allocation7 + $0x330] sm:$0xff] }
 0x214   :  { %4240 = vmatprep.subr.bf16.mxu1 %v5606_v59  ;;  %v439_v58 = vld [vmem:[#allocation7 + $0x390] sm:$0xff]  ;;  %v428_v59 = vld [vmem:[#allocation7 + $0x338] sm:$0xff] }
 0x215   :  { %v5224_v63 = vcombine.high %v427_v57, %v439_v58  ;;  %v5223_v8 = vcombine.low %v427_v57, %v439_v58  ;;  %v560_v57 = vld [vmem:[#allocation7 + $0x758] sm:$0xff] }
 0x216   :  { %4159 = vmatpush1.bf16.msra.mxu0 %v5603_v1  ;;  %v5914_v1 = vmov 1983009808  }
 0x217   :  { %4241 = vmatpush1.bf16.msra.mxu1 %v5605_v2  ;;  %4160 = vmatprep.subr.bf16.mxu0 %v5628_v3  ;;  %v4794_v2 = vunpack.c.l.s4 %v5914_v1  ;;  %v5226_v3 = vcombine.high %v428_v59, %v440_v40  ;;  %v572_v1 = vld [vmem:[#allocation7 + $0x7b8] sm:$0xff] }
 0x218   :  { %4242 = vmatprep.subr.bf16.mxu1 %v5630_v5  ;;  %v451_v5 = vld [vmem:[#allocation7 + $0x3f0] sm:$0xff] }
 0x21a   :  { %4161 = vmatpush1.bf16.msra.mxu0 %v5627_v9  ;;  %v5225_v9 = vcombine.low %v428_v59, %v440_v40 }
 0x21b   :  { %4243 = vmatpush1.bf16.msra.mxu1 %v5629_v10  ;;  %4162 = vmatprep.subr.bf16.mxu0 %v5652_v11  ;;  %v5248_v10 = vcombine.high %v451_v5, %v463_v4  ;;  %v4795_v11 = vunpack.c.0.s8 %v4794_v2  ;;  %v584_v2 = vld [vmem:[#allocation7 + $0x818] sm:$0xff] }
 0x21c   :  { %4244 = vmatprep.subr.bf16.mxu1 %v5654_v12  ;;  %v5250_v12 = vcombine.high %v452_v6, %v464_v7 }
 0x21e   :  { %4163 = vmatpush1.bf16.msra.mxu0 %v5651_v17  ;;  %v5247_v17 = vcombine.low %v451_v5, %v463_v4 }
 0x21f   :  { %4245 = vmatpush1.bf16.msra.mxu1 %v5653_v18  ;;  %4164 = vmatprep.subr.bf16.mxu0 %v5676_v19  ;;  %v5249_v18 = vcombine.low %v452_v6, %v464_v7  ;;  %v5272_v19 = vcombine.high %v475_v13, %v487_v14  ;;  %v5370_v6 = vcombine.high %v572_v1, %v584_v2  ;;  %v595_v7 = vld [vmem:[#allocation7 + $0x870] sm:$0xff] }
 0x220   :  { %4246 = vmatprep.subr.bf16.mxu1 %v5678_v20  ;;  %v6055_v20 = vsub.s32 %v4795_v11, %v6009_v38 }
 0x222   :  { %4165 = vmatpush1.bf16.msra.mxu0 %v5675_v25  ;;  %v511_v25 = vld [vmem:[#allocation7 + $0x5d0] sm:$0xff] }
 0x223   :  { %4247 = vmatpush1.bf16.msra.mxu1 %v5677_v26  ;;  %4273 = vmatprep.subr.bf16.mxu0 %v5128_v27  ;;  %v5296_v37 = vcombine.high %v499_v24, %v511_v25  ;;  %v5295_v48 = vcombine.low %v499_v24, %v511_v25  ;;  %v643_v24 = vld [vmem:[#allocation7 + $0x9f0] sm:$0xff] }
 0x224   :  { %4355 = vmatprep.subr.bf16.mxu1 %v5130_v28  ;;  %v500_v28 = vld [vmem:[#allocation7 + $0x578] sm:$0xff]  ;;  %v655_v25 = vld [vmem:[#allocation7 + $0xa50] sm:$0xff] }
 0x225   :  { %4183 = vmatmul.mubr.bf16.vlgmr.msra.gmra.mrb[12].mxu0 %v6032_v62  ;;  %v5298_v42 = vcombine.high %v500_v28, %v512_v29  ;;  %v5297_v49 = vcombine.low %v500_v28, %v512_v29  ;;  %v5415_v28 = vcombine.low %v619_v15, %v631_v16 }
 0x226   :  { %4265 = vmatmul.mubr.bf16.vlgmr.msra.gmra.mrb[12].mxu1 %v6032_v62  ;;  %4274 = vmatpush1.bf16.msra.mxu0 %v5127_v31 }
 0x227   :  { %4305 = vmatprep.mubr.bf16.mxu0 %v6017_v54  ;;  %4356 = vmatpush1.bf16.msra.mxu1 %v5129_v34  ;;  %v5271_v34 = vcombine.low %v475_v13, %v487_v14 }
 0x228   :  { %4387 = vmatprep.mubr.bf16.mxu1 %v6017_v54  ;;  %4275 = vmatprep.subr.bf16.mxu0 %v5152_v35 }
 0x229   :  { %4357 = vmatprep.subr.bf16.mxu1 %v5154_v39 }
 0x22a   :  { %4276 = vmatpush1.bf16.msra.mxu0 %v5151_v43  ;;  %v523_v43 = vld [vmem:[#allocation7 + $0x630] sm:$0xff] }
 0x22b   :  { %4358 = vmatpush1.bf16.msra.mxu1 %v5153_v44  ;;  %4277 = vmatprep.subr.bf16.mxu0 %v5176_v45  ;;  %v535_v44 = vld [vmem:[#allocation7 + $0x690] sm:$0xff]  ;;  %v524_v45 = vld [vmem:[#allocation7 + $0x638] sm:$0xff] }
 0x22c   :  { %4359 = vmatprep.subr.bf16.mxu1 %v5178_v46  ;;  %v536_v46 = vld [vmem:[#allocation7 + $0x698] sm:$0xff]  ;;  %v5320_v50 = vcombine.high %v523_v43, %v535_v44  ;;  %v5319_v58 = vcombine.low %v523_v43, %v535_v44 }
 0x22d   :  { %v5321_v59 = vcombine.low %v524_v45, %v536_v46  ;;  %v692_v43 = vld [vmem:[#allocation7 + $0xb78] sm:$0xff] }
 0x22e   :  { %4278 = vmatpush1.bf16.msra.mxu0 %v5175_v51  ;;  %v5322_v51 = vcombine.high %v524_v45, %v536_v46  ;;  %v704_v44 = vld [vmem:[#allocation7 + $0xbd8] sm:$0xff] }
 0x22f   :  { %4360 = vmatpush1.bf16.msra.mxu1 %v5177_v52  ;;  %4279 = vmatprep.subr.bf16.mxu0 %v5200_v53  ;;  %v547_v52 = vld [vmem:[#allocation7 + $0x6f0] sm:$0xff] }
 0x230   :  { %4361 = vmatprep.subr.bf16.mxu1 %v5202_v56  ;;  %v559_v53 = vld [vmem:[#allocation7 + $0x750] sm:$0xff]  ;;  %v548_v56 = vld [vmem:[#allocation7 + $0x6f8] sm:$0xff] }
 0x231   :  { %v5344_v40 = vcombine.high %v547_v52, %v559_v53  ;;  %v5345_v5 = vcombine.low %v548_v56, %v560_v57 }
 0x232   :  { %4280 = vmatpush1.bf16.msra.mxu0 %v5199_v60  ;;  %v5346_v60 = vcombine.high %v548_v56, %v560_v57  ;;  %v5489_v56 = vcombine.low %v692_v43, %v704_v44 }
 0x233   :  { %4362 = vmatpush1.bf16.msra.mxu1 %v5201_v61  ;;  %4281 = vmatprep.subr.bf16.mxu0 %v5224_v63  ;;  %v571_v61 = vld [vmem:[#allocation7 + $0x7b0] sm:$0xff] }
 0x234   :  { %4363 = vmatprep.subr.bf16.mxu1 %v5226_v3  ;;  %v583_v63 = vld [vmem:[#allocation7 + $0x810] sm:$0xff]  ;;  %v5343_v3 = vcombine.low %v547_v52, %v559_v53  ;;  %v728_v52 = vld [vmem:[#allocation7 + $0xc98] sm:$0xff] }
 0x235   :  { %v5368_v4 = vcombine.high %v571_v61, %v583_v63  ;;  %v5367_v11 = vcombine.low %v571_v61, %v583_v63  ;;  %v752_v61 = vld [vmem:[#allocation7 + $0xd58] sm:$0xff] }
 0x236   :  { %4282 = vmatpush1.bf16.msra.mxu0 %v5223_v8  ;;  %v607_v8 = vld [vmem:[#allocation7 + $0x8d0] sm:$0xff] }
 0x237   :  { %4364 = vmatpush1.bf16.msra.mxu1 %v5225_v9  ;;  %4283 = vmatprep.subr.bf16.mxu0 %v5248_v10  ;;  %v596_v9 = vld [vmem:[#allocation7 + $0x878] sm:$0xff]  ;;  %v5392_v13 = vcombine.high %v595_v7, %v607_v8 }
 0x238   :  { %v3856_v21 = vpop.f32.mrb[4].mxu0  ;;  %v3938_v22 = vpop.f32.mrb[4].mxu1  ;;  %4365 = vmatprep.subr.bf16.mxu1 %v5250_v12  ;;  %v608_v10 = vld [vmem:[#allocation7 + $0x8d8] sm:$0xff]  ;;  %v5369_v12 = vcombine.low %v572_v1, %v584_v2 }
 0x239   :  { %v3858_v26 = vpop.f32.mrb[5].mxu0  ;;  %v3940_v27 = vpop.f32.mrb[5].mxu1  ;;  %v5394_v14 = vcombine.high %v596_v9, %v608_v10 }
 0x23a   :  { %v4789_v30 = vcombine.low %v3856_v21, %v3858_v26  ;;  %v4791_v31 = vcombine.low %v3938_v22, %v3940_v27  ;;  %v3860_v32 = vpop.f32.mrb[6].mxu0  ;;  %v3942_v33 = vpop.f32.mrb[6].mxu1  ;;  %4284 = vmatpush1.bf16.msra.mxu0 %v5247_v17  ;;  %v620_v17 = vld [vmem:[#allocation7 + $0x938] sm:$0xff]  ;;  %v5393_v21 = vcombine.low %v596_v9, %v608_v10  ;;  %v5416_v22 = vcombine.high %v619_v15, %v631_v16 }
 0x23b   :  { %4366 = vmatpush1.bf16.msra.mxu1 %v5249_v18  ;;  %v3861_v35 = vpop.f32.mrb[7].mxu0  ;;  %v3943_v38 = vpop.f32.mrb[7].mxu1  ;;  %4285 = vmatprep.subr.bf16.mxu0 %v5272_v19  ;;  %v632_v18 = vld [vmem:[#allocation7 + $0x998] sm:$0xff]  ;;  %v5391_v19 = vcombine.low %v595_v7, %v607_v8  ;;  %v667_v32 = vld [vmem:[#allocation7 + $0xab0] sm:$0xff] }
 0x23c   :  { %v4799_v39 = vrot.slane %v4789_v30, %v6055_v20  ;;  %v4813_v41 = vrot.slane %v4791_v31, %v6055_v20  ;;  %4367 = vmatprep.subr.bf16.mxu1 %v5274_v23  ;;  %v5418_v23 = vcombine.high %v620_v17, %v632_v18  ;;  %v644_v26 = vld [vmem:[#allocation7 + $0x9f8] sm:$0xff]  ;;  %v5417_v29 = vcombine.low %v620_v17, %v632_v18  ;;  %v679_v33 = vld [vmem:[#allocation7 + $0xb10] sm:$0xff] }
 0x23d   :  { %v656_v27 = vld [vmem:[#allocation7 + $0xa58] sm:$0xff]  ;;  %v5440_v30 = vcombine.high %v643_v24, %v655_v25  ;;  %v5439_v38 = vcombine.low %v643_v24, %v655_v25  ;;  %v5463_v45 = vcombine.low %v667_v32, %v679_v33 }
 0x23e   :  { %v4821_v47 = vcombine.low %v4799_v39, %v4813_v41  ;;  %4286 = vmatpush1.bf16.msra.mxu0 %v5271_v34  ;;  %v5442_v31 = vcombine.high %v644_v26, %v656_v27  ;;  %v668_v34 = vld [vmem:[#allocation7 + $0xab8] sm:$0xff]  ;;  %v691_v41 = vld [vmem:[#allocation7 + $0xb70] sm:$0xff] }
 0x23f   :  { %4368 = vmatpush1.bf16.msra.mxu1 %v5273_v36  ;;  %4287 = vmatprep.subr.bf16.mxu0 %v5296_v37  ;;  %v680_v35 = vld [vmem:[#allocation7 + $0xb18] sm:$0xff]  ;;  %v5441_v36 = vcombine.low %v644_v26, %v656_v27  ;;  %v5464_v37 = vcombine.high %v667_v32, %v679_v33 }
 0x240   :  { %5068 = vst [vmem:[%s6113_s4] sm:$0xff] %v4821_v47  ;;  %4369 = vmatprep.subr.bf16.mxu1 %v5298_v42  ;;  %v5466_v39 = vcombine.high %v668_v34, %v680_v35  ;;  %v703_v42 = vld [vmem:[#allocation7 + $0xbd0] sm:$0xff]  ;;  %v5465_v46 = vcombine.low %v668_v34, %v680_v35  ;;  %v776_v7 = vld [vmem:[#allocation7 + $0xe18] sm:$0xff] }
 0x241   :  { %v5488_v47 = vcombine.high %v691_v41, %v703_v42  ;;  %v5487_v53 = vcombine.low %v691_v41, %v703_v42  ;;  %v800_v15 = vld [vmem:[#allocation7 + $0xed8] sm:$0xff] }
 0x242   :  { %4288 = vmatpush1.bf16.msra.mxu0 %v5295_v48  ;;  %v5490_v48 = vcombine.high %v692_v43, %v704_v44  ;;  %v824_v24 = vld [vmem:[#allocation7 + $0xf98] sm:$0xff] }
 0x243   :  { %4370 = vmatpush1.bf16.msra.mxu1 %v5297_v49  ;;  %4289 = vmatprep.subr.bf16.mxu0 %v5320_v50  ;;  %v715_v49 = vld [vmem:[#allocation7 + $0xc30] sm:$0xff]  ;;  %v848_v32 = vld [vmem:[#allocation7 + $0x1058] sm:$0xff] }
 0x244   :  { %4371 = vmatprep.subr.bf16.mxu1 %v5322_v51  ;;  %v727_v50 = vld [vmem:[#allocation7 + $0xc90] sm:$0xff]  ;;  %v716_v51 = vld [vmem:[#allocation7 + $0xc38] sm:$0xff] }
 0x245   :  { %v5512_v57 = vcombine.high %v715_v49, %v727_v50  ;;  %v5511_v63 = vcombine.low %v715_v49, %v727_v50  ;;  %v5513_v1 = vcombine.low %v716_v51, %v728_v52  ;;  %v872_v41 = vld [vmem:[#allocation7 + $0x1118] sm:$0xff] }
 0x246   :  { %4290 = vmatpush1.bf16.msra.mxu0 %v5319_v58  ;;  %v5514_v58 = vcombine.high %v716_v51, %v728_v52  ;;  %v896_v49 = vld [vmem:[#allocation7 + $0x11d8] sm:$0xff] }
 0x247   :  { %4372 = vmatpush1.bf16.msra.mxu1 %v5321_v59  ;;  %4291 = vmatprep.subr.bf16.mxu0 %v5344_v40  ;;  %v739_v59 = vld [vmem:[#allocation7 + $0xcf0] sm:$0xff] }
 0x248   :  { %4373 = vmatprep.subr.bf16.mxu1 %v5346_v60  ;;  %v751_v40 = vld [vmem:[#allocation7 + $0xd50] sm:$0xff]  ;;  %v740_v60 = vld [vmem:[#allocation7 + $0xcf8] sm:$0xff] }
 0x249   :  { %v5536_v2 = vcombine.high %v739_v59, %v751_v40  ;;  %v5535_v8 = vcombine.low %v739_v59, %v751_v40  ;;  %v5537_v9 = vcombine.low %v740_v60, %v752_v61  ;;  %v346_v59 = vld [vmem:[#allocation7 + $0xa8] sm:$0xff] }
 0x24a   :  { %4292 = vmatpush1.bf16.msra.mxu0 %v5343_v3  ;;  %v5538_v3 = vcombine.high %v740_v60, %v752_v61 }
 0x24b   :  { %4374 = vmatpush1.bf16.msra.mxu1 %v5345_v5  ;;  %4293 = vmatprep.subr.bf16.mxu0 %v5368_v4  ;;  %v763_v5 = vld [vmem:[#allocation7 + $0xdb0] sm:$0xff] }
 0x24c   :  { %4375 = vmatprep.subr.bf16.mxu1 %v5370_v6  ;;  %v775_v4 = vld [vmem:[#allocation7 + $0xe10] sm:$0xff]  ;;  %v764_v6 = vld [vmem:[#allocation7 + $0xdb8] sm:$0xff] }
 0x24d   :  { %v5560_v10 = vcombine.high %v763_v5, %v775_v4  ;;  %v5559_v16 = vcombine.low %v763_v5, %v775_v4  ;;  %v5561_v17 = vcombine.low %v764_v6, %v776_v7  ;;  %v358_v5 = vld [vmem:[#allocation7 + $0x108] sm:$0xff] }
 0x24e   :  { %4294 = vmatpush1.bf16.msra.mxu0 %v5367_v11  ;;  %v5562_v11 = vcombine.high %v764_v6, %v776_v7  ;;  %v370_v4 = vld [vmem:[#allocation7 + $0x168] sm:$0xff] }
 0x24f   :  { %4376 = vmatpush1.bf16.msra.mxu1 %v5369_v12  ;;  %4295 = vmatprep.subr.bf16.mxu0 %v5392_v13  ;;  %v787_v12 = vld [vmem:[#allocation7 + $0xe70] sm:$0xff] }
 0x250   :  { %4377 = vmatprep.subr.bf16.mxu1 %v5394_v14  ;;  %v799_v13 = vld [vmem:[#allocation7 + $0xed0] sm:$0xff]  ;;  %v788_v14 = vld [vmem:[#allocation7 + $0xe78] sm:$0xff] }
 0x251   :  { %v5584_v18 = vcombine.high %v787_v12, %v799_v13  ;;  %v5583_v25 = vcombine.low %v787_v12, %v799_v13  ;;  %v5585_v26 = vcombine.low %v788_v14, %v800_v15  ;;  %v394_v12 = vld [vmem:[#allocation7 + $0x228] sm:$0xff] }
 0x252   :  { %4296 = vmatpush1.bf16.msra.mxu0 %v5391_v19  ;;  %v5586_v19 = vcombine.high %v788_v14, %v800_v15  ;;  %v5157_v14 = vcombine.low %v358_v5, %v370_v4 }
 0x253   :  { %4378 = vmatpush1.bf16.msra.mxu1 %v5393_v21  ;;  %4297 = vmatprep.subr.bf16.mxu0 %v5416_v22  ;;  %v811_v21 = vld [vmem:[#allocation7 + $0xf30] sm:$0xff] }
 0x254   :  { %4379 = vmatprep.subr.bf16.mxu1 %v5418_v23  ;;  %v823_v22 = vld [vmem:[#allocation7 + $0xf90] sm:$0xff]  ;;  %v812_v23 = vld [vmem:[#allocation7 + $0xf38] sm:$0xff] }
 0x255   :  { %v5608_v27 = vcombine.high %v811_v21, %v823_v22  ;;  %v5607_v33 = vcombine.low %v811_v21, %v823_v22  ;;  %v5609_v34 = vcombine.low %v812_v23, %v824_v24  ;;  %v418_v21 = vld [vmem:[#allocation7 + $0x2e8] sm:$0xff] }
 0x256   :  { %4298 = vmatpush1.bf16.msra.mxu0 %v5415_v28  ;;  %v5610_v28 = vcombine.high %v812_v23, %v824_v24 }
 0x257   :  { %4380 = vmatpush1.bf16.msra.mxu1 %v5417_v29  ;;  %4299 = vmatprep.subr.bf16.mxu0 %v5440_v30  ;;  %v835_v29 = vld [vmem:[#allocation7 + $0xff0] sm:$0xff] }
 0x258   :  { %4381 = vmatprep.subr.bf16.mxu1 %v5442_v31  ;;  %v847_v30 = vld [vmem:[#allocation7 + $0x1050] sm:$0xff]  ;;  %v836_v31 = vld [vmem:[#allocation7 + $0xff8] sm:$0xff] }
 0x259   :  { %v5632_v35 = vcombine.high %v835_v29, %v847_v30  ;;  %v5631_v42 = vcombine.low %v835_v29, %v847_v30  ;;  %v5633_v43 = vcombine.low %v836_v31, %v848_v32  ;;  %v442_v29 = vld [vmem:[#allocation7 + $0x3a8] sm:$0xff] }
 0x25a   :  { %4300 = vmatpush1.bf16.msra.mxu0 %v5439_v38  ;;  %v5634_v38 = vcombine.high %v836_v31, %v848_v32 }
 0x25b   :  { %4382 = vmatpush1.bf16.msra.mxu1 %v5441_v36  ;;  %4301 = vmatprep.subr.bf16.mxu0 %v5464_v37  ;;  %v859_v36 = vld [vmem:[#allocation7 + $0x10b0] sm:$0xff] }
 0x25c   :  { %4383 = vmatprep.subr.bf16.mxu1 %v5466_v39  ;;  %v871_v37 = vld [vmem:[#allocation7 + $0x1110] sm:$0xff]  ;;  %v860_v39 = vld [vmem:[#allocation7 + $0x10b8] sm:$0xff] }
 0x25d   :  { %v5656_v44 = vcombine.high %v859_v36, %v871_v37  ;;  %v5655_v50 = vcombine.low %v859_v36, %v871_v37  ;;  %v5657_v51 = vcombine.low %v860_v39, %v872_v41  ;;  %v466_v36 = vld [vmem:[#allocation7 + $0x468] sm:$0xff] }
 0x25e   :  { %4302 = vmatpush1.bf16.msra.mxu0 %v5463_v45  ;;  %v5658_v45 = vcombine.high %v860_v39, %v872_v41 }
 0x25f   :  { %4384 = vmatpush1.bf16.msra.mxu1 %v5465_v46  ;;  %4303 = vmatprep.subr.bf16.mxu0 %v5488_v47  ;;  %v883_v46 = vld [vmem:[#allocation7 + $0x1170] sm:$0xff] }
 0x260   :  { %4385 = vmatprep.subr.bf16.mxu1 %v5490_v48  ;;  %v895_v47 = vld [vmem:[#allocation7 + $0x11d0] sm:$0xff]  ;;  %v884_v48 = vld [vmem:[#allocation7 + $0x1178] sm:$0xff] }
 0x261   :  { %v5680_v52 = vcombine.high %v883_v46, %v895_v47  ;;  %v5679_v40 = vcombine.low %v883_v46, %v895_v47  ;;  %v5681_v60 = vcombine.low %v884_v48, %v896_v49  ;;  %v490_v46 = vld [vmem:[#allocation7 + $0x528] sm:$0xff] }
 0x262   :  { %4304 = vmatpush1.bf16.msra.mxu0 %v5487_v53  ;;  %v5682_v53 = vcombine.high %v884_v48, %v896_v49 }
 0x263   :  { %4386 = vmatpush1.bf16.msra.mxu1 %v5489_v56  ;;  %4314 = vmatprep.subr.bf16.mxu0 %v5512_v57  ;;  %v333_v56 = vld [vmem:[#allocation7 + $0x40] sm:$0xff] }
 0x264   :  { %4396 = vmatprep.subr.bf16.mxu1 %v5514_v58  ;;  %v345_v57 = vld [vmem:[#allocation7 + $0xa0] sm:$0xff]  ;;  %v334_v58 = vld [vmem:[#allocation7 + $0x48] sm:$0xff] }
 0x265   :  { %4306 = vmatmul.mubr.bf16.vlgmr.msra.gmra.mrb[16].mxu0 %v6019_v55  ;;  %v5132_v61 = vcombine.high %v333_v56, %v345_v57  ;;  %v5133_v6 = vcombine.low %v334_v58, %v346_v59 }
 0x266   :  { %4388 = vmatmul.mubr.bf16.vlgmr.msra.gmra.mrb[16].mxu1 %v6019_v55  ;;  %4315 = vmatpush1.bf16.msra.mxu0 %v5511_v63  ;;  %v5134_v63 = vcombine.high %v334_v58, %v346_v59  ;;  %v502_v58 = vld [vmem:[#allocation7 + $0x588] sm:$0xff] }
 0x267   :  { %4397 = vmatpush1.bf16.msra.mxu1 %v5513_v1  ;;  %4316 = vmatprep.subr.bf16.mxu0 %v5536_v2  ;;  %v357_v1 = vld [vmem:[#allocation7 + $0x100] sm:$0xff]  ;;  %v514_v59 = vld [vmem:[#allocation7 + $0x5e8] sm:$0xff] }
 0x268   :  { %4398 = vmatprep.subr.bf16.mxu1 %v5538_v3  ;;  %4346 = vmatprep.mubr.bf16.mxu0 %v5911_v0  ;;  %v369_v2 = vld [vmem:[#allocation7 + $0x160] sm:$0xff]  ;;  %v5131_v3 = vcombine.low %v333_v56, %v345_v57 }
 0x269   :  { %4428 = vmatprep.mubr.bf16.mxu1 %v5911_v0  ;;  %v5156_v7 = vcombine.high %v357_v1, %v369_v2  ;;  %v5155_v13 = vcombine.low %v357_v1, %v369_v2 }
 0x26a   :  { %4317 = vmatpush1.bf16.msra.mxu0 %v5535_v8  ;;  %v381_v8 = vld [vmem:[#allocation7 + $0x1c0] sm:$0xff] }
 0x26b   :  { %4399 = vmatpush1.bf16.msra.mxu1 %v5537_v9  ;;  %4318 = vmatprep.subr.bf16.mxu0 %v5560_v10  ;;  %v393_v9 = vld [vmem:[#allocation7 + $0x220] sm:$0xff]  ;;  %v5158_v10 = vcombine.high %v358_v5, %v370_v4 }
 0x26c   :  { %4400 = vmatprep.subr.bf16.mxu1 %v5562_v11  ;;  %v382_v11 = vld [vmem:[#allocation7 + $0x1c8] sm:$0xff]  ;;  %v5180_v15 = vcombine.high %v381_v8, %v393_v9  ;;  %v5179_v22 = vcombine.low %v381_v8, %v393_v9  ;;  %v5302_v8 = vcombine.high %v502_v58, %v514_v59  ;;  %v525_v9 = vld [vmem:[#allocation7 + $0x640] sm:$0xff] }
 0x26d   :  { %v5181_v23 = vcombine.low %v382_v11, %v394_v12 }
 0x26e   :  { %4319 = vmatpush1.bf16.msra.mxu0 %v5559_v16  ;;  %v5182_v16 = vcombine.high %v382_v11, %v394_v12  ;;  %v526_v12 = vld [vmem:[#allocation7 + $0x648] sm:$0xff] }
 0x26f   :  { %4401 = vmatpush1.bf16.msra.mxu1 %v5561_v17  ;;  %4320 = vmatprep.subr.bf16.mxu0 %v5584_v18  ;;  %v405_v17 = vld [vmem:[#allocation7 + $0x280] sm:$0xff] }
 0x270   :  { %4402 = vmatprep.subr.bf16.mxu1 %v5586_v19  ;;  %v417_v18 = vld [vmem:[#allocation7 + $0x2e0] sm:$0xff]  ;;  %v406_v19 = vld [vmem:[#allocation7 + $0x288] sm:$0xff] }
 0x271   :  { %v5204_v24 = vcombine.high %v405_v17, %v417_v18  ;;  %v5203_v30 = vcombine.low %v405_v17, %v417_v18  ;;  %v5205_v31 = vcombine.low %v406_v19, %v418_v21 }
 0x272   :  { %4321 = vmatpush1.bf16.msra.mxu0 %v5583_v25  ;;  %v5206_v25 = vcombine.high %v406_v19, %v418_v21  ;;  %v549_v19 = vld [vmem:[#allocation7 + $0x700] sm:$0xff] }
 0x273   :  { %4403 = vmatpush1.bf16.msra.mxu1 %v5585_v26  ;;  %4322 = vmatprep.subr.bf16.mxu0 %v5608_v27  ;;  %v429_v26 = vld [vmem:[#allocation7 + $0x340] sm:$0xff] }
 0x274   :  { %4404 = vmatprep.subr.bf16.mxu1 %v5610_v28  ;;  %v441_v27 = vld [vmem:[#allocation7 + $0x3a0] sm:$0xff]  ;;  %v430_v28 = vld [vmem:[#allocation7 + $0x348] sm:$0xff] }
 0x275   :  { %v5228_v32 = vcombine.high %v429_v26, %v441_v27  ;;  %v5227_v37 = vcombine.low %v429_v26, %v441_v27  ;;  %v5229_v39 = vcombine.low %v430_v28, %v442_v29  ;;  %v561_v21 = vld [vmem:[#allocation7 + $0x760] sm:$0xff] }
 0x276   :  { %4323 = vmatpush1.bf16.msra.mxu0 %v5607_v33  ;;  %v5230_v33 = vcombine.high %v430_v28, %v442_v29  ;;  %v5348_v26 = vcombine.high %v549_v19, %v561_v21  ;;  %v573_v28 = vld [vmem:[#allocation7 + $0x7c0] sm:$0xff] }
 0x277   :  { %4405 = vmatpush1.bf16.msra.mxu1 %v5609_v34  ;;  %4324 = vmatprep.subr.bf16.mxu0 %v5632_v35  ;;  %v453_v34 = vld [vmem:[#allocation7 + $0x400] sm:$0xff] }
 0x278   :  { %4406 = vmatprep.subr.bf16.mxu1 %v5634_v38  ;;  %v465_v35 = vld [vmem:[#allocation7 + $0x460] sm:$0xff]  ;;  %v454_v38 = vld [vmem:[#allocation7 + $0x408] sm:$0xff] }
 0x279   :  { %v5252_v41 = vcombine.high %v453_v34, %v465_v35  ;;  %v5251_v47 = vcombine.low %v453_v34, %v465_v35  ;;  %v5253_v48 = vcombine.low %v454_v38, %v466_v36  ;;  %v585_v29 = vld [vmem:[#allocation7 + $0x820] sm:$0xff] }
 0x27a   :  { %4325 = vmatpush1.bf16.msra.mxu0 %v5631_v42  ;;  %v5254_v42 = vcombine.high %v454_v38, %v466_v36  ;;  %v5372_v34 = vcombine.high %v573_v28, %v585_v29  ;;  %v597_v38 = vld [vmem:[#allocation7 + $0x880] sm:$0xff] }
 0x27b   :  { %4407 = vmatpush1.bf16.msra.mxu1 %v5633_v43  ;;  %4326 = vmatprep.subr.bf16.mxu0 %v5656_v44  ;;  %v477_v43 = vld [vmem:[#allocation7 + $0x4c0] sm:$0xff] }
 0x27c   :  { %4408 = vmatprep.subr.bf16.mxu1 %v5658_v45  ;;  %v489_v44 = vld [vmem:[#allocation7 + $0x520] sm:$0xff]  ;;  %v478_v45 = vld [vmem:[#allocation7 + $0x4c8] sm:$0xff] }
 0x27d   :  { %v5276_v49 = vcombine.high %v477_v43, %v489_v44  ;;  %v5277_v5 = vcombine.low %v478_v45, %v490_v46  ;;  %v609_v36 = vld [vmem:[#allocation7 + $0x8e0] sm:$0xff] }
 0x27e   :  { %4327 = vmatpush1.bf16.msra.mxu0 %v5655_v50 }
 0x27f   :  { %4409 = vmatpush1.bf16.msra.mxu1 %v5657_v51  ;;  %4328 = vmatprep.subr.bf16.mxu0 %v5680_v52  ;;  %v5278_v51 = vcombine.high %v478_v45, %v490_v46  ;;  %v501_v52 = vld [vmem:[#allocation7 + $0x580] sm:$0xff] }
 0x280   :  { %4410 = vmatprep.subr.bf16.mxu1 %v5682_v53  ;;  %v513_v53 = vld [vmem:[#allocation7 + $0x5e0] sm:$0xff] }
 0x281   :  { %v5300_v4 = vcombine.high %v501_v52, %v513_v53  ;;  %v621_v45 = vld [vmem:[#allocation7 + $0x940] sm:$0xff] }
 0x282   :  { %4329 = vmatpush1.bf16.msra.mxu0 %v5679_v40  ;;  %v633_v46 = vld [vmem:[#allocation7 + $0x9a0] sm:$0xff] }
 0x283   :  { %4411 = vmatpush1.bf16.msra.mxu1 %v5681_v60  ;;  %4437 = vmatprep.subr.bf16.mxu0 %v5132_v61 }
 0x284   :  { %4519 = vmatprep.subr.bf16.mxu1 %v5134_v63  ;;  %v5275_v63 = vcombine.low %v477_v43, %v489_v44  ;;  %v5396_v43 = vcombine.high %v597_v38, %v609_v36 }
 0x285   :  { %4347 = vmatmul.mubr.bf16.vlgmr.msra.gmra.mrb[16].mxu0 %v6032_v62 }
 0x286   :  { %4429 = vmatmul.mubr.bf16.vlgmr.msra.gmra.mrb[16].mxu1 %v6032_v62  ;;  %4438 = vmatpush1.bf16.msra.mxu0 %v5131_v3 }
 0x287   :  { %4469 = vmatprep.mubr.bf16.mxu0 %v6017_v54  ;;  %4520 = vmatpush1.bf16.msra.mxu1 %v5133_v6 }
 0x288   :  { %4551 = vmatprep.mubr.bf16.mxu1 %v6017_v54  ;;  %4439 = vmatprep.subr.bf16.mxu0 %v5156_v7 }
 0x289   :  { %4521 = vmatprep.subr.bf16.mxu1 %v5158_v10  ;;  %v537_v10 = vld [vmem:[#allocation7 + $0x6a0] sm:$0xff] }
 0x28a   :  { %4440 = vmatpush1.bf16.msra.mxu0 %v5155_v13  ;;  %v538_v13 = vld [vmem:[#allocation7 + $0x6a8] sm:$0xff]  ;;  %v5324_v17 = vcombine.high %v525_v9, %v537_v10 }
 0x28b   :  { %4522 = vmatpush1.bf16.msra.mxu1 %v5157_v14  ;;  %4441 = vmatprep.subr.bf16.mxu0 %v5180_v15  ;;  %v5299_v14 = vcombine.low %v501_v52, %v513_v53  ;;  %v5326_v18 = vcombine.high %v526_v12, %v538_v13  ;;  %v645_v53 = vld [vmem:[#allocation7 + $0xa00] sm:$0xff] }
 0x28c   :  { %4523 = vmatprep.subr.bf16.mxu1 %v5182_v16  ;;  %v5301_v16 = vcombine.low %v502_v58, %v514_v59  ;;  %v658_v58 = vld [vmem:[#allocation7 + $0xa68] sm:$0xff]  ;;  %v5419_v59 = vcombine.low %v621_v45, %v633_v46 }
 0x28e   :  { %4442 = vmatpush1.bf16.msra.mxu0 %v5179_v22  ;;  %v550_v22 = vld [vmem:[#allocation7 + $0x708] sm:$0xff] }
 0x28f   :  { %4524 = vmatpush1.bf16.msra.mxu1 %v5181_v23  ;;  %4443 = vmatprep.subr.bf16.mxu0 %v5204_v24  ;;  %v562_v23 = vld [vmem:[#allocation7 + $0x768] sm:$0xff]  ;;  %v5323_v24 = vcombine.low %v525_v9, %v537_v10  ;;  %v705_v9 = vld [vmem:[#allocation7 + $0xbe0] sm:$0xff] }
 0x290   :  { %4525 = vmatprep.subr.bf16.mxu1 %v5206_v25  ;;  %v5325_v25 = vcombine.low %v526_v12, %v538_v13  ;;  %v5350_v27 = vcombine.high %v550_v22, %v562_v23  ;;  %v694_v10 = vld [vmem:[#allocation7 + $0xb88] sm:$0xff] }
 0x292   :  { %4444 = vmatpush1.bf16.msra.mxu0 %v5203_v30  ;;  %v574_v30 = vld [vmem:[#allocation7 + $0x7c8] sm:$0xff] }
 0x293   :  { %4526 = vmatpush1.bf16.msra.mxu1 %v5205_v31  ;;  %4445 = vmatprep.subr.bf16.mxu0 %v5228_v32  ;;  %v586_v31 = vld [vmem:[#allocation7 + $0x828] sm:$0xff]  ;;  %v5347_v32 = vcombine.low %v549_v19, %v561_v21 }
 0x294   :  { %4527 = vmatprep.subr.bf16.mxu1 %v5230_v33  ;;  %v5349_v33 = vcombine.low %v550_v22, %v562_v23  ;;  %v5374_v35 = vcombine.high %v574_v30, %v586_v31  ;;  %v730_v19 = vld [vmem:[#allocation7 + $0xca8] sm:$0xff] }
 0x296   :  { %4446 = vmatpush1.bf16.msra.mxu0 %v5227_v37  ;;  %v598_v37 = vld [vmem:[#allocation7 + $0x888] sm:$0xff] }
 0x297   :  { %4528 = vmatpush1.bf16.msra.mxu1 %v5229_v39  ;;  %4447 = vmatprep.subr.bf16.mxu0 %v5252_v41  ;;  %v610_v39 = vld [vmem:[#allocation7 + $0x8e8] sm:$0xff]  ;;  %v5371_v41 = vcombine.low %v573_v28, %v585_v29 }
 0x298   :  { %v4020_v50 = vpop.f32.mrb[8].mxu0  ;;  %4529 = vmatprep.subr.bf16.mxu1 %v5254_v42  ;;  %v5373_v42 = vcombine.low %v574_v30, %v586_v31  ;;  %v5398_v44 = vcombine.high %v598_v37, %v610_v39  ;;  %v754_v28 = vld [vmem:[#allocation7 + $0xd68] sm:$0xff] }
 0x299   :  { %v4102_v56 = vpop.f32.mrb[8].mxu1  ;;  %v4022_v57 = vpop.f32.mrb[9].mxu0 }
 0x29a   :  { %v4825_v40 = vcombine.low %v4020_v50, %v4022_v57  ;;  %v4104_v60 = vpop.f32.mrb[9].mxu1  ;;  %v4024_v61 = vpop.f32.mrb[10].mxu0  ;;  %4448 = vmatpush1.bf16.msra.mxu0 %v5251_v47  ;;  %v622_v47 = vld [vmem:[#allocation7 + $0x948] sm:$0xff]  ;;  %v5397_v50 = vcombine.low %v598_v37, %v610_v39 }
 0x29b   :  { %v4827_v1 = vcombine.low %v4102_v56, %v4104_v60  ;;  %v4106_v2 = vpop.f32.mrb[10].mxu1  ;;  %4530 = vmatpush1.bf16.msra.mxu1 %v5253_v48  ;;  %v4025_v3 = vpop.f32.mrb[11].mxu0  ;;  %4449 = vmatprep.subr.bf16.mxu0 %v5276_v49  ;;  %v634_v48 = vld [vmem:[#allocation7 + $0x9a8] sm:$0xff]  ;;  %v5395_v49 = vcombine.low %v597_v38, %v609_v36  ;;  %v657_v56 = vld [vmem:[#allocation7 + $0xa60] sm:$0xff] }
 0x29c   :  { %v4835_v6 = vrot.slane %v4825_v40, %v6055_v20  ;;  %v4107_v7 = vpop.f32.mrb[11].mxu1  ;;  %4531 = vmatprep.subr.bf16.mxu1 %v5278_v51  ;;  %v5420_v51 = vcombine.high %v621_v45, %v633_v46  ;;  %v5422_v52 = vcombine.high %v622_v47, %v634_v48  ;;  %v646_v57 = vld [vmem:[#allocation7 + $0xa08] sm:$0xff]  ;;  %v5421_v40 = vcombine.low %v622_v47, %v634_v48 }
 0x29d   :  { %v4849_v11 = vrot.slane %v4827_v1, %v6055_v20  ;;  %v5444_v60 = vcombine.high %v645_v53, %v657_v56  ;;  %v5446_v61 = vcombine.high %v646_v57, %v658_v58  ;;  %v681_v1 = vld [vmem:[#allocation7 + $0xb20] sm:$0xff]  ;;  %v670_v2 = vld [vmem:[#allocation7 + $0xac8] sm:$0xff] }
 0x29e   :  { %4450 = vmatpush1.bf16.msra.mxu0 %v5275_v63  ;;  %v669_v63 = vld [vmem:[#allocation7 + $0xac0] sm:$0xff]  ;;  %v682_v3 = vld [vmem:[#allocation7 + $0xb28] sm:$0xff] }
 0x29f   :  { %v4857_v15 = vcombine.low %v4835_v6, %v4849_v11  ;;  %4532 = vmatpush1.bf16.msra.mxu1 %v5277_v5  ;;  %4451 = vmatprep.subr.bf16.mxu0 %v5300_v4  ;;  %v5443_v5 = vcombine.low %v645_v53, %v657_v56  ;;  %v5445_v4 = vcombine.low %v646_v57, %v658_v58  ;;  %v706_v11 = vld [vmem:[#allocation7 + $0xbe8] sm:$0xff] }
 0x2a0   :  { %4533 = vmatprep.subr.bf16.mxu1 %v5302_v8  ;;  %v5468_v6 = vcombine.high %v669_v63, %v681_v1  ;;  %v5470_v7 = vcombine.high %v670_v2, %v682_v3  ;;  %v693_v8 = vld [vmem:[#allocation7 + $0xb80] sm:$0xff]  ;;  %v5467_v12 = vcombine.low %v669_v63, %v681_v1  ;;  %v5469_v13 = vcombine.low %v670_v2, %v682_v3  ;;  %v778_v38 = vld [vmem:[#allocation7 + $0xe28] sm:$0xff] }
 0x2a1   :  { %5070 = vst [vmem:[%s6113_s4 + $0x8] sm:$0xff] %v4857_v15  ;;  %v5494_v15 = vcombine.high %v694_v10, %v706_v11  ;;  %v5491_v21 = vcombine.low %v693_v8, %v705_v9  ;;  %v5493_v22 = vcombine.low %v694_v10, %v706_v11  ;;  %v802_v45 = vld [vmem:[#allocation7 + $0xee8] sm:$0xff] }
 0x2a2   :  { %4452 = vmatpush1.bf16.msra.mxu0 %v5299_v14  ;;  %v5492_v14 = vcombine.high %v693_v8, %v705_v9  ;;  %v826_v53 = vld [vmem:[#allocation7 + $0xfa8] sm:$0xff] }
 0x2a3   :  { %4534 = vmatpush1.bf16.msra.mxu1 %v5301_v16  ;;  %4453 = vmatprep.subr.bf16.mxu0 %v5324_v17  ;;  %v717_v16 = vld [vmem:[#allocation7 + $0xc40] sm:$0xff]  ;;  %v850_v63 = vld [vmem:[#allocation7 + $0x1068] sm:$0xff] }
 0x2a4   :  { %4535 = vmatprep.subr.bf16.mxu1 %v5326_v18  ;;  %v729_v17 = vld [vmem:[#allocation7 + $0xca0] sm:$0xff]  ;;  %v718_v18 = vld [vmem:[#allocation7 + $0xc48] sm:$0xff] }
 0x2a5   :  { %v5516_v23 = vcombine.high %v717_v16, %v729_v17  ;;  %v5515_v29 = vcombine.low %v717_v16, %v729_v17  ;;  %v5517_v30 = vcombine.low %v718_v18, %v730_v19  ;;  %v874_v8 = vld [vmem:[#allocation7 + $0x1128] sm:$0xff] }
 0x2a6   :  { %4454 = vmatpush1.bf16.msra.mxu0 %v5323_v24  ;;  %v5518_v24 = vcombine.high %v718_v18, %v730_v19  ;;  %v898_v16 = vld [vmem:[#allocation7 + $0x11e8] sm:$0xff] }
 0x2a7   :  { %4536 = vmatpush1.bf16.msra.mxu1 %v5325_v25  ;;  %4455 = vmatprep.subr.bf16.mxu0 %v5348_v26  ;;  %v741_v25 = vld [vmem:[#allocation7 + $0xd00] sm:$0xff] }
 0x2a8   :  { %4537 = vmatprep.subr.bf16.mxu1 %v5350_v27  ;;  %v753_v26 = vld [vmem:[#allocation7 + $0xd60] sm:$0xff]  ;;  %v742_v27 = vld [vmem:[#allocation7 + $0xd08] sm:$0xff] }
 0x2a9   :  { %v5540_v31 = vcombine.high %v741_v25, %v753_v26  ;;  %v5539_v36 = vcombine.low %v741_v25, %v753_v26  ;;  %v5541_v37 = vcombine.low %v742_v27, %v754_v28  ;;  %v348_v25 = vld [vmem:[#allocation7 + $0xb8] sm:$0xff] }
 0x2aa   :  { %4456 = vmatpush1.bf16.msra.mxu0 %v5347_v32  ;;  %v5542_v32 = vcombine.high %v742_v27, %v754_v28 }
 0x2ab   :  { %4538 = vmatpush1.bf16.msra.mxu1 %v5349_v33  ;;  %4457 = vmatprep.subr.bf16.mxu0 %v5372_v34  ;;  %v765_v33 = vld [vmem:[#allocation7 + $0xdc0] sm:$0xff] }
 0x2ac   :  { %4539 = vmatprep.subr.bf16.mxu1 %v5374_v35  ;;  %v777_v34 = vld [vmem:[#allocation7 + $0xe20] sm:$0xff]  ;;  %v766_v35 = vld [vmem:[#allocation7 + $0xdc8] sm:$0xff] }
 0x2ad   :  { %v5564_v39 = vcombine.high %v765_v33, %v777_v34  ;;  %v5563_v46 = vcombine.low %v765_v33, %v777_v34  ;;  %v5565_v47 = vcombine.low %v766_v35, %v778_v38  ;;  %v360_v33 = vld [vmem:[#allocation7 + $0x118] sm:$0xff] }
 0x2ae   :  { %4458 = vmatpush1.bf16.msra.mxu0 %v5371_v41  ;;  %v5566_v41 = vcombine.high %v766_v35, %v778_v38  ;;  %v372_v34 = vld [vmem:[#allocation7 + $0x178] sm:$0xff] }
 0x2af   :  { %4540 = vmatpush1.bf16.msra.mxu1 %v5373_v42  ;;  %4459 = vmatprep.subr.bf16.mxu0 %v5396_v43  ;;  %v789_v42 = vld [vmem:[#allocation7 + $0xe80] sm:$0xff] }
 0x2b0   :  { %4541 = vmatprep.subr.bf16.mxu1 %v5398_v44  ;;  %v801_v43 = vld [vmem:[#allocation7 + $0xee0] sm:$0xff]  ;;  %v790_v44 = vld [vmem:[#allocation7 + $0xe88] sm:$0xff] }
 0x2b1   :  { %v5588_v48 = vcombine.high %v789_v42, %v801_v43  ;;  %v5587_v56 = vcombine.low %v789_v42, %v801_v43  ;;  %v5589_v57 = vcombine.low %v790_v44, %v802_v45  ;;  %v396_v42 = vld [vmem:[#allocation7 + $0x238] sm:$0xff] }
 0x2b2   :  { %4460 = vmatpush1.bf16.msra.mxu0 %v5395_v49  ;;  %v5590_v49 = vcombine.high %v790_v44, %v802_v45  ;;  %v5161_v44 = vcombine.low %v360_v33, %v372_v34 }
 0x2b3   :  { %4542 = vmatpush1.bf16.msra.mxu1 %v5397_v50  ;;  %4461 = vmatprep.subr.bf16.mxu0 %v5420_v51  ;;  %v813_v50 = vld [vmem:[#allocation7 + $0xf40] sm:$0xff] }
 0x2b4   :  { %4543 = vmatprep.subr.bf16.mxu1 %v5422_v52  ;;  %v825_v51 = vld [vmem:[#allocation7 + $0xfa0] sm:$0xff]  ;;  %v814_v52 = vld [vmem:[#allocation7 + $0xf48] sm:$0xff] }
 0x2b5   :  { %v5612_v58 = vcombine.high %v813_v50, %v825_v51  ;;  %v5611_v1 = vcombine.low %v813_v50, %v825_v51  ;;  %v5613_v2 = vcombine.low %v814_v52, %v826_v53  ;;  %v420_v50 = vld [vmem:[#allocation7 + $0x2f8] sm:$0xff] }
 0x2b6   :  { %4462 = vmatpush1.bf16.msra.mxu0 %v5419_v59  ;;  %v5614_v59 = vcombine.high %v814_v52, %v826_v53 }
 0x2b7   :  { %4544 = vmatpush1.bf16.msra.mxu1 %v5421_v40  ;;  %4463 = vmatprep.subr.bf16.mxu0 %v5444_v60  ;;  %v837_v40 = vld [vmem:[#allocation7 + $0x1000] sm:$0xff] }
 0x2b8   :  { %4545 = vmatprep.subr.bf16.mxu1 %v5446_v61  ;;  %v849_v60 = vld [vmem:[#allocation7 + $0x1060] sm:$0xff]  ;;  %v838_v61 = vld [vmem:[#allocation7 + $0x1008] sm:$0xff] }
 0x2b9   :  { %v5636_v3 = vcombine.high %v837_v40, %v849_v60  ;;  %v5635_v9 = vcombine.low %v837_v40, %v849_v60  ;;  %v5637_v10 = vcombine.low %v838_v61, %v850_v63  ;;  %v444_v40 = vld [vmem:[#allocation7 + $0x3b8] sm:$0xff] }
 0x2ba   :  { %4464 = vmatpush1.bf16.msra.mxu0 %v5443_v5  ;;  %v5638_v5 = vcombine.high %v838_v61, %v850_v63 }
 0x2bb   :  { %4546 = vmatpush1.bf16.msra.mxu1 %v5445_v4  ;;  %4465 = vmatprep.subr.bf16.mxu0 %v5468_v6  ;;  %v861_v4 = vld [vmem:[#allocation7 + $0x10c0] sm:$0xff] }
 0x2bc   :  { %4547 = vmatprep.subr.bf16.mxu1 %v5470_v7  ;;  %v873_v6 = vld [vmem:[#allocation7 + $0x1120] sm:$0xff]  ;;  %v862_v7 = vld [vmem:[#allocation7 + $0x10c8] sm:$0xff] }
 0x2bd   :  { %v5660_v11 = vcombine.high %v861_v4, %v873_v6  ;;  %v5659_v17 = vcombine.low %v861_v4, %v873_v6  ;;  %v5661_v18 = vcombine.low %v862_v7, %v874_v8 }
 0x2be   :  { %4466 = vmatpush1.bf16.msra.mxu0 %v5467_v12  ;;  %v5662_v12 = vcombine.high %v862_v7, %v874_v8 }
 0x2bf   :  { %4548 = vmatpush1.bf16.msra.mxu1 %v5469_v13  ;;  %4467 = vmatprep.subr.bf16.mxu0 %v5492_v14  ;;  %v885_v13 = vld [vmem:[#allocation7 + $0x1180] sm:$0xff] }
 0x2c0   :  { %4549 = vmatprep.subr.bf16.mxu1 %v5494_v15  ;;  %v897_v14 = vld [vmem:[#allocation7 + $0x11e0] sm:$0xff]  ;;  %v886_v15 = vld [vmem:[#allocation7 + $0x1188] sm:$0xff] }
 0x2c1   :  { %v5684_v19 = vcombine.high %v885_v13, %v897_v14  ;;  %v5683_v26 = vcombine.low %v885_v13, %v897_v14  ;;  %v5685_v27 = vcombine.low %v886_v15, %v898_v16 }
 0x2c2   :  { %4468 = vmatpush1.bf16.msra.mxu0 %v5491_v21  ;;  %v5686_v21 = vcombine.high %v886_v15, %v898_v16 }
 0x2c3   :  { %4550 = vmatpush1.bf16.msra.mxu1 %v5493_v22  ;;  %4478 = vmatprep.subr.bf16.mxu0 %v5516_v23  ;;  %v335_v22 = vld [vmem:[#allocation7 + $0x50] sm:$0xff] }
 0x2c4   :  { %4560 = vmatprep.subr.bf16.mxu1 %v5518_v24  ;;  %v347_v23 = vld [vmem:[#allocation7 + $0xb0] sm:$0xff]  ;;  %v336_v24 = vld [vmem:[#allocation7 + $0x58] sm:$0xff] }
 0x2c5   :  { %4470 = vmatmul.mubr.bf16.vlgmr.msra.gmra.mrb[20].mxu0 %v6019_v55  ;;  %v5136_v28 = vcombine.high %v335_v22, %v347_v23  ;;  %v5137_v35 = vcombine.low %v336_v24, %v348_v25 }
 0x2c6   :  { %4552 = vmatmul.mubr.bf16.vlgmr.msra.gmra.mrb[20].mxu1 %v6019_v55  ;;  %4479 = vmatpush1.bf16.msra.mxu0 %v5515_v29  ;;  %v5138_v29 = vcombine.high %v336_v24, %v348_v25  ;;  %v516_v24 = vld [vmem:[#allocation7 + $0x5f8] sm:$0xff] }
 0x2c7   :  { %4561 = vmatpush1.bf16.msra.mxu1 %v5517_v30  ;;  %4480 = vmatprep.subr.bf16.mxu0 %v5540_v31  ;;  %v359_v30 = vld [vmem:[#allocation7 + $0x110] sm:$0xff] }
 0x2c8   :  { %4562 = vmatprep.subr.bf16.mxu1 %v5542_v32  ;;  %4510 = vmatprep.mubr.bf16.mxu0 %v5911_v0  ;;  %v371_v31 = vld [vmem:[#allocation7 + $0x170] sm:$0xff]  ;;  %v5135_v32 = vcombine.low %v335_v22, %v347_v23  ;;  %v504_v23 = vld [vmem:[#allocation7 + $0x598] sm:$0xff] }
 0x2c9   :  { %4592 = vmatprep.mubr.bf16.mxu1 %v5911_v0  ;;  %v5160_v38 = vcombine.high %v359_v30, %v371_v31  ;;  %v5159_v43 = vcombine.low %v359_v30, %v371_v31 }
 0x2ca   :  { %4481 = vmatpush1.bf16.msra.mxu0 %v5539_v36  ;;  %v383_v36 = vld [vmem:[#allocation7 + $0x1d0] sm:$0xff] }
 0x2cb   :  { %4563 = vmatpush1.bf16.msra.mxu1 %v5541_v37  ;;  %4482 = vmatprep.subr.bf16.mxu0 %v5564_v39  ;;  %v395_v37 = vld [vmem:[#allocation7 + $0x230] sm:$0xff]  ;;  %v5162_v39 = vcombine.high %v360_v33, %v372_v34 }
 0x2cc   :  { %4564 = vmatprep.subr.bf16.mxu1 %v5566_v41  ;;  %v384_v41 = vld [vmem:[#allocation7 + $0x1d8] sm:$0xff]  ;;  %v5184_v45 = vcombine.high %v383_v36, %v395_v37  ;;  %v5183_v51 = vcombine.low %v383_v36, %v395_v37  ;;  %v527_v36 = vld [vmem:[#allocation7 + $0x650] sm:$0xff] }
 0x2cd   :  { %v5185_v52 = vcombine.low %v384_v41, %v396_v42  ;;  %v539_v37 = vld [vmem:[#allocation7 + $0x6b0] sm:$0xff] }
 0x2ce   :  { %4483 = vmatpush1.bf16.msra.mxu0 %v5563_v46  ;;  %v5186_v46 = vcombine.high %v384_v41, %v396_v42  ;;  %v528_v41 = vld [vmem:[#allocation7 + $0x658] sm:$0xff] }
 0x2cf   :  { %4565 = vmatpush1.bf16.msra.mxu1 %v5565_v47  ;;  %4484 = vmatprep.subr.bf16.mxu0 %v5588_v48  ;;  %v407_v47 = vld [vmem:[#allocation7 + $0x290] sm:$0xff]  ;;  %v540_v42 = vld [vmem:[#allocation7 + $0x6b8] sm:$0xff] }
 0x2d0   :  { %4566 = vmatprep.subr.bf16.mxu1 %v5590_v49  ;;  %v419_v48 = vld [vmem:[#allocation7 + $0x2f0] sm:$0xff]  ;;  %v408_v49 = vld [vmem:[#allocation7 + $0x298] sm:$0xff] }
 0x2d1   :  { %v5208_v53 = vcombine.high %v407_v47, %v419_v48  ;;  %v5209_v60 = vcombine.low %v408_v49, %v420_v50 }
 0x2d2   :  { %4485 = vmatpush1.bf16.msra.mxu0 %v5587_v56  ;;  %v5210_v56 = vcombine.high %v408_v49, %v420_v50  ;;  %v563_v49 = vld [vmem:[#allocation7 + $0x770] sm:$0xff]  ;;  %v552_v50 = vld [vmem:[#allocation7 + $0x718] sm:$0xff] }
 0x2d3   :  { %4567 = vmatpush1.bf16.msra.mxu1 %v5589_v57  ;;  %4486 = vmatprep.subr.bf16.mxu0 %v5612_v58  ;;  %v431_v57 = vld [vmem:[#allocation7 + $0x350] sm:$0xff] }
 0x2d4   :  { %4568 = vmatprep.subr.bf16.mxu1 %v5614_v59  ;;  %v443_v58 = vld [vmem:[#allocation7 + $0x3b0] sm:$0xff]  ;;  %v432_v59 = vld [vmem:[#allocation7 + $0x358] sm:$0xff] }
 0x2d5   :  { %v5232_v61 = vcombine.high %v431_v57, %v443_v58  ;;  %v5234_v63 = vcombine.high %v432_v59, %v444_v40  ;;  %v5231_v4 = vcombine.low %v431_v57, %v443_v58  ;;  %v5233_v6 = vcombine.low %v432_v59, %v444_v40  ;;  %v575_v58 = vld [vmem:[#allocation7 + $0x7d0] sm:$0xff]  ;;  %v576_v40 = vld [vmem:[#allocation7 + $0x7d8] sm:$0xff] }
 0x2d6   :  { %4487 = vmatpush1.bf16.msra.mxu0 %v5611_v1  ;;  %v455_v1 = vld [vmem:[#allocation7 + $0x410] sm:$0xff] }
 0x2d7   :  { %4569 = vmatpush1.bf16.msra.mxu1 %v5613_v2  ;;  %4488 = vmatprep.subr.bf16.mxu0 %v5636_v3  ;;  %v467_v2 = vld [vmem:[#allocation7 + $0x470] sm:$0xff]  ;;  %v456_v3 = vld [vmem:[#allocation7 + $0x418] sm:$0xff] }
 0x2d8   :  { %4570 = vmatprep.subr.bf16.mxu1 %v5638_v5  ;;  %v468_v5 = vld [vmem:[#allocation7 + $0x478] sm:$0xff]  ;;  %v5256_v7 = vcombine.high %v455_v1, %v467_v2  ;;  %v5255_v13 = vcombine.low %v455_v1, %v467_v2  ;;  %v587_v59 = vld [vmem:[#allocation7 + $0x830] sm:$0xff] }
 0x2d9   :  { %v5258_v8 = vcombine.high %v456_v3, %v468_v5  ;;  %v5257_v14 = vcombine.low %v456_v3, %v468_v5  ;;  %v599_v2 = vld [vmem:[#allocation7 + $0x890] sm:$0xff]  ;;  %v600_v5 = vld [vmem:[#allocation7 + $0x898] sm:$0xff] }
 0x2da   :  { %4489 = vmatpush1.bf16.msra.mxu0 %v5635_v9  ;;  %v479_v9 = vld [vmem:[#allocation7 + $0x4d0] sm:$0xff] }
 0x2db   :  { %4571 = vmatpush1.bf16.msra.mxu1 %v5637_v10  ;;  %4490 = vmatprep.subr.bf16.mxu0 %v5660_v11  ;;  %v491_v10 = vld [vmem:[#allocation7 + $0x530] sm:$0xff]  ;;  %v480_v11 = vld [vmem:[#allocation7 + $0x4d8] sm:$0xff] }
 0x2dc   :  { %4572 = vmatprep.subr.bf16.mxu1 %v5662_v12  ;;  %v492_v12 = vld [vmem:[#allocation7 + $0x538] sm:$0xff]  ;;  %v5280_v15 = vcombine.high %v479_v9, %v491_v10  ;;  %v611_v3 = vld [vmem:[#allocation7 + $0x8f0] sm:$0xff] }
 0x2de   :  { %4491 = vmatpush1.bf16.msra.mxu0 %v5659_v17  ;;  %v5282_v17 = vcombine.high %v480_v11, %v492_v12 }
 0x2df   :  { %4573 = vmatpush1.bf16.msra.mxu1 %v5661_v18  ;;  %4492 = vmatprep.subr.bf16.mxu0 %v5684_v19  ;;  %v503_v18 = vld [vmem:[#allocation7 + $0x590] sm:$0xff] }
 0x2e0   :  { %4574 = vmatprep.subr.bf16.mxu1 %v5686_v21  ;;  %v515_v19 = vld [vmem:[#allocation7 + $0x5f0] sm:$0xff] }
 0x2e1   :  { %v5304_v33 = vcombine.high %v503_v18, %v515_v19 }
 0x2e2   :  { %4493 = vmatpush1.bf16.msra.mxu0 %v5683_v26 }
 0x2e3   :  { %4575 = vmatpush1.bf16.msra.mxu1 %v5685_v27  ;;  %4601 = vmatprep.subr.bf16.mxu0 %v5136_v28  ;;  %v5279_v28 = vcombine.low %v479_v9, %v491_v10  ;;  %v623_v10 = vld [vmem:[#allocation7 + $0x950] sm:$0xff] }
 0x2e4   :  { %4683 = vmatprep.subr.bf16.mxu1 %v5138_v29 }
 0x2e5   :  { %4511 = vmatmul.mubr.bf16.vlgmr.msra.gmra.mrb[20].mxu0 %v6032_v62 }
 0x2e6   :  { %4593 = vmatmul.mubr.bf16.vlgmr.msra.gmra.mrb[20].mxu1 %v6032_v62  ;;  %4602 = vmatpush1.bf16.msra.mxu0 %v5135_v32  ;;  %v5281_v32 = vcombine.low %v480_v11, %v492_v12  ;;  %v635_v11 = vld [vmem:[#allocation7 + $0x9b0] sm:$0xff]  ;;  %v624_v12 = vld [vmem:[#allocation7 + $0x958] sm:$0xff] }
 0x2e7   :  { %4633 = vmatprep.mubr.bf16.mxu0 %v6017_v54  ;;  %4684 = vmatpush1.bf16.msra.mxu1 %v5137_v35 }
 0x2e8   :  { %4715 = vmatprep.mubr.bf16.mxu1 %v6017_v54  ;;  %4603 = vmatprep.subr.bf16.mxu0 %v5160_v38  ;;  %v5207_v54 = vcombine.low %v407_v47, %v419_v48  ;;  %v5306_v38 = vcombine.high %v504_v23, %v516_v24  ;;  %v5330_v47 = vcombine.high %v528_v41, %v540_v42  ;;  %v551_v48 = vld [vmem:[#allocation7 + $0x710] sm:$0xff] }
 0x2e9   :  { %4685 = vmatprep.subr.bf16.mxu1 %v5162_v39 }
 0x2ea   :  { %4604 = vmatpush1.bf16.msra.mxu0 %v5159_v43  ;;  %v5303_v43 = vcombine.low %v503_v18, %v515_v19  ;;  %v647_v18 = vld [vmem:[#allocation7 + $0xa10] sm:$0xff] }
 0x2eb   :  { %4686 = vmatpush1.bf16.msra.mxu1 %v5161_v44  ;;  %4605 = vmatprep.subr.bf16.mxu0 %v5184_v45  ;;  %v5305_v45 = vcombine.low %v504_v23, %v516_v24  ;;  %v659_v19 = vld [vmem:[#allocation7 + $0xa70] sm:$0xff]  ;;  %v5423_v23 = vcombine.low %v623_v10, %v635_v11 }
 0x2ec   :  { %4687 = vmatprep.subr.bf16.mxu1 %v5186_v46  ;;  %v5328_v46 = vcombine.high %v527_v36, %v539_v37 }
 0x2ee   :  { %4606 = vmatpush1.bf16.msra.mxu0 %v5183_v51  ;;  %v564_v51 = vld [vmem:[#allocation7 + $0x778] sm:$0xff] }
 0x2ef   :  { %4688 = vmatpush1.bf16.msra.mxu1 %v5185_v52  ;;  %4607 = vmatprep.subr.bf16.mxu0 %v5208_v53  ;;  %v5327_v52 = vcombine.low %v527_v36, %v539_v37  ;;  %v5329_v53 = vcombine.low %v528_v41, %v540_v42  ;;  %v5354_v57 = vcombine.high %v552_v50, %v564_v51  ;;  %v696_v36 = vld [vmem:[#allocation7 + $0xb98] sm:$0xff] }
 0x2f0   :  { %4689 = vmatprep.subr.bf16.mxu1 %v5210_v56  ;;  %v5352_v56 = vcombine.high %v551_v48, %v563_v49  ;;  %v708_v37 = vld [vmem:[#allocation7 + $0xbf8] sm:$0xff] }
 0x2f2   :  { %4608 = vmatpush1.bf16.msra.mxu0 %v5207_v54  ;;  %v588_v54 = vld [vmem:[#allocation7 + $0x838] sm:$0xff] }
 0x2f3   :  { %4690 = vmatpush1.bf16.msra.mxu1 %v5209_v60  ;;  %4609 = vmatprep.subr.bf16.mxu0 %v5232_v61  ;;  %v5351_v60 = vcombine.low %v551_v48, %v563_v49  ;;  %v5353_v61 = vcombine.low %v552_v50, %v564_v51  ;;  %v5378_v1 = vcombine.high %v576_v40, %v588_v54 }
 0x2f4   :  { %4691 = vmatprep.subr.bf16.mxu1 %v5234_v63  ;;  %v5376_v63 = vcombine.high %v575_v58, %v587_v59  ;;  %v5497_v49 = vcombine.low %v696_v36, %v708_v37 }
 0x2f6   :  { %4610 = vmatpush1.bf16.msra.mxu0 %v5231_v4  ;;  %v612_v4 = vld [vmem:[#allocation7 + $0x8f8] sm:$0xff] }
 0x2f7   :  { %4692 = vmatpush1.bf16.msra.mxu1 %v5233_v6  ;;  %4611 = vmatprep.subr.bf16.mxu0 %v5256_v7  ;;  %v5375_v6 = vcombine.low %v575_v58, %v587_v59  ;;  %v5377_v7 = vcombine.low %v576_v40, %v588_v54  ;;  %v5402_v9 = vcombine.high %v600_v5, %v612_v4 }
 0x2f8   :  { %v4184_v16 = vpop.f32.mrb[12].mxu0  ;;  %4693 = vmatprep.subr.bf16.mxu1 %v5258_v8  ;;  %v5400_v8 = vcombine.high %v599_v2, %v611_v3 }
 0x2f9   :  { %v4266_v21 = vpop.f32.mrb[12].mxu1  ;;  %v4186_v22 = vpop.f32.mrb[13].mxu0 }
 0x2fa   :  { %v4861_v25 = vcombine.low %v4184_v16, %v4186_v22  ;;  %v4268_v26 = vpop.f32.mrb[13].mxu1  ;;  %v4188_v27 = vpop.f32.mrb[14].mxu0  ;;  %4612 = vmatpush1.bf16.msra.mxu0 %v5255_v13  ;;  %v636_v13 = vld [vmem:[#allocation7 + $0x9b8] sm:$0xff]  ;;  %v5424_v16 = vcombine.high %v623_v10, %v635_v11 }
 0x2fb   :  { %v4863_v29 = vcombine.low %v4266_v21, %v4268_v26  ;;  %v4270_v30 = vpop.f32.mrb[14].mxu1  ;;  %4694 = vmatpush1.bf16.msra.mxu1 %v5257_v14  ;;  %v4189_v31 = vpop.f32.mrb[15].mxu0  ;;  %4613 = vmatprep.subr.bf16.mxu0 %v5280_v15  ;;  %v5399_v14 = vcombine.low %v599_v2, %v611_v3  ;;  %v5401_v15 = vcombine.low %v600_v5, %v612_v4  ;;  %v648_v21 = vld [vmem:[#allocation7 + $0xa18] sm:$0xff]  ;;  %v671_v27 = vld [vmem:[#allocation7 + $0xad0] sm:$0xff] }
 0x2fc   :  { %v4871_v34 = vrot.slane %v4861_v25, %v6055_v20  ;;  %v4271_v35 = vpop.f32.mrb[15].mxu1  ;;  %4695 = vmatprep.subr.bf16.mxu1 %v5282_v17  ;;  %v5426_v17 = vcombine.high %v624_v12, %v636_v13  ;;  %v660_v22 = vld [vmem:[#allocation7 + $0xa78] sm:$0xff]  ;;  %v5425_v24 = vcombine.low %v624_v12, %v636_v13  ;;  %v5448_v25 = vcombine.high %v647_v18, %v659_v19  ;;  %v815_v13 = vld [vmem:[#allocation7 + $0xf50] sm:$0xff] }
 0x2fd   :  { %v4885_v39 = vrot.slane %v4863_v29, %v6055_v20  ;;  %v5450_v26 = vcombine.high %v648_v21, %v660_v22  ;;  %v672_v29 = vld [vmem:[#allocation7 + $0xad8] sm:$0xff]  ;;  %v5447_v31 = vcombine.low %v647_v18, %v659_v19  ;;  %v695_v35 = vld [vmem:[#allocation7 + $0xb90] sm:$0xff] }
 0x2fe   :  { %4614 = vmatpush1.bf16.msra.mxu0 %v5279_v28  ;;  %v683_v28 = vld [vmem:[#allocation7 + $0xb30] sm:$0xff]  ;;  %v684_v30 = vld [vmem:[#allocation7 + $0xb38] sm:$0xff] }
 0x2ff   :  { %v4893_v44 = vcombine.low %v4871_v34, %v4885_v39  ;;  %4696 = vmatpush1.bf16.msra.mxu1 %v5281_v32  ;;  %4615 = vmatprep.subr.bf16.mxu0 %v5304_v33  ;;  %v5449_v32 = vcombine.low %v648_v21, %v660_v22  ;;  %v5472_v33 = vcombine.high %v671_v27, %v683_v28  ;;  %v839_v21 = vld [vmem:[#allocation7 + $0x1010] sm:$0xff] }
 0x300   :  { %4697 = vmatprep.subr.bf16.mxu1 %v5306_v38  ;;  %v5474_v34 = vcombine.high %v672_v29, %v684_v30  ;;  %v707_v38 = vld [vmem:[#allocation7 + $0xbf0] sm:$0xff]  ;;  %v5471_v39 = vcombine.low %v671_v27, %v683_v28  ;;  %v5473_v41 = vcombine.low %v672_v29, %v684_v30 }
 0x301   :  { %5072 = vst [vmem:[%s6113_s4 + $0x10] sm:$0xff] %v4893_v44  ;;  %v5496_v42 = vcombine.high %v695_v35, %v707_v38  ;;  %v719_v44 = vld [vmem:[#allocation7 + $0xc50] sm:$0xff]  ;;  %v5495_v48 = vcombine.low %v695_v35, %v707_v38 }
 0x302   :  { %4616 = vmatpush1.bf16.msra.mxu0 %v5303_v43  ;;  %v5498_v43 = vcombine.high %v696_v36, %v708_v37  ;;  %v851_v22 = vld [vmem:[#allocation7 + $0x1070] sm:$0xff] }
 0x303   :  { %4698 = vmatpush1.bf16.msra.mxu1 %v5305_v45  ;;  %4617 = vmatprep.subr.bf16.mxu0 %v5328_v46  ;;  %v731_v45 = vld [vmem:[#allocation7 + $0xcb0] sm:$0xff]  ;;  %v720_v46 = vld [vmem:[#allocation7 + $0xc58] sm:$0xff]  ;;  %v5640_v27 = vcombine.high %v839_v21, %v851_v22 }
 0x304   :  { %4699 = vmatprep.subr.bf16.mxu1 %v5330_v47  ;;  %v732_v47 = vld [vmem:[#allocation7 + $0xcb8] sm:$0xff]  ;;  %v5520_v50 = vcombine.high %v719_v44, %v731_v45  ;;  %v5519_v58 = vcombine.low %v719_v44, %v731_v45  ;;  %v863_v29 = vld [vmem:[#allocation7 + $0x10d0] sm:$0xff] }
 0x305   :  { %v5522_v51 = vcombine.high %v720_v46, %v732_v47  ;;  %v5521_v59 = vcombine.low %v720_v46, %v732_v47  ;;  %v875_v30 = vld [vmem:[#allocation7 + $0x1130] sm:$0xff] }
 0x306   :  { %4618 = vmatpush1.bf16.msra.mxu0 %v5327_v52  ;;  %v743_v52 = vld [vmem:[#allocation7 + $0xd10] sm:$0xff]  ;;  %v5664_v35 = vcombine.high %v863_v29, %v875_v30 }
 0x307   :  { %4700 = vmatpush1.bf16.msra.mxu1 %v5329_v53  ;;  %4619 = vmatprep.subr.bf16.mxu0 %v5352_v56  ;;  %v755_v53 = vld [vmem:[#allocation7 + $0xd70] sm:$0xff]  ;;  %v744_v56 = vld [vmem:[#allocation7 + $0xd18] sm:$0xff] }
 0x308   :  { %4701 = vmatprep.subr.bf16.mxu1 %v5354_v57  ;;  %v756_v57 = vld [vmem:[#allocation7 + $0xd78] sm:$0xff]  ;;  %v5544_v40 = vcombine.high %v743_v52, %v755_v53  ;;  %v5543_v2 = vcombine.low %v743_v52, %v755_v53  ;;  %v887_v36 = vld [vmem:[#allocation7 + $0x1190] sm:$0xff] }
 0x309   :  { %v5546_v54 = vcombine.high %v744_v56, %v756_v57  ;;  %v5545_v3 = vcombine.low %v744_v56, %v756_v57  ;;  %v899_v37 = vld [vmem:[#allocation7 + $0x11f0] sm:$0xff] }
 0x30a   :  { %4620 = vmatpush1.bf16.msra.mxu0 %v5351_v60  ;;  %v767_v60 = vld [vmem:[#allocation7 + $0xdd0] sm:$0xff]  ;;  %v5688_v44 = vcombine.high %v887_v36, %v899_v37  ;;  %v5687_v46 = vcombine.low %v887_v36, %v899_v37 }
 0x30b   :  { %4702 = vmatpush1.bf16.msra.mxu1 %v5353_v61  ;;  %4621 = vmatprep.subr.bf16.mxu0 %v5376_v63  ;;  %v779_v61 = vld [vmem:[#allocation7 + $0xe30] sm:$0xff]  ;;  %v768_v63 = vld [vmem:[#allocation7 + $0xdd8] sm:$0xff] }
 0x30c   :  { %4703 = vmatprep.subr.bf16.mxu1 %v5378_v1  ;;  %v780_v1 = vld [vmem:[#allocation7 + $0xe38] sm:$0xff]  ;;  %v5568_v5 = vcombine.high %v767_v60, %v779_v61  ;;  %v5567_v10 = vcombine.low %v767_v60, %v779_v61 }
 0x30d   :  { %v5570_v4 = vcombine.high %v768_v63, %v780_v1 }
 0x30e   :  { %4622 = vmatpush1.bf16.msra.mxu0 %v5375_v6  ;;  %v791_v6 = vld [vmem:[#allocation7 + $0xe90] sm:$0xff] }
 0x30f   :  { %4704 = vmatpush1.bf16.msra.mxu1 %v5377_v7  ;;  %4623 = vmatprep.subr.bf16.mxu0 %v5400_v8  ;;  %v803_v7 = vld [vmem:[#allocation7 + $0xef0] sm:$0xff]  ;;  %v792_v8 = vld [vmem:[#allocation7 + $0xe98] sm:$0xff] }
 0x310   :  { %4705 = vmatprep.subr.bf16.mxu1 %v5402_v9  ;;  %v804_v9 = vld [vmem:[#allocation7 + $0xef8] sm:$0xff]  ;;  %v5592_v11 = vcombine.high %v791_v6, %v803_v7 }
 0x311   :  { %v5594_v12 = vcombine.high %v792_v8, %v804_v9  ;;  %v5593_v18 = vcombine.low %v792_v8, %v804_v9 }
 0x312   :  { %4624 = vmatpush1.bf16.msra.mxu0 %v5399_v14  ;;  %v827_v14 = vld [vmem:[#allocation7 + $0xfb0] sm:$0xff] }
 0x313   :  { %4706 = vmatpush1.bf16.msra.mxu1 %v5401_v15  ;;  %4625 = vmatprep.subr.bf16.mxu0 %v5424_v16  ;;  %v816_v15 = vld [vmem:[#allocation7 + $0xf58] sm:$0xff]  ;;  %v5616_v19 = vcombine.high %v815_v13, %v827_v14 }
 0x314   :  { %4707 = vmatprep.subr.bf16.mxu1 %v5426_v17  ;;  %v828_v16 = vld [vmem:[#allocation7 + $0xfb8] sm:$0xff]  ;;  %v5591_v17 = vcombine.low %v791_v6, %v803_v7 }
 0x316   :  { %4626 = vmatpush1.bf16.msra.mxu0 %v5423_v23  ;;  %v840_v23 = vld [vmem:[#allocation7 + $0x1018] sm:$0xff] }
 0x317   :  { %4708 = vmatpush1.bf16.msra.mxu1 %v5425_v24  ;;  %4627 = vmatprep.subr.bf16.mxu0 %v5448_v25  ;;  %v852_v24 = vld [vmem:[#allocation7 + $0x1078] sm:$0xff]  ;;  %v5615_v25 = vcombine.low %v815_v13, %v827_v14 }
 0x318   :  { %4709 = vmatprep.subr.bf16.mxu1 %v5450_v26  ;;  %v5617_v26 = vcombine.low %v816_v15, %v828_v16  ;;  %v5642_v28 = vcombine.high %v840_v23, %v852_v24 }
 0x31a   :  { %4628 = vmatpush1.bf16.msra.mxu0 %v5447_v31  ;;  %v864_v31 = vld [vmem:[#allocation7 + $0x10d8] sm:$0xff] }
 0x31b   :  { %4710 = vmatpush1.bf16.msra.mxu1 %v5449_v32  ;;  %4629 = vmatprep.subr.bf16.mxu0 %v5472_v33  ;;  %v876_v32 = vld [vmem:[#allocation7 + $0x1138] sm:$0xff]  ;;  %v5639_v33 = vcombine.low %v839_v21, %v851_v22 }
 0x31c   :  { %4711 = vmatprep.subr.bf16.mxu1 %v5474_v34  ;;  %v5641_v34 = vcombine.low %v840_v23, %v852_v24  ;;  %v5666_v38 = vcombine.high %v864_v31, %v876_v32 }
 0x31e   :  { %4630 = vmatpush1.bf16.msra.mxu0 %v5471_v39  ;;  %v888_v39 = vld [vmem:[#allocation7 + $0x1198] sm:$0xff] }
 0x31f   :  { %4712 = vmatpush1.bf16.msra.mxu1 %v5473_v41  ;;  %4631 = vmatprep.subr.bf16.mxu0 %v5496_v42  ;;  %v900_v41 = vld [vmem:[#allocation7 + $0x11f8] sm:$0xff]  ;;  %v5663_v42 = vcombine.low %v863_v29, %v875_v30 }
 0x320   :  { %4713 = vmatprep.subr.bf16.mxu1 %v5498_v43  ;;  %v5665_v43 = vcombine.low %v864_v31, %v876_v32  ;;  %v5690_v45 = vcombine.high %v888_v39, %v900_v41  ;;  %v5689_v47 = vcombine.low %v888_v39, %v900_v41 }
 0x322   :  { %4632 = vmatpush1.bf16.msra.mxu0 %v5495_v48 }
 0x323   :  { %4714 = vmatpush1.bf16.msra.mxu1 %v5497_v49  ;;  %4642 = vmatprep.subr.bf16.mxu0 %v5520_v50 }
 0x324   :  { %4724 = vmatprep.subr.bf16.mxu1 %v5522_v51 }
 0x325   :  { %4634 = vmatmul.mubr.bf16.vlgmr.msra.gmra.mrb[24].mxu0 %v6019_v55 }
 0x326   :  { %4716 = vmatmul.mubr.bf16.vlgmr.msra.gmra.mrb[24].mxu1 %v6019_v55  ;;  %4643 = vmatpush1.bf16.msra.mxu0 %v5519_v58  ;;  %v5569_v55 = vcombine.low %v768_v63, %v780_v1 }
 0x327   :  { %4725 = vmatpush1.bf16.msra.mxu1 %v5521_v59  ;;  %4644 = vmatprep.subr.bf16.mxu0 %v5544_v40 }
 0x328   :  { %4726 = vmatprep.subr.bf16.mxu1 %v5546_v54  ;;  %4674 = vmatprep.mubr.bf16.mxu0 %v5911_v0 }
 0x329   :  { %4756 = vmatprep.mubr.bf16.mxu1 %v5911_v0  ;;  %v5618_v0 = vcombine.high %v816_v15, %v828_v16 }
 0x32a   :  { %4645 = vmatpush1.bf16.msra.mxu0 %v5543_v2 }
 0x32b   :  { %4727 = vmatpush1.bf16.msra.mxu1 %v5545_v3  ;;  %4646 = vmatprep.subr.bf16.mxu0 %v5568_v5 }
 0x32c   :  { %4728 = vmatprep.subr.bf16.mxu1 %v5570_v4 }
 0x32e   :  { %4647 = vmatpush1.bf16.msra.mxu0 %v5567_v10 }
 0x32f   :  { %4729 = vmatpush1.bf16.msra.mxu1 %v5569_v55  ;;  %4648 = vmatprep.subr.bf16.mxu0 %v5592_v11 }
 0x330   :  { %4730 = vmatprep.subr.bf16.mxu1 %v5594_v12 }
 0x332   :  { %4649 = vmatpush1.bf16.msra.mxu0 %v5591_v17 }
 0x333   :  { %4731 = vmatpush1.bf16.msra.mxu1 %v5593_v18  ;;  %4650 = vmatprep.subr.bf16.mxu0 %v5616_v19 }
 0x334   :  { %4732 = vmatprep.subr.bf16.mxu1 %v5618_v0 }
 0x336   :  { %4651 = vmatpush1.bf16.msra.mxu0 %v5615_v25 }
 0x337   :  { %4733 = vmatpush1.bf16.msra.mxu1 %v5617_v26  ;;  %4652 = vmatprep.subr.bf16.mxu0 %v5640_v27 }
 0x338   :  { %4734 = vmatprep.subr.bf16.mxu1 %v5642_v28 }
 0x33a   :  { %4653 = vmatpush1.bf16.msra.mxu0 %v5639_v33 }
 0x33b   :  { %4735 = vmatpush1.bf16.msra.mxu1 %v5641_v34  ;;  %4654 = vmatprep.subr.bf16.mxu0 %v5664_v35 }
 0x33c   :  { %4736 = vmatprep.subr.bf16.mxu1 %v5666_v38 }
 0x33e   :  { %4655 = vmatpush1.bf16.msra.mxu0 %v5663_v42 }
 0x33f   :  { %4737 = vmatpush1.bf16.msra.mxu1 %v5665_v43  ;;  %4656 = vmatprep.subr.bf16.mxu0 %v5688_v44 }
 0x340   :  { %4738 = vmatprep.subr.bf16.mxu1 %v5690_v45 }
 0x342   :  { %4657 = vmatpush1.bf16.msra.mxu0 %v5687_v46 }
 0x343   :  { %4739 = vmatpush1.bf16.msra.mxu1 %v5689_v47 }
 0x345   :  { %4675 = vmatmul.mubr.bf16.vlgmr.msra.gmra.mrb[24].mxu0 %v6032_v62 }
 0x346   :  { %4757 = vmatmul.mubr.bf16.vlgmr.msra.gmra.mrb[24].mxu1 %v6032_v62 }
 0x358   :  { %v4348_v48 = vpop.f32.mrb[16].mxu0 }
 0x359   :  { %v4430_v49 = vpop.f32.mrb[16].mxu1  ;;  %v4350_v50 = vpop.f32.mrb[17].mxu0 }
 0x35a   :  { %v4897_v51 = vcombine.low %v4348_v48, %v4350_v50  ;;  %v4432_v52 = vpop.f32.mrb[17].mxu1  ;;  %v4352_v53 = vpop.f32.mrb[18].mxu0 }
 0x35b   :  { %v4899_v56 = vcombine.low %v4430_v49, %v4432_v52  ;;  %v4434_v57 = vpop.f32.mrb[18].mxu1  ;;  %v4353_v58 = vpop.f32.mrb[19].mxu0 }
 0x35c   :  { %v4907_v59 = vrot.slane %v4897_v51, %v6055_v20  ;;  %v4435_v40 = vpop.f32.mrb[19].mxu1 }
 0x35d   :  { %v4921_v54 = vrot.slane %v4899_v56, %v6055_v20 }
 0x35f   :  { %v4929_v60 = vcombine.low %v4907_v59, %v4921_v54 }
 0x361   :  { %5074 = vst [vmem:[%s6113_s4 + $0x18] sm:$0xff] %v4929_v60 }
 0x3b8   :  { %v4512_v62 = vpop.f32.mrb[20].mxu0 }
 0x3b9   :  { %v4594_v61 = vpop.f32.mrb[20].mxu1  ;;  %v4514_v63 = vpop.f32.mrb[21].mxu0 }
 0x3ba   :  { %v4933_v1 = vcombine.low %v4512_v62, %v4514_v63  ;;  %v4596_v2 = vpop.f32.mrb[21].mxu1  ;;  %v4516_v3 = vpop.f32.mrb[22].mxu0 }
 0x3bb   :  { %v4935_v5 = vcombine.low %v4594_v61, %v4596_v2  ;;  %v4598_v4 = vpop.f32.mrb[22].mxu1  ;;  %v4517_v6 = vpop.f32.mrb[23].mxu0 }
 0x3bc   :  { %v4943_v7 = vrot.slane %v4933_v1, %v6055_v20  ;;  %v4599_v8 = vpop.f32.mrb[23].mxu1 }
 0x3bd   :  { %v4957_v9 = vrot.slane %v4935_v5, %v6055_v20 }
 0x3bf   :  { %v4965_v10 = vcombine.low %v4943_v7, %v4957_v9 }
 0x3c1   :  { %5076 = vst [vmem:[%s6113_s4 + $0x20] sm:$0xff] %v4965_v10 }
 0x418   :  { %v4676_v55 = vpop.f32.mrb[24].mxu0 }
 0x419   :  { %v4758_v11 = vpop.f32.mrb[24].mxu1  ;;  %v4678_v12 = vpop.f32.mrb[25].mxu0 }
 0x41a   :  { %v4969_v13 = vcombine.low %v4676_v55, %v4678_v12  ;;  %v4760_v14 = vpop.f32.mrb[25].mxu1  ;;  %v4680_v15 = vpop.f32.mrb[26].mxu0 }
 0x41b   :  { %v4971_v16 = vcombine.low %v4758_v11, %v4760_v14  ;;  %v4762_v17 = vpop.f32.mrb[26].mxu1  ;;  %v4681_v18 = vpop.f32.mrb[27].mxu0 }
 0x41c   :  { %v4979_v19 = vrot.slane %v4969_v13, %v6055_v20  ;;  %v4763_v0 = vpop.f32.mrb[27].mxu1 }
 0x41d   :  { %v4993_v21 = vrot.slane %v4971_v16, %v6055_v20 }
 0x41f   :  { %v5001_v22 = vcombine.low %v4979_v19, %v4993_v21 }
 0x421   :  { %5078 = vst [vmem:[%s6113_s4 + $0x28] sm:$0xff] %v5001_v22 }
 0x422   :  { %5084 = vsyncpa [#allocation3], 1 }
 0x423   :  { %5085 = vsyncpa [#allocation5], 1 }
 0x424   :  { %5086 = vsyncpa [#allocation8], 1 }

// kernel: generator_forward.8
= control target key start
LH: loop header
LB: loop body
LE: loop exit
PB: predicated region body
PF: predicated region fallthrough
CT: control target
= control target key end

     0   :  { %vm82_vm0 = vcmask 392192   ;;  %s2470_s1 = inlined_call_operand.vmem [shape: bf16[48,48], index: 1, kind: input, shape index: {}]   ;;  %s2471_s0 = inlined_call_operand.vmem [shape: f32[512,48], index: 0, kind: input, shape index: {}]   ;;  %s2472_s2 = inlined_call_operand.vmem [shape: f32[1,48], index: 2, kind: input, shape index: {}]   ;;  %s2473_s3 = inlined_call_operand.vmem [shape: f32[1,48], index: 3, kind: input, shape index: {}]   ;;  %s2474_s4 = inlined_call_operand.vmem [shape: f32[512,48], index: 4, kind: output, shape index: {}]  }
   0x1   :  { %v1283_v0 = vld [vmem:[%s2470_s1] sm:$0xff]   ;;  %v1284_v1 = vld [vmem:[%s2470_s1 + $0x8] sm:$0xff]   ;;  %v1338_v4 = vld [vmem:[%s2471_s0 + $0x10] sm:$0xff] }
   0x2   :  { %1207 = vmatprep.subr.bf16.mxu0 %v1283_v0  ;;  %1277 = vmatprep.subr.bf16.mxu1 %v1283_v0  ;;  %v1328_v2 = vld [vmem:[%s2471_s0] sm:$0xff]  ;;  %v1333_v3 = vld [vmem:[%s2471_s0 + $0x8] sm:$0xff]  ;;  %v1285_v5 = vld [vmem:[%s2470_s1 + $0x10] sm:$0xff]   ;;  %v86_v9 = vsel %vm82_vm0, %v1338_v4, 0.0  ;;  %v219_v62 = vmul.f32 %v1338_v4, %v1338_v4 }
   0x3   :  { %1208 = vmatpush3.bf16.msra.mxu0 %v1283_v0  ;;  %1280 = vmatpush3.bf16.msra.mxu1 %v1283_v0  ;;  %v1346_v6 = vld [vmem:[%s2471_s0 + $0x18] sm:$0xff]  ;;  %v83_v7 = vsel %vm82_vm0, %v1328_v2, 0.0  ;;  %v84_v8 = vsel %vm82_vm0, %v1333_v3, 0.0  ;;  %v1357_v10 = vld [vmem:[%s2471_s0 + $0x20] sm:$0xff]  ;;  %v1364_v13 = vld [vmem:[%s2471_s0 + $0x28] sm:$0xff]  ;;  %v217_v58 = vmul.f32 %v1328_v2, %v1328_v2  ;;  %v218_v59 = vmul.f32 %v1333_v3, %v1333_v3 }
   0x4   :  { %1209 = vmatprep.subr.bf16.mxu0 %v1284_v1  ;;  %1278 = vmatprep.subr.bf16.mxu1 %v1284_v1  ;;  %v85_v11 = vadd.f32 %v84_v8, %v83_v7  ;;  %v88_v12 = vsel %vm82_vm0, %v1346_v6, 0.0  ;;  %v90_v15 = vsel %vm82_vm0, %v1357_v10, 0.0  ;;  %v1371_v16 = vld [vmem:[%s2471_s0 + $0x30] sm:$0xff]  ;;  %v92_v18 = vsel %vm82_vm0, %v1364_v13, 0.0  ;;  %v1378_v19 = vld [vmem:[%s2471_s0 + $0x38] sm:$0xff]  ;;  %v1385_v22 = vld [vmem:[%s2471_s0 + $0x40] sm:$0xff] }
   0x5   :  { %v94_v21 = vsel %vm82_vm0, %v1371_v16, 0.0  ;;  %v96_v24 = vsel %vm82_vm0, %v1378_v19, 0.0  ;;  %v1392_v25 = vld [vmem:[%s2471_s0 + $0x48] sm:$0xff]  ;;  %v98_v27 = vsel %vm82_vm0, %v1385_v22, 0.0  ;;  %v1399_v28 = vld [vmem:[%s2471_s0 + $0x50] sm:$0xff]  ;;  %v1406_v31 = vld [vmem:[%s2471_s0 + $0x58] sm:$0xff]  ;;  %v220_v0 = vmul.f32 %v1346_v6, %v1346_v6 }
   0x6   :  { %v87_v14 = vadd.f32 %v86_v9, %v85_v11  ;;  %v100_v30 = vsel %vm82_vm0, %v1392_v25, 0.0  ;;  %v102_v33 = vsel %vm82_vm0, %v1399_v28, 0.0  ;;  %v1413_v34 = vld [vmem:[%s2471_s0 + $0x60] sm:$0xff]  ;;  %v104_v36 = vsel %vm82_vm0, %v1406_v31, 0.0  ;;  %v1420_v37 = vld [vmem:[%s2471_s0 + $0x68] sm:$0xff]  ;;  %v1427_v40 = vld [vmem:[%s2471_s0 + $0x70] sm:$0xff] }
   0x7   :  { %1210 = vmatpush3.bf16.msra.mxu0 %v1284_v1  ;;  %1281 = vmatpush3.bf16.msra.mxu1 %v1284_v1  ;;  %v106_v39 = vsel %vm82_vm0, %v1413_v34, 0.0  ;;  %v108_v42 = vsel %vm82_vm0, %v1420_v37, 0.0  ;;  %v1434_v43 = vld [vmem:[%s2471_s0 + $0x78] sm:$0xff]  ;;  %v110_v45 = vsel %vm82_vm0, %v1427_v40, 0.0  ;;  %v1441_v46 = vld [vmem:[%s2471_s0 + $0x80] sm:$0xff]  ;;  %v1448_v49 = vld [vmem:[%s2471_s0 + $0x88] sm:$0xff]  ;;  %v221_v8 = vmul.f32 %v1357_v10, %v1357_v10 }
   0x8   :  { %1211 = vmatprep.subr.bf16.mxu0 %v1285_v5  ;;  %1279 = vmatprep.subr.bf16.mxu1 %v1285_v5  ;;  %v89_v17 = vadd.f32 %v88_v12, %v87_v14  ;;  %v112_v48 = vsel %vm82_vm0, %v1434_v43, 0.0  ;;  %v114_v51 = vsel %vm82_vm0, %v1441_v46, 0.0  ;;  %v1455_v52 = vld [vmem:[%s2471_s0 + $0x90] sm:$0xff]  ;;  %v116_v54 = vsel %vm82_vm0, %v1448_v49, 0.0  ;;  %v1462_v55 = vld [vmem:[%s2471_s0 + $0x98] sm:$0xff]  ;;  %v1473_v60 = vld [vmem:[%s2471_s0 + $0xa0] sm:$0xff] }
   0x9   :  { %2494 = vst [vmem:[#allocation2_spill] sm:$0xff] %v1455_v52  ;;  %2495 = vst [vmem:[#allocation3_spill] sm:$0xff] %v1462_v55  ;;  %v118_v57 = vsel %vm82_vm0, %v1455_v52, 0.0  ;;  %v120_v63 = vsel %vm82_vm0, %v1462_v55, 0.0  ;;  %v1484_v1 = vld [vmem:[%s2471_s0 + $0xa8] sm:$0xff]  ;;  %v122_v7 = vsel %vm82_vm0, %v1473_v60, 0.0 }
   0xa   :  { %v91_v20 = vadd.f32 %v90_v15, %v89_v17  ;;  %2496 = vst [vmem:[#allocation4_spill] sm:$0xff] %v1473_v60  ;;  %2497 = vst [vmem:[#allocation5_spill] sm:$0xff] %v1484_v1  ;;  %v281_v9 = vsel %vm82_vm0, %v217_v58, 0.0  ;;  %v282_v11 = vsel %vm82_vm0, %v218_v59, 0.0  ;;  %v1495_v12 = vld [vmem:[%s2471_s0 + $0xb0] sm:$0xff]  ;;  %v284_v17 = vsel %vm82_vm0, %v219_v62, 0.0 }
   0xb   :  { %1212 = vmatpush3.bf16.msra.mxu0 %v1285_v5  ;;  %1282 = vmatpush3.bf16.msra.mxu1 %v1285_v5  ;;  %2498 = vst [vmem:[#allocation6_spill] sm:$0xff] %v1495_v12  ;;  %v283_v15 = vadd.f32 %v282_v11, %v281_v9  ;;  %v1546_v58 = vld [vmem:[%s2471_s0 + $0xd8] sm:$0xff]  ;;  %v228_v11 = vmul.f32 %v1406_v31, %v1406_v31 }
   0xc   :  { %v93_v23 = vadd.f32 %v92_v18, %v91_v20  ;;  %v124_v18 = vsel %vm82_vm0, %v1484_v1, 0.0  ;;  %v222_v20 = vmul.f32 %v1364_v13, %v1364_v13  ;;  %v136_v9 = vsel %vm82_vm0, %v1546_v58, 0.0 }
   0xe   :  { %v95_v26 = vadd.f32 %v94_v21, %v93_v23  ;;  %v286_v21 = vsel %vm82_vm0, %v220_v0, 0.0  ;;  %v1506_v23 = vld [vmem:[%s2471_s0 + $0xb8] sm:$0xff] }
   0xf   :  { %2499 = vst [vmem:[#allocation7_spill] sm:$0xff] %v1506_v23 }
  0x10   :  { %v97_v29 = vadd.f32 %v96_v24, %v95_v26  ;;  %v285_v26 = vadd.f32 %v284_v17, %v283_v15  ;;  %v1566_v15 = vld [vmem:[%s2471_s0 + $0xe8] sm:$0xff] }
  0x12   :  { %v99_v32 = vadd.f32 %v98_v27, %v97_v29  ;;  %v126_v27 = vsel %vm82_vm0, %v1495_v12, 0.0  ;;  %v223_v29 = vmul.f32 %v1371_v16, %v1371_v16 }
  0x14   :  { %v101_v35 = vadd.f32 %v100_v30, %v99_v32  ;;  %v288_v30 = vsel %vm82_vm0, %v221_v8, 0.0  ;;  %v1516_v32 = vld [vmem:[%s2471_s0 + $0xc0] sm:$0xff] }
  0x15   :  { %2500 = vst [vmem:[#allocation8_spill] sm:$0xff] %v1516_v32 }
  0x16   :  { %v103_v38 = vadd.f32 %v102_v33, %v101_v35  ;;  %v287_v35 = vadd.f32 %v286_v21, %v285_v26  ;;  %v229_v21 = vmul.f32 %v1413_v34, %v1413_v34  ;;  %v1576_v26 = vld [vmem:[%s2471_s0 + $0xf0] sm:$0xff] }
  0x18   :  { %v105_v41 = vadd.f32 %v104_v36, %v103_v38  ;;  %v128_v36 = vsel %vm82_vm0, %v1506_v23, 0.0  ;;  %v224_v38 = vmul.f32 %v1378_v19, %v1378_v19 }
  0x1a   :  { %v107_v44 = vadd.f32 %v106_v39, %v105_v41  ;;  %v290_v39 = vsel %vm82_vm0, %v222_v20, 0.0  ;;  %v1526_v41 = vld [vmem:[%s2471_s0 + $0xc8] sm:$0xff] }
  0x1b   :  { %2501 = vst [vmem:[#allocation9_spill] sm:$0xff] %v1526_v41 }
  0x1c   :  { %v109_v47 = vadd.f32 %v108_v42, %v107_v44  ;;  %v289_v44 = vadd.f32 %v288_v30, %v287_v35  ;;  %v140_v30 = vsel %vm82_vm0, %v1566_v15, 0.0  ;;  %v302_v35 = vsel %vm82_vm0, %v228_v11, 0.0 }
  0x1e   :  { %v111_v50 = vadd.f32 %v110_v45, %v109_v47  ;;  %v130_v45 = vsel %vm82_vm0, %v1516_v32, 0.0  ;;  %v225_v47 = vmul.f32 %v1385_v22, %v1385_v22 }
  0x20   :  { %v113_v53 = vadd.f32 %v112_v48, %v111_v50  ;;  %v292_v48 = vsel %vm82_vm0, %v223_v29, 0.0  ;;  %v1536_v50 = vld [vmem:[%s2471_s0 + $0xd0] sm:$0xff]  ;;  %v296_v0 = vsel %vm82_vm0, %v225_v47, 0.0  ;;  %v1596_v47 = vld [vmem:[%s2471_s0 + $0x100] sm:$0xff] }
  0x21   :  { %v134_v62 = vsel %vm82_vm0, %v1536_v50, 0.0 }
  0x22   :  { %v115_v56 = vadd.f32 %v114_v51, %v113_v53  ;;  %v291_v53 = vadd.f32 %v290_v39, %v289_v44  ;;  %v231_v44 = vmul.f32 %v1427_v40, %v1427_v40 }
  0x24   :  { %v117_v61 = vadd.f32 %v116_v54, %v115_v56  ;;  %v132_v54 = vsel %vm82_vm0, %v1526_v41, 0.0  ;;  %v226_v56 = vmul.f32 %v1392_v25, %v1392_v25 }
  0x26   :  { %v119_v5 = vadd.f32 %v118_v57, %v117_v61  ;;  %v294_v57 = vsel %vm82_vm0, %v224_v38, 0.0  ;;  %v293_v61 = vadd.f32 %v292_v48, %v291_v53 }
  0x28   :  { %v121_v14 = vadd.f32 %v120_v63, %v119_v5  ;;  %v227_v63 = vmul.f32 %v1399_v28, %v1399_v28  ;;  %v1556_v5 = vld [vmem:[%s2471_s0 + $0xe0] sm:$0xff]  ;;  %v295_v8 = vadd.f32 %v294_v57, %v293_v61  ;;  %v1606_v57 = vld [vmem:[%s2471_s0 + $0x108] sm:$0xff] }
  0x29   :  { %v138_v20 = vsel %vm82_vm0, %v1556_v5, 0.0  ;;  %v148_v11 = vsel %vm82_vm0, %v1606_v57, 0.0 }
  0x2a   :  { %v123_v24 = vadd.f32 %v122_v7, %v121_v14  ;;  %v298_v14 = vsel %vm82_vm0, %v226_v56, 0.0 }
  0x2c   :  { %v125_v33 = vadd.f32 %v124_v18, %v123_v24  ;;  %v297_v18 = vadd.f32 %v296_v0, %v295_v8  ;;  %v300_v24 = vsel %vm82_vm0, %v227_v63, 0.0  ;;  %v233_v63 = vmul.f32 %v1441_v46, %v1441_v46 }
  0x2d   :  { %v308_v0 = vsel %vm82_vm0, %v231_v44, 0.0  ;;  %v1646_v44 = vld [vmem:[%s2471_s0 + $0x128] sm:$0xff] }
  0x2e   :  { %v127_v42 = vadd.f32 %v126_v27, %v125_v33  ;;  %v299_v29 = vadd.f32 %v298_v14, %v297_v18  ;;  %v230_v33 = vmul.f32 %v1420_v37, %v1420_v37  ;;  %v234_v14 = vmul.f32 %v1448_v49, %v1448_v49  ;;  %v1626_v18 = vld [vmem:[%s2471_s0 + $0x118] sm:$0xff] }
  0x30   :  { %v129_v51 = vadd.f32 %v128_v36, %v127_v42  ;;  %v1586_v36 = vld [vmem:[%s2471_s0 + $0xf8] sm:$0xff]  ;;  %v301_v39 = vadd.f32 %v300_v24, %v299_v29  ;;  %v142_v42 = vsel %vm82_vm0, %v1576_v26, 0.0  ;;  %v306_v56 = vsel %vm82_vm0, %v230_v33, 0.0 }
  0x31   :  { %v144_v53 = vsel %vm82_vm0, %v1586_v36, 0.0  ;;  %v312_v29 = vsel %vm82_vm0, %v233_v63, 0.0  ;;  %v238_v63 = vmul.f32 %v1484_v1, %v1484_v1  ;;  %v1880_v1 = vld [vmem:[%s2471_s0 + $0x1d8] sm:$0xff] }
  0x32   :  { %v131_v59 = vadd.f32 %v130_v45, %v129_v51  ;;  %v304_v45 = vsel %vm82_vm0, %v229_v21, 0.0  ;;  %v303_v51 = vadd.f32 %v302_v35, %v301_v39  ;;  %v236_v39 = vmul.f32 %v1462_v55, %v1462_v55  ;;  %2508 = vst [vmem:[#allocation16_spill] sm:$0xff] %v1880_v1  ;;  %v1906_v55 = vld [vmem:[%s2471_s0 + $0x1e8] sm:$0xff] }
  0x33   :  { %2510 = vst [vmem:[#allocation18_spill] sm:$0xff] %v1906_v55 }
  0x34   :  { %v133_v7 = vadd.f32 %v132_v54, %v131_v59  ;;  %v232_v54 = vmul.f32 %v1434_v43, %v1434_v43  ;;  %v305_v61 = vadd.f32 %v304_v45, %v303_v51 }
  0x36   :  { %v135_v17 = vadd.f32 %v134_v62, %v133_v7  ;;  %v146_v62 = vsel %vm82_vm0, %v1596_v47, 0.0  ;;  %v1616_v7 = vld [vmem:[%s2471_s0 + $0x110] sm:$0xff] }
  0x37   :  { %v150_v24 = vsel %vm82_vm0, %v1616_v7, 0.0 }
  0x38   :  { %v137_v27 = vadd.f32 %v136_v9, %v135_v17  ;;  %v307_v9 = vadd.f32 %v306_v56, %v305_v61  ;;  %v310_v17 = vsel %vm82_vm0, %v232_v54, 0.0  ;;  %v1656_v56 = vld [vmem:[%s2471_s0 + $0x130] sm:$0xff] }
  0x3a   :  { %v139_v38 = vadd.f32 %v138_v20, %v137_v27  ;;  %v309_v21 = vadd.f32 %v308_v0, %v307_v9  ;;  %v235_v27 = vmul.f32 %v1455_v52, %v1455_v52  ;;  %v318_v0 = vsel %vm82_vm0, %v236_v39, 0.0  ;;  %v1919_v52 = vld [vmem:[%s2471_s0 + $0x1f0] sm:$0xff] }
  0x3b   :  { %2511 = vst [vmem:[#allocation19_spill] sm:$0xff] %v1919_v52 }
  0x3c   :  { %v141_v48 = vadd.f32 %v140_v30, %v139_v38  ;;  %v1636_v30 = vld [vmem:[%s2471_s0 + $0x120] sm:$0xff]  ;;  %v311_v35 = vadd.f32 %v310_v17, %v309_v21  ;;  %v152_v38 = vsel %vm82_vm0, %v1626_v18, 0.0  ;;  %v316_v54 = vsel %vm82_vm0, %v235_v27, 0.0 }
  0x3d   :  { %v154_v51 = vsel %vm82_vm0, %v1636_v30, 0.0  ;;  %v239_v17 = vmul.f32 %v1495_v12, %v1495_v12  ;;  %v1676_v21 = vld [vmem:[%s2471_s0 + $0x140] sm:$0xff] }
  0x3e   :  { %v143_v59 = vadd.f32 %v142_v42, %v141_v48  ;;  %v314_v42 = vsel %vm82_vm0, %v234_v14, 0.0  ;;  %v313_v48 = vadd.f32 %v312_v29, %v311_v35  ;;  %v158_v14 = vsel %vm82_vm0, %v1656_v56, 0.0 }
  0x3f   :  { %v322_v35 = vsel %vm82_vm0, %v238_v63, 0.0 }
  0x40   :  { %v145_v8 = vadd.f32 %v144_v53, %v143_v59  ;;  %v237_v53 = vmul.f32 %v1473_v60, %v1473_v60  ;;  %v315_v61 = vadd.f32 %v314_v42, %v313_v48  ;;  %v241_v48 = vmul.f32 %v1516_v32, %v1516_v32  ;;  %v1893_v60 = vld [vmem:[%s2471_s0 + $0x1e0] sm:$0xff] }
  0x41   :  { %2509 = vst [vmem:[#allocation17_spill] sm:$0xff] %v1893_v60 }
  0x42   :  { %v147_v20 = vadd.f32 %v146_v62, %v145_v8  ;;  %v156_v62 = vsel %vm82_vm0, %v1646_v44, 0.0  ;;  %v1666_v8 = vld [vmem:[%s2471_s0 + $0x138] sm:$0xff] }
  0x43   :  { %v160_v29 = vsel %vm82_vm0, %v1666_v8, 0.0 }
  0x44   :  { %v149_v33 = vadd.f32 %v148_v11, %v147_v20  ;;  %v317_v11 = vadd.f32 %v316_v54, %v315_v61  ;;  %v320_v20 = vsel %vm82_vm0, %v237_v53, 0.0  ;;  %v1696_v53 = vld [vmem:[%s2471_s0 + $0x150] sm:$0xff] }
  0x46   :  { %v151_v45 = vadd.f32 %v150_v24, %v149_v33  ;;  %v319_v27 = vadd.f32 %v318_v0, %v317_v11  ;;  %v240_v33 = vmul.f32 %v1506_v23, %v1506_v23  ;;  %v1706_v0 = vld [vmem:[%s2471_s0 + $0x158] sm:$0xff]  ;;  %v256_v23 = vmul.f32 %v1666_v8, %v1666_v8 }
  0x48   :  { %v153_v59 = vadd.f32 %v152_v38, %v151_v45  ;;  %v1686_v38 = vld [vmem:[%s2471_s0 + $0x148] sm:$0xff]  ;;  %v321_v42 = vadd.f32 %v320_v20, %v319_v27  ;;  %v162_v45 = vsel %vm82_vm0, %v1676_v21, 0.0  ;;  %v326_v63 = vsel %vm82_vm0, %v240_v33, 0.0 }
  0x49   :  { %v164_v61 = vsel %vm82_vm0, %v1686_v38, 0.0  ;;  %v328_v20 = vsel %vm82_vm0, %v241_v48, 0.0  ;;  %v168_v33 = vsel %vm82_vm0, %v1706_v0, 0.0 }
  0x4a   :  { %v155_v9 = vadd.f32 %v154_v51, %v153_v59  ;;  %v324_v51 = vsel %vm82_vm0, %v239_v17, 0.0  ;;  %v323_v59 = vadd.f32 %v322_v35, %v321_v42  ;;  %v243_v17 = vmul.f32 %v1536_v50, %v1536_v50  ;;  %v1726_v50 = vld [vmem:[%s2471_s0 + $0x168] sm:$0xff] }
  0x4b   :  { %v244_v35 = vmul.f32 %v1546_v58, %v1546_v58  ;;  %v1736_v58 = vld [vmem:[%s2471_s0 + $0x170] sm:$0xff] }
  0x4c   :  { %v157_v24 = vadd.f32 %v156_v62, %v155_v9  ;;  %v242_v62 = vmul.f32 %v1526_v41, %v1526_v41  ;;  %v325_v11 = vadd.f32 %v324_v51, %v323_v59  ;;  %v245_v51 = vmul.f32 %v1556_v5, %v1556_v5  ;;  %v1746_v5 = vld [vmem:[%s2471_s0 + $0x178] sm:$0xff] }
  0x4e   :  { %v159_v39 = vadd.f32 %v158_v14, %v157_v24  ;;  %v166_v14 = vsel %vm82_vm0, %v1696_v53, 0.0  ;;  %v1716_v24 = vld [vmem:[%s2471_s0 + $0x160] sm:$0xff] }
  0x4f   :  { %v170_v48 = vsel %vm82_vm0, %v1716_v24, 0.0 }
  0x50   :  { %v161_v54 = vadd.f32 %v160_v29, %v159_v39  ;;  %v327_v29 = vadd.f32 %v326_v63, %v325_v11  ;;  %v330_v39 = vsel %vm82_vm0, %v242_v62, 0.0  ;;  %v172_v62 = vsel %vm82_vm0, %v1726_v50, 0.0 }
  0x51   :  { %v246_v63 = vmul.f32 %v1566_v15, %v1566_v15  ;;  %v1756_v15 = vld [vmem:[%s2471_s0 + $0x180] sm:$0xff] }
  0x52   :  { %v163_v9 = vadd.f32 %v162_v45, %v161_v54  ;;  %v329_v45 = vadd.f32 %v328_v20, %v327_v29  ;;  %v332_v54 = vsel %vm82_vm0, %v243_v17, 0.0  ;;  %v174_v17 = vsel %vm82_vm0, %v1736_v58, 0.0 }
  0x53   :  { %v247_v20 = vmul.f32 %v1576_v26, %v1576_v26  ;;  %v1766_v26 = vld [vmem:[%s2471_s0 + $0x188] sm:$0xff] }
  0x54   :  { %v165_v27 = vadd.f32 %v164_v61, %v163_v9  ;;  %v331_v61 = vadd.f32 %v330_v39, %v329_v45  ;;  %v334_v9 = vsel %vm82_vm0, %v244_v35, 0.0  ;;  %v176_v35 = vsel %vm82_vm0, %v1746_v5, 0.0 }
  0x55   :  { %v248_v39 = vmul.f32 %v1586_v36, %v1586_v36  ;;  %v1776_v36 = vld [vmem:[%s2471_s0 + $0x190] sm:$0xff] }
  0x56   :  { %v167_v42 = vadd.f32 %v166_v14, %v165_v27  ;;  %v333_v14 = vadd.f32 %v332_v54, %v331_v61  ;;  %v336_v27 = vsel %vm82_vm0, %v245_v51, 0.0  ;;  %v178_v51 = vsel %vm82_vm0, %v1756_v15, 0.0 }
  0x57   :  { %v249_v54 = vmul.f32 %v1596_v47, %v1596_v47 }
  0x58   :  { %v169_v59 = vadd.f32 %v168_v33, %v167_v42  ;;  %v335_v33 = vadd.f32 %v334_v9, %v333_v14  ;;  %v338_v42 = vsel %vm82_vm0, %v246_v63, 0.0  ;;  %v180_v63 = vsel %vm82_vm0, %v1766_v26, 0.0  ;;  %v1786_v14 = vld [vmem:[%s2471_s0 + $0x198] sm:$0xff] }
  0x59   :  { %v250_v9 = vmul.f32 %v1606_v57, %v1606_v57  ;;  %2502 = vst [vmem:[#allocation10_spill] sm:$0xff] %v1786_v14 }
  0x5a   :  { %v171_v11 = vadd.f32 %v170_v48, %v169_v59  ;;  %v337_v48 = vadd.f32 %v336_v27, %v335_v33  ;;  %v340_v59 = vsel %vm82_vm0, %v247_v20, 0.0  ;;  %v182_v27 = vsel %vm82_vm0, %v1776_v36, 0.0 }
  0x5b   :  { %v344_v33 = vsel %vm82_vm0, %v249_v54, 0.0 }
  0x5c   :  { %v173_v29 = vadd.f32 %v172_v62, %v171_v11  ;;  %v339_v62 = vadd.f32 %v338_v42, %v337_v48  ;;  %v342_v11 = vsel %vm82_vm0, %v248_v39, 0.0  ;;  %v252_v48 = vmul.f32 %v1626_v18, %v1626_v18 }
  0x5e   :  { %v175_v45 = vadd.f32 %v174_v17, %v173_v29  ;;  %v341_v20 = vadd.f32 %v340_v59, %v339_v62  ;;  %v251_v29 = vmul.f32 %v1616_v7, %v1616_v7  ;;  %v1806_v59 = vld [vmem:[%s2471_s0 + $0x1a8] sm:$0xff] }
  0x5f   :  { %2504 = vst [vmem:[#allocation12_spill] sm:$0xff] %v1806_v59  ;;  %v188_v41 = vsel %vm82_vm0, %v1806_v59, 0.0 }
  0x60   :  { %v177_v61 = vadd.f32 %v176_v35, %v175_v45  ;;  %v1796_v35 = vld [vmem:[%s2471_s0 + $0x1a0] sm:$0xff]  ;;  %v343_v42 = vadd.f32 %v342_v11, %v341_v20  ;;  %v184_v45 = vsel %vm82_vm0, %v1786_v14, 0.0  ;;  %v348_v11 = vsel %vm82_vm0, %v251_v29, 0.0 }
  0x61   :  { %2503 = vst [vmem:[#allocation11_spill] sm:$0xff] %v1796_v35  ;;  %v186_v62 = vsel %vm82_vm0, %v1796_v35, 0.0 }
  0x62   :  { %v179_v17 = vadd.f32 %v178_v51, %v177_v61  ;;  %v346_v51 = vsel %vm82_vm0, %v250_v9, 0.0  ;;  %v345_v61 = vadd.f32 %v344_v33, %v343_v42  ;;  %v350_v33 = vsel %vm82_vm0, %v252_v48, 0.0 }
  0x64   :  { %v181_v39 = vadd.f32 %v180_v63, %v179_v17  ;;  %v253_v63 = vmul.f32 %v1636_v30, %v1636_v30  ;;  %v1816_v17 = vld [vmem:[%s2471_s0 + $0x1b0] sm:$0xff]  ;;  %v347_v20 = vadd.f32 %v346_v51, %v345_v61 }
  0x65   :  { %2505 = vst [vmem:[#allocation13_spill] sm:$0xff] %v1816_v17  ;;  %v190_v32 = vsel %vm82_vm0, %v1816_v17, 0.0 }
  0x66   :  { %v183_v54 = vadd.f32 %v182_v27, %v181_v39  ;;  %v254_v27 = vmul.f32 %v1646_v44, %v1646_v44  ;;  %v1826_v39 = vld [vmem:[%s2471_s0 + $0x1b8] sm:$0xff]  ;;  %v349_v42 = vadd.f32 %v348_v11, %v347_v20  ;;  %v352_v51 = vsel %vm82_vm0, %v253_v63, 0.0 }
  0x67   :  { %v192_v48 = vsel %vm82_vm0, %v1826_v39, 0.0  ;;  %v257_v63 = vmul.f32 %v1676_v21, %v1676_v21 }
  0x68   :  { %v185_v9 = vadd.f32 %v184_v45, %v183_v54  ;;  %v255_v45 = vmul.f32 %v1656_v56, %v1656_v56  ;;  %v351_v61 = vadd.f32 %v350_v33, %v349_v42  ;;  %v354_v12 = vsel %vm82_vm0, %v254_v27, 0.0 }
  0x69   :  { %v258_v27 = vmul.f32 %v1686_v38, %v1686_v38  ;;  %v358_v42 = vsel %vm82_vm0, %v256_v23, 0.0 }
  0x6a   :  { %v187_v29 = vadd.f32 %v186_v62, %v185_v9  ;;  %v1841_v62 = vld [vmem:[%s2471_s0 + $0x1c0] sm:$0xff]  ;;  %v353_v9 = vadd.f32 %v352_v51, %v351_v61 }
  0x6b   :  { %v362_v23 = vsel %vm82_vm0, %v258_v27, 0.0 }
  0x6c   :  { %v189_v54 = vadd.f32 %v188_v41, %v187_v29  ;;  %v356_v41 = vsel %vm82_vm0, %v255_v45, 0.0  ;;  %v355_v33 = vadd.f32 %v354_v12, %v353_v9  ;;  %v194_v29 = vsel %vm82_vm0, %v1841_v62, 0.0  ;;  %v1867_v9 = vld [vmem:[%s2471_s0 + $0x1d0] sm:$0xff] }
  0x6d   :  { %v360_v45 = vsel %vm82_vm0, %v257_v63, 0.0  ;;  %2507 = vst [vmem:[#allocation15_spill] sm:$0xff] %v1867_v9 }
  0x6e   :  { %v191_v11 = vadd.f32 %v190_v32, %v189_v54  ;;  %v1854_v32 = vld [vmem:[%s2471_s0 + $0x1c8] sm:$0xff]  ;;  %v357_v51 = vadd.f32 %v356_v41, %v355_v33  ;;  %v259_v54 = vmul.f32 %v1696_v53, %v1696_v53  ;;  %v261_v33 = vmul.f32 %v1716_v24, %v1716_v24 }
  0x6f   :  { %2506 = vst [vmem:[#allocation14_spill] sm:$0xff] %v1854_v32 }
  0x70   :  { %v193_v20 = vadd.f32 %v192_v48, %v191_v11  ;;  %v359_v61 = vadd.f32 %v358_v42, %v357_v51  ;;  %v196_v48 = vsel %vm82_vm0, %v1854_v32, 0.0  ;;  %v260_v11 = vmul.f32 %v1706_v0, %v1706_v0 }
  0x71   :  { %v364_v63 = vsel %vm82_vm0, %v259_v54, 0.0  ;;  %v198_v42 = vsel %vm82_vm0, %v1867_v9, 0.0  ;;  %v262_v51 = vmul.f32 %v1726_v50, %v1726_v50  ;;  %v368_v54 = vsel %vm82_vm0, %v261_v33, 0.0 }
  0x72   :  { %v195_v12 = vadd.f32 %v194_v29, %v193_v20  ;;  %v361_v41 = vadd.f32 %v360_v45, %v359_v61  ;;  %v366_v27 = vsel %vm82_vm0, %v260_v11, 0.0  ;;  %v263_v61 = vmul.f32 %v1736_v58, %v1736_v58 }
  0x73   :  { %v370_v11 = vsel %vm82_vm0, %v262_v51, 0.0 }
  0x74   :  { %v197_v20 = vadd.f32 %v196_v48, %v195_v12  ;;  %v363_v29 = vadd.f32 %v362_v23, %v361_v41  ;;  %v200_v23 = vsel %vm82_vm0, %v1880_v1, 0.0  ;;  %v264_v41 = vmul.f32 %v1746_v5, %v1746_v5 }
  0x75   :  { %v372_v33 = vsel %vm82_vm0, %v263_v61, 0.0 }
  0x76   :  { %v365_v45 = vadd.f32 %v364_v63, %v363_v29  ;;  %v199_v12 = vadd.f32 %v198_v42, %v197_v20  ;;  %v265_v29 = vmul.f32 %v1756_v15, %v1756_v15  ;;  %v374_v51 = vsel %vm82_vm0, %v264_v41, 0.0 }
  0x78   :  { %v367_v48 = vadd.f32 %v366_v27, %v365_v45  ;;  %v201_v20 = vadd.f32 %v200_v23, %v199_v12  ;;  %v202_v27 = vsel %vm82_vm0, %v1893_v60, 0.0  ;;  %v266_v45 = vmul.f32 %v1766_v26, %v1766_v26 }
  0x79   :  { %v376_v61 = vsel %vm82_vm0, %v265_v29, 0.0 }
  0x7a   :  { %v369_v63 = vadd.f32 %v368_v54, %v367_v48  ;;  %v267_v48 = vmul.f32 %v1776_v36, %v1776_v36  ;;  %v203_v12 = vadd.f32 %v202_v27, %v201_v20  ;;  %v378_v41 = vsel %vm82_vm0, %v266_v45, 0.0 }
  0x7c   :  { %v371_v42 = vadd.f32 %v370_v11, %v369_v63  ;;  %v204_v11 = vsel %vm82_vm0, %v1906_v55, 0.0  ;;  %v268_v63 = vmul.f32 %v1786_v14, %v1786_v14  ;;  %v380_v29 = vsel %vm82_vm0, %v267_v48, 0.0  ;;  %v1932_v14 = vld [vmem:[%s2471_s0 + $0x1f8] sm:$0xff] }
  0x7d   :  { %v205_v20 = vadd.f32 %v204_v11, %v203_v12  ;;  %2512 = vst [vmem:[#allocation20_spill] sm:$0xff] %v1932_v14 }
  0x7e   :  { %v373_v54 = vadd.f32 %v372_v33, %v371_v42  ;;  %v269_v42 = vmul.f32 %v1796_v35, %v1796_v35  ;;  %v382_v45 = vsel %vm82_vm0, %v268_v63, 0.0  ;;  %v273_v35 = vmul.f32 %v1841_v62, %v1841_v62 }
  0x80   :  { %v375_v23 = vadd.f32 %v374_v51, %v373_v54  ;;  %v206_v51 = vsel %vm82_vm0, %v1919_v52, 0.0  ;;  %v270_v54 = vmul.f32 %v1806_v59, %v1806_v59  ;;  %v384_v48 = vsel %vm82_vm0, %v269_v42, 0.0 }
  0x81   :  { %v207_v12 = vadd.f32 %v206_v51, %v205_v20  ;;  %v274_v42 = vmul.f32 %v1854_v32, %v1854_v32 }
  0x82   :  { %v377_v33 = vadd.f32 %v376_v61, %v375_v23  ;;  %v271_v23 = vmul.f32 %v1816_v17, %v1816_v17  ;;  %v386_v63 = vsel %vm82_vm0, %v270_v54, 0.0 }
  0x84   :  { %v379_v27 = vadd.f32 %v378_v41, %v377_v33  ;;  %v208_v41 = vsel %vm82_vm0, %v1932_v14, 0.0  ;;  %v272_v33 = vmul.f32 %v1826_v39, %v1826_v39 }
  0x86   :  { %v381_v61 = vadd.f32 %v380_v29, %v379_v27  ;;  %v388_v29 = vsel %vm82_vm0, %v271_v23, 0.0  ;;  %v209_v27 = vadd.f32 %v208_v41, %v207_v12  ;;  %v390_v20 = vsel %vm82_vm0, %v272_v33, 0.0 }
  0x87   :  { %v394_v23 = vsel %vm82_vm0, %v274_v42, 0.0 }
  0x88   :  { %v383_v11 = vadd.f32 %v382_v45, %v381_v61  ;;  %v275_v45 = vmul.f32 %v1867_v9, %v1867_v9  ;;  %v392_v61 = vsel %vm82_vm0, %v273_v35, 0.0  ;;  %v210_v54 = vrot.slane %v209_v27, 4 }
  0x8a   :  { %v385_v59 = vadd.f32 %v384_v48, %v383_v11  ;;  %v276_v11 = vmul.f32 %v1880_v1, %v1880_v1  ;;  %v396_v41 = vsel %vm82_vm0, %v275_v45, 0.0  ;;  %v211_v33 = vadd.f32 %v210_v54, %v209_v27 }
  0x8c   :  { %v387_v17 = vadd.f32 %v386_v63, %v385_v59  ;;  %v277_v59 = vmul.f32 %v1893_v60, %v1893_v60  ;;  %v278_v63 = vmul.f32 %v1906_v55, %v1906_v55  ;;  %v398_v35 = vsel %vm82_vm0, %v276_v11, 0.0 }
  0x8d   :  { %v212_v42 = vrot.slane %v211_v33, 2 }
  0x8e   :  { %v389_v51 = vadd.f32 %v388_v29, %v387_v17  ;;  %v402_v45 = vsel %vm82_vm0, %v278_v63, 0.0 }
  0x90   :  { %v391_v48 = vadd.f32 %v390_v20, %v389_v51  ;;  %v279_v20 = vmul.f32 %v1919_v52, %v1919_v52  ;;  %v400_v51 = vsel %vm82_vm0, %v277_v59, 0.0 }
  0x92   :  { %v393_v12 = vadd.f32 %v392_v61, %v391_v48  ;;  %v280_v48 = vmul.f32 %v1932_v14, %v1932_v14  ;;  %v404_v54 = vsel %vm82_vm0, %v279_v20, 0.0 }
  0x94   :  { %v395_v17 = vadd.f32 %v394_v23, %v393_v12  ;;  %v213_v23 = vadd.f32 %v212_v42, %v211_v33  ;;  %v406_v11 = vsel %vm82_vm0, %v280_v48, 0.0  ;;  %v425_v33 = vlaneseq  ;;  %v417_v42 = vld [vmem:[%s2472_s2] sm:$0x1] }
  0x96   :  { %v397_v29 = vadd.f32 %v396_v41, %v395_v17  ;;  %v214_v17 = vrot.slane %v213_v23, 1  ;;  %v426_v20 = vshrl.u32 %v425_v33, 7 }
  0x98   :  { %v399_v61 = vadd.f32 %v398_v35, %v397_v29  ;;  %v215_v60 = vadd.f32 %v214_v17, %v213_v23  ;;  %v427_v48 = vsub.s32 0, %v426_v20 }
  0x9a   :  { %v401_v27 = vadd.f32 %v400_v51, %v399_v61  ;;  %v216_v35 = vmul.f32 0.001953125, %v215_v60 }
  0x9c   :  { %v403_v12 = vadd.f32 %v402_v45, %v401_v27  ;;  %v415_v32 = vmul.f32 %v216_v35, %v216_v35 }
  0x9e   :  { %v405_v41 = vadd.f32 %v404_v54, %v403_v12 }
  0xa0   :  { %v407_v55 = vadd.f32 %v406_v11, %v405_v41 }
  0xa2   :  { %v408_v52 = vrot.slane %v407_v55, 4 }
  0xa4   :  { %v409_v59 = vadd.f32 %v408_v52, %v407_v55  ;;  %v421_v52 = vld [vmem:[%s2473_s3] sm:$0x1] }
  0xa6   :  { %v410_v1 = vrot.slane %v409_v59, 2 }
  0xa8   :  { %v411_v29 = vadd.f32 %v410_v1, %v409_v59 }
  0xaa   :  { %v412_v9 = vrot.slane %v411_v29, 1 }
  0xac   :  { %v413_v14 = vadd.f32 %v412_v9, %v411_v29 }
  0xae   :  { %v414_v63 = vmul.f32 0.001953125, %v413_v14 }
  0xb0   :  { %v416_v51 = vsub.f32 %v414_v63, %v415_v32 }
  0xb2   :  { %v418_v61 = vadd.f32 1e-05, %v416_v51 }
  0xb4   :  { %1286 = vrsqrt.f32 %v418_v61 }
  0xbe   :  { %v1287_v45 = vpop.eup %1286 }
  0xbf   :  { %v420_v27 = vmul.f32 %v1287_v45, %v417_v42 }
  0xc1   :  { %v422_v55 = vmul.f32 %v420_v27, %v216_v35  ;;  %v1974_v60 = vrot.slane %v420_v27, %v427_v48 }
  0xc3   :  { %v423_v1 = vsub.f32 %v421_v52, %v422_v55  ;;  %v430_v14 = vmul.f32 %v1974_v60, %v1328_v2  ;;  %v431_v32 = vmul.f32 %v1974_v60, %v1333_v3  ;;  %v462_v9 = vmul.f32 %v1974_v60, %v1596_v47 }
  0xc4   :  { %v463_v54 = vmul.f32 %v1974_v60, %v1606_v57  ;;  %v432_v23 = vmul.f32 %v1974_v60, %v1338_v4  ;;  %v433_v12 = vmul.f32 %v1974_v60, %v1346_v6  ;;  %v464_v11 = vmul.f32 %v1974_v60, %v1616_v7 }
  0xc5   :  { %v1990_v41 = vrot.slane %v423_v1, %v427_v48  ;;  %v465_v2 = vmul.f32 %v1974_v60, %v1626_v18  ;;  %v434_v3 = vmul.f32 %v1974_v60, %v1357_v10  ;;  %v435_v47 = vmul.f32 %v1974_v60, %v1364_v13 }
  0xc6   :  { %v466_v4 = vmul.f32 %v1974_v60, %v1636_v30  ;;  %v467_v6 = vmul.f32 %v1974_v60, %v1646_v44  ;;  %v436_v57 = vmul.f32 %v1974_v60, %v1371_v16  ;;  %v437_v7 = vmul.f32 %v1974_v60, %v1378_v19 }
  0xc7   :  { %v500_v18 = vadd.f32 %v1990_v41, %v430_v14  ;;  %v501_v17 = vadd.f32 %v1990_v41, %v431_v32  ;;  %v532_v10 = vadd.f32 %v1990_v41, %v462_v9  ;;  %v533_v13 = vadd.f32 %v1990_v41, %v463_v54 }
  0xc8   :  { %v502_v59 = vadd.f32 %v1990_v41, %v432_v23  ;;  %v503_v30 = vadd.f32 %v1990_v41, %v433_v12  ;;  %v534_v44 = vadd.f32 %v1990_v41, %v464_v11  ;;  %v535_v35 = vadd.f32 %v1990_v41, %v465_v2 }
  0xc9   :  { %v564_v16 = vmax.f32 %v500_v18, 0.0  ;;  %v565_v29 = vmax.f32 %v501_v17, 0.0  ;;  %v596_v63 = vmax.f32 %v532_v10, 0.0  ;;  %v597_v19 = vmax.f32 %v533_v13, 0.0 }
  0xca   :  { %v566_v51 = vmax.f32 %v502_v59, 0.0  ;;  %v567_v61 = vmax.f32 %v503_v30, 0.0  ;;  %v598_v33 = vmax.f32 %v534_v44, 0.0  ;;  %v599_v20 = vmax.f32 %v535_v35, 0.0 }
  0xcb   :  { %v628_v42 = vpack.c.bf16 %v565_v29, %v564_v16  ;;  %v644_v48 = vpack.c.bf16 %v597_v19, %v596_v63  ;;  %v504_v45 = vadd.f32 %v1990_v41, %v434_v3  ;;  %v505_v27 = vadd.f32 %v1990_v41, %v435_v47 }
  0xcc   :  { %v629_v52 = vpack.c.bf16 %v567_v61, %v566_v51  ;;  %v645_v55 = vpack.c.bf16 %v599_v20, %v598_v33  ;;  %v536_v1 = vadd.f32 %v1990_v41, %v466_v4  ;;  %v537_v14 = vadd.f32 %v1990_v41, %v467_v6 }
  0xcd   :  { %1213 = vmatprep.mubr.msk.bf16.mxu0 %vm82_vm0, %v628_v42  ;;  %1245 = vmatprep.mubr.msk.bf16.mxu1 %vm82_vm0, %v644_v48  ;;  %v568_v32 = vmax.f32 %v504_v45, 0.0  ;;  %v569_v9 = vmax.f32 %v505_v27, 0.0  ;;  %v506_v54 = vadd.f32 %v1990_v41, %v436_v57  ;;  %v507_v23 = vadd.f32 %v1990_v41, %v437_v7 }
  0xce   :  { %1214 = vmatmul.mubr.msk.bf16.vlgmr.msra.gmra.mrb[0].mxu0 %vm82_vm0, %v629_v52  ;;  %1246 = vmatmul.mubr.msk.bf16.vlgmr.msra.gmra.mrb[0].mxu1 %vm82_vm0, %v645_v55  ;;  %v600_v12 = vmax.f32 %v536_v1, 0.0  ;;  %v601_v11 = vmax.f32 %v537_v14, 0.0  ;;  %v468_v2 = vmul.f32 %v1974_v60, %v1656_v56  ;;  %v469_v3 = vmul.f32 %v1974_v60, %v1666_v8 }
  0xcf   :  { %v630_v47 = vpack.c.bf16 %v569_v9, %v568_v32  ;;  %v570_v4 = vmax.f32 %v506_v54, 0.0  ;;  %v571_v6 = vmax.f32 %v507_v23, 0.0  ;;  %v438_v57 = vmul.f32 %v1974_v60, %v1385_v22 }
  0xd0   :  { %v646_v18 = vpack.c.bf16 %v601_v11, %v600_v12  ;;  %v538_v7 = vadd.f32 %v1990_v41, %v468_v2  ;;  %v539_v17 = vadd.f32 %v1990_v41, %v469_v3  ;;  %v439_v10 = vmul.f32 %v1974_v60, %v1392_v25 }
  0xd1   :  { %1217 = vmatprep.mubr.msk.bf16.mxu0 %vm82_vm0, %v630_v47  ;;  %v631_v56 = vpack.c.bf16 %v571_v6, %v570_v4  ;;  %v508_v13 = vadd.f32 %v1990_v41, %v438_v57  ;;  %v470_v8 = vmul.f32 %v1974_v60, %v1676_v21  ;;  %v471_v59 = vmul.f32 %v1974_v60, %v1686_v38 }
  0xd2   :  { %1249 = vmatprep.mubr.msk.bf16.mxu1 %vm82_vm0, %v646_v18  ;;  %v602_v22 = vmax.f32 %v538_v7, 0.0  ;;  %v603_v30 = vmax.f32 %v539_v17, 0.0  ;;  %v509_v44 = vadd.f32 %v1990_v41, %v439_v10  ;;  %v440_v25 = vmul.f32 %v1974_v60, %v1399_v28 }
  0xd3   :  { %v572_v35 = vmax.f32 %v508_v13, 0.0  ;;  %v540_v16 = vadd.f32 %v1990_v41, %v470_v8  ;;  %v541_v29 = vadd.f32 %v1990_v41, %v471_v59  ;;  %v441_v21 = vmul.f32 %v1974_v60, %v1406_v31 }
  0xd4   :  { %v647_v63 = vpack.c.bf16 %v603_v30, %v602_v22  ;;  %v573_v19 = vmax.f32 %v509_v44, 0.0  ;;  %v510_v38 = vadd.f32 %v1990_v41, %v440_v25  ;;  %v472_v51 = vmul.f32 %v1974_v60, %v1696_v53  ;;  %v2513_v25 = vld [vmem:[#allocation2_spill] sm:$0xff] }
  0xd5   :  { %v604_v61 = vmax.f32 %v540_v16, 0.0  ;;  %v605_v33 = vmax.f32 %v541_v29, 0.0  ;;  %v511_v20 = vadd.f32 %v1990_v41, %v441_v21  ;;  %v473_v28 = vmul.f32 %v1974_v60, %v1706_v0  ;;  %v2514_v21 = vld [vmem:[#allocation3_spill] sm:$0xff] }
  0xd6   :  { %1218 = vmatmul.mubr.msk.bf16.gmra.mrb[4].mxu0 %vm82_vm0, %v631_v56  ;;  %1250 = vmatmul.mubr.msk.bf16.gmra.mrb[4].mxu1 %vm82_vm0, %v647_v63  ;;  %v632_v42 = vpack.c.bf16 %v573_v19, %v572_v35  ;;  %v574_v31 = vmax.f32 %v510_v38, 0.0  ;;  %v542_v48 = vadd.f32 %v1990_v41, %v472_v51  ;;  %v442_v45 = vmul.f32 %v1974_v60, %v1413_v34 }
  0xd7   :  { %v648_v27 = vpack.c.bf16 %v605_v33, %v604_v61  ;;  %v575_v53 = vmax.f32 %v511_v20, 0.0  ;;  %v543_v52 = vadd.f32 %v1990_v41, %v473_v28  ;;  %v443_v55 = vmul.f32 %v1974_v60, %v1420_v37  ;;  %v2515_v20 = vld [vmem:[#allocation10_spill] sm:$0xff] }
  0xd8   :  { %1221 = vmatprep.mubr.msk.bf16.mxu0 %vm82_vm0, %v632_v42  ;;  %v606_v0 = vmax.f32 %v542_v48, 0.0  ;;  %v512_v1 = vadd.f32 %v1990_v41, %v442_v45  ;;  %v474_v14 = vmul.f32 %v1974_v60, %v1716_v24  ;;  %v475_v32 = vmul.f32 %v1974_v60, %v1726_v50  ;;  %v2516_v45 = vld [vmem:[#allocation4_spill] sm:$0xff] }
  0xd9   :  { %1253 = vmatprep.mubr.msk.bf16.mxu1 %vm82_vm0, %v648_v27  ;;  %v633_v34 = vpack.c.bf16 %v575_v53, %v574_v31  ;;  %v607_v9 = vmax.f32 %v543_v52, 0.0  ;;  %v513_v54 = vadd.f32 %v1990_v41, %v443_v55  ;;  %v444_v37 = vmul.f32 %v1974_v60, %v1427_v40 }
  0xda   :  { %v576_v23 = vmax.f32 %v512_v1, 0.0  ;;  %v544_v12 = vadd.f32 %v1990_v41, %v474_v14  ;;  %v545_v11 = vadd.f32 %v1990_v41, %v475_v32  ;;  %v445_v24 = vmul.f32 %v1974_v60, %v1434_v43  ;;  %v2518_v32 = vld [vmem:[#allocation11_spill] sm:$0xff] }
  0xdb   :  { %v649_v2 = vpack.c.bf16 %v607_v9, %v606_v0  ;;  %v577_v3 = vmax.f32 %v513_v54, 0.0  ;;  %v514_v50 = vadd.f32 %v1990_v41, %v444_v37  ;;  %v476_v47 = vmul.f32 %v1974_v60, %v1736_v58  ;;  %v2517_v0 = vld [vmem:[#allocation5_spill] sm:$0xff]  ;;  %v2519_v9 = vld [vmem:[#allocation12_spill] sm:$0xff] }
  0xdc   :  { %v608_v4 = vmax.f32 %v544_v12, 0.0  ;;  %v609_v6 = vmax.f32 %v545_v11, 0.0  ;;  %v515_v57 = vadd.f32 %v1990_v41, %v445_v24  ;;  %v477_v40 = vmul.f32 %v1974_v60, %v1746_v5  ;;  %v2520_v11 = vld [vmem:[#allocation6_spill] sm:$0xff] }
  0xdd   :  { %v634_v18 = vpack.c.bf16 %v577_v3, %v576_v23  ;;  %v578_v7 = vmax.f32 %v514_v50, 0.0  ;;  %v546_v17 = vadd.f32 %v1990_v41, %v476_v47  ;;  %v446_v43 = vmul.f32 %v1974_v60, %v1441_v46  ;;  %v2521_v47 = vld [vmem:[#allocation7_spill] sm:$0xff] }
  0xde   :  { %1222 = vmatmul.mubr.msk.bf16.gmra.mrb[8].mxu0 %vm82_vm0, %v633_v34  ;;  %1254 = vmatmul.mubr.msk.bf16.gmra.mrb[8].mxu1 %vm82_vm0, %v649_v2  ;;  %v650_v10 = vpack.c.bf16 %v609_v6, %v608_v4  ;;  %v579_v58 = vmax.f32 %v515_v57, 0.0  ;;  %v547_v56 = vadd.f32 %v1990_v41, %v477_v40  ;;  %v447_v13 = vmul.f32 %v1974_v60, %v1448_v49 }
  0xdf   :  { %1225 = vmatprep.mubr.msk.bf16.mxu0 %vm82_vm0, %v634_v18  ;;  %v610_v5 = vmax.f32 %v546_v17, 0.0  ;;  %v516_v8 = vadd.f32 %v1990_v41, %v446_v43  ;;  %v478_v59 = vmul.f32 %v1974_v60, %v1756_v15  ;;  %v479_v46 = vmul.f32 %v1974_v60, %v1766_v26  ;;  %v2522_v18 = vld [vmem:[#allocation13_spill] sm:$0xff] }
  0xe0   :  { %1257 = vmatprep.mubr.msk.bf16.mxu1 %vm82_vm0, %v650_v10  ;;  %v635_v22 = vpack.c.bf16 %v579_v58, %v578_v7  ;;  %v611_v30 = vmax.f32 %v547_v56, 0.0  ;;  %v517_v44 = vadd.f32 %v1990_v41, %v447_v13  ;;  %v448_v49 = vmul.f32 %v1974_v60, %v2513_v25 }
  0xe1   :  { %v580_v35 = vmax.f32 %v516_v8, 0.0  ;;  %v548_v16 = vadd.f32 %v1990_v41, %v478_v59  ;;  %v549_v29 = vadd.f32 %v1990_v41, %v479_v46  ;;  %v449_v15 = vmul.f32 %v1974_v60, %v2514_v21  ;;  %v2523_v8 = vld [vmem:[#allocation8_spill] sm:$0xff] }
  0xe2   :  { %v651_v63 = vpack.c.bf16 %v611_v30, %v610_v5  ;;  %v581_v19 = vmax.f32 %v517_v44, 0.0  ;;  %v518_v26 = vadd.f32 %v1990_v41, %v448_v49  ;;  %v480_v38 = vmul.f32 %v1974_v60, %v1776_v36  ;;  %v2524_v44 = vld [vmem:[#allocation9_spill] sm:$0xff] }
  0xe3   :  { %v612_v51 = vmax.f32 %v548_v16, 0.0  ;;  %v613_v61 = vmax.f32 %v549_v29, 0.0  ;;  %v519_v33 = vadd.f32 %v1990_v41, %v449_v15  ;;  %v481_v28 = vmul.f32 %v1974_v60, %v2515_v20 }
  0xe4   :  { %v636_v42 = vpack.c.bf16 %v581_v19, %v580_v35  ;;  %v582_v31 = vmax.f32 %v518_v26, 0.0  ;;  %v550_v48 = vadd.f32 %v1990_v41, %v480_v38  ;;  %v450_v27 = vmul.f32 %v1974_v60, %v2516_v45 }
  0xe5   :  { %v652_v53 = vpack.c.bf16 %v613_v61, %v612_v51  ;;  %v583_v52 = vmax.f32 %v519_v33, 0.0  ;;  %v551_v55 = vadd.f32 %v1990_v41, %v481_v28  ;;  %v451_v36 = vmul.f32 %v1974_v60, %v2517_v0  ;;  %v1289_v51 = vld [vmem:[%s2471_s0 + $0xd8] sm:$0xff] }
  0xe6   :  { %1226 = vmatmul.mubr.msk.bf16.gmra.mrb[12].mxu0 %vm82_vm0, %v635_v22  ;;  %1258 = vmatmul.mubr.msk.bf16.gmra.mrb[12].mxu1 %vm82_vm0, %v651_v63  ;;  %v614_v1 = vmax.f32 %v550_v48, 0.0  ;;  %v520_v14 = vadd.f32 %v1990_v41, %v450_v27  ;;  %v482_v34 = vmul.f32 %v1974_v60, %v2518_v32  ;;  %v483_v54 = vmul.f32 %v1974_v60, %v2519_v9  ;;  %v1288_v63 = vld [vmem:[%s2471_s0 + $0xd0] sm:$0xff] }
  0xe7   :  { %1229 = vmatprep.mubr.msk.bf16.mxu0 %vm82_vm0, %v636_v42  ;;  %1261 = vmatprep.mubr.msk.bf16.mxu1 %vm82_vm0, %v652_v53  ;;  %v637_v37 = vpack.c.bf16 %v583_v52, %v582_v31  ;;  %v615_v23 = vmax.f32 %v551_v55, 0.0  ;;  %v521_v12 = vadd.f32 %v1990_v41, %v451_v36  ;;  %v452_v24 = vmul.f32 %v1974_v60, %v2520_v11  ;;  %v2526_v42 = vld [vmem:[#allocation15_spill] sm:$0xff]  ;;  %v2527_v53 = vld [vmem:[#allocation16_spill] sm:$0xff]  ;;  %v2528_v11 = vld [vmem:[#allocation17_spill] sm:$0xff] }
  0xe8   :  { %v584_v2 = vmax.f32 %v520_v14, 0.0  ;;  %v552_v3 = vadd.f32 %v1990_v41, %v482_v34  ;;  %v553_v50 = vadd.f32 %v1990_v41, %v483_v54  ;;  %v453_v4 = vmul.f32 %v1974_v60, %v2521_v47  ;;  %v1291_v54 = vld [vmem:[%s2471_s0 + $0xe8] sm:$0xff] }
  0xe9   :  { %v653_v6 = vpack.c.bf16 %v615_v23, %v614_v1  ;;  %v585_v57 = vmax.f32 %v521_v12, 0.0  ;;  %v522_v40 = vadd.f32 %v1990_v41, %v452_v24  ;;  %v484_v7 = vmul.f32 %v1974_v60, %v2522_v18  ;;  %v1290_v1 = vld [vmem:[%s2471_s0 + $0xe0] sm:$0xff] }
  0xea   :  { %v616_v17 = vmax.f32 %v552_v3, 0.0  ;;  %v617_v43 = vmax.f32 %v553_v50, 0.0  ;;  %v523_v10 = vadd.f32 %v1990_v41, %v453_v4  ;;  %v485_v58 = vmul.f32 %v1974_v60, %v1826_v39  ;;  %v2525_v39 = vld [vmem:[#allocation14_spill] sm:$0xff] }
  0xeb   :  { %v638_v56 = vpack.c.bf16 %v585_v57, %v584_v2  ;;  %v586_v13 = vmax.f32 %v522_v40, 0.0  ;;  %v554_v5 = vadd.f32 %v1990_v41, %v484_v7  ;;  %v454_v59 = vmul.f32 %v1974_v60, %v2523_v8  ;;  %v2529_v2 = vld [vmem:[#allocation18_spill] sm:$0xff]  ;;  %v1293_v7 = vld [vmem:[%s2471_s0 + $0xf8] sm:$0xff]  ;;  %v2531_v8 = vld [vmem:[#allocation20_spill] sm:$0xff] }
  0xec   :  { %v654_v46 = vpack.c.bf16 %v617_v43, %v616_v17  ;;  %v587_v22 = vmax.f32 %v523_v10, 0.0  ;;  %v555_v30 = vadd.f32 %v1990_v41, %v485_v58  ;;  %v455_v25 = vmul.f32 %v1974_v60, %v2524_v44  ;;  %v2530_v58 = vld [vmem:[#allocation19_spill] sm:$0xff] }
  0xed   :  { %v524_v49 = vadd.f32 %v1990_v41, %v454_v59  ;;  %v486_v35 = vmul.f32 %v1974_v60, %v1841_v62  ;;  %v487_v16 = vmul.f32 %v1974_v60, %v2525_v39  ;;  %v618_v29 = vmax.f32 %v554_v5, 0.0 }
  0xee   :  { %1230 = vmatmul.mubr.msk.bf16.gmra.mrb[16].mxu0 %vm82_vm0, %v637_v37  ;;  %1262 = vmatmul.mubr.msk.bf16.gmra.mrb[16].mxu1 %vm82_vm0, %v653_v6  ;;  %v619_v21 = vmax.f32 %v555_v30, 0.0  ;;  %v525_v15 = vadd.f32 %v1990_v41, %v455_v25  ;;  %v456_v19 = vmul.f32 %v1288_v63, %v1974_v60  ;;  %v457_v61 = vmul.f32 %v1289_v51, %v1974_v60  ;;  %v1292_v6 = vld [vmem:[%s2471_s0 + $0xf0] sm:$0xff] }
  0xef   :  { %1233 = vmatprep.mubr.msk.bf16.mxu0 %vm82_vm0, %v638_v56  ;;  %1265 = vmatprep.mubr.msk.bf16.mxu1 %vm82_vm0, %v654_v46  ;;  %v588_v62 = vmax.f32 %v524_v49, 0.0  ;;  %v556_v26 = vadd.f32 %v1990_v41, %v486_v35  ;;  %v557_v38 = vadd.f32 %v1990_v41, %v487_v16  ;;  %v639_v33 = vpack.c.bf16 %v587_v22, %v586_v13 }
  0xf0   :  { %v589_v20 = vmax.f32 %v525_v15, 0.0  ;;  %v526_v28 = vadd.f32 %v1990_v41, %v456_v19  ;;  %v488_v31 = vmul.f32 %v1974_v60, %v2526_v42  ;;  %v527_v27 = vadd.f32 %v1990_v41, %v457_v61 }
  0xf1   :  { %v620_v48 = vmax.f32 %v556_v26, 0.0  ;;  %v621_v45 = vmax.f32 %v557_v38, 0.0  ;;  %v489_v52 = vmul.f32 %v1974_v60, %v2527_v53  ;;  %v655_v55 = vpack.c.bf16 %v619_v21, %v618_v29 }
  0xf2   :  { %v640_v0 = vpack.c.bf16 %v589_v20, %v588_v62  ;;  %v558_v36 = vadd.f32 %v1990_v41, %v488_v31  ;;  %v458_v14 = vmul.f32 %v1290_v1, %v1974_v60  ;;  %v590_v34 = vmax.f32 %v526_v28, 0.0 }
  0xf3   :  { %v656_v32 = vpack.c.bf16 %v621_v45, %v620_v48  ;;  %v559_v9 = vadd.f32 %v1990_v41, %v489_v52  ;;  %v459_v37 = vmul.f32 %v1291_v54, %v1974_v60  ;;  %v591_v23 = vmax.f32 %v527_v27, 0.0 }
  0xf4   :  { %v528_v12 = vadd.f32 %v1990_v41, %v458_v14  ;;  %v490_v24 = vmul.f32 %v1974_v60, %v2528_v11  ;;  %v491_v3 = vmul.f32 %v1974_v60, %v2529_v2  ;;  %v622_v50 = vmax.f32 %v558_v36, 0.0 }
  0xf5   :  { %v623_v47 = vmax.f32 %v559_v9, 0.0  ;;  %v529_v4 = vadd.f32 %v1990_v41, %v459_v37  ;;  %v460_v57 = vmul.f32 %v1292_v6, %v1974_v60  ;;  %v461_v17 = vmul.f32 %v1293_v7, %v1974_v60 }
  0xf6   :  { %1234 = vmatmul.mubr.msk.bf16.gmra.mrb[20].mxu0 %vm82_vm0, %v639_v33  ;;  %1266 = vmatmul.mubr.msk.bf16.gmra.mrb[20].mxu1 %vm82_vm0, %v655_v55  ;;  %v560_v40 = vadd.f32 %v1990_v41, %v490_v24  ;;  %v561_v18 = vadd.f32 %v1990_v41, %v491_v3  ;;  %v592_v43 = vmax.f32 %v528_v12, 0.0  ;;  %v492_v56 = vmul.f32 %v1974_v60, %v2530_v58 }
  0xf7   :  { %1237 = vmatprep.mubr.msk.bf16.mxu0 %vm82_vm0, %v640_v0  ;;  %1269 = vmatprep.mubr.msk.bf16.mxu1 %vm82_vm0, %v656_v32  ;;  %v593_v10 = vmax.f32 %v529_v4, 0.0  ;;  %v493_v59 = vmul.f32 %v1974_v60, %v2531_v8  ;;  %v641_v46 = vpack.c.bf16 %v591_v23, %v590_v34  ;;  %v657_v22 = vpack.c.bf16 %v623_v47, %v622_v50 }
  0xf8   :  { %v624_v13 = vmax.f32 %v560_v40, 0.0  ;;  %v625_v5 = vmax.f32 %v561_v18, 0.0  ;;  %v530_v30 = vadd.f32 %v1990_v41, %v460_v57  ;;  %v531_v44 = vadd.f32 %v1990_v41, %v461_v17 }
  0xf9   :  { %v562_v25 = vadd.f32 %v1990_v41, %v492_v56  ;;  %v563_v49 = vadd.f32 %v1990_v41, %v493_v59  ;;  %v642_v35 = vpack.c.bf16 %v593_v10, %v592_v43 }
  0xfa   :  { %v658_v39 = vpack.c.bf16 %v625_v5, %v624_v13  ;;  %v594_v16 = vmax.f32 %v530_v30, 0.0  ;;  %v595_v29 = vmax.f32 %v531_v44, 0.0 }
  0xfb   :  { %v626_v21 = vmax.f32 %v562_v25, 0.0  ;;  %v627_v60 = vmax.f32 %v563_v49, 0.0 }
  0xfc   :  { %v643_v15 = vpack.c.bf16 %v595_v29, %v594_v16 }
  0xfd   :  { %v659_v63 = vpack.c.bf16 %v627_v60, %v626_v21 }
  0xfe   :  { %1238 = vmatmul.mubr.msk.bf16.gmra.mrb[24].mxu0 %vm82_vm0, %v641_v46  ;;  %1270 = vmatmul.mubr.msk.bf16.gmra.mrb[24].mxu1 %vm82_vm0, %v657_v22 }
  0xff   :  { %1241 = vmatprep.mubr.msk.bf16.mxu0 %vm82_vm0, %v642_v35  ;;  %1273 = vmatprep.mubr.msk.bf16.mxu1 %vm82_vm0, %v658_v39 }
 0x106   :  { %1242 = vmatmul.mubr.msk.bf16.gmra.mrb[28].mxu0 %vm82_vm0, %v643_v15  ;;  %1274 = vmatmul.mubr.msk.bf16.gmra.mrb[28].mxu1 %vm82_vm0, %v659_v63 }
 0x1a1   :  { %v1215_v41 = vpop.f32.mrb[0].mxu0  ;;  %v1247_v19 = vpop.f32.mrb[0].mxu1 }
 0x1a2   :  { %1071 = vst.msk [vmem:[%s2474_s4 + $0x10] sm:$0xff] %vm82_vm0, %v1215_v41  ;;  %1103 = vst.msk [vmem:[%s2474_s4 + $0x110] sm:$0xff] %vm82_vm0, %v1247_v19  ;;  %v814_v62 = vpop.f32.mrb[1].mxu0  ;;  %v942_v26 = vpop.f32.mrb[1].mxu1 }
 0x1a3   :  { %1069 = vst.msk [vmem:[%s2474_s4] sm:$0xff] %vm82_vm0, %v814_v62  ;;  %1101 = vst.msk [vmem:[%s2474_s4 + $0x100] sm:$0xff] %vm82_vm0, %v942_v26  ;;  %v1216_v38 = vpop.f32.mrb[2].mxu0  ;;  %v1248_v51 = vpop.f32.mrb[2].mxu1 }
 0x1a4   :  { %1072 = vst.msk [vmem:[%s2474_s4 + $0x18] sm:$0xff] %vm82_vm0, %v1216_v38  ;;  %1104 = vst.msk [vmem:[%s2474_s4 + $0x118] sm:$0xff] %vm82_vm0, %v1248_v51  ;;  %v817_v61 = vpop.f32.mrb[3].mxu0  ;;  %v945_v33 = vpop.f32.mrb[3].mxu1 }
 0x1a5   :  { %1070 = vst.msk [vmem:[%s2474_s4 + $0x8] sm:$0xff] %vm82_vm0, %v817_v61  ;;  %1102 = vst.msk [vmem:[%s2474_s4 + $0x108] sm:$0xff] %vm82_vm0, %v945_v33 }
 0x1a9   :  { %v1219_v20 = vpop.f32.mrb[4].mxu0  ;;  %v1251_v28 = vpop.f32.mrb[4].mxu1 }
 0x1aa   :  { %1075 = vst.msk [vmem:[%s2474_s4 + $0x30] sm:$0xff] %vm82_vm0, %v1219_v20  ;;  %1107 = vst.msk [vmem:[%s2474_s4 + $0x130] sm:$0xff] %vm82_vm0, %v1251_v28  ;;  %v830_v42 = vpop.f32.mrb[5].mxu0  ;;  %v958_v31 = vpop.f32.mrb[5].mxu1 }
 0x1ab   :  { %1073 = vst.msk [vmem:[%s2474_s4 + $0x20] sm:$0xff] %vm82_vm0, %v830_v42  ;;  %1105 = vst.msk [vmem:[%s2474_s4 + $0x120] sm:$0xff] %vm82_vm0, %v958_v31  ;;  %v1220_v48 = vpop.f32.mrb[6].mxu0  ;;  %v1252_v45 = vpop.f32.mrb[6].mxu1 }
 0x1ac   :  { %1076 = vst.msk [vmem:[%s2474_s4 + $0x38] sm:$0xff] %vm82_vm0, %v1220_v48  ;;  %1108 = vst.msk [vmem:[%s2474_s4 + $0x138] sm:$0xff] %vm82_vm0, %v1252_v45  ;;  %v833_v27 = vpop.f32.mrb[7].mxu0  ;;  %v961_v53 = vpop.f32.mrb[7].mxu1 }
 0x1ad   :  { %1074 = vst.msk [vmem:[%s2474_s4 + $0x28] sm:$0xff] %vm82_vm0, %v833_v27  ;;  %1106 = vst.msk [vmem:[%s2474_s4 + $0x128] sm:$0xff] %vm82_vm0, %v961_v53 }
 0x1b1   :  { %v1223_v52 = vpop.f32.mrb[8].mxu0  ;;  %v1255_v55 = vpop.f32.mrb[8].mxu1 }
 0x1b2   :  { %1079 = vst.msk [vmem:[%s2474_s4 + $0x50] sm:$0xff] %vm82_vm0, %v1223_v52  ;;  %1111 = vst.msk [vmem:[%s2474_s4 + $0x150] sm:$0xff] %vm82_vm0, %v1255_v55  ;;  %v846_v0 = vpop.f32.mrb[9].mxu0  ;;  %v974_v36 = vpop.f32.mrb[9].mxu1 }
 0x1b3   :  { %1077 = vst.msk [vmem:[%s2474_s4 + $0x40] sm:$0xff] %vm82_vm0, %v846_v0  ;;  %1109 = vst.msk [vmem:[%s2474_s4 + $0x140] sm:$0xff] %vm82_vm0, %v974_v36  ;;  %v1224_v1 = vpop.f32.mrb[10].mxu0  ;;  %v1256_v14 = vpop.f32.mrb[10].mxu1 }
 0x1b4   :  { %1080 = vst.msk [vmem:[%s2474_s4 + $0x58] sm:$0xff] %vm82_vm0, %v1224_v1  ;;  %1112 = vst.msk [vmem:[%s2474_s4 + $0x158] sm:$0xff] %vm82_vm0, %v1256_v14  ;;  %v849_v32 = vpop.f32.mrb[11].mxu0  ;;  %v977_v34 = vpop.f32.mrb[11].mxu1 }
 0x1b5   :  { %1078 = vst.msk [vmem:[%s2474_s4 + $0x48] sm:$0xff] %vm82_vm0, %v849_v32  ;;  %1110 = vst.msk [vmem:[%s2474_s4 + $0x148] sm:$0xff] %vm82_vm0, %v977_v34 }
 0x1b9   :  { %v1227_v9 = vpop.f32.mrb[12].mxu0  ;;  %v1259_v54 = vpop.f32.mrb[12].mxu1 }
 0x1ba   :  { %1083 = vst.msk [vmem:[%s2474_s4 + $0x70] sm:$0xff] %vm82_vm0, %v1227_v9  ;;  %1115 = vst.msk [vmem:[%s2474_s4 + $0x170] sm:$0xff] %vm82_vm0, %v1259_v54  ;;  %v862_v37 = vpop.f32.mrb[13].mxu0  ;;  %v990_v23 = vpop.f32.mrb[13].mxu1 }
 0x1bb   :  { %1081 = vst.msk [vmem:[%s2474_s4 + $0x60] sm:$0xff] %vm82_vm0, %v862_v37  ;;  %1113 = vst.msk [vmem:[%s2474_s4 + $0x160] sm:$0xff] %vm82_vm0, %v990_v23  ;;  %v1228_v12 = vpop.f32.mrb[14].mxu0  ;;  %v1260_v11 = vpop.f32.mrb[14].mxu1 }
 0x1bc   :  { %1084 = vst.msk [vmem:[%s2474_s4 + $0x78] sm:$0xff] %vm82_vm0, %v1228_v12  ;;  %1116 = vst.msk [vmem:[%s2474_s4 + $0x178] sm:$0xff] %vm82_vm0, %v1260_v11  ;;  %v865_v24 = vpop.f32.mrb[15].mxu0  ;;  %v993_v2 = vpop.f32.mrb[15].mxu1 }
 0x1bd   :  { %1082 = vst.msk [vmem:[%s2474_s4 + $0x68] sm:$0xff] %vm82_vm0, %v865_v24  ;;  %1114 = vst.msk [vmem:[%s2474_s4 + $0x168] sm:$0xff] %vm82_vm0, %v993_v2 }
 0x1c1   :  { %v1231_v3 = vpop.f32.mrb[16].mxu0  ;;  %v1263_v50 = vpop.f32.mrb[16].mxu1 }
 0x1c2   :  { %1087 = vst.msk [vmem:[%s2474_s4 + $0x90] sm:$0xff] %vm82_vm0, %v1231_v3  ;;  %1119 = vst.msk [vmem:[%s2474_s4 + $0x190] sm:$0xff] %vm82_vm0, %v1263_v50  ;;  %v878_v47 = vpop.f32.mrb[17].mxu0  ;;  %v1006_v4 = vpop.f32.mrb[17].mxu1 }
 0x1c3   :  { %1085 = vst.msk [vmem:[%s2474_s4 + $0x80] sm:$0xff] %vm82_vm0, %v878_v47  ;;  %1117 = vst.msk [vmem:[%s2474_s4 + $0x180] sm:$0xff] %vm82_vm0, %v1006_v4  ;;  %v1232_v6 = vpop.f32.mrb[18].mxu0  ;;  %v1264_v57 = vpop.f32.mrb[18].mxu1 }
 0x1c4   :  { %1088 = vst.msk [vmem:[%s2474_s4 + $0x98] sm:$0xff] %vm82_vm0, %v1232_v6  ;;  %1120 = vst.msk [vmem:[%s2474_s4 + $0x198] sm:$0xff] %vm82_vm0, %v1264_v57  ;;  %v881_v40 = vpop.f32.mrb[19].mxu0  ;;  %v1009_v18 = vpop.f32.mrb[19].mxu1 }
 0x1c5   :  { %1086 = vst.msk [vmem:[%s2474_s4 + $0x88] sm:$0xff] %vm82_vm0, %v881_v40  ;;  %1118 = vst.msk [vmem:[%s2474_s4 + $0x188] sm:$0xff] %vm82_vm0, %v1009_v18 }
 0x1c9   :  { %v1235_v7 = vpop.f32.mrb[20].mxu0  ;;  %v1267_v17 = vpop.f32.mrb[20].mxu1 }
 0x1ca   :  { %1091 = vst.msk [vmem:[%s2474_s4 + $0xb0] sm:$0xff] %vm82_vm0, %v1235_v7  ;;  %1123 = vst.msk [vmem:[%s2474_s4 + $0x1b0] sm:$0xff] %vm82_vm0, %v1267_v17  ;;  %v894_v43 = vpop.f32.mrb[21].mxu0  ;;  %v1022_v10 = vpop.f32.mrb[21].mxu1 }
 0x1cb   :  { %1089 = vst.msk [vmem:[%s2474_s4 + $0xa0] sm:$0xff] %vm82_vm0, %v894_v43  ;;  %1121 = vst.msk [vmem:[%s2474_s4 + $0x1a0] sm:$0xff] %vm82_vm0, %v1022_v10  ;;  %v1236_v58 = vpop.f32.mrb[22].mxu0  ;;  %v1268_v56 = vpop.f32.mrb[22].mxu1 }
 0x1cc   :  { %1092 = vst.msk [vmem:[%s2474_s4 + $0xb8] sm:$0xff] %vm82_vm0, %v1236_v58  ;;  %1124 = vst.msk [vmem:[%s2474_s4 + $0x1b8] sm:$0xff] %vm82_vm0, %v1268_v56  ;;  %v897_v13 = vpop.f32.mrb[23].mxu0  ;;  %v1025_v5 = vpop.f32.mrb[23].mxu1 }
 0x1cd   :  { %1090 = vst.msk [vmem:[%s2474_s4 + $0xa8] sm:$0xff] %vm82_vm0, %v897_v13  ;;  %1122 = vst.msk [vmem:[%s2474_s4 + $0x1a8] sm:$0xff] %vm82_vm0, %v1025_v5 }
 0x1d1   :  { %v1239_v8 = vpop.f32.mrb[24].mxu0  ;;  %v1271_v59 = vpop.f32.mrb[24].mxu1 }
 0x1d2   :  { %1095 = vst.msk [vmem:[%s2474_s4 + $0xd0] sm:$0xff] %vm82_vm0, %v1239_v8  ;;  %1127 = vst.msk [vmem:[%s2474_s4 + $0x1d0] sm:$0xff] %vm82_vm0, %v1271_v59  ;;  %v910_v46 = vpop.f32.mrb[25].mxu0  ;;  %v1038_v22 = vpop.f32.mrb[25].mxu1 }
 0x1d3   :  { %1093 = vst.msk [vmem:[%s2474_s4 + $0xc0] sm:$0xff] %vm82_vm0, %v910_v46  ;;  %1125 = vst.msk [vmem:[%s2474_s4 + $0x1c0] sm:$0xff] %vm82_vm0, %v1038_v22  ;;  %v1240_v30 = vpop.f32.mrb[26].mxu0  ;;  %v1272_v44 = vpop.f32.mrb[26].mxu1 }
 0x1d4   :  { %1096 = vst.msk [vmem:[%s2474_s4 + $0xd8] sm:$0xff] %vm82_vm0, %v1240_v30  ;;  %1128 = vst.msk [vmem:[%s2474_s4 + $0x1d8] sm:$0xff] %vm82_vm0, %v1272_v44  ;;  %v913_v25 = vpop.f32.mrb[27].mxu0  ;;  %v1041_v49 = vpop.f32.mrb[27].mxu1 }
 0x1d5   :  { %1094 = vst.msk [vmem:[%s2474_s4 + $0xc8] sm:$0xff] %vm82_vm0, %v913_v25  ;;  %1126 = vst.msk [vmem:[%s2474_s4 + $0x1c8] sm:$0xff] %vm82_vm0, %v1041_v49 }
 0x1d9   :  { %v1243_v35 = vpop.f32.mrb[28].mxu0  ;;  %v1275_v39 = vpop.f32.mrb[28].mxu1 }
 0x1da   :  { %1099 = vst.msk [vmem:[%s2474_s4 + $0xf0] sm:$0xff] %vm82_vm0, %v1243_v35  ;;  %1131 = vst.msk [vmem:[%s2474_s4 + $0x1f0] sm:$0xff] %vm82_vm0, %v1275_v39  ;;  %v926_v16 = vpop.f32.mrb[29].mxu0  ;;  %v1054_v29 = vpop.f32.mrb[29].mxu1 }
 0x1db   :  { %1097 = vst.msk [vmem:[%s2474_s4 + $0xe0] sm:$0xff] %vm82_vm0, %v926_v16  ;;  %1129 = vst.msk [vmem:[%s2474_s4 + $0x1e0] sm:$0xff] %vm82_vm0, %v1054_v29  ;;  %v1244_v21 = vpop.f32.mrb[30].mxu0  ;;  %v1276_v60 = vpop.f32.mrb[30].mxu1 }
 0x1dc   :  { %1100 = vst.msk [vmem:[%s2474_s4 + $0xf8] sm:$0xff] %vm82_vm0, %v1244_v21  ;;  %1132 = vst.msk [vmem:[%s2474_s4 + $0x1f8] sm:$0xff] %vm82_vm0, %v1276_v60  ;;  %v929_v15 = vpop.f32.mrb[31].mxu0  ;;  %v1057_v63 = vpop.f32.mrb[31].mxu1 }
 0x1dd   :  { %1098 = vst.msk [vmem:[%s2474_s4 + $0xe8] sm:$0xff] %vm82_vm0, %v929_v15  ;;  %1130 = vst.msk [vmem:[%s2474_s4 + $0x1e8] sm:$0xff] %vm82_vm0, %v1057_v63 }

// kernel: tile.8
= control target key start
LH: loop header
LB: loop body
LE: loop exit
PB: predicated region body
PF: predicated region fallthrough
CT: control target
= control target key end

     0   :  { %s22_s0 = inlined_call_operand.vmem [shape: f32[3], index: 0, kind: input, shape index: {}]   ;;  %s23_s1 = inlined_call_operand.vmem [shape: f32[2,3], index: 1, kind: output, shape index: {}]  }
   0x1   :  { %v4_v0 = vld [vmem:[%s22_s0] ss:$0 sm:$0xff] }
   0x2   :  { %5 = vst [vmem:[%s23_s1] sm:$0x3] %v4_v0 }

// kernel: tile.0
= control target key start
LH: loop header
LB: loop body
LE: loop exit
PB: predicated region body
PF: predicated region fallthrough
CT: control target
= control target key end

     0   :  { %vm7_vm0 = vcmask 7168   ;;  %s26_s10 = smov 126   ;;  %s49_s0 = inlined_call_operand.vmem [shape: f32[2,3], index: 0, kind: input, shape index: {}]   ;;  %s50_s1 = inlined_call_operand.vmem [shape: f32[6,1], index: 1, kind: output, shape index: {}]  }
   0x1   :  { %v4_v0 = vld [vmem:[%s49_s0] sm:$0x3]  ;;  %s25_s0 = smov 127  }
   0x2   :  { %5 = vst [vmem:[#allocation0] sm:$0x3] %v4_v0 }
   0x9   :  { %v9_v1 = vld [vmem:[#allocation0] sm:$0x3]  }
   0xa   :  { %v6_v2 = vld [vmem:[#allocation0] sm:$0x3]   ;;  %10 = vrot.lane.b32.xlu0 %v9_v1, %s25_s0 }
   0xb   :  { %8 = vst.msk [vmem:[%s50_s1] ss:$3 sm:$0x3] %vm7_vm0, %v6_v2   ;;  %v15_v3 = vld [vmem:[#allocation0] sm:$0x3]  }
   0xe   :  { %16 = vrot.lane.b32.xlu0 %v15_v3, %s26_s10 }
  0x7c   :  { %v11_v4 = vpop.permute.xlu0 %10  }
  0x7d   :  { %21 = vst.msk [vmem:[%s50_s1 + $0x1] ss:$3 sm:$0x3] %vm7_vm0, %v11_v4  }
  0x80   :  { %v17_v5 = vpop.permute.xlu0 %16  }
  0x81   :  { %22 = vst.msk [vmem:[%s50_s1 + $0x2] ss:$3 sm:$0x3] %vm7_vm0, %v17_v5  }

// kernel: generator_forward.9
= control target key start
LH: loop header
LB: loop body
LE: loop exit
PB: predicated region body
PF: predicated region fallthrough
CT: control target
= control target key end

     0   :  { %v71_v0 = vmov 0   ;;  %s138_s1 = inlined_call_operand.vmem [shape: f32[6,1], index: 1, kind: input, shape index: {}]   ;;  %s139_s0 = inlined_call_operand.vmem [shape: f32[6,1024], index: 0, kind: input, shape index: {}]   ;;  %s140_s2 = inlined_call_operand.vmem [shape: f32[6,1024], index: 2, kind: output, shape index: {}]  }
   0x1   :  { %54 = vset.pattern.permute.xlu0 %v71_v0  ;;  %v19_v1 = vld [vmem:[%s138_s1] sm:$0xff]  ;;  %v12_v3 = vld [vmem:[%s139_s0 + $0x8] sm:$0xff]  ;;  %v13_v4 = vld [vmem:[%s139_s0 + $0x10] sm:$0xff] }
   0x2   :  { %22 = vperm.xlu0 %54, %v19_v1   ;;  %v11_v2 = vld [vmem:[%s139_s0] sm:$0xff]  ;;  %v14_v5 = vld [vmem:[%s139_s0 + $0x18] sm:$0xff]  ;;  %v16_v8 = vld [vmem:[%s139_s0 + $0x28] sm:$0xff] }
   0x3   :  { %v15_v7 = vld [vmem:[%s139_s0 + $0x20] sm:$0xff]  ;;  %v17_v12 = vld [vmem:[%s139_s0 + $0x30] sm:$0xff]  ;;  %v18_v14 = vld [vmem:[%s139_s0 + $0x38] sm:$0xff] }
  0x81   :  { %v23_v6 = vpop.permute.xlu0 %22 }
  0x82   :  { %v25_v9 = vadd.f32 %v23_v6, %v11_v2  ;;  %v26_v10 = vadd.f32 %v23_v6, %v12_v3  ;;  %v27_v11 = vadd.f32 %v23_v6, %v13_v4  ;;  %v28_v13 = vadd.f32 %v23_v6, %v14_v5 }
  0x83   :  { %v29_v15 = vadd.f32 %v23_v6, %v15_v7  ;;  %v30_v16 = vadd.f32 %v23_v6, %v16_v8  ;;  %v31_v17 = vadd.f32 %v23_v6, %v17_v12  ;;  %v32_v18 = vadd.f32 %v23_v6, %v18_v14 }
  0x84   :  { %55 = vtanh.f32 %v25_v9 }
  0x85   :  { %57 = vtanh.f32 %v26_v10 }
  0x86   :  { %59 = vtanh.f32 %v27_v11 }
  0x87   :  { %61 = vtanh.f32 %v28_v13 }
  0x88   :  { %63 = vtanh.f32 %v29_v15 }
  0x89   :  { %65 = vtanh.f32 %v30_v16 }
  0x8a   :  { %67 = vtanh.f32 %v31_v17 }
  0x8b   :  { %69 = vtanh.f32 %v32_v18 }
  0x8e   :  { %v56_v19 = vpop.eup %55 }
  0x8f   :  { %v58_v20 = vpop.eup %57  ;;  %41 = vst [vmem:[%s140_s2] sm:$0xff] %v56_v19 }
  0x90   :  { %v60_v21 = vpop.eup %59  ;;  %42 = vst [vmem:[%s140_s2 + $0x8] sm:$0xff] %v58_v20 }
  0x91   :  { %v62_v22 = vpop.eup %61  ;;  %43 = vst [vmem:[%s140_s2 + $0x10] sm:$0xff] %v60_v21 }
  0x92   :  { %v64_v23 = vpop.eup %63  ;;  %44 = vst [vmem:[%s140_s2 + $0x18] sm:$0xff] %v62_v22 }
  0x93   :  { %v66_v24 = vpop.eup %65  ;;  %45 = vst [vmem:[%s140_s2 + $0x20] sm:$0xff] %v64_v23 }
  0x94   :  { %v68_v25 = vpop.eup %67  ;;  %46 = vst [vmem:[%s140_s2 + $0x28] sm:$0xff] %v66_v24 }
  0x95   :  { %v70_v26 = vpop.eup %69  ;;  %47 = vst [vmem:[%s140_s2 + $0x30] sm:$0xff] %v68_v25 }
  0x96   :  { %48 = vst [vmem:[%s140_s2 + $0x38] sm:$0xff] %v70_v26 }

</bundles_post_ra>
